<compile_context>
chip_gen: v7x
topology: tpu7x:2x2x1
jax: 0.10.0
libtpu: 0.0.40
codegen_flags: <defaults>
</compile_context>

<pallas_src>
import functools

import jax
import jax.numpy as jnp
from jax.experimental import pallas as pl
from jax.experimental.pallas import tpu as pltpu

_EPS = 1e-5


# ----------------------------------------------------------------------------
# Generation-aware VMEM budgeting
# ----------------------------------------------------------------------------
def _tpu_vmem_capacity_bytes():
    try:
        return int(pltpu.get_tpu_info().vmem_capacity_bytes)
    except Exception:
        return 64 * 1024 * 1024            # conservative fallback (v7x per-core)


def _vmem_limit_bytes():
    # ~82% of physical: ~100 MiB on v5e/v6e (128 MiB), ~52 MiB on v7x (64 MiB/TC).
    return int(min(_tpu_vmem_capacity_bytes() * 0.82, 100 * 1024 * 1024))


def _pick_tile_n(N, H, W, Cin, Cout, Csc, in_bytes, out_bytes,
                 weight_bytes, vmem_limit):
    """Largest divisor of N whose double-buffered per-step footprint fits the
    VMEM budget; prefers >= 2 grid steps so the 'parallel' axis can shard
    across both v7x TensorCores (no-op on single-core chips)."""
    rows = H * W
    per_img = (rows * Cin * in_bytes * 2             # input block, double buffered
               + rows * Cout * out_bytes * 2         # output block, double buffered
               + rows * Csc * 4 * 2                  # f32 shortcut block
               + (H + 2) * (W + 2) * Cin * 2         # padded bf16 scratch
               + rows * 9 * Cin * 2                  # im2col bf16 scratch
               + rows * max(Cin, Cout) * 4 * 3)      # f32 compute-temp headroom
    # weights are VMEM-resident (counted x2 for the default double buffer).
    # TODO(synk): pl.Buffered(1) on the constant-index weight specs would free
    # the redundant buffer (most relevant on v7x with wide layers).
    budget = max(int((vmem_limit - 2 * weight_bytes) * 0.5), per_img)
    fitting = [d for d in range(1, N + 1) if N % d == 0 and d * per_img <= budget]
    if not fitting:
        return 1
    multi = [d for d in fitting if N // d >= 2]
    return max(multi) if multi else max(fitting)


# ----------------------------------------------------------------------------
# Kernels
# ----------------------------------------------------------------------------
def _bn_stats_kernel(x_ref, o_ref):
    """Per-channel partial (sum, sumsq) of one (tm, C) row tile."""
    x = x_ref[...].astype(jnp.float32)
    s1 = jnp.sum(x, axis=0, keepdims=True)            # (1, C)
    s2 = jnp.sum(x * x, axis=0, keepdims=True)        # (1, C)
    o_ref[...] = jnp.concatenate([s1, s2], axis=0).reshape(1, 2, x.shape[1])


def _make_bnrelu_conv3_kernel(tile_n, H, W, Cin, Cout, *, emit_stats,
                              has_shortcut, has_proj, Csc):
    """Fused  BN(batch stats) -> ReLU -> Conv3x3(+bias) [-> +shortcut] kernel."""
    rows = tile_n * H * W

    def kernel(*refs):
        it = iter(refs)
        x_ref = next(it)                               # (tile_n, H, W, Cin)
        mu_ref = next(it)                              # (1, Cin)  batch mean
        rs_ref = next(it)                              # (1, Cin)  rsqrt(var+eps)
        w_ref = next(it)                               # (9*Cin, Cout) bf16 K-slab
        b_ref = next(it)                               # (1, Cout)
        sc_ref = next(it) if has_shortcut else None    # (tile_n, H, W, Csc)
        pw_ref = next(it) if has_proj else None        # (Csc, Cout) f32
        pb_ref = next(it) if has_proj else None        # (1, Cout)
        o_ref = next(it)                               # (tile_n, H, W, Cout)
        st_ref = next(it) if emit_stats else None      # (1, 2, Cout) partial stats
        pad_ref = next(it)                             # (tile_n, H+2, W+2, Cin) bf16
        col_ref = next(it)                             # (rows, 9*Cin) bf16 im2col

        # BatchNorm (batch statistics, no affine) + ReLU, in f32.
        xa = x_ref[...].astype(jnp.float32).reshape(rows, Cin)
        a = jnp.maximum((xa - mu_ref[...]) * rs_ref[...], 0.0)

        # Zero ONLY the 1-pixel halo: the interior is fully overwritten every
        # step, so re-zeroing the whole scratch would just burn the scarce
        # vector-store slot.  (Padding zeros are applied AFTER bn+relu, as in
        # PyTorch's SAME padding.)
        zr = jnp.zeros((tile_n, 1, W + 2, Cin), pad_ref.dtype)
        zc = jnp.zeros((tile_n, H + 2, 1, Cin), pad_ref.dtype)
        pad_ref[:, 0:1, :, :] = zr
        pad_ref[:, H + 1:H + 2, :, :] = zr
        pad_ref[:, :, 0:1, :] = zc
        pad_ref[:, :, W + 1:W + 2, :] = zc
        pad_ref[:, 1:H + 1, 1:W + 1, :] = (
            a.astype(pad_ref.dtype).reshape(tile_n, H, W, Cin))

        # im2col: pack the 9 shifted windows as contiguous K slabs so the conv
        # is a single MXU matmul with contraction depth 9*Cin (instead of nine
        # K=Cin matmuls chained with f32 VPU adds).
        for t in range(9):
            dy, dx = t // 3, t % 3
            col_ref[:, t * Cin:(t + 1) * Cin] = (
                pad_ref[:, dy:dy + H, dx:dx + W, :].reshape(rows, Cin))

        y = jnp.dot(col_ref[...], w_ref[...],
                    preferred_element_type=jnp.float32) + b_ref[...]

        # Fused residual add: identity, or 1x1-conv projection kept in f32 so
        # the residual path does not lose precision.
        if has_shortcut:
            if has_proj:
                s = sc_ref[...].astype(jnp.float32).reshape(rows, Csc)
                y = y + jnp.dot(s, pw_ref[...],
                                preferred_element_type=jnp.float32) + pb_ref[...]
            else:
                y = y + sc_ref[...].astype(jnp.float32).reshape(rows, Cout)

        yo = y.astype(o_ref.dtype)
        o_ref[...] = yo.reshape(tile_n, H, W, Cout)

        # Per-tile partial (sum, sumsq) of the *stored* activation (so bn2
        # normalizes exactly what conv2 will read back), feeding the next BN.
        if emit_stats:
            yf = yo.astype(jnp.float32)
            s1 = jnp.sum(yf, axis=0, keepdims=True)
            s2 = jnp.sum(yf * yf, axis=0, keepdims=True)
            st_ref[...] = jnp.concatenate([s1, s2], axis=0).reshape(1, 2, Cout)

    return kernel


# ----------------------------------------------------------------------------
# pallas_call wrappers
# ----------------------------------------------------------------------------
def _stats_tile_rows(M, target=2048):
    """Row-tile for the pure-bandwidth stats pass, independent of the conv tile."""
    if M <= target:
        return M
    best = None
    for d in range(8, target + 1, 8):
        if M % d == 0:
            best = d
    return best if best is not None else M


def _bn_stats(x_nhwc, vmem_limit):
    """Partial per-channel (sum, sumsq) over row tiles of an NHWC tensor."""
    N, H, W, C = x_nhwc.shape
    M = N * H * W
    tm = _stats_tile_rows(M)
    n_t = M // tm
    x2 = x_nhwc.reshape(M, C)
    return pl.pallas_call(
        _bn_stats_kernel,
        out_shape=jax.ShapeDtypeStruct((n_t, 2, C), jnp.float32),
        grid=(n_t,),
        in_specs=[pl.BlockSpec((tm, C), lambda i: (i, 0))],
        out_specs=pl.BlockSpec((1, 2, C), lambda i: (i, 0, 0)),
        compiler_params=pltpu.CompilerParams(
            dimension_semantics=("parallel",),
            vmem_limit_bytes=vmem_limit),
        cost_estimate=pl.CostEstimate(
            flops=int(3 * M * C), transcendentals=0,
            bytes_accessed=int(M * C * x2.dtype.itemsize + n_t * 2 * C * 4)),
    )(x2)


def _bn_finalize(parts, count, eps=_EPS):
    """Reduce per-tile partials -> (mean, rsqrt(var+eps)), each (1, C) f32."""
    s = jnp.sum(parts, axis=0)                         # (2, C)
    mean = s[0] / count
    var = jnp.maximum(s[1] / count - mean * mean, 0.0)  # biased var (torch BN)
    rstd = jax.lax.rsqrt(var + eps)
    return mean.reshape(1, -1), rstd.reshape(1, -1)


def _bnrelu_conv3(x, mu, rs, w_slab, b, *, tile_n, out_dtype=jnp.float32,
                  emit_stats=False, shortcut=None, proj_w=None, proj_b=None,
                  vmem_limit=None):
    """y = conv3x3(relu((x - mu) * rs)) + b  [+ shortcut]; optionally emits
    per-tile (sum, sumsq) partial stats of y as a second output."""
    if vmem_limit is None:
        vmem_limit = _vmem_limit_bytes()
    N, H, W, Cin = x.shape
    Cout = w_slab.shape[-1]
    assert w_slab.shape[0] == 9 * Cin
    assert N % tile_n == 0
    n_t = N // tile_n
    rows_total = N * H * W

    has_sc = shortcut is not None
    has_proj = proj_w is not None
    Csc = shortcut.shape[-1] if has_sc else 0

    kernel = _make_bnrelu_conv3_kernel(tile_n, H, W, Cin, Cout,
                                       emit_stats=emit_stats,
                                       has_shortcut=has_sc, has_proj=has_proj,
                                       Csc=Csc)

    in_specs = [
        pl.BlockSpec((tile_n, H, W, Cin), lambda i: (i, 0, 0, 0)),
        pl.BlockSpec((1, Cin), lambda i: (0, 0)),
        pl.BlockSpec((1, Cin), lambda i: (0, 0)),
        # constant index_map -> weights stay VMEM-resident across the grid
        pl.BlockSpec((9 * Cin, Cout), lambda i: (0, 0)),
        pl.BlockSpec((1, Cout), lambda i: (0, 0)),
    ]
    args = [x, mu, rs, w_slab, b]
    if has_sc:
        in_specs.append(pl.BlockSpec((tile_n, H, W, Csc), lambda i: (i, 0, 0, 0)))
        args.append(shortcut)
        if has_proj:
            in_specs += [pl.BlockSpec((Csc, Cout), lambda i: (0, 0)),
                         pl.BlockSpec((1, Cout), lambda i: (0, 0))]
            args += [proj_w, proj_b]

    out_shape = [jax.ShapeDtypeStruct((N, H, W, Cout), out_dtype)]
    out_specs = [pl.BlockSpec((tile_n, H, W, Cout), lambda i: (i, 0, 0, 0))]
    if emit_stats:
        out_shape.append(jax.ShapeDtypeStruct((n_t, 2, Cout), jnp.float32))
        out_specs.append(pl.BlockSpec((1, 2, Cout), lambda i: (i, 0, 0)))

    flops = (2 * rows_total * 9 * Cin * Cout
             + (2 * rows_total * Csc * Cout if has_proj else 0))
    bytes_accessed = (x.size * x.dtype.itemsize
                      + rows_total * Cout * jnp.dtype(out_dtype).itemsize
                      + w_slab.size * w_slab.dtype.itemsize
                      + (shortcut.size * shortcut.dtype.itemsize if has_sc else 0))

    outs = pl.pallas_call(
        kernel,
        out_shape=out_shape,
        grid=(n_t,),
        in_specs=in_specs,
        out_specs=out_specs,
        scratch_shapes=[
            pltpu.VMEM((tile_n, H + 2, W + 2, Cin), jnp.bfloat16),   # padded act
            pltpu.VMEM((tile_n * H * W, 9 * Cin), jnp.bfloat16),     # im2col slab
        ],
        compiler_params=pltpu.CompilerParams(
            dimension_semantics=("parallel",),
            vmem_limit_bytes=vmem_limit),
        cost_estimate=pl.CostEstimate(flops=int(flops), transcendentals=0,
                                      bytes_accessed=int(bytes_accessed)),
    )(*args)

    if emit_stats:
        return outs[0], outs[1]
    return outs[0], None


# ----------------------------------------------------------------------------
# wide_basic forward (Pallas path) and parameter handling
# ----------------------------------------------------------------------------
def wide_basic_forward(x_nhwc, kp, *, stride=1, tile_n=None):
    """wide_basic forward; x is NHWC float32, returns NHWC float32."""
    if stride != 1:
        # TODO(synk): stride != 1 downsampling variant of wide_basic is not implemented.
        raise NotImplementedError("Pallas wide_basic path supports stride == 1 only")

    N, H, W, Cin = x_nhwc.shape
    Cout = kp["w1"].shape[-1]
    has_proj = "ws" in kp
    vmem_limit = _vmem_limit_bytes()

    if tile_n is None:
        t1 = _pick_tile_n(N, H, W, Cin, Cout, 0, 4, 2,
                          kp["w1"].size * 2 + kp["b1"].size * 4, vmem_limit)
        t2 = _pick_tile_n(N, H, W, Cout, Cout, Cin, 2, 4,
                          kp["w2"].size * 2 + kp["b2"].size * 4
                          + ((kp["ws"].size + kp["bs"].size) * 4 if has_proj else 0),
                          vmem_limit)
        tile_n = min(t1, t2)
    assert N % tile_n == 0

    count = N * H * W

    # bn1: two-pass batch statistics (bandwidth-sized tiled Pallas reduction).
    mu1, rs1 = _bn_finalize(_bn_stats(x_nhwc, vmem_limit), count)

    # conv1( relu(bn1(x)) ) + b1, fused; bf16 intermediate; bn2 partial stats
    # are emitted as a second output (computed under the MXU for free).
    h, parts2 = _bnrelu_conv3(x_nhwc, mu1, rs1, kp["w1"], kp["b1"],
                              tile_n=tile_n, out_dtype=jnp.bfloat16,
                              emit_stats=True, vmem_limit=vmem_limit)

    # TODO(synk): nn.Dropout training-mode RNG mask omitted; eval-mode identity used.

    mu2, rs2 = _bn_finalize(parts2, count)

    # conv2( relu(bn2(h)) ) + b2 + shortcut(x), residual fused into the kernel.
    out, _ = _bnrelu_conv3(h, mu2, rs2, kp["w2"], kp["b2"],
                           tile_n=tile_n, out_dtype=jnp.float32,
                           shortcut=x_nhwc,
                           proj_w=kp["ws"] if has_proj else None,
                           proj_b=kp["bs"] if has_proj else None,
                           vmem_limit=vmem_limit)
    return out


def wide_basic_forward_nchw(x_nchw, kp, *, stride=1, tile_n=None):
    """PyTorch-layout (NCHW) wrapper; in a full network keep everything NHWC
    and transpose only once at the model boundary."""
    x = jnp.transpose(x_nchw, (0, 2, 3, 1))            # NCHW -> NHWC
    out = wide_basic_forward(x, kp, stride=stride, tile_n=tile_n)
    return jnp.transpose(out, (0, 3, 1, 2))            # NHWC -> NCHW


def init_torch_params(key, in_planes, planes, stride=1):
    """PyTorch-layout parameters (OIHW weights, 1-D biases)."""
    ks = jax.random.split(key, 6)
    s = 0.1
    p = {
        "w1": s * jax.random.normal(ks[0], (planes, in_planes, 3, 3), jnp.float32),
        "b1": s * jax.random.normal(ks[1], (planes,), jnp.float32),
        "w2": s * jax.random.normal(ks[2], (planes, planes, 3, 3), jnp.float32),
        "b2": s * jax.random.normal(ks[3], (planes,), jnp.float32),
    }
    if stride != 1 or in_planes != planes:
        p["ws"] = s * jax.random.normal(ks[4], (planes, in_planes, 1, 1), jnp.float32)
        p["bs"] = s * jax.random.normal(ks[5], (planes,), jnp.float32)
    return p


def prepare_kernel_params(tp):
    """One-time re-layout: OIHW conv weights -> (9*Cin, Cout) bf16 K-slabs
    (K ordering matches the in-kernel im2col: k = (dy*3+dx)*Cin + c), biases
    -> (1, C), 1x1 projection kept f32 to preserve residual-path precision."""
    # TODO(synk): for real WRN widths, pad Cin/Cout to multiples of 128 (v5e) /
    # 256 (v6e/v7x) here for lane-dense stores and full MXU width.
    def conv3_to_slab(w_oihw):
        cout, cin = w_oihw.shape[0], w_oihw.shape[1]
        return (jnp.transpose(w_oihw, (2, 3, 1, 0))    # (kh, kw, Cin, Cout)
                .reshape(9 * cin, cout).astype(jnp.bfloat16))
    kp = {
        "w1": conv3_to_slab(tp["w1"]), "b1": tp["b1"].reshape(1, -1),
        "w2": conv3_to_slab(tp["w2"]), "b2": tp["b2"].reshape(1, -1),
    }
    if "ws" in tp:
        kp["ws"] = jnp.transpose(tp["ws"][:, :, 0, 0], (1, 0))   # (Cin, Cout) f32
        kp["bs"] = tp["bs"].reshape(1, -1)
    return kp


# ----------------------------------------------------------------------------
# Pure-JAX reference (PyTorch semantics) for correctness checking
# ----------------------------------------------------------------------------
def reference_forward(x_nchw, tp, stride=1, eps=_EPS):
    def bn(v):
        m = jnp.mean(v, axis=(0, 2, 3), keepdims=True)
        var = jnp.mean((v - m) ** 2, axis=(0, 2, 3), keepdims=True)
        return (v - m) * jax.lax.rsqrt(var + eps)

    def conv(v, w, b, s, pad):
        y = jax.lax.conv_general_dilated(
            v, w, window_strides=(s, s), padding=[(pad, pad), (pad, pad)],
            dimension_numbers=("NCHW", "OIHW", "NCHW"))
        return y + b.reshape(1, -1, 1, 1)

    out = conv(jax.nn.relu(bn(x_nchw)), tp["w1"], tp["b1"], 1, 1)
    out = conv(jax.nn.relu(bn(out)), tp["w2"], tp["b2"], stride, 1)
    sc = conv(x_nchw, tp["ws"], tp["bs"], stride, 0) if "ws" in tp else x_nchw
    return out + sc


if __name__ == "__main__":
    key = jax.random.PRNGKey(0)
    k_x, k_p = jax.random.split(key)

    N, in_planes, planes, H, W, stride = 2, 4, 8, 16, 16, 1
    x = jax.random.normal(k_x, (N, in_planes, H, W), jnp.float32)
    tparams = init_torch_params(k_p, in_planes, planes, stride)
    kparams = prepare_kernel_params(tparams)

    # tile_n=None -> generation-aware picker; with N=2 it keeps >=2 grid steps,
    # exercising the tiled/pipelined path and the cross-tile stat reduction.
    fwd = jax.jit(functools.partial(wide_basic_forward_nchw,
                                    stride=stride, tile_n=None))
    out = fwd(x, kparams)
    jax.block_until_ready(out)
    assert out.shape == (N, planes, H, W) and out.dtype == jnp.float32

    ref = reference_forward(x, tparams, stride=stride)
    err = float(jnp.max(jnp.abs(out - ref)))
    assert err < 1e-1, f"Pallas vs reference max abs error too large: {err}"
    print("KERNEL_OK")
</pallas_src>

<mosaic_0001>
module attributes {stable_mosaic.version = 11 : i64} {
  func.func @_bn_stats_kernel(%arg0: i32, %arg1: memref<512x4xf32, #tpu.memory_space<vmem>>, %arg2: memref<1x2x4xf32, #tpu.memory_space<vmem>>) attributes {dimension_semantics = [#tpu.dimension_semantics<parallel>], iteration_bounds = array<i64: 1>, scalar_prefetch = 0 : i64, scratch_operands = 0 : i64, tpu.core_type = #tpu.core_type<tc>, window_params = [{transform_indices = @transform_0, window_bounds = array<i64: 512, 4>}, {transform_indices = @transform_1, window_bounds = array<i64: 1, 2, 4>}]} {
    %c0 = arith.constant 0 : index
    %c0_0 = arith.constant 0 : index
    %0 = vector.load %arg1[%c0, %c0_0] : memref<512x4xf32, #tpu.memory_space<vmem>>, vector<512x4xf32>
    %cst = arith.constant dense<0.000000e+00> : vector<4xf32>
    %1 = vector.multi_reduction <add>, %0, %cst [0] : vector<512x4xf32> to vector<4xf32>
    %2 = vector.shape_cast %1 : vector<4xf32> to vector<1x4xf32>
    %3 = arith.mulf %0, %0 : vector<512x4xf32>
    %cst_1 = arith.constant dense<0.000000e+00> : vector<4xf32>
    %4 = vector.multi_reduction <add>, %3, %cst_1 [0] : vector<512x4xf32> to vector<4xf32>
    %5 = vector.shape_cast %4 : vector<4xf32> to vector<1x4xf32>
    %6 = tpu.concatenate %2, %5 in 0 : vector<1x4xf32>, vector<1x4xf32> -> vector<2x4xf32>
    %7 = vector.shape_cast %6 : vector<2x4xf32> to vector<1x2x4xf32>
    %c0_2 = arith.constant 0 : index
    %c0_3 = arith.constant 0 : index
    %c0_4 = arith.constant 0 : index
    %8 = vector.load %arg2[%c0_2, %c0_3, %c0_4] : memref<1x2x4xf32, #tpu.memory_space<vmem>>, vector<1x2x4xf32>
    tpu.vector_store %arg2[%c0_2, %c0_3, %c0_4], %7 {strides = array<i32>} : memref<1x2x4xf32, #tpu.memory_space<vmem>>, vector<1x2x4xf32>,
    return
  }
  func.func @transform_0(%arg0: i32) -> (i32, i32) {
    %c0_i32 = arith.constant 0 : i32
    %c0_i32_0 = arith.constant 0 : i32
    return %arg0, %c0_i32 : i32, i32
  }
  func.func @transform_1(%arg0: i32) -> (i32, i32, i32) {
    %c0_i32 = arith.constant 0 : i32
    %c0_i32_0 = arith.constant 0 : i32
    %c0_i32_1 = arith.constant 0 : i32
    return %arg0, %c0_i32, %c0_i32_0 : i32, i32, i32
  }
}

module attributes {stable_mosaic.version = 11 : i64} {
  func.func @kernel(%arg0: i32, %arg1: memref<1x16x16x4xf32, #tpu.memory_space<vmem>>, %arg2: memref<1x4xf32, #tpu.memory_space<vmem>>, %arg3: memref<1x4xf32, #tpu.memory_space<vmem>>, %arg4: memref<36x8xbf16, #tpu.memory_space<vmem>>, %arg5: memref<1x8xf32, #tpu.memory_space<vmem>>, %arg6: memref<1x16x16x8xbf16, #tpu.memory_space<vmem>>, %arg7: memref<1x2x8xf32, #tpu.memory_space<vmem>>, %arg8: memref<1x18x18x4xbf16, #tpu.memory_space<vmem>>, %arg9: memref<256x36xbf16, #tpu.memory_space<vmem>>) attributes {dimension_semantics = [#tpu.dimension_semantics<parallel>], iteration_bounds = array<i64: 2>, scalar_prefetch = 0 : i64, scratch_operands = 2 : i64, tpu.core_type = #tpu.core_type<tc>, window_params = [{transform_indices = @transform_0, window_bounds = array<i64: 1, 16, 16, 4>}, {pipeline_mode = #tpu.pipeline_mode<synchronous>, transform_indices = @transform_1, window_bounds = array<i64: 1, 4>}, {pipeline_mode = #tpu.pipeline_mode<synchronous>, transform_indices = @transform_2, window_bounds = array<i64: 1, 4>}, {pipeline_mode = #tpu.pipeline_mode<synchronous>, transform_indices = @transform_3, window_bounds = array<i64: 36, 8>}, {pipeline_mode = #tpu.pipeline_mode<synchronous>, transform_indices = @transform_4, window_bounds = array<i64: 1, 8>}, {transform_indices = @transform_5, window_bounds = array<i64: 1, 16, 16, 8>}, {transform_indices = @transform_6, window_bounds = array<i64: 1, 2, 8>}]} {
    %c0 = arith.constant 0 : index
    %c0_0 = arith.constant 0 : index
    %c0_1 = arith.constant 0 : index
    %c0_2 = arith.constant 0 : index
    %0 = vector.load %arg1[%c0, %c0_0, %c0_1, %c0_2] : memref<1x16x16x4xf32, #tpu.memory_space<vmem>>, vector<1x16x16x4xf32>
    %1 = vector.shape_cast %0 : vector<1x16x16x4xf32> to vector<256x4xf32>
    %c0_3 = arith.constant 0 : index
    %c0_4 = arith.constant 0 : index
    %2 = vector.load %arg2[%c0_3, %c0_4] : memref<1x4xf32, #tpu.memory_space<vmem>>, vector<1x4xf32>
    %3 = vector.broadcast %2 : vector<1x4xf32> to vector<256x4xf32>
    %4 = arith.subf %1, %3 : vector<256x4xf32>
    %c0_5 = arith.constant 0 : index
    %c0_6 = arith.constant 0 : index
    %5 = vector.load %arg3[%c0_5, %c0_6] : memref<1x4xf32, #tpu.memory_space<vmem>>, vector<1x4xf32>
    %6 = vector.broadcast %5 : vector<1x4xf32> to vector<256x4xf32>
    %7 = arith.mulf %4, %6 : vector<256x4xf32>
    %cst = arith.constant 0.000000e+00 : f32
    %8 = vector.broadcast %cst : f32 to vector<256x4xf32>
    %9 = arith.maximumf %7, %8 : vector<256x4xf32>
    %cst_7 = arith.constant 0.000000e+00 : bf16
    %10 = vector.broadcast %cst_7 : bf16 to vector<1x1x18x4xbf16>
    %cst_8 = arith.constant 0.000000e+00 : bf16
    %11 = vector.broadcast %cst_8 : bf16 to vector<1x18x1x4xbf16>
    %c0_9 = arith.constant 0 : index
    %c0_10 = arith.constant 0 : index
    %c0_11 = arith.constant 0 : index
    %c0_12 = arith.constant 0 : index
    %12 = vector.load %arg8[%c0_9, %c0_10, %c0_11, %c0_12] : memref<1x18x18x4xbf16, #tpu.memory_space<vmem>>, vector<1x1x18x4xbf16>
    tpu.vector_store %arg8[%c0_9, %c0_10, %c0_11, %c0_12], %10 {strides = array<i32>} : memref<1x18x18x4xbf16, #tpu.memory_space<vmem>>, vector<1x1x18x4xbf16>,
    %c0_13 = arith.constant 0 : index
    %c17 = arith.constant 17 : index
    %c0_14 = arith.constant 0 : index
    %c0_15 = arith.constant 0 : index
    %13 = vector.load %arg8[%c0_13, %c17, %c0_14, %c0_15] : memref<1x18x18x4xbf16, #tpu.memory_space<vmem>>, vector<1x1x18x4xbf16>
    tpu.vector_store %arg8[%c0_13, %c17, %c0_14, %c0_15], %10 {strides = array<i32>} : memref<1x18x18x4xbf16, #tpu.memory_space<vmem>>, vector<1x1x18x4xbf16>,
    %c0_16 = arith.constant 0 : index
    %c0_17 = arith.constant 0 : index
    %c0_18 = arith.constant 0 : index
    %c0_19 = arith.constant 0 : index
    %14 = vector.load %arg8[%c0_16, %c0_17, %c0_18, %c0_19] : memref<1x18x18x4xbf16, #tpu.memory_space<vmem>>, vector<1x18x1x4xbf16>
    tpu.vector_store %arg8[%c0_16, %c0_17, %c0_18, %c0_19], %11 {strides = array<i32>} : memref<1x18x18x4xbf16, #tpu.memory_space<vmem>>, vector<1x18x1x4xbf16>,
    %c0_20 = arith.constant 0 : index
    %c0_21 = arith.constant 0 : index
    %c17_22 = arith.constant 17 : index
    %c0_23 = arith.constant 0 : index
    %15 = vector.load %arg8[%c0_20, %c0_21, %c17_22, %c0_23] : memref<1x18x18x4xbf16, #tpu.memory_space<vmem>>, vector<1x18x1x4xbf16>
    tpu.vector_store %arg8[%c0_20, %c0_21, %c17_22, %c0_23], %11 {strides = array<i32>} : memref<1x18x18x4xbf16, #tpu.memory_space<vmem>>, vector<1x18x1x4xbf16>,
    %16 = arith.truncf %9 : vector<256x4xf32> to vector<256x4xbf16>
    %17 = vector.shape_cast %16 : vector<256x4xbf16> to vector<1x16x16x4xbf16>
    %c0_24 = arith.constant 0 : index
    %c1 = arith.constant 1 : index
    %c1_25 = arith.constant 1 : index
    %c0_26 = arith.constant 0 : index
    %18 = vector.load %arg8[%c0_24, %c1, %c1_25, %c0_26] : memref<1x18x18x4xbf16, #tpu.memory_space<vmem>>, vector<1x16x16x4xbf16>
    tpu.vector_store %arg8[%c0_24, %c1, %c1_25, %c0_26], %17 {strides = array<i32>} : memref<1x18x18x4xbf16, #tpu.memory_space<vmem>>, vector<1x16x16x4xbf16>,
    %c0_27 = arith.constant 0 : index
    %c0_28 = arith.constant 0 : index
    %c0_29 = arith.constant 0 : index
    %c0_30 = arith.constant 0 : index
    %19 = vector.load %arg8[%c0_27, %c0_28, %c0_29, %c0_30] : memref<1x18x18x4xbf16, #tpu.memory_space<vmem>>, vector<1x16x16x4xbf16>
    %20 = vector.shape_cast %19 : vector<1x16x16x4xbf16> to vector<256x4xbf16>
    %c0_31 = arith.constant 0 : index
    %c0_32 = arith.constant 0 : index
    %21 = vector.load %arg9[%c0_31, %c0_32] : memref<256x36xbf16, #tpu.memory_space<vmem>>, vector<256x4xbf16>
    tpu.vector_store %arg9[%c0_31, %c0_32], %20 {strides = array<i32>} : memref<256x36xbf16, #tpu.memory_space<vmem>>, vector<256x4xbf16>,
    %c0_33 = arith.constant 0 : index
    %c0_34 = arith.constant 0 : index
    %c1_35 = arith.constant 1 : index
    %c0_36 = arith.constant 0 : index
    %22 = vector.load %arg8[%c0_33, %c0_34, %c1_35, %c0_36] : memref<1x18x18x4xbf16, #tpu.memory_space<vmem>>, vector<1x16x16x4xbf16>
    %23 = vector.shape_cast %22 : vector<1x16x16x4xbf16> to vector<256x4xbf16>
    %c0_37 = arith.constant 0 : index
    %c4 = arith.constant 4 : index
    %24 = vector.load %arg9[%c0_37, %c4] : memref<256x36xbf16, #tpu.memory_space<vmem>>, vector<256x4xbf16>
    tpu.vector_store %arg9[%c0_37, %c4], %23 {strides = array<i32>} : memref<256x36xbf16, #tpu.memory_space<vmem>>, vector<256x4xbf16>,
    %c0_38 = arith.constant 0 : index
    %c0_39 = arith.constant 0 : index
    %c2 = arith.constant 2 : index
    %c0_40 = arith.constant 0 : index
    %25 = vector.load %arg8[%c0_38, %c0_39, %c2, %c0_40] : memref<1x18x18x4xbf16, #tpu.memory_space<vmem>>, vector<1x16x16x4xbf16>
    %26 = vector.shape_cast %25 : vector<1x16x16x4xbf16> to vector<256x4xbf16>
    %c0_41 = arith.constant 0 : index
    %c8 = arith.constant 8 : index
    %27 = vector.load %arg9[%c0_41, %c8] : memref<256x36xbf16, #tpu.memory_space<vmem>>, vector<256x4xbf16>
    tpu.vector_store %arg9[%c0_41, %c8], %26 {strides = array<i32>} : memref<256x36xbf16, #tpu.memory_space<vmem>>, vector<256x4xbf16>,
    %c0_42 = arith.constant 0 : index
    %c1_43 = arith.constant 1 : index
    %c0_44 = arith.constant 0 : index
    %c0_45 = arith.constant 0 : index
    %28 = vector.load %arg8[%c0_42, %c1_43, %c0_44, %c0_45] : memref<1x18x18x4xbf16, #tpu.memory_space<vmem>>, vector<1x16x16x4xbf16>
    %29 = vector.shape_cast %28 : vector<1x16x16x4xbf16> to vector<256x4xbf16>
    %c0_46 = arith.constant 0 : index
    %c12 = arith.constant 12 : index
    %30 = vector.load %arg9[%c0_46, %c12] : memref<256x36xbf16, #tpu.memory_space<vmem>>, vector<256x4xbf16>
    tpu.vector_store %arg9[%c0_46, %c12], %29 {strides = array<i32>} : memref<256x36xbf16, #tpu.memory_space<vmem>>, vector<256x4xbf16>,
    %c0_47 = arith.constant 0 : index
    %c1_48 = arith.constant 1 : index
    %c1_49 = arith.constant 1 : index
    %c0_50 = arith.constant 0 : index
    %31 = vector.load %arg8[%c0_47, %c1_48, %c1_49, %c0_50] : memref<1x18x18x4xbf16, #tpu.memory_space<vmem>>, vector<1x16x16x4xbf16>
    %32 = vector.shape_cast %31 : vector<1x16x16x4xbf16> to vector<256x4xbf16>
    %c0_51 = arith.constant 0 : index
    %c16 = arith.constant 16 : index
    %33 = vector.load %arg9[%c0_51, %c16] : memref<256x36xbf16, #tpu.memory_space<vmem>>, vector<256x4xbf16>
    tpu.vector_store %arg9[%c0_51, %c16], %32 {strides = array<i32>} : memref<256x36xbf16, #tpu.memory_space<vmem>>, vector<256x4xbf16>,
    %c0_52 = arith.constant 0 : index
    %c1_53 = arith.constant 1 : index
    %c2_54 = arith.constant 2 : index
    %c0_55 = arith.constant 0 : index
    %34 = vector.load %arg8[%c0_52, %c1_53, %c2_54, %c0_55] : memref<1x18x18x4xbf16, #tpu.memory_space<vmem>>, vector<1x16x16x4xbf16>
    %35 = vector.shape_cast %34 : vector<1x16x16x4xbf16> to vector<256x4xbf16>
    %c0_56 = arith.constant 0 : index
    %c20 = arith.constant 20 : index
    %36 = vector.load %arg9[%c0_56, %c20] : memref<256x36xbf16, #tpu.memory_space<vmem>>, vector<256x4xbf16>
    tpu.vector_store %arg9[%c0_56, %c20], %35 {strides = array<i32>} : memref<256x36xbf16, #tpu.memory_space<vmem>>, vector<256x4xbf16>,
    %c0_57 = arith.constant 0 : index
    %c2_58 = arith.constant 2 : index
    %c0_59 = arith.constant 0 : index
    %c0_60 = arith.constant 0 : index
    %37 = vector.load %arg8[%c0_57, %c2_58, %c0_59, %c0_60] : memref<1x18x18x4xbf16, #tpu.memory_space<vmem>>, vector<1x16x16x4xbf16>
    %38 = vector.shape_cast %37 : vector<1x16x16x4xbf16> to vector<256x4xbf16>
    %c0_61 = arith.constant 0 : index
    %c24 = arith.constant 24 : index
    %39 = vector.load %arg9[%c0_61, %c24] : memref<256x36xbf16, #tpu.memory_space<vmem>>, vector<256x4xbf16>
    tpu.vector_store %arg9[%c0_61, %c24], %38 {strides = array<i32>} : memref<256x36xbf16, #tpu.memory_space<vmem>>, vector<256x4xbf16>,
    %c0_62 = arith.constant 0 : index
    %c2_63 = arith.constant 2 : index
    %c1_64 = arith.constant 1 : index
    %c0_65 = arith.constant 0 : index
    %40 = vector.load %arg8[%c0_62, %c2_63, %c1_64, %c0_65] : memref<1x18x18x4xbf16, #tpu.memory_space<vmem>>, vector<1x16x16x4xbf16>
    %41 = vector.shape_cast %40 : vector<1x16x16x4xbf16> to vector<256x4xbf16>
    %c0_66 = arith.constant 0 : index
    %c28 = arith.constant 28 : index
    %42 = vector.load %arg9[%c0_66, %c28] : memref<256x36xbf16, #tpu.memory_space<vmem>>, vector<256x4xbf16>
    tpu.vector_store %arg9[%c0_66, %c28], %41 {strides = array<i32>} : memref<256x36xbf16, #tpu.memory_space<vmem>>, vector<256x4xbf16>,
    %c0_67 = arith.constant 0 : index
    %c2_68 = arith.constant 2 : index
    %c2_69 = arith.constant 2 : index
    %c0_70 = arith.constant 0 : index
    %43 = vector.load %arg8[%c0_67, %c2_68, %c2_69, %c0_70] : memref<1x18x18x4xbf16, #tpu.memory_space<vmem>>, vector<1x16x16x4xbf16>
    %44 = vector.shape_cast %43 : vector<1x16x16x4xbf16> to vector<256x4xbf16>
    %c0_71 = arith.constant 0 : index
    %c32 = arith.constant 32 : index
    %45 = vector.load %arg9[%c0_71, %c32] : memref<256x36xbf16, #tpu.memory_space<vmem>>, vector<256x4xbf16>
    tpu.vector_store %arg9[%c0_71, %c32], %44 {strides = array<i32>} : memref<256x36xbf16, #tpu.memory_space<vmem>>, vector<256x4xbf16>,
    %c0_72 = arith.constant 0 : index
    %c0_73 = arith.constant 0 : index
    %46 = vector.load %arg9[%c0_72, %c0_73] : memref<256x36xbf16, #tpu.memory_space<vmem>>, vector<256x36xbf16>
    %c0_74 = arith.constant 0 : index
    %c0_75 = arith.constant 0 : index
    %47 = vector.load %arg4[%c0_74, %c0_75] : memref<36x8xbf16, #tpu.memory_space<vmem>>, vector<36x8xbf16>
    %cst_76 = arith.constant dense<0.000000e+00> : vector<256x8xf32>
    %48 = tpu.matmul %46, %47, %cst_76 {dimension_numbers = #tpu.dot_dimension_numbers<[1], [0], [0], [1], [0, 0, 1, 1], [], []>} : vector<256x36xbf16>, vector<36x8xbf16>, vector<256x8xf32> -> vector<256x8xf32>
    %c0_77 = arith.constant 0 : index
    %c0_78 = arith.constant 0 : index
    %49 = vector.load %arg5[%c0_77, %c0_78] : memref<1x8xf32, #tpu.memory_space<vmem>>, vector<1x8xf32>
    %50 = vector.broadcast %49 : vector<1x8xf32> to vector<256x8xf32>
    %51 = arith.addf %48, %50 : vector<256x8xf32>
    %52 = arith.truncf %51 : vector<256x8xf32> to vector<256x8xbf16>
    %53 = vector.shape_cast %52 : vector<256x8xbf16> to vector<1x16x16x8xbf16>
    %c0_79 = arith.constant 0 : index
    %c0_80 = arith.constant 0 : index
    %c0_81 = arith.constant 0 : index
    %c0_82 = arith.constant 0 : index
    %54 = vector.load %arg6[%c0_79, %c0_80, %c0_81, %c0_82] : memref<1x16x16x8xbf16, #tpu.memory_space<vmem>>, vector<1x16x16x8xbf16>
    tpu.vector_store %arg6[%c0_79, %c0_80, %c0_81, %c0_82], %53 {strides = array<i32>} : memref<1x16x16x8xbf16, #tpu.memory_space<vmem>>, vector<1x16x16x8xbf16>,
    %55 = arith.extf %52 : vector<256x8xbf16> to vector<256x8xf32>
    %cst_83 = arith.constant dense<0.000000e+00> : vector<8xf32>
    %56 = vector.multi_reduction <add>, %55, %cst_83 [0] : vector<256x8xf32> to vector<8xf32>
    %57 = vector.shape_cast %56 : vector<8xf32> to vector<1x8xf32>
    %58 = arith.mulf %55, %55 : vector<256x8xf32>
    %cst_84 = arith.constant dense<0.000000e+00> : vector<8xf32>
    %59 = vector.multi_reduction <add>, %58, %cst_84 [0] : vector<256x8xf32> to vector<8xf32>
    %60 = vector.shape_cast %59 : vector<8xf32> to vector<1x8xf32>
    %61 = tpu.concatenate %57, %60 in 0 : vector<1x8xf32>, vector<1x8xf32> -> vector<2x8xf32>
    %62 = vector.shape_cast %61 : vector<2x8xf32> to vector<1x2x8xf32>
    %c0_85 = arith.constant 0 : index
    %c0_86 = arith.constant 0 : index
    %c0_87 = arith.constant 0 : index
    %63 = vector.load %arg7[%c0_85, %c0_86, %c0_87] : memref<1x2x8xf32, #tpu.memory_space<vmem>>, vector<1x2x8xf32>
    tpu.vector_store %arg7[%c0_85, %c0_86, %c0_87], %62 {strides = array<i32>} : memref<1x2x8xf32, #tpu.memory_space<vmem>>, vector<1x2x8xf32>,
    return
  }
  func.func @transform_0(%arg0: i32) -> (i32, i32, i32, i32) {
    %c0_i32 = arith.constant 0 : i32
    %c0_i32_0 = arith.constant 0 : i32
    %c0_i32_1 = arith.constant 0 : i32
    %c0_i32_2 = arith.constant 0 : i32
    return %arg0, %c0_i32, %c0_i32_0, %c0_i32_1 : i32, i32, i32, i32
  }
  func.func @transform_1(%arg0: i32) -> (i32, i32) {
    %c0_i32 = arith.constant 0 : i32
    %c0_i32_0 = arith.constant 0 : i32
    %c0_i32_1 = arith.constant 0 : i32
    return %c0_i32, %c0_i32_0 : i32, i32
  }
  func.func @transform_2(%arg0: i32) -> (i32, i32) {
    %c0_i32 = arith.constant 0 : i32
    %c0_i32_0 = arith.constant 0 : i32
    %c0_i32_1 = arith.constant 0 : i32
    return %c0_i32, %c0_i32_0 : i32, i32
  }
  func.func @transform_3(%arg0: i32) -> (i32, i32) {
    %c0_i32 = arith.constant 0 : i32
    %c0_i32_0 = arith.constant 0 : i32
    %c0_i32_1 = arith.constant 0 : i32
    return %c0_i32, %c0_i32_0 : i32, i32
  }
  func.func @transform_4(%arg0: i32) -> (i32, i32) {
    %c0_i32 = arith.constant 0 : i32
    %c0_i32_0 = arith.constant 0 : i32
    %c0_i32_1 = arith.constant 0 : i32
    return %c0_i32, %c0_i32_0 : i32, i32
  }
  func.func @transform_5(%arg0: i32) -> (i32, i32, i32, i32) {
    %c0_i32 = arith.constant 0 : i32
    %c0_i32_0 = arith.constant 0 : i32
    %c0_i32_1 = arith.constant 0 : i32
    %c0_i32_2 = arith.constant 0 : i32
    return %arg0, %c0_i32, %c0_i32_0, %c0_i32_1 : i32, i32, i32, i32
  }
  func.func @transform_6(%arg0: i32) -> (i32, i32, i32) {
    %c0_i32 = arith.constant 0 : i32
    %c0_i32_0 = arith.constant 0 : i32
    %c0_i32_1 = arith.constant 0 : i32
    return %arg0, %c0_i32, %c0_i32_0 : i32, i32, i32
  }
}

module attributes {stable_mosaic.version = 11 : i64} {
  func.func @kernel(%arg0: i32, %arg1: memref<1x16x16x8xbf16, #tpu.memory_space<vmem>>, %arg2: memref<1x8xf32, #tpu.memory_space<vmem>>, %arg3: memref<1x8xf32, #tpu.memory_space<vmem>>, %arg4: memref<72x8xbf16, #tpu.memory_space<vmem>>, %arg5: memref<1x8xf32, #tpu.memory_space<vmem>>, %arg6: memref<1x16x16x4xf32, #tpu.memory_space<vmem>>, %arg7: memref<4x8xf32, #tpu.memory_space<vmem>>, %arg8: memref<1x8xf32, #tpu.memory_space<vmem>>, %arg9: memref<1x16x16x8xf32, #tpu.memory_space<vmem>>, %arg10: memref<1x18x18x8xbf16, #tpu.memory_space<vmem>>, %arg11: memref<256x72xbf16, #tpu.memory_space<vmem>>) attributes {dimension_semantics = [#tpu.dimension_semantics<parallel>], iteration_bounds = array<i64: 2>, scalar_prefetch = 0 : i64, scratch_operands = 2 : i64, tpu.core_type = #tpu.core_type<tc>, window_params = [{transform_indices = @transform_0, window_bounds = array<i64: 1, 16, 16, 8>}, {pipeline_mode = #tpu.pipeline_mode<synchronous>, transform_indices = @transform_1, window_bounds = array<i64: 1, 8>}, {pipeline_mode = #tpu.pipeline_mode<synchronous>, transform_indices = @transform_2, window_bounds = array<i64: 1, 8>}, {pipeline_mode = #tpu.pipeline_mode<synchronous>, transform_indices = @transform_3, window_bounds = array<i64: 72, 8>}, {pipeline_mode = #tpu.pipeline_mode<synchronous>, transform_indices = @transform_4, window_bounds = array<i64: 1, 8>}, {transform_indices = @transform_5, window_bounds = array<i64: 1, 16, 16, 4>}, {pipeline_mode = #tpu.pipeline_mode<synchronous>, transform_indices = @transform_6, window_bounds = array<i64: 4, 8>}, {pipeline_mode = #tpu.pipeline_mode<synchronous>, transform_indices = @transform_7, window_bounds = array<i64: 1, 8>}, {transform_indices = @transform_8, window_bounds = array<i64: 1, 16, 16, 8>}]} {
    %c0 = arith.constant 0 : index
    %c0_0 = arith.constant 0 : index
    %c0_1 = arith.constant 0 : index
    %c0_2 = arith.constant 0 : index
    %0 = vector.load %arg1[%c0, %c0_0, %c0_1, %c0_2] : memref<1x16x16x8xbf16, #tpu.memory_space<vmem>>, vector<1x16x16x8xbf16>
    %1 = arith.extf %0 : vector<1x16x16x8xbf16> to vector<1x16x16x8xf32>
    %2 = vector.shape_cast %1 : vector<1x16x16x8xf32> to vector<256x8xf32>
    %c0_3 = arith.constant 0 : index
    %c0_4 = arith.constant 0 : index
    %3 = vector.load %arg2[%c0_3, %c0_4] : memref<1x8xf32, #tpu.memory_space<vmem>>, vector<1x8xf32>
    %4 = vector.broadcast %3 : vector<1x8xf32> to vector<256x8xf32>
    %5 = arith.subf %2, %4 : vector<256x8xf32>
    %c0_5 = arith.constant 0 : index
    %c0_6 = arith.constant 0 : index
    %6 = vector.load %arg3[%c0_5, %c0_6] : memref<1x8xf32, #tpu.memory_space<vmem>>, vector<1x8xf32>
    %7 = vector.broadcast %6 : vector<1x8xf32> to vector<256x8xf32>
    %8 = arith.mulf %5, %7 : vector<256x8xf32>
    %cst = arith.constant 0.000000e+00 : f32
    %9 = vector.broadcast %cst : f32 to vector<256x8xf32>
    %10 = arith.maximumf %8, %9 : vector<256x8xf32>
    %cst_7 = arith.constant 0.000000e+00 : bf16
    %11 = vector.broadcast %cst_7 : bf16 to vector<1x1x18x8xbf16>
    %cst_8 = arith.constant 0.000000e+00 : bf16
    %12 = vector.broadcast %cst_8 : bf16 to vector<1x18x1x8xbf16>
    %c0_9 = arith.constant 0 : index
    %c0_10 = arith.constant 0 : index
    %c0_11 = arith.constant 0 : index
    %c0_12 = arith.constant 0 : index
    %13 = vector.load %arg10[%c0_9, %c0_10, %c0_11, %c0_12] : memref<1x18x18x8xbf16, #tpu.memory_space<vmem>>, vector<1x1x18x8xbf16>
    tpu.vector_store %arg10[%c0_9, %c0_10, %c0_11, %c0_12], %11 {strides = array<i32>} : memref<1x18x18x8xbf16, #tpu.memory_space<vmem>>, vector<1x1x18x8xbf16>,
    %c0_13 = arith.constant 0 : index
    %c17 = arith.constant 17 : index
    %c0_14 = arith.constant 0 : index
    %c0_15 = arith.constant 0 : index
    %14 = vector.load %arg10[%c0_13, %c17, %c0_14, %c0_15] : memref<1x18x18x8xbf16, #tpu.memory_space<vmem>>, vector<1x1x18x8xbf16>
    tpu.vector_store %arg10[%c0_13, %c17, %c0_14, %c0_15], %11 {strides = array<i32>} : memref<1x18x18x8xbf16, #tpu.memory_space<vmem>>, vector<1x1x18x8xbf16>,
    %c0_16 = arith.constant 0 : index
    %c0_17 = arith.constant 0 : index
    %c0_18 = arith.constant 0 : index
    %c0_19 = arith.constant 0 : index
    %15 = vector.load %arg10[%c0_16, %c0_17, %c0_18, %c0_19] : memref<1x18x18x8xbf16, #tpu.memory_space<vmem>>, vector<1x18x1x8xbf16>
    tpu.vector_store %arg10[%c0_16, %c0_17, %c0_18, %c0_19], %12 {strides = array<i32>} : memref<1x18x18x8xbf16, #tpu.memory_space<vmem>>, vector<1x18x1x8xbf16>,
    %c0_20 = arith.constant 0 : index
    %c0_21 = arith.constant 0 : index
    %c17_22 = arith.constant 17 : index
    %c0_23 = arith.constant 0 : index
    %16 = vector.load %arg10[%c0_20, %c0_21, %c17_22, %c0_23] : memref<1x18x18x8xbf16, #tpu.memory_space<vmem>>, vector<1x18x1x8xbf16>
    tpu.vector_store %arg10[%c0_20, %c0_21, %c17_22, %c0_23], %12 {strides = array<i32>} : memref<1x18x18x8xbf16, #tpu.memory_space<vmem>>, vector<1x18x1x8xbf16>,
    %17 = arith.truncf %10 : vector<256x8xf32> to vector<256x8xbf16>
    %18 = vector.shape_cast %17 : vector<256x8xbf16> to vector<1x16x16x8xbf16>
    %c0_24 = arith.constant 0 : index
    %c1 = arith.constant 1 : index
    %c1_25 = arith.constant 1 : index
    %c0_26 = arith.constant 0 : index
    %19 = vector.load %arg10[%c0_24, %c1, %c1_25, %c0_26] : memref<1x18x18x8xbf16, #tpu.memory_space<vmem>>, vector<1x16x16x8xbf16>
    tpu.vector_store %arg10[%c0_24, %c1, %c1_25, %c0_26], %18 {strides = array<i32>} : memref<1x18x18x8xbf16, #tpu.memory_space<vmem>>, vector<1x16x16x8xbf16>,
    %c0_27 = arith.constant 0 : index
    %c0_28 = arith.constant 0 : index
    %c0_29 = arith.constant 0 : index
    %c0_30 = arith.constant 0 : index
    %20 = vector.load %arg10[%c0_27, %c0_28, %c0_29, %c0_30] : memref<1x18x18x8xbf16, #tpu.memory_space<vmem>>, vector<1x16x16x8xbf16>
    %21 = vector.shape_cast %20 : vector<1x16x16x8xbf16> to vector<256x8xbf16>
    %c0_31 = arith.constant 0 : index
    %c0_32 = arith.constant 0 : index
    %22 = vector.load %arg11[%c0_31, %c0_32] : memref<256x72xbf16, #tpu.memory_space<vmem>>, vector<256x8xbf16>
    tpu.vector_store %arg11[%c0_31, %c0_32], %21 {strides = array<i32>} : memref<256x72xbf16, #tpu.memory_space<vmem>>, vector<256x8xbf16>,
    %c0_33 = arith.constant 0 : index
    %c0_34 = arith.constant 0 : index
    %c1_35 = arith.constant 1 : index
    %c0_36 = arith.constant 0 : index
    %23 = vector.load %arg10[%c0_33, %c0_34, %c1_35, %c0_36] : memref<1x18x18x8xbf16, #tpu.memory_space<vmem>>, vector<1x16x16x8xbf16>
    %24 = vector.shape_cast %23 : vector<1x16x16x8xbf16> to vector<256x8xbf16>
    %c0_37 = arith.constant 0 : index
    %c8 = arith.constant 8 : index
    %25 = vector.load %arg11[%c0_37, %c8] : memref<256x72xbf16, #tpu.memory_space<vmem>>, vector<256x8xbf16>
    tpu.vector_store %arg11[%c0_37, %c8], %24 {strides = array<i32>} : memref<256x72xbf16, #tpu.memory_space<vmem>>, vector<256x8xbf16>,
    %c0_38 = arith.constant 0 : index
    %c0_39 = arith.constant 0 : index
    %c2 = arith.constant 2 : index
    %c0_40 = arith.constant 0 : index
    %26 = vector.load %arg10[%c0_38, %c0_39, %c2, %c0_40] : memref<1x18x18x8xbf16, #tpu.memory_space<vmem>>, vector<1x16x16x8xbf16>
    %27 = vector.shape_cast %26 : vector<1x16x16x8xbf16> to vector<256x8xbf16>
    %c0_41 = arith.constant 0 : index
    %c16 = arith.constant 16 : index
    %28 = vector.load %arg11[%c0_41, %c16] : memref<256x72xbf16, #tpu.memory_space<vmem>>, vector<256x8xbf16>
    tpu.vector_store %arg11[%c0_41, %c16], %27 {strides = array<i32>} : memref<256x72xbf16, #tpu.memory_space<vmem>>, vector<256x8xbf16>,
    %c0_42 = arith.constant 0 : index
    %c1_43 = arith.constant 1 : index
    %c0_44 = arith.constant 0 : index
    %c0_45 = arith.constant 0 : index
    %29 = vector.load %arg10[%c0_42, %c1_43, %c0_44, %c0_45] : memref<1x18x18x8xbf16, #tpu.memory_space<vmem>>, vector<1x16x16x8xbf16>
    %30 = vector.shape_cast %29 : vector<1x16x16x8xbf16> to vector<256x8xbf16>
    %c0_46 = arith.constant 0 : index
    %c24 = arith.constant 24 : index
    %31 = vector.load %arg11[%c0_46, %c24] : memref<256x72xbf16, #tpu.memory_space<vmem>>, vector<256x8xbf16>
    tpu.vector_store %arg11[%c0_46, %c24], %30 {strides = array<i32>} : memref<256x72xbf16, #tpu.memory_space<vmem>>, vector<256x8xbf16>,
    %c0_47 = arith.constant 0 : index
    %c1_48 = arith.constant 1 : index
    %c1_49 = arith.constant 1 : index
    %c0_50 = arith.constant 0 : index
    %32 = vector.load %arg10[%c0_47, %c1_48, %c1_49, %c0_50] : memref<1x18x18x8xbf16, #tpu.memory_space<vmem>>, vector<1x16x16x8xbf16>
    %33 = vector.shape_cast %32 : vector<1x16x16x8xbf16> to vector<256x8xbf16>
    %c0_51 = arith.constant 0 : index
    %c32 = arith.constant 32 : index
    %34 = vector.load %arg11[%c0_51, %c32] : memref<256x72xbf16, #tpu.memory_space<vmem>>, vector<256x8xbf16>
    tpu.vector_store %arg11[%c0_51, %c32], %33 {strides = array<i32>} : memref<256x72xbf16, #tpu.memory_space<vmem>>, vector<256x8xbf16>,
    %c0_52 = arith.constant 0 : index
    %c1_53 = arith.constant 1 : index
    %c2_54 = arith.constant 2 : index
    %c0_55 = arith.constant 0 : index
    %35 = vector.load %arg10[%c0_52, %c1_53, %c2_54, %c0_55] : memref<1x18x18x8xbf16, #tpu.memory_space<vmem>>, vector<1x16x16x8xbf16>
    %36 = vector.shape_cast %35 : vector<1x16x16x8xbf16> to vector<256x8xbf16>
    %c0_56 = arith.constant 0 : index
    %c40 = arith.constant 40 : index
    %37 = vector.load %arg11[%c0_56, %c40] : memref<256x72xbf16, #tpu.memory_space<vmem>>, vector<256x8xbf16>
    tpu.vector_store %arg11[%c0_56, %c40], %36 {strides = array<i32>} : memref<256x72xbf16, #tpu.memory_space<vmem>>, vector<256x8xbf16>,
    %c0_57 = arith.constant 0 : index
    %c2_58 = arith.constant 2 : index
    %c0_59 = arith.constant 0 : index
    %c0_60 = arith.constant 0 : index
    %38 = vector.load %arg10[%c0_57, %c2_58, %c0_59, %c0_60] : memref<1x18x18x8xbf16, #tpu.memory_space<vmem>>, vector<1x16x16x8xbf16>
    %39 = vector.shape_cast %38 : vector<1x16x16x8xbf16> to vector<256x8xbf16>
    %c0_61 = arith.constant 0 : index
    %c48 = arith.constant 48 : index
    %40 = vector.load %arg11[%c0_61, %c48] : memref<256x72xbf16, #tpu.memory_space<vmem>>, vector<256x8xbf16>
    tpu.vector_store %arg11[%c0_61, %c48], %39 {strides = array<i32>} : memref<256x72xbf16, #tpu.memory_space<vmem>>, vector<256x8xbf16>,
    %c0_62 = arith.constant 0 : index
    %c2_63 = arith.constant 2 : index
    %c1_64 = arith.constant 1 : index
    %c0_65 = arith.constant 0 : index
    %41 = vector.load %arg10[%c0_62, %c2_63, %c1_64, %c0_65] : memref<1x18x18x8xbf16, #tpu.memory_space<vmem>>, vector<1x16x16x8xbf16>
    %42 = vector.shape_cast %41 : vector<1x16x16x8xbf16> to vector<256x8xbf16>
    %c0_66 = arith.constant 0 : index
    %c56 = arith.constant 56 : index
    %43 = vector.load %arg11[%c0_66, %c56] : memref<256x72xbf16, #tpu.memory_space<vmem>>, vector<256x8xbf16>
    tpu.vector_store %arg11[%c0_66, %c56], %42 {strides = array<i32>} : memref<256x72xbf16, #tpu.memory_space<vmem>>, vector<256x8xbf16>,
    %c0_67 = arith.constant 0 : index
    %c2_68 = arith.constant 2 : index
    %c2_69 = arith.constant 2 : index
    %c0_70 = arith.constant 0 : index
    %44 = vector.load %arg10[%c0_67, %c2_68, %c2_69, %c0_70] : memref<1x18x18x8xbf16, #tpu.memory_space<vmem>>, vector<1x16x16x8xbf16>
    %45 = vector.shape_cast %44 : vector<1x16x16x8xbf16> to vector<256x8xbf16>
    %c0_71 = arith.constant 0 : index
    %c64 = arith.constant 64 : index
    %46 = vector.load %arg11[%c0_71, %c64] : memref<256x72xbf16, #tpu.memory_space<vmem>>, vector<256x8xbf16>
    tpu.vector_store %arg11[%c0_71, %c64], %45 {strides = array<i32>} : memref<256x72xbf16, #tpu.memory_space<vmem>>, vector<256x8xbf16>,
    %c0_72 = arith.constant 0 : index
    %c0_73 = arith.constant 0 : index
    %47 = vector.load %arg11[%c0_72, %c0_73] : memref<256x72xbf16, #tpu.memory_space<vmem>>, vector<256x72xbf16>
    %c0_74 = arith.constant 0 : index
    %c0_75 = arith.constant 0 : index
    %48 = vector.load %arg4[%c0_74, %c0_75] : memref<72x8xbf16, #tpu.memory_space<vmem>>, vector<72x8xbf16>
    %cst_76 = arith.constant dense<0.000000e+00> : vector<256x8xf32>
    %49 = tpu.matmul %47, %48, %cst_76 {dimension_numbers = #tpu.dot_dimension_numbers<[1], [0], [0], [1], [0, 0, 1, 1], [], []>} : vector<256x72xbf16>, vector<72x8xbf16>, vector<256x8xf32> -> vector<256x8xf32>
    %c0_77 = arith.constant 0 : index
    %c0_78 = arith.constant 0 : index
    %50 = vector.load %arg5[%c0_77, %c0_78] : memref<1x8xf32, #tpu.memory_space<vmem>>, vector<1x8xf32>
    %51 = vector.broadcast %50 : vector<1x8xf32> to vector<256x8xf32>
    %52 = arith.addf %49, %51 : vector<256x8xf32>
    %c0_79 = arith.constant 0 : index
    %c0_80 = arith.constant 0 : index
    %c0_81 = arith.constant 0 : index
    %c0_82 = arith.constant 0 : index
    %53 = vector.load %arg6[%c0_79, %c0_80, %c0_81, %c0_82] : memref<1x16x16x4xf32, #tpu.memory_space<vmem>>, vector<1x16x16x4xf32>
    %54 = vector.shape_cast %53 : vector<1x16x16x4xf32> to vector<256x4xf32>
    %c0_83 = arith.constant 0 : index
    %c0_84 = arith.constant 0 : index
    %55 = vector.load %arg7[%c0_83, %c0_84] : memref<4x8xf32, #tpu.memory_space<vmem>>, vector<4x8xf32>
    %cst_85 = arith.constant dense<0.000000e+00> : vector<256x8xf32>
    %56 = tpu.matmul %54, %55, %cst_85 {dimension_numbers = #tpu.dot_dimension_numbers<[1], [0], [0], [1], [0, 0, 1, 1], [], []>} : vector<256x4xf32>, vector<4x8xf32>, vector<256x8xf32> -> vector<256x8xf32>
    %57 = arith.addf %52, %56 : vector<256x8xf32>
    %c0_86 = arith.constant 0 : index
    %c0_87 = arith.constant 0 : index
    %58 = vector.load %arg8[%c0_86, %c0_87] : memref<1x8xf32, #tpu.memory_space<vmem>>, vector<1x8xf32>
    %59 = vector.broadcast %58 : vector<1x8xf32> to vector<256x8xf32>
    %60 = arith.addf %57, %59 : vector<256x8xf32>
    %61 = vector.shape_cast %60 : vector<256x8xf32> to vector<1x16x16x8xf32>
    %c0_88 = arith.constant 0 : index
    %c0_89 = arith.constant 0 : index
    %c0_90 = arith.constant 0 : index
    %c0_91 = arith.constant 0 : index
    %62 = vector.load %arg9[%c0_88, %c0_89, %c0_90, %c0_91] : memref<1x16x16x8xf32, #tpu.memory_space<vmem>>, vector<1x16x16x8xf32>
    tpu.vector_store %arg9[%c0_88, %c0_89, %c0_90, %c0_91], %61 {strides = array<i32>} : memref<1x16x16x8xf32, #tpu.memory_space<vmem>>, vector<1x16x16x8xf32>,
    return
  }
  func.func @transform_0(%arg0: i32) -> (i32, i32, i32, i32) {
    %c0_i32 = arith.constant 0 : i32
    %c0_i32_0 = arith.constant 0 : i32
    %c0_i32_1 = arith.constant 0 : i32
    %c0_i32_2 = arith.constant 0 : i32
    return %arg0, %c0_i32, %c0_i32_0, %c0_i32_1 : i32, i32, i32, i32
  }
  func.func @transform_1(%arg0: i32) -> (i32, i32) {
    %c0_i32 = arith.constant 0 : i32
    %c0_i32_0 = arith.constant 0 : i32
    %c0_i32_1 = arith.constant 0 : i32
    return %c0_i32, %c0_i32_0 : i32, i32
  }
  func.func @transform_2(%arg0: i32) -> (i32, i32) {
    %c0_i32 = arith.constant 0 : i32
    %c0_i32_0 = arith.constant 0 : i32
    %c0_i32_1 = arith.constant 0 : i32
    return %c0_i32, %c0_i32_0 : i32, i32
  }
  func.func @transform_3(%arg0: i32) -> (i32, i32) {
    %c0_i32 = arith.constant 0 : i32
    %c0_i32_0 = arith.constant 0 : i32
    %c0_i32_1 = arith.constant 0 : i32
    return %c0_i32, %c0_i32_0 : i32, i32
  }
  func.func @transform_4(%arg0: i32) -> (i32, i32) {
    %c0_i32 = arith.constant 0 : i32
    %c0_i32_0 = arith.constant 0 : i32
    %c0_i32_1 = arith.constant 0 : i32
    return %c0_i32, %c0_i32_0 : i32, i32
  }
  func.func @transform_5(%arg0: i32) -> (i32, i32, i32, i32) {
    %c0_i32 = arith.constant 0 : i32
    %c0_i32_0 = arith.constant 0 : i32
    %c0_i32_1 = arith.constant 0 : i32
    %c0_i32_2 = arith.constant 0 : i32
    return %arg0, %c0_i32, %c0_i32_0, %c0_i32_1 : i32, i32, i32, i32
  }
  func.func @transform_6(%arg0: i32) -> (i32, i32) {
    %c0_i32 = arith.constant 0 : i32
    %c0_i32_0 = arith.constant 0 : i32
    %c0_i32_1 = arith.constant 0 : i32
    return %c0_i32, %c0_i32_0 : i32, i32
  }
  func.func @transform_7(%arg0: i32) -> (i32, i32) {
    %c0_i32 = arith.constant 0 : i32
    %c0_i32_0 = arith.constant 0 : i32
    %c0_i32_1 = arith.constant 0 : i32
    return %c0_i32, %c0_i32_0 : i32, i32
  }
  func.func @transform_8(%arg0: i32) -> (i32, i32, i32, i32) {
    %c0_i32 = arith.constant 0 : i32
    %c0_i32_0 = arith.constant 0 : i32
    %c0_i32_1 = arith.constant 0 : i32
    %c0_i32_2 = arith.constant 0 : i32
    return %arg0, %c0_i32, %c0_i32_0, %c0_i32_1 : i32, i32, i32, i32
  }
}

</mosaic_0001>

<bundles_post_ra>
// kernel: wide_basic_forward_nchw.3
= control target key start
LH: loop header
LB: loop body
LE: loop exit
PB: predicated region body
PF: predicated region fallthrough
CT: control target
= control target key end

     0   :  { %vm72_vm0 = vcmask 31744   ;;  %vm403_vm1 = vcmask 1040384   ;;  %vm405_vm2 = vcmask 25600   ;;  %s1276_s0 = inlined_call_operand.vmem [shape: f32[512,4], index: 0, kind: input, shape index: {}]   ;;  %s1277_s1 = inlined_call_operand.vmem [shape: f32[1,2,4], index: 1, kind: output, shape index: {}]  }
   0x1   :  { %v424_v0 = vld [vmem:[%s1276_s0] sm:$0xff]  ;;  %v429_v1 = vld [vmem:[%s1276_s0 + $0x8] sm:$0xff]  ;;  %v434_v2 = vld [vmem:[%s1276_s0 + $0x10] sm:$0xff] }
   0x2   :  { %v73_v3 = vsel %vm72_vm0, %v424_v0, 0.0  ;;  %v74_v4 = vsel %vm72_vm0, %v429_v1, 0.0  ;;  %v76_v5 = vsel %vm72_vm0, %v434_v2, 0.0  ;;  %v445_v6 = vld [vmem:[%s1276_s0 + $0x18] sm:$0xff]  ;;  %v452_v9 = vld [vmem:[%s1276_s0 + $0x20] sm:$0xff]  ;;  %v459_v12 = vld [vmem:[%s1276_s0 + $0x28] sm:$0xff] }
   0x3   :  { %v75_v7 = vadd.f32 %v74_v4, %v73_v3  ;;  %v78_v8 = vsel %vm72_vm0, %v445_v6, 0.0  ;;  %v80_v11 = vsel %vm72_vm0, %v452_v9, 0.0  ;;  %v82_v14 = vsel %vm72_vm0, %v459_v12, 0.0  ;;  %v466_v15 = vld [vmem:[%s1276_s0 + $0x30] sm:$0xff]  ;;  %v471_v17 = vld [vmem:[%s1276_s0 + $0x38] sm:$0xff]  ;;  %v476_v18 = vld [vmem:[%s1276_s0 + $0x40] sm:$0xff] }
   0x4   :  { %v84_v19 = vsel %vm72_vm0, %v466_v15, 0.0  ;;  %v483_v20 = vld [vmem:[%s1276_s0 + $0x48] sm:$0xff]  ;;  %v488_v21 = vld [vmem:[%s1276_s0 + $0x50] sm:$0xff]  ;;  %v493_v22 = vld [vmem:[%s1276_s0 + $0x58] sm:$0xff]  ;;  %v86_v24 = vsel %vm72_vm0, %v471_v17, 0.0  ;;  %v88_v25 = vsel %vm72_vm0, %v476_v18, 0.0 }
   0x5   :  { %v77_v10 = vadd.f32 %v76_v5, %v75_v7  ;;  %v502_v26 = vld [vmem:[%s1276_s0 + $0x108] sm:$0xff]  ;;  %v507_v27 = vld [vmem:[%s1276_s0 + $0x110] sm:$0xff]  ;;  %v512_v28 = vld [vmem:[%s1276_s0 + $0x118] sm:$0xff]  ;;  %v90_v29 = vsel %vm72_vm0, %v483_v20, 0.0  ;;  %v92_v30 = vsel %vm72_vm0, %v488_v21, 0.0  ;;  %v520_v31 = vsel %vm72_vm0, %v493_v22, 0.0 }
   0x6   :  { %v525_v32 = vld [vmem:[%s1276_s0 + $0x120] sm:$0xff]  ;;  %v530_v33 = vld [vmem:[%s1276_s0 + $0x128] sm:$0xff]  ;;  %v535_v34 = vld [vmem:[%s1276_s0 + $0x130] sm:$0xff]  ;;  %v539_v36 = vsel %vm72_vm0, %v502_v26, 0.0  ;;  %v543_v37 = vsel %vm72_vm0, %v507_v27, 0.0  ;;  %v547_v38 = vsel %vm72_vm0, %v512_v28, 0.0 }
   0x7   :  { %v79_v13 = vadd.f32 %v78_v8, %v77_v10  ;;  %1296 = vst [vmem:[#allocation2_spill] sm:$0xff] %v539_v36  ;;  %1297 = vst [vmem:[#allocation3_spill] sm:$0xff] %v543_v37  ;;  %v552_v39 = vld [vmem:[%s1276_s0 + $0x138] sm:$0xff]  ;;  %v557_v40 = vld [vmem:[%s1276_s0 + $0x140] sm:$0xff]  ;;  %v566_v42 = vsel %vm72_vm0, %v525_v32, 0.0  ;;  %v570_v43 = vsel %vm72_vm0, %v530_v33, 0.0  ;;  %v208_v36 = vmul.f32 %v434_v2, %v434_v2 }
   0x8   :  { %1298 = vst [vmem:[#allocation4_spill] sm:$0xff] %v547_v38  ;;  %v562_v41 = vld [vmem:[%s1276_s0 + $0x148] sm:$0xff]  ;;  %1299 = vst [vmem:[#allocation5_spill] sm:$0xff] %v566_v42  ;;  %v574_v44 = vsel %vm72_vm0, %v535_v34, 0.0  ;;  %v579_v45 = vld [vmem:[%s1276_s0 + $0x150] sm:$0xff]  ;;  %v593_v49 = vsel %vm72_vm0, %v552_v39, 0.0 }
   0x9   :  { %v81_v16 = vadd.f32 %v80_v11, %v79_v13  ;;  %1300 = vst [vmem:[#allocation6_spill] sm:$0xff] %v570_v43  ;;  %1301 = vst [vmem:[#allocation7_spill] sm:$0xff] %v574_v44  ;;  %v584_v46 = vld [vmem:[%s1276_s0 + $0x158] sm:$0xff]  ;;  %v589_v47 = vld [vmem:[%s1276_s0 + $0x160] sm:$0xff]  ;;  %v597_v50 = vsel %vm72_vm0, %v557_v40, 0.0  ;;  %v601_v51 = vsel %vm72_vm0, %v562_v41, 0.0 }
   0xa   :  { %1302 = vst [vmem:[#allocation8_spill] sm:$0xff] %v593_v49  ;;  %1303 = vst [vmem:[#allocation9_spill] sm:$0xff] %v597_v50  ;;  %v606_v52 = vld [vmem:[%s1276_s0 + $0x168] sm:$0xff]  ;;  %v611_v53 = vld [vmem:[%s1276_s0 + $0x170] sm:$0xff]  ;;  %v620_v55 = vsel %vm72_vm0, %v579_v45, 0.0  ;;  %v624_v56 = vsel %vm72_vm0, %v584_v46, 0.0 }
   0xb   :  { %v83_v23 = vadd.f32 %v82_v14, %v81_v16  ;;  %1304 = vst [vmem:[#allocation10_spill] sm:$0xff] %v601_v51  ;;  %v616_v54 = vld [vmem:[%s1276_s0 + $0x178] sm:$0xff]  ;;  %1305 = vst [vmem:[#allocation11_spill] sm:$0xff] %v620_v55  ;;  %v628_v57 = vsel %vm72_vm0, %v589_v47, 0.0  ;;  %v633_v58 = vld [vmem:[%s1276_s0 + $0x180] sm:$0xff]  ;;  %v647_v62 = vsel %vm72_vm0, %v606_v52, 0.0 }
   0xc   :  { %1306 = vst [vmem:[#allocation12_spill] sm:$0xff] %v624_v56  ;;  %1307 = vst [vmem:[#allocation13_spill] sm:$0xff] %v628_v57  ;;  %v638_v59 = vld [vmem:[%s1276_s0 + $0x188] sm:$0xff]  ;;  %v643_v60 = vld [vmem:[%s1276_s0 + $0x190] sm:$0xff]  ;;  %v651_v63 = vsel %vm72_vm0, %v611_v53, 0.0  ;;  %v655_v3 = vsel %vm72_vm0, %v616_v54, 0.0 }
   0xd   :  { %v85_v35 = vadd.f32 %v84_v19, %v83_v23  ;;  %1308 = vst [vmem:[#allocation14_spill] sm:$0xff] %v647_v62  ;;  %1309 = vst [vmem:[#allocation15_spill] sm:$0xff] %v651_v63  ;;  %v660_v4 = vld [vmem:[%s1276_s0 + $0x198] sm:$0xff]  ;;  %v665_v5 = vld [vmem:[%s1276_s0 + $0x1a0] sm:$0xff]  ;;  %v674_v8 = vsel %vm72_vm0, %v633_v58, 0.0  ;;  %v678_v10 = vsel %vm72_vm0, %v638_v59, 0.0 }
   0xe   :  { %1310 = vst [vmem:[#allocation16_spill] sm:$0xff] %v655_v3  ;;  %v670_v7 = vld [vmem:[%s1276_s0 + $0x1a8] sm:$0xff]  ;;  %1311 = vst [vmem:[#allocation17_spill] sm:$0xff] %v674_v8  ;;  %v682_v11 = vsel %vm72_vm0, %v643_v60, 0.0  ;;  %v687_v13 = vld [vmem:[%s1276_s0 + $0x60] sm:$0xff] }
   0xf   :  { %v87_v48 = vadd.f32 %v86_v24, %v85_v35  ;;  %1312 = vst [vmem:[#allocation18_spill] sm:$0xff] %v678_v10  ;;  %1313 = vst [vmem:[#allocation19_spill] sm:$0xff] %v682_v11  ;;  %v692_v14 = vld [vmem:[%s1276_s0 + $0x1b0] sm:$0xff]  ;;  %v697_v16 = vld [vmem:[%s1276_s0 + $0x1b8] sm:$0xff]  ;;  %v706_v24 = vsel %vm72_vm0, %v660_v4, 0.0  ;;  %v714_v35 = vsel %vm72_vm0, %v670_v7, 0.0 }
  0x10   :  { %v702_v19 = vld [vmem:[%s1276_s0 + $0x1c0] sm:$0xff]  ;;  %1314 = vst [vmem:[#allocation20_spill] sm:$0xff] %v706_v24  ;;  %1316 = vst [vmem:[#allocation22_spill] sm:$0xff] %v714_v35  ;;  %v737_v35 = vsel %vm72_vm0, %v697_v16, 0.0  ;;  %v751_v10 = vld [vmem:[%s1276_s0 + $0x1e8] sm:$0xff] }
  0x11   :  { %v89_v61 = vadd.f32 %v88_v25, %v87_v48  ;;  %v710_v25 = vsel %vm72_vm0, %v665_v5, 0.0  ;;  %v719_v48 = vld [vmem:[%s1276_s0 + $0x1c8] sm:$0xff]  ;;  %1318 = vst [vmem:[#allocation24_spill] sm:$0xff] %v737_v35  ;;  %v741_v24 = vsel %vm72_vm0, %v702_v19, 0.0  ;;  %v746_v11 = vld [vmem:[%s1276_s0 + $0x1e0] sm:$0xff]  ;;  %v773_v63 = vld [vmem:[%s1276_s0 + $0x1f8] sm:$0xff] }
  0x12   :  { %1315 = vst [vmem:[#allocation21_spill] sm:$0xff] %v710_v25  ;;  %v733_v25 = vsel %vm72_vm0, %v692_v14, 0.0  ;;  %1319 = vst [vmem:[#allocation25_spill] sm:$0xff] %v741_v24  ;;  %v760_v8 = vsel %vm72_vm0, %v719_v48, 0.0  ;;  %v795_v57 = vsel %vm72_vm0, %v773_v63, 0.0  ;;  %v824_v55 = vld [vmem:[%s1276_s0 + $0x90] sm:$0xff] }
  0x13   :  { %v91_v23 = vadd.f32 %v90_v29, %v89_v61  ;;  %v724_v29 = vld [vmem:[%s1276_s0 + $0x1d0] sm:$0xff]  ;;  %v729_v61 = vld [vmem:[%s1276_s0 + $0x1d8] sm:$0xff]  ;;  %1317 = vst [vmem:[#allocation23_spill] sm:$0xff] %v733_v25  ;;  %1321 = vst [vmem:[#allocation27_spill] sm:$0xff] %v760_v8  ;;  %v783_v8 = vsel %vm72_vm0, %v751_v10, 0.0 }
  0x14   :  { %v756_v25 = vld [vmem:[%s1276_s0 + $0x1f0] sm:$0xff]  ;;  %v764_v24 = vsel %vm72_vm0, %v724_v29, 0.0  ;;  %v768_v3 = vsel %vm72_vm0, %v729_v61, 0.0  ;;  %1324 = vst [vmem:[#allocation30_spill] sm:$0xff] %v773_v63  ;;  %1326 = vst [vmem:[#allocation32_spill] sm:$0xff] %v783_v8  ;;  %v829_v51 = vld [vmem:[%s1276_s0 + $0x98] sm:$0xff] }
  0x15   :  { %1320 = vst [vmem:[#allocation26_spill] sm:$0xff] %v756_v25  ;;  %v93_v35 = vadd.f32 %v92_v30, %v91_v23  ;;  %1322 = vst [vmem:[#allocation28_spill] sm:$0xff] %v764_v24  ;;  %v96_v30 = vsel %vm72_vm0, %v687_v13, 0.0  ;;  %v779_v23 = vsel %vm72_vm0, %v746_v11, 0.0  ;;  %v787_v24 = vsel %vm72_vm0, %v756_v25, 0.0  ;;  %v22_v8 = vld [vmem:[%s1276_s0 + $0x70] sm:$0xff] }
  0x16   :  { %1323 = vst [vmem:[#allocation29_spill] sm:$0xff] %v768_v3  ;;  %1325 = vst [vmem:[#allocation31_spill] sm:$0xff] %v779_v23  ;;  %v21_v3 = vld [vmem:[%s1276_s0 + $0x68] sm:$0xff]  ;;  %v834_v50 = vld [vmem:[%s1276_s0 + $0xa0] sm:$0xff]  ;;  %v110_v38 = vsel %vm72_vm0, %v829_v51, 0.0 }
  0x17   :  { %1327 = vst [vmem:[#allocation33_spill] sm:$0xff] %v787_v24  ;;  %v95_v62 = vadd.f32 %v520_v31, %v93_v35  ;;  %1328 = vst [vmem:[#allocation34_spill] sm:$0xff] %v795_v57  ;;  %v98_v23 = vsel %vm72_vm0, %v21_v3, 0.0  ;;  %v804_v24 = vld [vmem:[%s1276_s0 + $0x78] sm:$0xff]  ;;  %v809_v31 = vld [vmem:[%s1276_s0 + $0x80] sm:$0xff]  ;;  %v100_v57 = vsel %vm72_vm0, %v22_v8, 0.0 }
  0x18   :  { %1329 = vst [vmem:[#allocation35_spill] sm:$0xff] %v804_v24  ;;  %1330 = vst [vmem:[#allocation36_spill] sm:$0xff] %v809_v31  ;;  %v814_v35 = vld [vmem:[%s1276_s0 + $0x88] sm:$0xff]  ;;  %v850_v42 = vld [vmem:[%s1276_s0 + $0xb0] sm:$0xff]  ;;  %v112_v37 = vsel %vm72_vm0, %v834_v50, 0.0 }
  0x19   :  { %v97_v56 = vadd.f32 %v96_v30, %v95_v62  ;;  %1331 = vst [vmem:[#allocation37_spill] sm:$0xff] %v814_v35  ;;  %v206_v62 = vmul.f32 %v424_v0, %v424_v0  ;;  %v207_v30 = vmul.f32 %v429_v1, %v429_v1  ;;  %1332 = vst [vmem:[#allocation38_spill] sm:$0xff] %v824_v55  ;;  %v102_v0 = vsel %vm72_vm0, %v804_v24, 0.0  ;;  %v845_v43 = vld [vmem:[%s1276_s0 + $0xa8] sm:$0xff]  ;;  %v891_v63 = vld [vmem:[%s1276_s0 + $0xd8] sm:$0xff] }
  0x1a   :  { %1333 = vst [vmem:[#allocation39_spill] sm:$0xff] %v829_v51  ;;  %1334 = vst [vmem:[#allocation40_spill] sm:$0xff] %v834_v50  ;;  %v104_v1 = vsel %vm72_vm0, %v809_v31, 0.0  ;;  %v106_v44 = vsel %vm72_vm0, %v814_v35, 0.0  ;;  %v868_v35 = vld [vmem:[%s1276_s0 + $0xc0] sm:$0xff]  ;;  %v873_v31 = vld [vmem:[%s1276_s0 + $0xc8] sm:$0xff]  ;;  %v209_v24 = vmul.f32 %v445_v6, %v445_v6 }
  0x1b   :  { %v99_v49 = vadd.f32 %v98_v23, %v97_v56  ;;  %1335 = vst [vmem:[#allocation41_spill] sm:$0xff] %v845_v43  ;;  %1336 = vst [vmem:[#allocation42_spill] sm:$0xff] %v850_v42  ;;  %v855_v56 = vld [vmem:[%s1276_s0 + $0xb8] sm:$0xff]  ;;  %v108_v23 = vsel %vm72_vm0, %v824_v55, 0.0  ;;  %v878_v51 = vld [vmem:[%s1276_s0 + $0xd0] sm:$0xff]  ;;  %v114_v50 = vsel %vm72_vm0, %v845_v43, 0.0 }
  0x1c   :  { %1337 = vst [vmem:[#allocation43_spill] sm:$0xff] %v855_v56  ;;  %1338 = vst [vmem:[#allocation44_spill] sm:$0xff] %v868_v35  ;;  %v884_v2 = vsel %vm72_vm0, %v850_v42, 0.0  ;;  %v896_v25 = vld [vmem:[%s1276_s0 + $0xe0] sm:$0xff]  ;;  %v908_v6 = vsel %vm72_vm0, %v873_v31, 0.0  ;;  %v912_v42 = vsel %vm72_vm0, %v878_v51, 0.0 }
  0x1d   :  { %1339 = vst [vmem:[#allocation45_spill] sm:$0xff] %v873_v31  ;;  %1340 = vst [vmem:[#allocation46_spill] sm:$0xff] %v878_v51  ;;  %v101_v55 = vadd.f32 %v100_v57, %v99_v49  ;;  %v900_v49 = vsel %vm72_vm0, %v855_v56, 0.0  ;;  %v904_v57 = vsel %vm72_vm0, %v868_v35, 0.0  ;;  %v917_v43 = vld [vmem:[%s1276_s0 + $0xe8] sm:$0xff]  ;;  %v922_v56 = vld [vmem:[%s1276_s0 + $0xf0] sm:$0xff]  ;;  %v210_v51 = vmul.f32 %v452_v9, %v452_v9 }
  0x1e   :  { %1341 = vst [vmem:[#allocation47_spill] sm:$0xff] %v891_v63  ;;  %1342 = vst [vmem:[#allocation48_spill] sm:$0xff] %v896_v25  ;;  %v930_v31 = vsel %vm72_vm0, %v896_v25, 0.0  ;;  %v213_v25 = vmul.f32 %v471_v17, %v471_v17  ;;  %v214_v9 = vmul.f32 %v476_v18, %v476_v18  ;;  %v239_v17 = vmul.f32 %v502_v26, %v502_v26 }
  0x1f   :  { %1343 = vst [vmem:[#allocation49_spill] sm:$0xff] %v904_v57  ;;  %1344 = vst [vmem:[#allocation50_spill] sm:$0xff] %v908_v6  ;;  %v103_v35 = vadd.f32 %v102_v0, %v101_v55  ;;  %v926_v57 = vsel %vm72_vm0, %v891_v63, 0.0  ;;  %v940_v6 = vsel %vm72_vm0, %v922_v56, 0.0  ;;  %v211_v55 = vmul.f32 %v459_v12, %v459_v12 }
  0x20   :  { %1345 = vst [vmem:[#allocation51_spill] sm:$0xff] %v912_v42  ;;  %1346 = vst [vmem:[#allocation52_spill] sm:$0xff] %v917_v43  ;;  %v936_v42 = vsel %vm72_vm0, %v917_v43, 0.0  ;;  %v212_v0 = vmul.f32 %v466_v15, %v466_v15  ;;  %v215_v43 = vmul.f32 %v483_v20, %v483_v20  ;;  %v218_v12 = vmul.f32 %v687_v13, %v687_v13 }
  0x21   :  { %1347 = vst [vmem:[#allocation53_spill] sm:$0xff] %v922_v56  ;;  %1348 = vst [vmem:[#allocation54_spill] sm:$0xff] %v940_v6  ;;  %v105_v63 = vadd.f32 %v104_v1, %v103_v35  ;;  %v216_v56 = vmul.f32 %v488_v21, %v488_v21  ;;  %v217_v6 = vmul.f32 %v493_v22, %v493_v22 }
  0x22   :  { %v958_v15 = vmul.f32 %v21_v3, %v21_v3  ;;  %v960_v1 = vmul.f32 %v22_v8, %v22_v8  ;;  %v240_v18 = vmul.f32 %v507_v27, %v507_v27  ;;  %v241_v20 = vmul.f32 %v512_v28, %v512_v28 }
  0x23   :  { %v107_v35 = vadd.f32 %v106_v44, %v105_v63  ;;  %v242_v21 = vmul.f32 %v525_v32, %v525_v32  ;;  %v243_v22 = vmul.f32 %v530_v33, %v530_v33  ;;  %v244_v44 = vmul.f32 %v535_v34, %v535_v34 }
  0x24   :  { %v245_v3 = vmul.f32 %v552_v39, %v552_v39  ;;  %v246_v26 = vmul.f32 %v557_v40, %v557_v40  ;;  %v247_v27 = vmul.f32 %v562_v41, %v562_v41  ;;  %v248_v28 = vmul.f32 %v579_v45, %v579_v45 }
  0x25   :  { %v109_v63 = vadd.f32 %v108_v23, %v107_v35  ;;  %v249_v32 = vmul.f32 %v584_v46, %v584_v46  ;;  %v270_v33 = vsel %vm72_vm0, %v206_v62, 0.0  ;;  %v271_v34 = vsel %vm72_vm0, %v207_v30, 0.0 }
  0x26   :  { %v250_v39 = vmul.f32 %v589_v47, %v589_v47  ;;  %v272_v13 = vadd.f32 %v271_v34, %v270_v33  ;;  %v273_v40 = vsel %vm72_vm0, %v208_v36, 0.0  ;;  %v251_v41 = vmul.f32 %v606_v52, %v606_v52  ;;  %v1350_v33 = vld [vmem:[#allocation30_spill] sm:$0xff] }
  0x27   :  { %v111_v8 = vadd.f32 %v110_v38, %v109_v63  ;;  %v252_v45 = vmul.f32 %v611_v53, %v611_v53  ;;  %v253_v46 = vmul.f32 %v616_v54, %v616_v54  ;;  %v275_v62 = vsel %vm72_vm0, %v209_v24, 0.0  ;;  %v1349_v63 = vld [vmem:[#allocation26_spill] sm:$0xff] }
  0x28   :  { %v254_v38 = vmul.f32 %v633_v58, %v633_v58  ;;  %v255_v47 = vmul.f32 %v638_v59, %v638_v59  ;;  %v274_v30 = vadd.f32 %v273_v40, %v272_v13  ;;  %v256_v36 = vmul.f32 %v643_v60, %v643_v60  ;;  %v1351_v40 = vld [vmem:[#allocation49_spill] sm:$0xff] }
  0x29   :  { %v113_v23 = vadd.f32 %v112_v37, %v111_v8  ;;  %v257_v52 = vmul.f32 %v660_v4, %v660_v4  ;;  %v258_v53 = vmul.f32 %v665_v5, %v665_v5  ;;  %v277_v54 = vsel %vm72_vm0, %v210_v51, 0.0 }
  0x2a   :  { %v259_v37 = vmul.f32 %v670_v7, %v670_v7  ;;  %v260_v58 = vmul.f32 %v692_v14, %v692_v14  ;;  %v276_v59 = vadd.f32 %v275_v62, %v274_v30  ;;  %v261_v35 = vmul.f32 %v697_v16, %v697_v16 }
  0x2b   :  { %v115_v24 = vadd.f32 %v114_v50, %v113_v23  ;;  %v262_v60 = vmul.f32 %v702_v19, %v702_v19  ;;  %v263_v4 = vmul.f32 %v719_v48, %v719_v48  ;;  %v279_v5 = vsel %vm72_vm0, %v211_v55, 0.0 }
  0x2c   :  { %v264_v51 = vmul.f32 %v724_v29, %v724_v29  ;;  %v265_v7 = vmul.f32 %v729_v61, %v729_v61  ;;  %v278_v14 = vadd.f32 %v277_v54, %v276_v59  ;;  %v266_v16 = vmul.f32 %v746_v11, %v746_v11 }
  0x2d   :  { %v117_v50 = vadd.f32 %v884_v2, %v115_v24  ;;  %v267_v19 = vmul.f32 %v751_v10, %v751_v10  ;;  %v268_v48 = vmul.f32 %v1349_v63, %v1349_v63  ;;  %v281_v55 = vsel %vm72_vm0, %v212_v0, 0.0  ;;  %v1353_v24 = vld [vmem:[#allocation51_spill] sm:$0xff] }
  0x2e   :  { %v269_v29 = vmul.f32 %v1350_v33, %v1350_v33  ;;  %v280_v34 = vadd.f32 %v279_v5, %v278_v14  ;;  %v283_v61 = vsel %vm72_vm0, %v213_v25, 0.0  ;;  %v285_v8 = vsel %vm72_vm0, %v214_v9, 0.0  ;;  %v1355_v33 = vld [vmem:[#allocation54_spill] sm:$0xff] }
  0x2f   :  { %v119_v2 = vadd.f32 %v900_v49, %v117_v50  ;;  %v287_v11 = vsel %vm72_vm0, %v215_v43, 0.0  ;;  %v289_v13 = vsel %vm72_vm0, %v216_v56, 0.0  ;;  %v291_v10 = vsel %vm72_vm0, %v217_v6, 0.0  ;;  %v1352_v6 = vld [vmem:[#allocation50_spill] sm:$0xff] }
  0x30   :  { %v282_v23 = vadd.f32 %v281_v55, %v280_v34  ;;  %v293_v0 = vsel %vm72_vm0, %v218_v12, 0.0  ;;  %v1041_v49 = vsel %vm72_vm0, %v239_v17, 0.0  ;;  %v1044_v30 = vsel %vm72_vm0, %v240_v18, 0.0  ;;  %v1354_v55 = vld [vmem:[#allocation35_spill] sm:$0xff] }
  0x31   :  { %v121_v62 = vadd.f32 %v1351_v40, %v119_v2  ;;  %v1047_v25 = vsel %vm72_vm0, %v241_v20, 0.0  ;;  %v1050_v43 = vsel %vm72_vm0, %v242_v21, 0.0  ;;  %v1053_v56 = vsel %vm72_vm0, %v243_v22, 0.0 }
  0x32   :  { %v284_v54 = vadd.f32 %v283_v61, %v282_v23  ;;  %v1057_v12 = vsel %vm72_vm0, %v244_v44, 0.0  ;;  %v1060_v17 = vsel %vm72_vm0, %v245_v3, 0.0  ;;  %v1063_v18 = vsel %vm72_vm0, %v246_v26, 0.0  ;;  %v1356_v61 = vld [vmem:[#allocation36_spill] sm:$0xff] }
  0x33   :  { %v123_v9 = vadd.f32 %v1352_v6, %v121_v62  ;;  %v1066_v20 = vsel %vm72_vm0, %v247_v27, 0.0  ;;  %v1069_v21 = vsel %vm72_vm0, %v248_v28, 0.0  ;;  %v1072_v22 = vsel %vm72_vm0, %v249_v32, 0.0 }
  0x34   :  { %v286_v5 = vadd.f32 %v285_v8, %v284_v54  ;;  %v1076_v44 = vsel %vm72_vm0, %v250_v39, 0.0  ;;  %v1079_v3 = vsel %vm72_vm0, %v251_v41, 0.0  ;;  %v1082_v26 = vsel %vm72_vm0, %v252_v45, 0.0 }
  0x35   :  { %v125_v59 = vadd.f32 %v1353_v24, %v123_v9  ;;  %v1085_v27 = vsel %vm72_vm0, %v253_v46, 0.0  ;;  %v1088_v28 = vsel %vm72_vm0, %v254_v38, 0.0  ;;  %v1091_v32 = vsel %vm72_vm0, %v255_v47, 0.0  ;;  %v1358_v9 = vld [vmem:[#allocation38_spill] sm:$0xff] }
  0x36   :  { %v288_v14 = vadd.f32 %v287_v11, %v286_v5  ;;  %v1095_v39 = vsel %vm72_vm0, %v256_v36, 0.0  ;;  %v1098_v41 = vsel %vm72_vm0, %v257_v52, 0.0  ;;  %v1101_v45 = vsel %vm72_vm0, %v258_v53, 0.0  ;;  %v1359_v24 = vld [vmem:[#allocation2_spill] sm:$0xff] }
  0x37   :  { %v127_v50 = vadd.f32 %v926_v57, %v125_v59  ;;  %v1104_v46 = vsel %vm72_vm0, %v259_v37, 0.0  ;;  %v1107_v38 = vsel %vm72_vm0, %v260_v58, 0.0  ;;  %v1110_v47 = vsel %vm72_vm0, %v261_v35, 0.0 }
  0x38   :  { %v290_v63 = vadd.f32 %v289_v13, %v288_v14  ;;  %v1114_v36 = vsel %vm72_vm0, %v262_v60, 0.0  ;;  %v1117_v52 = vsel %vm72_vm0, %v263_v4, 0.0  ;;  %v1120_v53 = vsel %vm72_vm0, %v264_v51, 0.0 }
  0x39   :  { %v129_v57 = vadd.f32 %v930_v31, %v127_v50  ;;  %v1123_v37 = vsel %vm72_vm0, %v265_v7, 0.0  ;;  %v1126_v58 = vsel %vm72_vm0, %v266_v16, 0.0  ;;  %v1129_v35 = vsel %vm72_vm0, %v267_v19, 0.0  ;;  %v1134_v31 = vld [vmem:[%s1276_s0 + $0xf8] sm:$0xff]  ;;  %v1360_v50 = vld [vmem:[#allocation39_spill] sm:$0xff] }
  0x3a   :  { %v292_v4 = vadd.f32 %v291_v10, %v290_v63  ;;  %v1138_v51 = vsel %vm72_vm0, %v268_v48, 0.0  ;;  %v1141_v7 = vsel %vm72_vm0, %v269_v29, 0.0  ;;  %v134_v16 = vsel %vm72_vm0, %v1134_v31, 0.0 }
  0x3b   :  { %v131_v60 = vadd.f32 %v936_v42, %v129_v57  ;;  %v221_v19 = vmul.f32 %v1354_v55, %v1354_v55  ;;  %v295_v2 = vsel %vm72_vm0, %v958_v15, 0.0  ;;  %v1152_v42 = vld [vmem:[%s1276_s0 + $0x100] sm:$0xff]  ;;  %v222_v8 = vmul.f32 %v1356_v61, %v1356_v61  ;;  %v1357_v15 = vld [vmem:[#allocation37_spill] sm:$0xff]  ;;  %v1361_v57 = vld [vmem:[#allocation3_spill] sm:$0xff] }
  0x3c   :  { %v294_v34 = vadd.f32 %v293_v0, %v292_v4  ;;  %v136_v29 = vsel %vm72_vm0, %v1152_v42, 0.0  ;;  %v297_v11 = vsel %vm72_vm0, %v960_v1, 0.0  ;;  %v223_v40 = vmul.f32 %v1357_v15, %v1357_v15  ;;  %v1362_v4 = vld [vmem:[#allocation40_spill] sm:$0xff]  ;;  %v1365_v61 = vld [vmem:[#allocation5_spill] sm:$0xff] }
  0x3d   :  { %v133_v48 = vadd.f32 %v1355_v33, %v131_v60  ;;  %v299_v62 = vsel %vm72_vm0, %v221_v19, 0.0  ;;  %v224_v0 = vmul.f32 %v1358_v9, %v1358_v9  ;;  %v301_v54 = vsel %vm72_vm0, %v222_v8, 0.0  ;;  %v1363_v19 = vld [vmem:[#allocation4_spill] sm:$0xff] }
  0x3e   :  { %v296_v10 = vadd.f32 %v295_v2, %v294_v34  ;;  %v225_v1 = vmul.f32 %v1360_v50, %v1360_v50  ;;  %v303_v14 = vsel %vm72_vm0, %v223_v40, 0.0  ;;  %v1367_v40 = vld [vmem:[#allocation6_spill] sm:$0xff] }
  0x3f   :  { %v135_v13 = vadd.f32 %v134_v16, %v133_v48  ;;  %v226_v16 = vmul.f32 %v1362_v4, %v1362_v4  ;;  %v305_v55 = vsel %vm72_vm0, %v224_v0, 0.0  ;;  %v1364_v48 = vld [vmem:[#allocation41_spill] sm:$0xff] }
  0x40   :  { %v298_v6 = vadd.f32 %v297_v11, %v296_v10  ;;  %v227_v34 = vmul.f32 %v1364_v48, %v1364_v48 }
  0x41   :  { %v137_v23 = vadd.f32 %v136_v29, %v135_v13  ;;  %v307_v29 = vsel %vm72_vm0, %v225_v1, 0.0  ;;  %v1366_v13 = vld [vmem:[#allocation42_spill] sm:$0xff]  ;;  %v309_v15 = vsel %vm72_vm0, %v226_v16, 0.0 }
  0x42   :  { %v300_v5 = vadd.f32 %v299_v62, %v298_v6  ;;  %v228_v10 = vmul.f32 %v1366_v13, %v1366_v13  ;;  %v1368_v6 = vld [vmem:[#allocation43_spill] sm:$0xff]  ;;  %v311_v0 = vsel %vm72_vm0, %v227_v34, 0.0 }
  0x43   :  { %v139_v59 = vadd.f32 %v1359_v24, %v137_v23  ;;  %v229_v9 = vmul.f32 %v1368_v6, %v1368_v6 }
  0x44   :  { %v302_v60 = vadd.f32 %v301_v54, %v300_v5  ;;  %v1369_v54 = vld [vmem:[#allocation7_spill] sm:$0xff]  ;;  %v1370_v5 = vld [vmem:[#allocation44_spill] sm:$0xff]  ;;  %v313_v1 = vsel %vm72_vm0, %v228_v10, 0.0 }
  0x45   :  { %v141_v63 = vadd.f32 %v1361_v57, %v139_v59  ;;  %v230_v50 = vmul.f32 %v1370_v5, %v1370_v5  ;;  %v315_v16 = vsel %vm72_vm0, %v229_v9, 0.0 }
  0x46   :  { %v304_v33 = vadd.f32 %v303_v14, %v302_v60  ;;  %v1371_v14 = vld [vmem:[#allocation8_spill] sm:$0xff]  ;;  %v1372_v60 = vld [vmem:[#allocation45_spill] sm:$0xff] }
  0x47   :  { %v143_v2 = vadd.f32 %v1363_v19, %v141_v63  ;;  %v231_v4 = vmul.f32 %v1372_v60, %v1372_v60  ;;  %v317_v34 = vsel %vm72_vm0, %v230_v50, 0.0 }
  0x48   :  { %v306_v11 = vadd.f32 %v305_v55, %v304_v33  ;;  %v1373_v55 = vld [vmem:[#allocation9_spill] sm:$0xff]  ;;  %v1374_v33 = vld [vmem:[#allocation46_spill] sm:$0xff] }
  0x49   :  { %v145_v8 = vadd.f32 %v1365_v61, %v143_v2  ;;  %v232_v48 = vmul.f32 %v1374_v33, %v1374_v33  ;;  %v319_v10 = vsel %vm72_vm0, %v231_v4, 0.0 }
  0x4a   :  { %v308_v23 = vadd.f32 %v307_v29, %v306_v11  ;;  %v1375_v29 = vld [vmem:[#allocation10_spill] sm:$0xff]  ;;  %v1376_v11 = vld [vmem:[#allocation47_spill] sm:$0xff] }
  0x4b   :  { %v147_v62 = vadd.f32 %v1367_v40, %v145_v8  ;;  %v233_v13 = vmul.f32 %v1376_v11, %v1376_v11  ;;  %v321_v9 = vsel %vm72_vm0, %v232_v48, 0.0  ;;  %v1384_v48 = vld [vmem:[#allocation15_spill] sm:$0xff]  ;;  %v1385_v11 = vld [vmem:[#allocation16_spill] sm:$0xff] }
  0x4c   :  { %v310_v59 = vadd.f32 %v309_v15, %v308_v23  ;;  %v1377_v15 = vld [vmem:[#allocation11_spill] sm:$0xff]  ;;  %v1378_v23 = vld [vmem:[#allocation48_spill] sm:$0xff] }
  0x4d   :  { %v149_v24 = vadd.f32 %v1369_v54, %v147_v62  ;;  %v234_v6 = vmul.f32 %v1378_v23, %v1378_v23  ;;  %v323_v50 = vsel %vm72_vm0, %v233_v13, 0.0 }
  0x4e   :  { %v312_v63 = vadd.f32 %v311_v0, %v310_v59  ;;  %v1379_v0 = vld [vmem:[#allocation12_spill] sm:$0xff] }
  0x4f   :  { %v151_v57 = vadd.f32 %v1371_v14, %v149_v24  ;;  %v1380_v59 = vld [vmem:[#allocation52_spill] sm:$0xff]  ;;  %v325_v4 = vsel %vm72_vm0, %v234_v6, 0.0  ;;  %v1387_v6 = vld [vmem:[#allocation18_spill] sm:$0xff] }
  0x50   :  { %v314_v2 = vadd.f32 %v313_v1, %v312_v63  ;;  %v235_v5 = vmul.f32 %v1380_v59, %v1380_v59  ;;  %v1381_v1 = vld [vmem:[#allocation13_spill] sm:$0xff] }
  0x51   :  { %v153_v19 = vadd.f32 %v1373_v55, %v151_v57  ;;  %v1382_v63 = vld [vmem:[#allocation53_spill] sm:$0xff] }
  0x52   :  { %v316_v8 = vadd.f32 %v315_v16, %v314_v2  ;;  %v236_v60 = vmul.f32 %v1382_v63, %v1382_v63  ;;  %v1383_v16 = vld [vmem:[#allocation14_spill] sm:$0xff]  ;;  %v237_v2 = vmul.f32 %v1134_v31, %v1134_v31  ;;  %v327_v33 = vsel %vm72_vm0, %v235_v5, 0.0  ;;  %v1389_v5 = vld [vmem:[#allocation20_spill] sm:$0xff] }
  0x53   :  { %v155_v61 = vadd.f32 %v1375_v29, %v153_v19  ;;  %v1391_v63 = vld [vmem:[#allocation22_spill] sm:$0xff] }
  0x54   :  { %v318_v62 = vadd.f32 %v317_v34, %v316_v8  ;;  %v329_v8 = vsel %vm72_vm0, %v236_v60, 0.0 }
  0x55   :  { %v157_v40 = vadd.f32 %v1377_v15, %v155_v61  ;;  %v238_v61 = vmul.f32 %v1152_v42, %v1152_v42  ;;  %v331_v15 = vsel %vm72_vm0, %v237_v2, 0.0  ;;  %v1393_v2 = vld [vmem:[#allocation24_spill] sm:$0xff] }
  0x56   :  { %v320_v24 = vadd.f32 %v319_v10, %v318_v62 }
  0x57   :  { %v159_v54 = vadd.f32 %v1379_v0, %v157_v40  ;;  %v1386_v40 = vld [vmem:[#allocation17_spill] sm:$0xff]  ;;  %v333_v31 = vsel %vm72_vm0, %v238_v61, 0.0  ;;  %v1395_v61 = vld [vmem:[#allocation27_spill] sm:$0xff] }
  0x58   :  { %v322_v57 = vadd.f32 %v321_v9, %v320_v24 }
  0x59   :  { %v161_v14 = vadd.f32 %v1381_v1, %v159_v54  ;;  %v1388_v54 = vld [vmem:[#allocation19_spill] sm:$0xff]  ;;  %v1390_v1 = vld [vmem:[#allocation21_spill] sm:$0xff] }
  0x5a   :  { %v324_v19 = vadd.f32 %v323_v50, %v322_v57 }
  0x5b   :  { %v163_v55 = vadd.f32 %v1383_v16, %v161_v14  ;;  %v1392_v16 = vld [vmem:[#allocation23_spill] sm:$0xff] }
  0x5c   :  { %v326_v29 = vadd.f32 %v325_v4, %v324_v19 }
  0x5d   :  { %v165_v34 = vadd.f32 %v1384_v48, %v163_v55 }
  0x5e   :  { %v328_v10 = vadd.f32 %v327_v33, %v326_v29 }
  0x5f   :  { %v167_v13 = vadd.f32 %v1385_v11, %v165_v34  ;;  %v1394_v34 = vld [vmem:[#allocation25_spill] sm:$0xff]  ;;  %v1396_v11 = vld [vmem:[#allocation28_spill] sm:$0xff] }
  0x60   :  { %v330_v23 = vadd.f32 %v329_v8, %v328_v10  ;;  %v1397_v10 = vld [vmem:[#allocation29_spill] sm:$0xff] }
  0x61   :  { %v169_v62 = vadd.f32 %v1386_v40, %v167_v13  ;;  %v1398_v40 = vld [vmem:[#allocation31_spill] sm:$0xff] }
  0x62   :  { %v332_v0 = vadd.f32 %v331_v15, %v330_v23  ;;  %v1399_v23 = vld [vmem:[#allocation32_spill] sm:$0xff] }
  0x63   :  { %v171_v9 = vadd.f32 %v1387_v6, %v169_v62  ;;  %v1400_v6 = vld [vmem:[#allocation33_spill] sm:$0xff] }
  0x64   :  { %v334_v59 = vadd.f32 %v333_v31, %v332_v0  ;;  %v1401_v0 = vld [vmem:[#allocation34_spill] sm:$0xff] }
  0x65   :  { %v173_v24 = vadd.f32 %v1388_v54, %v171_v9 }
  0x66   :  { %v336_v50 = vadd.f32 %v1041_v49, %v334_v59 }
  0x67   :  { %v175_v42 = vadd.f32 %v1389_v5, %v173_v24 }
  0x68   :  { %v338_v57 = vadd.f32 %v1044_v30, %v336_v50 }
  0x69   :  { %v177_v14 = vadd.f32 %v1390_v1, %v175_v42 }
  0x6a   :  { %v340_v4 = vadd.f32 %v1047_v25, %v338_v57 }
  0x6b   :  { %v179_v60 = vadd.f32 %v1391_v63, %v177_v14 }
  0x6c   :  { %v342_v19 = vadd.f32 %v1050_v43, %v340_v4 }
  0x6d   :  { %v181_v55 = vadd.f32 %v1392_v16, %v179_v60 }
  0x6e   :  { %v344_v48 = vadd.f32 %v1053_v56, %v342_v19 }
  0x6f   :  { %v183_v33 = vadd.f32 %v1393_v2, %v181_v55 }
  0x70   :  { %v346_v49 = vadd.f32 %v1057_v12, %v344_v48 }
  0x71   :  { %v185_v29 = vadd.f32 %v1394_v34, %v183_v33 }
  0x72   :  { %v348_v30 = vadd.f32 %v1060_v17, %v346_v49 }
  0x73   :  { %v187_v8 = vadd.f32 %v1395_v61, %v185_v29 }
  0x74   :  { %v350_v25 = vadd.f32 %v1063_v18, %v348_v30 }
  0x75   :  { %v189_v13 = vadd.f32 %v1396_v11, %v187_v8 }
  0x76   :  { %v352_v43 = vadd.f32 %v1066_v20, %v350_v25 }
  0x77   :  { %v191_v15 = vadd.f32 %v1397_v10, %v189_v13 }
  0x78   :  { %v354_v56 = vadd.f32 %v1069_v21, %v352_v43 }
  0x79   :  { %v193_v62 = vadd.f32 %v1398_v40, %v191_v15 }
  0x7a   :  { %v356_v12 = vadd.f32 %v1072_v22, %v354_v56 }
  0x7b   :  { %v195_v31 = vadd.f32 %v1399_v23, %v193_v62 }
  0x7c   :  { %v358_v17 = vadd.f32 %v1076_v44, %v356_v12 }
  0x7d   :  { %v197_v9 = vadd.f32 %v1400_v6, %v195_v31 }
  0x7e   :  { %v360_v18 = vadd.f32 %v1079_v3, %v358_v17 }
  0x7f   :  { %v199_v54 = vadd.f32 %v1401_v0, %v197_v9 }
  0x80   :  { %v362_v24 = vadd.f32 %v1082_v26, %v360_v18 }
  0x81   :  { %v200_v1 = vrot.slane %v199_v54, 4 }
  0x82   :  { %v364_v20 = vadd.f32 %v1085_v27, %v362_v24 }
  0x84   :  { %v366_v59 = vadd.f32 %v1088_v28, %v364_v20 }
  0x86   :  { %v368_v21 = vadd.f32 %v1091_v32, %v366_v59 }
  0x88   :  { %v370_v5 = vadd.f32 %v1095_v39, %v368_v21  ;;  %v201_v39 = vadd.f32 %v200_v1, %v199_v54 }
  0x8a   :  { %v372_v22 = vadd.f32 %v1098_v41, %v370_v5  ;;  %v202_v14 = vrot.slane %v201_v39, 2 }
  0x8c   :  { %v374_v42 = vadd.f32 %v1101_v45, %v372_v22 }
  0x8e   :  { %v376_v44 = vadd.f32 %v1104_v46, %v374_v42 }
  0x90   :  { %v378_v50 = vadd.f32 %v1107_v38, %v376_v44 }
  0x92   :  { %v380_v3 = vadd.f32 %v1110_v47, %v378_v50  ;;  %v203_v47 = vadd.f32 %v202_v14, %v201_v39 }
  0x94   :  { %v382_v26 = vadd.f32 %v1114_v36, %v380_v3  ;;  %v204_v63 = vrot.slane %v203_v47, 1 }
  0x96   :  { %v384_v27 = vadd.f32 %v1117_v52, %v382_v26  ;;  %v205_v4 = vadd.f32 %v204_v63, %v203_v47 }
  0x98   :  { %v386_v28 = vadd.f32 %v1120_v53, %v384_v27 }
  0x9a   :  { %v388_v32 = vadd.f32 %v1123_v37, %v386_v28 }
  0x9c   :  { %v390_v41 = vadd.f32 %v1126_v58, %v388_v32 }
  0x9e   :  { %v392_v45 = vadd.f32 %v1129_v35, %v390_v41 }
  0xa0   :  { %v394_v46 = vadd.f32 %v1138_v51, %v392_v45 }
  0xa2   :  { %v396_v38 = vadd.f32 %v1141_v7, %v394_v46 }
  0xa4   :  { %v397_v57 = vrot.slane %v396_v38, 4 }
  0xa6   :  { %v398_v36 = vadd.f32 %v397_v57, %v396_v38 }
  0xa8   :  { %v399_v52 = vrot.slane %v398_v36, 2 }
  0xaa   :  { %v400_v60 = vadd.f32 %v399_v52, %v398_v36 }
  0xac   :  { %v401_v53 = vrot.slane %v400_v60, 1 }
  0xae   :  { %v402_v37 = vadd.f32 %v401_v53, %v400_v60 }
  0xb0   :  { %v404_v16 = vsel %vm403_vm1, %v205_v4, %v402_v37 }
  0xb1   :  { %406 = vst.msk [vmem:[%s1277_s1] sm:$0x3] %vm405_vm2, %v404_v16 }

// kernel: wide_basic_forward_nchw.4
= control target key start
LH: loop header
LB: loop body
LE: loop exit
PB: predicated region body
PF: predicated region fallthrough
CT: control target
= control target key end

     0   :  { %s5423_s21 = smov 0   ;;  %s7148_s0 = inlined_call_operand.vmem [shape: f32[2,16,16,4], index: 0, kind: input, shape index: {}]   ;;  %s7149_s1 = inlined_call_operand.vmem [shape: f32[1,4], index: 1, kind: input, shape index: {}]   ;;  %s7150_s2 = inlined_call_operand.vmem [shape: f32[1,4], index: 2, kind: input, shape index: {}]   ;;  %s7151_s3 = inlined_call_operand.vmem [shape: bf16[36,8], index: 3, kind: input, shape index: {}]   ;;  %s7152_s4 = inlined_call_operand.vmem [shape: f32[1,8], index: 4, kind: input, shape index: {}]   ;;  %s7153_s5 = inlined_call_operand.vmem [shape: bf16[2,16,16,8], index: 5, kind: output, shape index: {0}]   ;;  %s7154_s6 = inlined_call_operand.vmem [shape: f32[2,2,8], index: 6, kind: output, shape index: {1}]  }
   0x1 LB: > { %s4876_s22 = sadd.s32 4294967295, %s5377_s21   ;;  %p4880_p0 = scmp.ge.s32.totalorder %s5377_s21, 1  ;;  %s5377_s21 = sphi %s5423_s21, %s17_s21  }
   0x2   : > { %p215_p1 = scmp.lt.s32.totalorder %s5377_s21, 3 }
   0x4   : > { %p216_p2 = pnand %p4880_p0, %p215_p1 }
   0x5   : > { %vm406_vm0 = vcmask (!%p216_p2), 27648   ;;  %vm409_vm1 = vcmask (!%p216_p2), 24576   ;;  %vm416_vm2 = vsmask.f32 (!%p216_p2), 256  ;;  %v5379_v0 = vmov (!%p216_p2), 0   ;;  %p249_p3 = scmp.lt.s32.totalorder (!%p216_p2), %s4876_s22, 1 }
   0x6   : > { %219 = sbr.rel (%p216_p2) target bundleno = 799 (0x31f), region = 40  ;;  %407 = vst.msk [vmem:[#allocation2] sm:$0xf] (!%p216_p2), %vm406_vm0, %v5379_v0  ;;  %408 = vst.msk [vmem:[#allocation2 + $0x4] sm:$0xf] (!%p216_p2), %vm406_vm0, %v5379_v0  ;;  %vm1850_vm5 = vcmask (!%p216_p2), 1042432  }
   0x7   : > { %410 = vst.msk [vmem:[#allocation2 + $0x8] sm:$0x1] (!%p216_p2), %vm409_vm1, %v5379_v0  ;;  %414 = vst.msk [vmem:[#allocation2 + $0xd4] sm:$0x1] (!%p216_p2), %vm409_vm1, %v5379_v0  ;;  %vm472_vm4 = vsmask.f32 (!%p216_p2), 7938 }
   0x8   : > { %412 = vst.msk [vmem:[#allocation2 + $0xcc] sm:$0xf] (!%p216_p2), %vm406_vm0, %v5379_v0  ;;  %413 = vst.msk [vmem:[#allocation2 + $0xd0] sm:$0xf] (!%p216_p2), %vm406_vm0, %v5379_v0  ;;  %vm1851_vm6 = vcmask (!%p216_p2), 1046532   ;;  %s5380_s7 = smov (!%p216_p2), 8  }
   0x9   : > { %vm5439_vm3 = vmand (!%p216_p2), %vm409_vm1, %vm416_vm2  ;;  %v424_v2 = vld [vmem:[#allocation2 + $0x18] sm:$0x1] (!%p216_p2)  ;;  %v421_v4 = vld [vmem:[#allocation2 + $0xc] sm:$0x1] (!%p216_p2)  ;;  %vm1254_vm9 = vsmask.f32 (!%p216_p2), 3328 }
   0xa   : > { %v425_v3 = vsel (!%p216_p2), %vm5439_vm3, 0, %v424_v2  ;;  %v427_v5 = vld [vmem:[#allocation2 + $0x24] sm:$0x1] (!%p216_p2)  ;;  %v422_v6 = vsel (!%p216_p2), %vm5439_vm3, 0, %v421_v4  ;;  %v430_v8 = vld [vmem:[#allocation2 + $0x30] sm:$0x1] (!%p216_p2)  ;;  %vm5453_vm7 = vmand (!%p216_p2), %vm409_vm1, %vm472_vm4 }
   0xb   : > { %426 = vst [vmem:[#allocation2 + $0x18] sm:$0x1] (!%p216_p2), %v425_v3  ;;  %v428_v7 = vsel (!%p216_p2), %vm5439_vm3, 0, %v427_v5  ;;  %v5461_v10 = vld [vmem:[%s7149_s1] ss:$0 sm:$0xff] (!%p216_p2)  ;;  %v431_v11 = vsel (!%p216_p2), %vm5439_vm3, 0, %v430_v8  ;;  %vm5467_vm8 = vmor (!%p216_p2), %vm1850_vm5, %vm1851_vm6 }
   0xc   : > { %423 = vst [vmem:[#allocation2 + $0xc] sm:$0x1] (!%p216_p2), %v422_v6  ;;  %429 = vst [vmem:[#allocation2 + $0x24] sm:$0x1] (!%p216_p2), %v428_v7  ;;  %v477_v12 = vld [vmem:[#allocation2 + $0x14] sm:$0x1] (!%p216_p2) }
   0xd   : > { %s7208_s22 = smov (!%p249_p3, %s4876_s22), 1  ;;  %v5479_v14 = vld [vmem:[%s7150_s2] ss:$0 sm:$0xff]  ;;  %432 = vst [vmem:[#allocation2 + $0x30] sm:$0x1] %v431_v11  ;;  %v478_v15 = vsel %vm5453_vm7, 0, %v477_v12  ;;  %vm5531_vm13 = vmand %vm406_vm0, %vm472_vm4 }
   0xe   : > { %s5166_s23 = sshll.u32 %s7208_s22, 8  ;;  %v480_v16 = vld [vmem:[#allocation2 + $0x20] sm:$0x1]  ;;  %v474_v17 = vld [vmem:[#allocation2 + $0x8] sm:$0x1]  ;;  %s5381_s8 = smov 4  }
   0xf   : > { %s5474_s28 = scalar_lea.vmem %s7148_s0, %s5166_s23  ;;  %v1754_v18 = vld [vmem:[#allocation2] sm:$0xe]  ;;  %v1755_v19 = vld [vmem:[#allocation2 + $0x4] sm:$0xf]  ;;  %vm1255_vm10 = vsmask.f32 7440 }
  0x10   : > { %479 = vst [vmem:[#allocation2 + $0x14] sm:$0x1] %v478_v15  ;;  %v475_v20 = vsel %vm5453_vm7, 0, %v474_v17  ;;  %v4952_v21 = vrot.slane %v1754_v18, 9  ;;  %v1855_v22 = vrot.slane %v1755_v19, 5  ;;  %v266_v24 = vld [vmem:[%s5474_s28 + $0x10] sm:$0xff]  ;;  %vm5523_vm12 = vmor %vm1254_vm9, %vm1255_vm10 }
  0x11   : > { %v418_v23 = vld [vmem:[#allocation2] sm:$0x1]  ;;  %476 = vst [vmem:[#allocation2 + $0x8] sm:$0x1] %v475_v20  ;;  %v1207_v26 = vld [vmem:[#allocation2 + $0x4] sm:$0xf]  ;;  %v305_v28 = vsub.f32 %v266_v24, %v5461_v10 }
  0x12   : > { %v419_v25 = vsel %vm5439_vm3, 0, %v418_v23  ;;  %v267_v27 = vld [vmem:[%s5474_s28 + $0x18] sm:$0xff]  ;;  %v264_v29 = vld [vmem:[%s5474_s28] sm:$0xff]  ;;  %v481_v30 = vsel %vm5453_vm7, 0, %v480_v16  ;;  %v5495_v31 = vsel %vm5467_vm8, %v4952_v21, %v1855_v22  ;;  %v1857_v32 = vrot.slane %v1855_v22, 4  ;;  %v265_v35 = vld [vmem:[%s5474_s28 + $0x8] sm:$0xff] }
  0x13   : > { %420 = vst [vmem:[#allocation2] sm:$0x1] %v419_v25  ;;  %v1267_v33 = vshll.u32 %v1207_v26, 16  ;;  %v1271_v34 = vshrl.u32 %v1207_v26, 16  ;;  %v268_v36 = vld [vmem:[%s5474_s28 + $0x20] sm:$0xff]  ;;  %v269_v37 = vld [vmem:[%s5474_s28 + $0x28] sm:$0xff]  ;;  %v306_v38 = vsub.f32 %v267_v27, %v5461_v10  ;;  %v344_v39 = vmul.f32 %v5479_v14, %v305_v28 }
  0x14   : > { %482 = vst [vmem:[#allocation2 + $0x20] sm:$0x1] %v481_v30  ;;  %vm624_vm11 = vsmask.f32 4368  ;;  %v303_v40 = vsub.f32 %v264_v29, %v5461_v10  ;;  %v304_v41 = vsub.f32 %v265_v35, %v5461_v10  ;;  %v270_v42 = vld [vmem:[%s5474_s28 + $0x30] sm:$0xff]  ;;  %v307_v45 = vsub.f32 %v268_v36, %v5461_v10  ;;  %v271_v51 = vld [vmem:[%s5474_s28 + $0x38] sm:$0xff] }
  0x15   : > { %v5505_v43 = vrot.slane %v1267_v33, 5  ;;  %v1273_v44 = vrot.slane %v1271_v34, 4  ;;  %v308_v46 = vsub.f32 %v269_v37, %v5461_v10  ;;  %v345_v47 = vmul.f32 %v5479_v14, %v306_v38  ;;  %v956_v26 = vld [vmem:[#allocation2 + $0x18] sm:$0xf]  ;;  %vm5541_vm14 = vmor %vm416_vm2, %vm624_vm11  ;;  %s5382_s9 = smov 12   ;;  %s5383_s10 = smov 24  }
  0x16   : > { %v376_v48 = vmax.f32 %v344_v39, 0.0  ;;  %v342_v49 = vmul.f32 %v5479_v14, %v303_v40  ;;  %v343_v50 = vmul.f32 %v5479_v14, %v304_v41  ;;  %v346_v53 = vmul.f32 %v5479_v14, %v307_v45  ;;  %v949_v39 = vld [vmem:[#allocation2 + $0xc] sm:$0xf]  ;;  %s5384_s11 = smov 20   ;;  %s5385_s12 = smov 32  }
  0x17   : > { %v1274_v52 = vor.u32 %v1273_v44, %v5505_v43  ;;  %v347_v54 = vmul.f32 %v5479_v14, %v308_v46  ;;  %v309_v55 = vsub.f32 %v270_v42, %v5461_v10  ;;  %v377_v56 = vmax.f32 %v345_v47, 0.0  ;;  %s5386_s13 = smov 16   ;;  %s5387_s14 = smov 28   ;;  %v525_v21 = vld [vmem:[#allocation2 + $0xd4] sm:$0x1] }
  0x18   : > { %v5170_v57 = vpack.c.bf16 %v376_v48, %v376_v48  ;;  %v374_v58 = vmax.f32 %v342_v49, 0.0  ;;  %v375_v59 = vmax.f32 %v343_v50, 0.0  ;;  %v1756_v60 = vld [vmem:[#allocation2 + $0x8] sm:$0x1]  ;;  %v378_v63 = vmax.f32 %v346_v53, 0.0 }
  0x19   : > { %v1208_v61 = vld [vmem:[#allocation2 + $0x8] sm:$0x1]  ;;  %v1275_v62 = vrot.slane %v1274_v52, 4  ;;  %v310_v0 = vsub.f32 %v271_v51, %v5461_v10  ;;  %v5519_v2 = vmul.f32 %v5479_v14, %v309_v55  ;;  %v1858_v3 = vrot.slane %v1756_v60, 5  ;;  %v483_v55 = vld [vmem:[#allocation2 + $0x2c] sm:$0x1] }
  0x1a   : > { %v1206_v4 = vld [vmem:[#allocation2] sm:$0xf]  ;;  %v1277_v5 = vshll.u32 %v1208_v61, 16  ;;  %v5171_v6 = vpack.c.bf16 %v377_v56, %v377_v56  ;;  %v644_v7 = vshrl.u32 %v5170_v57, 16  ;;  %v647_v15 = vshll.u32 %v5170_v57, 16 }
  0x1b   : > { %v1258_v11 = vshrl.u32 %v1206_v4, 16  ;;  %v1261_v12 = vshll.u32 %v1206_v4, 16  ;;  %v5168_v16 = vpack.c.bf16 %v374_v58, %v374_v58  ;;  %v1859_v17 = vsel %vm5467_vm8, %v1857_v32, %v1858_v3  ;;  %v960_v60 = vld [vmem:[#allocation2 + $0x20] sm:$0x1] }
  0x1c   : > { %v1279_v18 = vrot.slane %v1277_v5, 5  ;;  %v646_v19 = vrot.slane %v644_v7, 7  ;;  %v652_v20 = vshrl.u32 %v5171_v6, 16  ;;  %v4968_v22 = vcombine.low %v5495_v31, %v1859_v17  ;;  %v963_v7 = vld [vmem:[#allocation2 + $0x24] sm:$0xf] }
  0x1d   : > { %v1260_v23 = vrot.slane %v1258_v11, 4  ;;  %v1263_v24 = vrot.slane %v1261_v12, 5  ;;  %v655_v25 = vshll.u32 %v5171_v6, 16  ;;  %v5169_v31 = vpack.c.bf16 %v375_v59, %v375_v59 }
  0x1e   : > { %v1280_v27 = vsel %vm5523_vm12, %v1275_v62, %v1279_v18  ;;  %v649_v28 = vor.u32 %v647_v15, %v646_v19  ;;  %v650_v29 = vrot.slane %v646_v19, 4  ;;  %v654_v30 = vrot.slane %v652_v20, 7  ;;  %2013 = vrot.lane.b32.xlu1 %v4968_v22, %s5380_s7  ;;  %v272_v19 = vld [vmem:[%s5474_s28 + $0x40] sm:$0xff] }
  0x1f   : > { %v1264_v32 = vor.u32 %v1263_v24, %v1260_v23  ;;  %v627_v34 = vshrl.u32 %v5168_v16, 16  ;;  %v630_v35 = vshll.u32 %v5168_v16, 16  ;;  %v379_v40 = vmax.f32 %v347_v54, 0.0  ;;  %v953_v54 = vld [vmem:[#allocation2 + $0x14] sm:$0x1] }
  0x20   : > { %v657_v36 = vor.u32 %v655_v25, %v654_v30  ;;  %v659_v37 = vrot.slane %v654_v30, 4  ;;  %v957_v38 = vsel %vm5531_vm13, %v649_v28, %v956_v26  ;;  %v635_v44 = vshrl.u32 %v5169_v31, 16 }
  0x21   : > { %v1265_v41 = vrot.slane %v1264_v32, 4  ;;  %958 = vst [vmem:[#allocation2 + $0x18] sm:$0xf] %v957_v38  ;;  %v629_v42 = vrot.slane %v627_v34, 7  ;;  %v638_v45 = vshll.u32 %v5169_v31, 16  ;;  %v5172_v47 = vpack.c.bf16 %v378_v63, %v378_v63 }
  0x22   : > { %v658_v46 = vsel %vm5541_vm14, %v650_v29, %v657_v36  ;;  %v5173_v48 = vpack.c.bf16 %v379_v40, %v379_v40  ;;  %v349_v49 = vmul.f32 %v5479_v14, %v310_v0  ;;  %v637_v53 = vrot.slane %v635_v44, 7  ;;  %v274_v36 = vld [vmem:[%s5474_s28 + $0x50] sm:$0xff] }
  0x23   : > { %v1270_v50 = vsel %vm5523_vm12, %v1265_v41, %v5505_v43  ;;  %959 = vst.msk [vmem:[#allocation2 + $0x1c] sm:$0xf] %vm406_vm0, %v658_v46  ;;  %v632_v51 = vor.u32 %v630_v35, %v629_v42  ;;  %v633_v52 = vrot.slane %v629_v42, 4  ;;  %v661_v57 = vshrl.u32 %v5172_v47, 16  ;;  %v273_v35 = vld [vmem:[%s5474_s28 + $0x48] sm:$0xff] }
  0x24   : > { %v4936_v56 = vcombine.low %v1270_v50, %v1280_v27  ;;  %v664_v58 = vshll.u32 %v5172_v47, 16  ;;  %v669_v59 = vshrl.u32 %v5173_v48, 16  ;;  %v640_v61 = vor.u32 %v638_v45, %v637_v53 }
  0x25   : > { %v642_v62 = vrot.slane %v637_v53, 4  ;;  %v950_v63 = vsel %vm5531_vm13, %v632_v51, %v949_v39  ;;  %v672_v0 = vshll.u32 %v5173_v48, 16  ;;  %v663_v43 = vrot.slane %v661_v57, 7 }
  0x26   : > { %1689 = vrot.lane.b32.xlu0 %v4936_v56, %s5381_s8  ;;  %951 = vst [vmem:[#allocation2 + $0xc] sm:$0xf] %v950_v63  ;;  %v5557_v3 = vrot.slane %v669_v59, 7  ;;  %v380_v4 = vmax.f32 %v5519_v2, 0.0  ;;  %v381_v5 = vmax.f32 %v349_v49, 0.0  ;;  %v641_v6 = vsel %vm5541_vm14, %v633_v52, %v640_v61  ;;  %v275_v52 = vld [vmem:[%s5474_s28 + $0x58] sm:$0xff] }
  0x27   : > { %v954_v11 = vsel %vm5439_vm3, %v642_v62, %v953_v54  ;;  %v961_v12 = vsel %vm5439_vm3, %v659_v37, %v960_v60  ;;  %v484_v15 = vsel %vm5453_vm7, 0, %v483_v55  ;;  %952 = vst.msk [vmem:[#allocation2 + $0x10] sm:$0xf] %vm406_vm0, %v641_v6  ;;  %v666_v16 = vor.u32 %v664_v58, %v663_v43  ;;  %v970_v37 = vld [vmem:[#allocation2 + $0x30] sm:$0xf] }
  0x28   : > { %v667_v17 = vrot.slane %v663_v43, 4  ;;  %v674_v2 = vor.u32 %v672_v0, %v5557_v3  ;;  %v676_v18 = vrot.slane %v5557_v3, 4  ;;  %955 = vst [vmem:[#allocation2 + $0x14] sm:$0x1] %v954_v11  ;;  %962 = vst [vmem:[#allocation2 + $0x20] sm:$0x1] %v961_v12  ;;  %v5174_v20 = vpack.c.bf16 %v380_v4, %v380_v4 }
  0x29   : > { %485 = vst [vmem:[#allocation2 + $0x2c] sm:$0x1] %v484_v15  ;;  %v5175_v22 = vpack.c.bf16 %v381_v5, %v381_v5  ;;  %v5572_v23 = vld [vmem:[#allocation2 + $0x18] sm:$0xe]  ;;  %v964_v28 = vsel %vm5531_vm13, %v666_v16, %v963_v7  ;;  %v311_v46 = vsub.f32 %v272_v19, %v5461_v10  ;;  %v312_v62 = vsub.f32 %v273_v35, %v5461_v10 }
  0x2a   : > { %v5574_v24 = vld [vmem:[#allocation2 + $0x18] sm:$0xe]  ;;  %v675_v27 = vsel %vm5541_vm14, %v667_v17, %v674_v2  ;;  %v5017_v29 = vrot.slane %v5572_v23, 9  ;;  %965 = vst [vmem:[#allocation2 + $0x24] sm:$0xf] %v964_v28  ;;  %v678_v30 = vshrl.u32 %v5174_v20, 16  ;;  %v313_v63 = vsub.f32 %v274_v36, %v5461_v10 }
  0x2b   : > { %v5576_v25 = vld [vmem:[#allocation2 + $0x18] sm:$0xf]  ;;  %966 = vst.msk [vmem:[#allocation2 + $0x28] sm:$0xf] %vm406_vm0, %v675_v27  ;;  %v681_v32 = vshll.u32 %v5174_v20, 16  ;;  %v686_v31 = vshrl.u32 %v5175_v22, 16  ;;  %v5606_v17 = vmul.f32 %v5479_v14, %v311_v46  ;;  %v314_v2 = vsub.f32 %v275_v52, %v5461_v10 }
  0x2c   : > { %v5314_v26 = vld [vmem:[#allocation2 + $0x18] sm:$0xff]   ;;  %v689_v34 = vshll.u32 %v5175_v22, 16  ;;  %v5080_v40 = vrot.slane %v5574_v24, 9  ;;  %v2328_v41 = vshrl.u32 %v5576_v25, 16  ;;  %v680_v42 = vrot.slane %v678_v30, 7 }
  0x2d   : > { %2192 = vrot.lane.b32.xlu1 %v5314_v26, %s5382_s9  ;;  %v2804_v38 = vld [vmem:[#allocation2 + $0x1c] sm:$0xf]  ;;  %v5589_v44 = vrot.slane %v686_v31, 7  ;;  %v1757_v45 = vld [vmem:[#allocation2 + $0xc] sm:$0xe]  ;;  %v5612_v31 = vmul.f32 %v5479_v14, %v312_v62  ;;  %vm7155_vm15 = vcmask 31744  }
  0x2e   : > { %v3845_v39 = vld [vmem:[#allocation2 + $0x1c] sm:$0xf]  ;;  %v4953_v47 = vrot.slane %v1757_v45, 9  ;;  %v2800_v48 = vld [vmem:[#allocation2 + $0xc] sm:$0xe]  ;;  %v2905_v49 = vrot.slane %v2804_v38, 5  ;;  %v683_v55 = vor.u32 %v681_v32, %v680_v42 }
  0x2f   : > { %v3942_v50 = vrot.slane %v3845_v39, 5  ;;  %v5592_v51 = vrot.slane %v2328_v41, 4  ;;  %v5315_v53 = vld [vmem:[#allocation2 + $0xc] sm:$0xff]   ;;  %v5317_v54 = vld [vmem:[#allocation2 + $0x18] sm:$0xff]   ;;  %v684_v56 = vrot.slane %v680_v42, 4  ;;  %v691_v57 = vor.u32 %v689_v34, %v5589_v44 }
  0x30   : > { %v693_v58 = vrot.slane %v5589_v44, 4  ;;  %v1758_v59 = vld [vmem:[#allocation2 + $0x10] sm:$0xf]  ;;  %v1759_v60 = vld [vmem:[#allocation2 + $0x14] sm:$0x1]  ;;  %2190 = vrot.lane.b32.xlu0 %v5315_v53, %s5382_s9  ;;  %v971_v43 = vsel %vm5531_vm13, %v683_v55, %v970_v37  ;;  %v5016_v12 = vrot.slane %v2800_v48, 9  ;;  %v5615_v34 = vmul.f32 %v5479_v14, %v313_v63 }
  0x31   : > { %v2801_v61 = vld [vmem:[#allocation2 + $0x10] sm:$0xf]  ;;  %v692_v0 = vsel %vm5541_vm14, %v684_v56, %v691_v57  ;;  %v1862_v4 = vrot.slane %v1758_v59, 5  ;;  %v1865_v5 = vrot.slane %v1759_v60, 5  ;;  %v2802_v6 = vld [vmem:[#allocation2 + $0x14] sm:$0x1]  ;;  %v5627_v41 = vsel %vm5467_vm8, %v5017_v29, %v2905_v49 }
  0x32   : > { %v2805_v7 = vld [vmem:[#allocation2 + $0x20] sm:$0x1]  ;;  %v5316_v11 = vld [vmem:[#allocation2 + $0x24] sm:$0xff]   ;;  %972 = vst [vmem:[#allocation2 + $0x30] sm:$0xf] %v971_v43  ;;  %v2898_v19 = vrot.slane %v2801_v61, 5  ;;  %v3943_v42 = vsel %vm5467_vm8, %v5080_v40, %v3942_v50  ;;  %v5640_v40 = vmul.f32 %v5479_v14, %v314_v2 }
  0x33   : > { %973 = vst.msk [vmem:[#allocation2 + $0x34] sm:$0xf] %vm406_vm0, %v692_v0  ;;  %v5319_v15 = vld [vmem:[#allocation2 + $0x24] sm:$0xff]   ;;  %v1864_v16 = vrot.slane %v1862_v4, 4  ;;  %3236 = vrot.lane.b32.xlu1 %v5316_v11, %s5383_s10  ;;  %v2901_v20 = vrot.slane %v2802_v6, 5  ;;  %v2907_v22 = vrot.slane %v2905_v49, 4  ;;  %v1863_v35 = vsel %vm5467_vm8, %v4953_v47, %v1862_v4 }
  0x34   : > { %v2908_v24 = vrot.slane %v2805_v7, 5  ;;  %v3846_v26 = vld [vmem:[#allocation2 + $0x20] sm:$0x1]  ;;  %3234 = vrot.lane.b32.xlu0 %v5317_v54, %s5383_s10  ;;  %v3944_v27 = vrot.slane %v3942_v50, 4  ;;  %v967_v30 = vld [vmem:[#allocation2 + $0x2c] sm:$0x1]  ;;  %v2899_v37 = vsel %vm5467_vm8, %v5016_v12, %v2898_v19 }
  0x35   : > { %v3945_v28 = vrot.slane %v3846_v26, 5  ;;  %v1763_v32 = vld [vmem:[#allocation2 + $0x24] sm:$0xe]  ;;  %v1866_v36 = vsel %vm5467_vm8, %v1864_v16, %v1865_v5  ;;  %v2900_v38 = vrot.slane %v2898_v19, 4  ;;  %v1764_v39 = vld [vmem:[#allocation2 + $0x28] sm:$0xf]  ;;  %v968_v46 = vsel %vm5439_vm3, %v676_v18, %v967_v30 }
  0x36   : > { %v3847_v47 = vld [vmem:[#allocation2 + $0x24] sm:$0xe]  ;;  %v3848_v48 = vld [vmem:[#allocation2 + $0x28] sm:$0xf]  ;;  %v2259_v52 = vld [vmem:[#allocation2 + $0x1c] sm:$0xf]  ;;  %v4969_v3 = vcombine.low %v1863_v35, %v1866_v36  ;;  %v2909_v18 = vsel %vm5467_vm8, %v2907_v22, %v2908_v24 }
  0x37   : > { %v3946_v45 = vsel %vm5467_vm8, %v3944_v27, %v3945_v28  ;;  %v2902_v23 = vsel %vm5467_vm8, %v2900_v38, %v2901_v20  ;;  %969 = vst [vmem:[#allocation2 + $0x2c] sm:$0x1] %v968_v46  ;;  %v4955_v29 = vrot.slane %v1763_v32, 9  ;;  %v1876_v49 = vrot.slane %v1764_v39, 5  ;;  %v2260_v53 = vld [vmem:[#allocation2 + $0x20] sm:$0x1] }
  0x38   : > { %v1760_v54 = vld [vmem:[#allocation2 + $0x18] sm:$0xe]  ;;  %2194 = vrot.lane.b32.xlu0 %v5319_v15, %s5382_s9  ;;  %v5032_v55 = vcombine.low %v2899_v37, %v2902_v23  ;;  %v3949_v56 = vrot.slane %v3848_v48, 5  ;;  %v5096_v57 = vcombine.low %v3943_v42, %v3946_v45  ;;  %v5081_v59 = vrot.slane %v3847_v47, 9  ;;  %v1761_v62 = vld [vmem:[#allocation2 + $0x1c] sm:$0xf] }
  0x39   : > { %v2331_v60 = vshll.u32 %v5576_v25, 16  ;;  %v2337_v61 = vshll.u32 %v2259_v52, 16  ;;  %v1878_v63 = vrot.slane %v1876_v49, 4  ;;  %v2341_v0 = vshrl.u32 %v2259_v52, 16  ;;  %v1762_v4 = vld [vmem:[#allocation2 + $0x20] sm:$0x1] }
  0x3a   : > { %v5318_v50 = vld [vmem:[#allocation2 + $0x30] sm:$0xff]   ;;  %v3951_v14 = vrot.slane %v3949_v56, 4  ;;  %v2347_v43 = vshll.u32 %v2260_v53, 16  ;;  %v4954_v7 = vrot.slane %v1760_v54, 9  ;;  %v1869_v11 = vrot.slane %v1761_v62, 5 }
  0x3b   : > { %2196 = vrot.lane.b32.xlu1 %v5318_v50, %s5382_s9  ;;  %v2333_v5 = vrot.slane %v2331_v60, 5  ;;  %v2339_v6 = vrot.slane %v2337_v61, 5  ;;  %v3302_v12 = vld [vmem:[#allocation2 + $0x24] sm:$0xf]  ;;  %v2343_v15 = vrot.slane %v2341_v0, 4  ;;  %v1872_v25 = vrot.slane %v1762_v4, 5 }
  0x3c   : > { %3056 = vrot.lane.b32.xlu0 %v5032_v55, %s5384_s11  ;;  %v2349_v16 = vrot.slane %v2347_v43, 5  ;;  %v3372_v2 = vshrl.u32 %v3302_v12, 16  ;;  %v1870_v20 = vsel %vm5467_vm8, %v4954_v7, %v1869_v11  ;;  %v1871_v22 = vrot.slane %v1869_v11, 4  ;;  %v3303_v36 = vld [vmem:[#allocation2 + $0x28] sm:$0xf] }
  0x3d   : > { %v2334_v19 = vor.u32 %v2333_v5, %v5592_v51  ;;  %v3375_v24 = vshll.u32 %v3302_v12, 16  ;;  %v5033_v26 = vcombine.low %v5627_v41, %v2909_v18  ;;  %v1877_v28 = vsel %vm5467_vm8, %v4955_v29, %v1876_v49  ;;  %v1209_v49 = vld [vmem:[#allocation2 + $0xc] sm:$0xf]  ;;  %v1210_v53 = vld [vmem:[#allocation2 + $0x10] sm:$0xf] }
  0x3e   : > { %v1765_v27 = vld [vmem:[#allocation2 + $0x2c] sm:$0x1]  ;;  %v3950_v32 = vsel %vm5467_vm8, %v5081_v59, %v3949_v56  ;;  %v2344_v35 = vor.u32 %v2343_v15, %v2339_v6  ;;  %v1873_v39 = vsel %vm5467_vm8, %v1871_v22, %v1872_v25  ;;  %v3374_v46 = vrot.slane %v3372_v2, 4  ;;  %v1211_v18 = vld [vmem:[#allocation2 + $0x14] sm:$0x1] }
  0x3f   : > { %2015 = vrot.lane.b32.xlu1 %v4969_v3, %s5380_s7  ;;  %v3849_v30 = vld [vmem:[#allocation2 + $0x2c] sm:$0x1]  ;;  %v1879_v51 = vrot.slane %v1765_v27, 5  ;;  %v2335_v38 = vrot.slane %v2334_v19, 4  ;;  %v4970_v42 = vcombine.low %v1870_v20, %v1873_v39  ;;  %v3377_v47 = vrot.slane %v3375_v24, 5 }
  0x40   : > { %v3952_v37 = vrot.slane %v3849_v30, 5  ;;  %4100 = vrot.lane.b32.xlu0 %v5096_v57, %s5385_s12  ;;  %v2345_v41 = vrot.slane %v2344_v35, 4  ;;  %v3304_v45 = vld [vmem:[#allocation2 + $0x2c] sm:$0x1]  ;;  %v3381_v29 = vshll.u32 %v3303_v36, 16  ;;  %v3385_v59 = vshrl.u32 %v3303_v36, 16 }
  0x41   : > { %v1880_v48 = vsel %vm5467_vm8, %v1878_v63, %v1879_v51  ;;  %v2340_v23 = vsel %vm5523_vm12, %v2335_v38, %v2339_v6  ;;  %v3378_v55 = vor.u32 %v3377_v47, %v3374_v46  ;;  %v3391_v60 = vshll.u32 %v3304_v45, 16  ;;  %v1212_v0 = vld [vmem:[#allocation2 + $0x18] sm:$0xf]  ;;  %v1213_v7 = vld [vmem:[#allocation2 + $0x1c] sm:$0xf] }
  0x42   : > { %v3953_v52 = vsel %vm5467_vm8, %v3951_v14, %v3952_v37  ;;  %v4971_v54 = vcombine.low %v1877_v28, %v1880_v48  ;;  %v2350_v3 = vsel %vm5523_vm12, %v2345_v41, %v2349_v16  ;;  %v3383_v57 = vrot.slane %v3381_v29, 5  ;;  %v1214_v25 = vld [vmem:[#allocation2 + $0x20] sm:$0x1]  ;;  %v2255_v30 = vld [vmem:[#allocation2 + $0xc] sm:$0xf] }
  0x43   : > { %3058 = vrot.lane.b32.xlu1 %v5033_v26, %s5384_s11  ;;  %v5097_v50 = vcombine.low %v3950_v32, %v3953_v52  ;;  %v5001_v56 = vcombine.low %v2340_v23, %v2350_v3  ;;  %v3379_v61 = vrot.slane %v3378_v55, 4  ;;  %v1282_v62 = vshrl.u32 %v1209_v49, 16  ;;  %v2256_v45 = vld [vmem:[#allocation2 + $0x10] sm:$0xf] }
  0x44   : > { %v1285_v63 = vshll.u32 %v1209_v49, 16  ;;  %v1291_v14 = vshll.u32 %v1210_v53, 16  ;;  %v3387_v43 = vrot.slane %v3385_v59, 4  ;;  %v3393_v4 = vrot.slane %v3391_v60, 5 }
  0x45   : > { %4102 = vrot.lane.b32.xlu0 %v5097_v50, %s5385_s12  ;;  %v1295_v5 = vshrl.u32 %v1210_v53, 16  ;;  %v1301_v6 = vshll.u32 %v1211_v18, 16  ;;  %v3384_v11 = vsel %vm5523_vm12, %v3379_v61, %v3383_v57  ;;  %v1284_v12 = vrot.slane %v1282_v62, 4  ;;  %v2257_v53 = vld [vmem:[#allocation2 + $0x14] sm:$0x1] }
  0x46   : > { %v1287_v15 = vrot.slane %v1285_v63, 5  ;;  %v1293_v16 = vrot.slane %v1291_v14, 5  ;;  %v3388_v2 = vor.u32 %v3387_v43, %v3383_v57  ;;  %v1306_v22 = vshrl.u32 %v1212_v0, 16  ;;  %v1216_v61 = vld [vmem:[#allocation2 + $0x28] sm:$0xf] }
  0x47   : > { %2019 = vrot.lane.b32.xlu1 %v4971_v54, %s5380_s7  ;;  %v1297_v19 = vrot.slane %v1295_v5, 4  ;;  %v1303_v20 = vrot.slane %v1301_v6, 5  ;;  %v1309_v26 = vshll.u32 %v1212_v0, 16  ;;  %v1315_v27 = vshll.u32 %v1213_v7, 16  ;;  %v1215_v54 = vld [vmem:[#allocation2 + $0x24] sm:$0xf] }
  0x48   : > { %v1288_v24 = vor.u32 %v1287_v15, %v1284_v12  ;;  %v1319_v28 = vshrl.u32 %v1213_v7, 16  ;;  %v3389_v32 = vrot.slane %v3388_v2, 4  ;;  %v1308_v36 = vrot.slane %v1306_v22, 4  ;;  %v1217_v0 = vld [vmem:[#allocation2 + $0x2c] sm:$0x1] }
  0x49   : > { %2017 = vrot.lane.b32.xlu0 %v4970_v42, %s5380_s7  ;;  %v1298_v35 = vor.u32 %v1297_v19, %v1293_v16  ;;  %v1325_v51 = vshll.u32 %v1214_v25, 16  ;;  %v1311_v38 = vrot.slane %v1309_v26, 5  ;;  %v1317_v39 = vrot.slane %v1315_v27, 5  ;;  %v3300_v27 = vld [vmem:[#allocation2 + $0x1c] sm:$0xf] }
  0x4a   : > { %v1289_v37 = vrot.slane %v1288_v24, 4  ;;  %v1321_v41 = vrot.slane %v1319_v28, 4  ;;  %v3394_v42 = vsel %vm5523_vm12, %v3389_v32, %v3393_v4  ;;  %v2304_v48 = vshrl.u32 %v2255_v30, 16 }
  0x4b   : > { %2737 = vrot.lane.b32.xlu1 %v5001_v56, %s5386_s13  ;;  %v1299_v46 = vrot.slane %v1298_v35, 4  ;;  %v1327_v47 = vrot.slane %v1325_v51, 5  ;;  %v5065_v52 = vcombine.low %v3384_v11, %v3394_v42  ;;  %v1312_v29 = vor.u32 %v1311_v38, %v1308_v36  ;;  %v3299_v11 = vld [vmem:[#allocation2 + $0x18] sm:$0xf]  ;;  %v2261_v42 = vld [vmem:[#allocation2 + $0x24] sm:$0xf] }
  0x4c   : > { %v1294_v23 = vsel %vm5523_vm12, %v1289_v37, %v1293_v16  ;;  %v1322_v49 = vor.u32 %v1321_v41, %v1317_v39  ;;  %v2306_v3 = vrot.slane %v2304_v48, 4  ;;  %v2307_v55 = vshll.u32 %v2255_v30, 16  ;;  %v3301_v37 = vld [vmem:[#allocation2 + $0x20] sm:$0x1] }
  0x4d   : > { %v1304_v50 = vsel %vm5523_vm12, %v1299_v46, %v1303_v20  ;;  %v2313_v18 = vshll.u32 %v2256_v45, 16  ;;  %v1313_v57 = vrot.slane %v1312_v29, 4  ;;  %v2317_v60 = vshrl.u32 %v2256_v45, 16 }
  0x4e   : > { %v4937_v56 = vcombine.low %v1294_v23, %v1304_v50  ;;  %v1323_v59 = vrot.slane %v1322_v49, 4  ;;  %v2309_v62 = vrot.slane %v2307_v55, 5  ;;  %v2323_v14 = vshll.u32 %v2257_v53, 16  ;;  %v486_v50 = vld [vmem:[#allocation2 + $0x38] sm:$0x1] }
  0x4f   : > { %3781 = vrot.lane.b32.xlu1 %v5065_v52, %s5387_s14  ;;  %v2315_v63 = vrot.slane %v2313_v18, 5  ;;  %v1330_v43 = vshrl.u32 %v1215_v54, 16  ;;  %v1318_v4 = vsel %vm5523_vm12, %v1313_v57, %v1317_v39  ;;  %v2319_v6 = vrot.slane %v2317_v60, 4 }
  0x50   : > { %1691 = vrot.lane.b32.xlu0 %v4937_v56, %s5381_s8  ;;  %v1328_v5 = vsel %vm5523_vm12, %v1323_v59, %v1327_v47  ;;  %v1333_v7 = vshll.u32 %v1215_v54, 16  ;;  %v2310_v15 = vor.u32 %v2309_v62, %v2306_v3  ;;  %v2325_v16 = vrot.slane %v2323_v14, 5  ;;  %v2262_v54 = vld [vmem:[#allocation2 + $0x28] sm:$0xf]  ;;  %v2263_v56 = vld [vmem:[#allocation2 + $0x2c] sm:$0x1] }
  0x51   : > { %v4938_v12 = vcombine.low %v1318_v4, %v1328_v5  ;;  %v1332_v25 = vrot.slane %v1330_v43, 4  ;;  %v2320_v2 = vor.u32 %v2319_v6, %v2315_v63  ;;  %v1339_v20 = vshll.u32 %v1216_v61, 16  ;;  %v2265_v5 = vld [vmem:[#allocation2 + $0x34] sm:$0xf] }
  0x52   : > { %v1335_v19 = vrot.slane %v1333_v7, 5  ;;  %v1343_v22 = vshrl.u32 %v1216_v61, 16  ;;  %v2311_v24 = vrot.slane %v2310_v15, 4  ;;  %v1349_v26 = vshll.u32 %v1217_v0, 16 }
  0x53   : > { %1693 = vrot.lane.b32.xlu1 %v4938_v12, %s5381_s8  ;;  %v3348_v28 = vshrl.u32 %v3299_v11, 16  ;;  %v3351_v30 = vshll.u32 %v3299_v11, 16  ;;  %v2321_v32 = vrot.slane %v2320_v2, 4  ;;  %v1341_v36 = vrot.slane %v1339_v20, 5  ;;  %v2807_v20 = vld [vmem:[#allocation2 + $0x28] sm:$0xf] }
  0x54   : > { %v1336_v35 = vor.u32 %v1335_v19, %v1332_v25  ;;  %v1345_v51 = vrot.slane %v1343_v22, 4  ;;  %v2316_v38 = vsel %vm5523_vm12, %v2311_v24, %v2315_v63  ;;  %v1351_v39 = vrot.slane %v1349_v26, 5  ;;  %v2264_v63 = vld [vmem:[#allocation2 + $0x30] sm:$0xf]  ;;  %v2806_v19 = vld [vmem:[#allocation2 + $0x24] sm:$0xe] }
  0x55   : > { %v3350_v41 = vrot.slane %v3348_v28, 4  ;;  %v3353_v45 = vrot.slane %v3351_v30, 5  ;;  %v2326_v46 = vsel %vm5523_vm12, %v2321_v32, %v2325_v16  ;;  %v3357_v52 = vshll.u32 %v3300_v27, 16  ;;  %v2808_v28 = vld [vmem:[#allocation2 + $0x2c] sm:$0x1] }
  0x56   : > { %v1337_v47 = vrot.slane %v1336_v35, 4  ;;  %v1346_v48 = vor.u32 %v1345_v51, %v1341_v36  ;;  %v5000_v23 = vcombine.low %v2316_v38, %v2326_v46  ;;  %v3361_v49 = vshrl.u32 %v3300_v27, 16 }
  0x57   : > { %v3354_v29 = vor.u32 %v3353_v45, %v3350_v41  ;;  %v3367_v53 = vshll.u32 %v3301_v37, 16  ;;  %v3359_v18 = vrot.slane %v3357_v52, 5  ;;  %v2352_v57 = vshrl.u32 %v2261_v42, 16  ;;  %v5704_v41 = vld [vmem:[#allocation2 + $0x30] sm:$0xe]  ;;  %v5707_v45 = vld [vmem:[%s5474_s28 + $0x60] sm:$0xff] }
  0x58   : > { %v1342_v3 = vsel %vm5523_vm12, %v1337_v47, %v1341_v36  ;;  %v1347_v55 = vrot.slane %v1346_v48, 4  ;;  %2735 = vrot.lane.b32.xlu0 %v5000_v23, %s5386_s13  ;;  %v3363_v60 = vrot.slane %v3361_v49, 4  ;;  %v2355_v62 = vshll.u32 %v2261_v42, 16  ;;  %v5712_v52 = vld [vmem:[%s5474_s28 + $0x68] sm:$0xff] }
  0x59   : > { %v3355_v59 = vrot.slane %v3354_v29, 4  ;;  %v3369_v61 = vrot.slane %v3367_v53, 5  ;;  %v2354_v0 = vrot.slane %v2352_v57, 4  ;;  %v2361_v43 = vshll.u32 %v2262_v54, 16 }
  0x5a   : > { %v1352_v14 = vsel %vm5523_vm12, %v1347_v55, %v1351_v39  ;;  %v2365_v4 = vshrl.u32 %v2262_v54, 16  ;;  %v3364_v11 = vor.u32 %v3363_v60, %v3359_v18  ;;  %v2357_v12 = vrot.slane %v2355_v62, 5  ;;  %v5716_v54 = vld [vmem:[#allocation2 + $0x34] sm:$0xf] }
  0x5b   : > { %v4939_v6 = vcombine.low %v1342_v3, %v1352_v14  ;;  %v3360_v7 = vsel %vm5523_vm12, %v3355_v59, %v3359_v18  ;;  %v2363_v15 = vrot.slane %v2361_v43, 5  ;;  %v2371_v25 = vshll.u32 %v2263_v56, 16  ;;  %v433_v18 = vld [vmem:[#allocation2 + $0x3c] sm:$0x1]  ;;  %v3306_v62 = vld [vmem:[#allocation2 + $0x34] sm:$0xf] }
  0x5c   : > { %v2367_v16 = vrot.slane %v2365_v4, 4  ;;  %v487_v2 = vsel %vm5453_vm7, 0, %v486_v50  ;;  %v3365_v22 = vrot.slane %v3364_v11, 4  ;;  %v2358_v24 = vor.u32 %v2357_v12, %v2354_v0 }
  0x5d   : > { %1695 = vrot.lane.b32.xlu1 %v4939_v6, %s5381_s8  ;;  %488 = vst [vmem:[#allocation2 + $0x38] sm:$0x1] %v487_v2  ;;  %v2376_v26 = vshrl.u32 %v2264_v63, 16  ;;  %v2379_v27 = vshll.u32 %v2264_v63, 16  ;;  %v2373_v32 = vrot.slane %v2371_v25, 5  ;;  %v2385_v35 = vshll.u32 %v2265_v5, 16 }
  0x5e   : > { %v2368_v30 = vor.u32 %v2367_v16, %v2363_v15  ;;  %v2389_v36 = vshrl.u32 %v2265_v5, 16  ;;  %v3370_v51 = vsel %vm5523_vm12, %v3365_v22, %v3369_v61  ;;  %v2359_v37 = vrot.slane %v2358_v24, 4  ;;  %v3305_v61 = vld [vmem:[#allocation2 + $0x30] sm:$0xf]  ;;  %v3851_v22 = vld [vmem:[#allocation2 + $0x34] sm:$0xf] }
  0x5f   : > { %v2378_v38 = vrot.slane %v2376_v26, 4  ;;  %v2381_v39 = vrot.slane %v2379_v27, 5  ;;  %v5064_v42 = vcombine.low %v3360_v7, %v3370_v51  ;;  %v5709_v47 = vrot.slane %v2385_v35, 5  ;;  %v3850_v25 = vld [vmem:[#allocation2 + $0x30] sm:$0xe] }
  0x60   : > { %v2369_v46 = vrot.slane %v2368_v30, 4  ;;  %v2391_v48 = vrot.slane %v2389_v36, 4  ;;  %v2364_v23 = vsel %vm5523_vm12, %v2359_v37, %v2363_v15  ;;  %v5018_v49 = vrot.slane %v2806_v19, 9  ;;  %v489_v15 = vld [vmem:[#allocation2 + $0x44] sm:$0x1]  ;;  %v5320_v37 = vld [vmem:[#allocation2 + $0x30] sm:$0xff]  }
  0x61   : > { %v2382_v29 = vor.u32 %v2381_v39, %v2378_v38  ;;  %v2912_v53 = vrot.slane %v2807_v20, 5  ;;  %3779 = vrot.lane.b32.xlu0 %v5064_v42, %s5387_s14  ;;  %v2915_v55 = vrot.slane %v2808_v28, 5  ;;  %v315_v56 = vsub.f32 %v5707_v45, %v5461_v10  ;;  %v1218_v30 = vld [vmem:[#allocation2 + $0x30] sm:$0xf] }
  0x62   : > { %v2374_v50 = vsel %vm5523_vm12, %v2369_v46, %v2373_v32  ;;  %v2392_v3 = vor.u32 %v2391_v48, %v5709_v47  ;;  %v316_v63 = vsub.f32 %v5712_v52, %v5461_v10  ;;  %v5019_v0 = vrot.slane %v5704_v41, 9 }
  0x63   : > { %v5002_v57 = vcombine.low %v2364_v23, %v2374_v50  ;;  %v2913_v59 = vsel %vm5467_vm8, %v5018_v49, %v2912_v53  ;;  %v2914_v60 = vrot.slane %v2912_v53, 4  ;;  %v2919_v43 = vrot.slane %v5716_v54, 5 }
  0x64   : > { %v974_v14 = vld [vmem:[#allocation2 + $0x38] sm:$0x1]  ;;  %v382_v4 = vmax.f32 %v5606_v17, 0.0  ;;  %v383_v5 = vmax.f32 %v5612_v31, 0.0  ;;  %v5736_v7 = vrot.slane %v2382_v29, 4  ;;  %v434_v12 = vsel %vm5439_vm3, 0, %v433_v18 }
  0x65   : > { %v975_v6 = vsel %vm5439_vm3, %v693_v58, %v974_v14  ;;  %v2916_v11 = vsel %vm5467_vm8, %v2914_v60, %v2915_v55  ;;  %2739 = vrot.lane.b32.xlu0 %v5002_v57, %s5386_s13  ;;  %v5743_v17 = vrot.slane %v2392_v3, 4  ;;  %v2921_v16 = vrot.slane %v2919_v43, 4  ;;  %435 = vst [vmem:[#allocation2 + $0x3c] sm:$0x1] %v434_v12  ;;  %v5751_v60 = vld [vmem:[%s7150_s2] ss:$0 sm:$0xff] }
  0x66   : > { %976 = vst [vmem:[#allocation2 + $0x38] sm:$0x1] %v975_v6  ;;  %v5034_v31 = vcombine.low %v2913_v59, %v2916_v11  ;;  %v5176_v44 = vpack.c.bf16 %v382_v4, %v382_v4  ;;  %v5177_v58 = vpack.c.bf16 %v383_v5, %v383_v5  ;;  %v3396_v2 = vshrl.u32 %v3305_v61, 16  ;;  %v1219_v59 = vld [vmem:[#allocation2 + $0x34] sm:$0xf] }
  0x67   : > { %v3399_v19 = vshll.u32 %v3305_v61, 16  ;;  %v3405_v20 = vshll.u32 %v3306_v62, 16  ;;  %v3409_v27 = vshrl.u32 %v3306_v62, 16  ;;  %v490_v28 = vsel %vm5453_vm7, 0, %v489_v15 }
  0x68   : > { %v695_v24 = vshrl.u32 %v5176_v44, 16  ;;  %v698_v26 = vshll.u32 %v5176_v44, 16  ;;  %v703_v32 = vshrl.u32 %v5177_v58, 16  ;;  %v706_v35 = vshll.u32 %v5177_v58, 16  ;;  %491 = vst [vmem:[#allocation2 + $0x44] sm:$0x1] %v490_v28 }
  0x69   : > { %v3398_v36 = vrot.slane %v3396_v2, 4  ;;  %v3401_v51 = vrot.slane %v3399_v19, 5  ;;  %3060 = vrot.lane.b32.xlu0 %v5034_v31, %s5384_s11  ;;  %v3407_v39 = vrot.slane %v3405_v20, 5  ;;  %v3411_v41 = vrot.slane %v3409_v27, 4  ;;  %v1766_v28 = vld [vmem:[#allocation2 + $0x30] sm:$0xe] }
  0x6a   : > { %v697_v38 = vrot.slane %v695_v24, 7  ;;  %v5082_v45 = vrot.slane %v3850_v25, 9  ;;  %v705_v42 = vrot.slane %v703_v32, 7  ;;  %v3956_v48 = vrot.slane %v3851_v22, 5 }
  0x6b   : > { %v3402_v46 = vor.u32 %v3401_v51, %v3398_v36  ;;  %v1354_v23 = vshrl.u32 %v1218_v30, 16  ;;  %v3412_v53 = vor.u32 %v3411_v41, %v3407_v39  ;;  %v1357_v54 = vshll.u32 %v1218_v30, 16  ;;  %v5784_v51 = vld [vmem:[#allocation2 + $0x34] sm:$0xf] }
  0x6c   : > { %v700_v29 = vor.u32 %v698_v26, %v697_v38  ;;  %v701_v49 = vrot.slane %v697_v38, 4  ;;  %v708_v55 = vor.u32 %v706_v35, %v705_v42  ;;  %v710_v18 = vrot.slane %v705_v42, 4  ;;  %v977_v6 = vld [vmem:[#allocation2 + $0x3c] sm:$0xf] }
  0x6d   : > { %v2266_v50 = vld [vmem:[#allocation2 + $0x38] sm:$0x1]  ;;  %v3403_v57 = vrot.slane %v3402_v46, 4  ;;  %v5754_v61 = vmul.f32 %v5751_v60, %v315_v56  ;;  %v2388_v62 = vsel %vm5523_vm12, %v5736_v7, %v5709_v47  ;;  %v5762_v4 = vsel %vm5467_vm8, %v5019_v0, %v2919_v43  ;;  %3238 = vrot.lane.b32.xlu0 %v5320_v37, %s5383_s10 }
  0x6e   : > { %v2811_v3 = vld [vmem:[#allocation2 + $0x38] sm:$0x1]  ;;  %v2395_v14 = vshll.u32 %v2266_v50, 16  ;;  %v709_v12 = vsel %vm5541_vm14, %v701_v49, %v708_v55  ;;  %v978_v56 = vsel %vm5531_vm13, %v700_v29, %v977_v6  ;;  %v3413_v15 = vrot.slane %v3412_v53, 4 }
  0x6f   : > { %v2922_v5 = vrot.slane %v2811_v3, 5  ;;  %v3307_v11 = vld [vmem:[#allocation2 + $0x38] sm:$0x1]  ;;  %v5771_v47 = vsel %vm5467_vm8, %v5082_v45, %v3956_v48  ;;  %979 = vst [vmem:[#allocation2 + $0x3c] sm:$0xf] %v978_v56  ;;  %v3958_v58 = vrot.slane %v3956_v48, 4  ;;  %v3408_v2 = vsel %vm5523_vm12, %v3403_v57, %v3407_v39 }
  0x70   : > { %v3852_v31 = vld [vmem:[#allocation2 + $0x38] sm:$0x1]  ;;  %v2397_v0 = vrot.slane %v2395_v14, 5  ;;  %980 = vst.msk [vmem:[#allocation2 + $0x40] sm:$0xf] %vm406_vm0, %v709_v12  ;;  %v3415_v44 = vshll.u32 %v3307_v11, 16 }
  0x71   : > { %v1220_v7 = vld [vmem:[#allocation2 + $0x38] sm:$0x1]  ;;  %v2923_v43 = vsel %vm5467_vm8, %v2921_v16, %v2922_v5  ;;  %v981_v25 = vld [vmem:[#allocation2 + $0x44] sm:$0x1]  ;;  %v3959_v20 = vrot.slane %v3852_v31, 5  ;;  %v1356_v22 = vrot.slane %v1354_v23, 4 }
  0x72   : > { %v982_v19 = vsel %vm5439_vm3, %v710_v18, %v981_v25  ;;  %v2398_v24 = vsel %vm5523_vm12, %v5743_v17, %v2397_v0  ;;  %v3417_v16 = vrot.slane %v3415_v44, 5  ;;  %v1359_v26 = vrot.slane %v1357_v54, 5  ;;  %v5786_v37 = vld [vmem:[#allocation2 + $0x38] sm:$0x1]  ;;  %v5793_v45 = vld [vmem:[%s5474_s28 + $0x70] sm:$0xff] }
  0x73   : > { %983 = vst [vmem:[#allocation2 + $0x44] sm:$0x1] %v982_v19  ;;  %v1363_v27 = vshll.u32 %v1219_v59, 16  ;;  %v5003_v30 = vcombine.low %v2388_v62, %v2398_v24  ;;  %v5035_v32 = vcombine.low %v5762_v4, %v2923_v43  ;;  %v1367_v35 = vshrl.u32 %v1219_v59, 16  ;;  %v5797_v29 = vld [vmem:[%s5474_s28 + $0x78] sm:$0xff] }
  0x74   : > { %v1373_v36 = vshll.u32 %v1220_v7, 16  ;;  %v3418_v38 = vsel %vm5523_vm12, %v3413_v15, %v3417_v16  ;;  %v3960_v17 = vsel %vm5467_vm8, %v3958_v58, %v3959_v20  ;;  %v1360_v39 = vor.u32 %v1359_v26, %v1356_v22  ;;  %v5808_v59 = vld [vmem:[%s7149_s1] ss:$0 sm:$0xff] }
  0x75   : > { %v1365_v41 = vrot.slane %v1363_v27, 5  ;;  %2741 = vrot.lane.b32.xlu1 %v5003_v30, %s5386_s13  ;;  %v5066_v42 = vcombine.low %v3408_v2, %v3418_v38  ;;  %v1369_v46 = vrot.slane %v1367_v35, 4  ;;  %v4956_v23 = vrot.slane %v1766_v28, 9 }
  0x76   : > { %v1375_v48 = vrot.slane %v1373_v36, 5  ;;  %v1361_v49 = vrot.slane %v1360_v39, 4  ;;  %v1883_v53 = vrot.slane %v5784_v51, 5  ;;  %v1886_v54 = vrot.slane %v5786_v37, 5  ;;  %v3308_v14 = vld [vmem:[#allocation2 + $0x3c] sm:$0xf] }
  0x77   : > { %v384_v50 = vmax.f32 %v5615_v34, 0.0  ;;  %v5321_v3 = vld [vmem:[#allocation2 + $0x3c] sm:$0xff]   ;;  %3783 = vrot.lane.b32.xlu0 %v5066_v42, %s5387_s14  ;;  %v5098_v55 = vcombine.low %v5771_v47, %v3960_v17  ;;  %v1370_v18 = vor.u32 %v1369_v46, %v1365_v41  ;;  %v385_v57 = vmax.f32 %v5640_v40, 0.0 }
  0x78   : > { %v317_v62 = vsub.f32 %v5793_v45, %v5808_v59  ;;  %v3309_v4 = vld [vmem:[#allocation2 + $0x40] sm:$0xf]  ;;  %v1366_v34 = vsel %vm5523_vm12, %v1361_v49, %v1365_v41  ;;  %v3853_v5 = vld [vmem:[#allocation2 + $0x3c] sm:$0xe]  ;;  %v5818_v6 = vsel %vm5467_vm8, %v4956_v23, %v1883_v53  ;;  %v5824_v40 = vmul.f32 %v5751_v60, %v316_v63 }
  0x79   : > { %v318_v11 = vsub.f32 %v5797_v29, %v5808_v59  ;;  %3062 = vrot.lane.b32.xlu1 %v5035_v32, %s5384_s11  ;;  %v3420_v56 = vshrl.u32 %v3308_v14, 16  ;;  %v3423_v15 = vshll.u32 %v3308_v14, 16  ;;  %v3429_v31 = vshll.u32 %v3309_v4, 16  ;;  %v3854_v43 = vld [vmem:[#allocation2 + $0x40] sm:$0xf] }
  0x7a   : > { %v3310_v12 = vld [vmem:[#allocation2 + $0x44] sm:$0x1]  ;;  %v3433_v47 = vshrl.u32 %v3309_v4, 16  ;;  %v1371_v0 = vrot.slane %v1370_v18, 4  ;;  %v5829_v25 = vpack.c.bf16 %v384_v50, %v384_v50  ;;  %v5831_v10 = vpack.c.bf16 %v385_v57, %v385_v57  ;;  %v1221_v19 = vld [vmem:[#allocation2 + $0x3c] sm:$0xf] }
  0x7b   : > { %v3439_v7 = vshll.u32 %v3310_v12, 16  ;;  %v3855_v44 = vld [vmem:[#allocation2 + $0x44] sm:$0x1]  ;;  %v3422_v52 = vrot.slane %v3420_v56, 4  ;;  %v3425_v63 = vrot.slane %v3423_v15, 5  ;;  %v3431_v58 = vrot.slane %v3429_v31, 5  ;;  %4104 = vrot.lane.b32.xlu0 %v5098_v55, %s5385_s12 }
  0x7c   : > { %v3435_v2 = vrot.slane %v3433_v47, 4  ;;  %v1376_v22 = vsel %vm5523_vm12, %v1371_v0, %v1375_v48  ;;  %v5083_v24 = vrot.slane %v3853_v5, 9  ;;  %v3963_v16 = vrot.slane %v3854_v43, 5  ;;  %v1222_v26 = vld [vmem:[#allocation2 + $0x40] sm:$0xf] }
  0x7d   : > { %v3441_v20 = vrot.slane %v3439_v7, 5  ;;  %3240 = vrot.lane.b32.xlu1 %v5321_v3, %s5383_s10  ;;  %v3426_v27 = vor.u32 %v3425_v63, %v3422_v52  ;;  %v4940_v30 = vcombine.low %v1366_v34, %v1376_v22  ;;  %v3966_v32 = vrot.slane %v3855_v44, 5  ;;  %v1223_v35 = vld [vmem:[#allocation2 + $0x44] sm:$0x1]  ;;  %v1769_v41 = vld [vmem:[#allocation2 + $0x3c] sm:$0xe] }
  0x7e   : > { %v3436_v28 = vor.u32 %v3435_v2, %v3431_v58  ;;  %v3964_v36 = vsel %vm5467_vm8, %v5083_v24, %v3963_v16  ;;  %v3965_v38 = vrot.slane %v3963_v16, 4  ;;  %v1378_v17 = vshrl.u32 %v1221_v19, 16  ;;  %v1770_v42 = vld [vmem:[#allocation2 + $0x40] sm:$0xf]  ;;  %v1771_v50 = vld [vmem:[#allocation2 + $0x44] sm:$0x1] }
  0x7f   : > { %v1381_v39 = vshll.u32 %v1221_v19, 16  ;;  %v3427_v46 = vrot.slane %v3426_v27, 4  ;;  %v1387_v23 = vshll.u32 %v1222_v26, 16  ;;  %v1391_v49 = vshrl.u32 %v1222_v26, 16  ;;  %v436_v12 = vld [vmem:[#allocation2 + $0x48] sm:$0x1] }
  0x80   : > { %v3437_v48 = vrot.slane %v3436_v28, 4  ;;  %v3967_v3 = vsel %vm5467_vm8, %v3965_v38, %v3966_v32  ;;  %v1380_v55 = vrot.slane %v1378_v17, 4  ;;  %v1397_v57 = vshll.u32 %v1223_v35, 16  ;;  %v2267_v19 = vld [vmem:[#allocation2 + $0x3c] sm:$0xf] }
  0x81   : > { %v1383_v18 = vrot.slane %v1381_v39, 5  ;;  %v3432_v14 = vsel %vm5523_vm12, %v3427_v46, %v3431_v58  ;;  %v5099_v34 = vcombine.low %v3964_v36, %v3967_v3  ;;  %v1389_v5 = vrot.slane %v1387_v23, 5  ;;  %v2268_v22 = vld [vmem:[#allocation2 + $0x40] sm:$0xf]  ;;  %v492_v24 = vld [vmem:[#allocation2 + $0x50] sm:$0x1] }
  0x82   : > { %v3442_v4 = vsel %vm5523_vm12, %v3437_v48, %v3441_v20  ;;  %v1393_v31 = vrot.slane %v1391_v49, 4  ;;  %v1399_v47 = vrot.slane %v1397_v57, 5  ;;  %v1885_v7 = vrot.slane %v1883_v53, 4  ;;  %v2269_v35 = vld [vmem:[#allocation2 + $0x44] sm:$0x1] }
  0x83   : > { %v5067_v56 = vcombine.low %v3432_v14, %v3442_v4  ;;  %v1384_v15 = vor.u32 %v1383_v18, %v1380_v55  ;;  %4106 = vrot.lane.b32.xlu0 %v5099_v34, %s5385_s12  ;;  %v4957_v0 = vrot.slane %v1769_v41, 9  ;;  %v1890_v43 = vrot.slane %v1770_v42, 5  ;;  %v2812_v39 = vld [vmem:[#allocation2 + $0x3c] sm:$0xe]  ;;  %v2813_v48 = vld [vmem:[#allocation2 + $0x40] sm:$0xf] }
  0x84   : > { %v1893_v44 = vrot.slane %v1771_v50, 5  ;;  %v1394_v63 = vor.u32 %v1393_v31, %v1389_v5  ;;  %v437_v58 = vsel %vm5439_vm3, 0, %v436_v12  ;;  %v712_v2 = vshrl.u32 %v5829_v25, 16  ;;  %v2814_v3 = vld [vmem:[#allocation2 + $0x44] sm:$0x1] }
  0x85   : > { %3785 = vrot.lane.b32.xlu1 %v5067_v56, %s5387_s14  ;;  %v1385_v52 = vrot.slane %v1384_v15, 4  ;;  %v1887_v20 = vsel %vm5467_vm8, %v1885_v7, %v1886_v54  ;;  %v1892_v51 = vrot.slane %v1890_v43, 4  ;;  %438 = vst [vmem:[#allocation2 + $0x48] sm:$0x1] %v437_v58  ;;  %v715_v53 = vshll.u32 %v5829_v25, 16 }
  0x86   : > { %v5861_v16 = vmul.f32 %v5751_v60, %v317_v62  ;;  %v1395_v27 = vrot.slane %v1394_v63, 4  ;;  %v4972_v37 = vcombine.low %v5818_v6, %v1887_v20  ;;  %v714_v28 = vrot.slane %v712_v2, 7  ;;  %v5322_v6 = vld [vmem:[#allocation2 + $0x3c] sm:$0xff]   ;;  %v439_v4 = vld [vmem:[#allocation2 + $0x54] sm:$0x1] }
  0x87   : > { %v1390_v26 = vsel %vm5523_vm12, %v1385_v52, %v1389_v5  ;;  %v1891_v54 = vsel %vm5467_vm8, %v4957_v0, %v1890_v43  ;;  %v720_v25 = vshrl.u32 %v5831_v10, 16  ;;  %v723_v32 = vshll.u32 %v5831_v10, 16  ;;  %v495_v34 = vld [vmem:[#allocation2 + $0x5c] sm:$0x1]  ;;  %v442_v2 = vld [vmem:[#allocation2 + $0x60] sm:$0x1] }
  0x88   : > { %v2400_v36 = vshrl.u32 %v2267_v19, 16  ;;  %v1400_v45 = vsel %vm5523_vm12, %v1395_v27, %v1399_v47  ;;  %2021 = vrot.lane.b32.xlu0 %v4972_v37, %s5380_s7  ;;  %v1894_v62 = vsel %vm5467_vm8, %v1892_v51, %v1893_v44  ;;  %v717_v38 = vor.u32 %v715_v53, %v714_v28 }
  0x89   : > { %1697 = vrot.lane.b32.xlu1 %v4940_v30, %s5381_s8  ;;  %v718_v17 = vrot.slane %v714_v28, 4  ;;  %v4941_v41 = vcombine.low %v1390_v26, %v1400_v45  ;;  %v722_v42 = vrot.slane %v720_v25, 7  ;;  %v2403_v10 = vshll.u32 %v2267_v19, 16 }
  0x8a   : > { %v2402_v46 = vrot.slane %v2400_v36, 4  ;;  %v2409_v23 = vshll.u32 %v2268_v22, 16  ;;  %v2413_v49 = vshrl.u32 %v2268_v22, 16  ;;  %v2419_v30 = vshll.u32 %v2269_v35, 16  ;;  %v5337_v22 = vld [vmem:[%s7151_s3] sm:$0xff]  }
  0x8b   : > { %v493_v50 = vsel %vm5453_vm7, 0, %v492_v24  ;;  %v4973_v55 = vcombine.low %v1891_v54, %v1894_v62  ;;  %v725_v18 = vor.u32 %v723_v32, %v722_v42  ;;  %v727_v57 = vrot.slane %v722_v42, 4  ;;  %v498_v54 = vld [vmem:[#allocation2 + $0x68] sm:$0x1]  ;;  %5251 = vmatprep.subr.bf16.mxu0 %v5337_v22  ;;  %5289 = vmatprep.subr.bf16.mxu1 %v5337_v22 }
  0x8c   : > { %v2405_v14 = vrot.slane %v2403_v10, 5  ;;  %494 = vst [vmem:[#allocation2 + $0x50] sm:$0x1] %v493_v50  ;;  %2198 = vrot.lane.b32.xlu0 %v5322_v6, %s5382_s9  ;;  %v984_v5 = vld [vmem:[#allocation2 + $0x48] sm:$0xf]  ;;  %v2411_v12 = vrot.slane %v2409_v23, 5  ;;  %5252 = vmatpush3.bf16.msra.mxu0 %v5337_v22 }
  0x8d   : > { %1699 = vrot.lane.b32.xlu1 %v4941_v41, %s5381_s8  ;;  %v2415_v56 = vrot.slane %v2413_v49, 4  ;;  %v5020_v15 = vrot.slane %v2812_v39, 9  ;;  %v2926_v31 = vrot.slane %v2813_v48, 5  ;;  %v726_v47 = vsel %vm5541_vm14, %v718_v17, %v725_v18  ;;  %5292 = vmatpush3.bf16.msra.mxu1 %v5337_v22 }
  0x8e   : > { %v985_v7 = vsel %vm5531_vm13, %v717_v38, %v984_v5  ;;  %v2406_v0 = vor.u32 %v2405_v14, %v2402_v46  ;;  %v2929_v43 = vrot.slane %v2814_v3, 5  ;;  %987 = vst.msk [vmem:[#allocation2 + $0x4c] sm:$0xf] %vm406_vm0, %v726_v47  ;;  %v2421_v52 = vrot.slane %v2419_v30, 5  ;;  %v280_v38 = vld [vmem:[%s5474_s28 + $0x80] sm:$0xff]  ;;  %v281_v46 = vld [vmem:[%s5474_s28 + $0x88] sm:$0xff] }
  0x8f   : > { %986 = vst [vmem:[#allocation2 + $0x48] sm:$0xf] %v985_v7  ;;  %v2416_v44 = vor.u32 %v2415_v56, %v2411_v12  ;;  %v2928_v63 = vrot.slane %v2926_v31, 4  ;;  %v386_v58 = vmax.f32 %v5754_v61, 0.0  ;;  %v387_v20 = vmax.f32 %v5824_v40, 0.0 }
  0x90   : > { %v2407_v19 = vrot.slane %v2406_v0, 4  ;;  %v440_v51 = vsel %vm5439_vm3, 0, %v439_v4  ;;  %v496_v53 = vsel %vm5453_vm7, 0, %v495_v34  ;;  %v2927_v61 = vsel %vm5467_vm8, %v5020_v15, %v2926_v31 }
  0x91   : > { %2023 = vrot.lane.b32.xlu1 %v4973_v55, %s5380_s7  ;;  %v2417_v24 = vrot.slane %v2416_v44, 4  ;;  %441 = vst [vmem:[#allocation2 + $0x54] sm:$0x1] %v440_v51  ;;  %v5180_v26 = vpack.c.bf16 %v386_v58, %v386_v58  ;;  %497 = vst [vmem:[#allocation2 + $0x5c] sm:$0x1] %v496_v53  ;;  %v5901_v40 = vmul.f32 %v5751_v60, %v318_v11  ;;  %v443_v11 = vsel %vm5439_vm3, 0, %v442_v2  ;;  %v5928_v2 = vpop.permute.xlu1 %2013 }
  0x92   : > { %v2412_v27 = vsel %vm5523_vm12, %v2407_v19, %v2411_v12  ;;  %v2930_v37 = vsel %vm5467_vm8, %v2928_v63, %v2929_v43  ;;  %v5181_v28 = vpack.c.bf16 %v387_v20, %v387_v20  ;;  %v388_v6 = vmax.f32 %v5861_v16, 0.0  ;;  %444 = vst [vmem:[#allocation2 + $0x60] sm:$0x1] %v443_v11  ;;  %v5339_v19 = vld [vmem:[%s7151_s3 + $0x8] sm:$0xff]  }
  0x93   : > { %v2422_v25 = vsel %vm5523_vm12, %v2417_v24, %v2421_v52  ;;  %v988_v32 = vld [vmem:[#allocation2 + $0x50] sm:$0x1]  ;;  %v729_v35 = vshrl.u32 %v5180_v26, 16  ;;  %v732_v29 = vshll.u32 %v5180_v26, 16  ;;  %v389_v41 = vmax.f32 %v5901_v40, 0.0  ;;  %5253 = vmatprep.subr.bf16.mxu0 %v5339_v19  ;;  %5290 = vmatprep.subr.bf16.mxu1 %v5339_v19 }
  0x94   : > { %v5004_v36 = vcombine.low %v2412_v27, %v2422_v25  ;;  %v989_v45 = vsel %vm5439_vm3, %v727_v57, %v988_v32  ;;  %v737_v62 = vshrl.u32 %v5181_v28, 16  ;;  %v740_v39 = vshll.u32 %v5181_v28, 16  ;;  %5254 = vmatpush3.bf16.msra.mxu0 %v5339_v19  ;;  %5293 = vmatpush3.bf16.msra.mxu1 %v5339_v19 }
  0x95   : > { %990 = vst [vmem:[#allocation2 + $0x50] sm:$0x1] %v989_v45  ;;  %v731_v17 = vrot.slane %v729_v35, 7  ;;  %v499_v42 = vsel %vm5453_vm7, 0, %v498_v54  ;;  %v5036_v48 = vcombine.low %v2927_v61, %v2930_v37  ;;  %v2271_v30 = vld [vmem:[#allocation2 + $0x4c] sm:$0xf]  ;;  %v319_v55 = vsub.f32 %v280_v38, %v5808_v59 }
  0x96   : > { %v5323_v10 = vld [vmem:[#allocation2 + $0x48] sm:$0xff]   ;;  %2743 = vrot.lane.b32.xlu0 %v5004_v36, %s5386_s13  ;;  %v5920_v23 = vrot.slane %v737_v62, 7  ;;  %500 = vst [vmem:[#allocation2 + $0x68] sm:$0x1] %v499_v42  ;;  %v2433_v14 = vshll.u32 %v2271_v30, 16  ;;  %v2437_v4 = vshrl.u32 %v2271_v30, 16  ;;  %v320_v15 = vsub.f32 %v281_v46, %v5808_v59 }
  0x97   : > { %v2270_v49 = vld [vmem:[#allocation2 + $0x48] sm:$0xf]  ;;  %v734_v3 = vor.u32 %v732_v29, %v731_v17  ;;  %2200 = vrot.lane.b32.xlu1 %v5323_v10, %s5382_s9  ;;  %v2816_v34 = vld [vmem:[#allocation2 + $0x4c] sm:$0xf]  ;;  %v735_v52 = vrot.slane %v731_v17, 4  ;;  %v5936_v26 = vmul.f32 %v5751_v60, %v319_v55  ;;  %v5954_v30 = vld [vmem:[%s5474_s28 + $0x90] sm:$0xff] }
  0x98   : > { %v2815_v50 = vld [vmem:[#allocation2 + $0x48] sm:$0xe]  ;;  %v2424_v18 = vshrl.u32 %v2270_v49, 16  ;;  %v2427_v57 = vshll.u32 %v2270_v49, 16  ;;  %v2933_v12 = vrot.slane %v2816_v34, 5  ;;  %v742_v56 = vor.u32 %v740_v39, %v5920_v23  ;;  %v5940_v32 = vpop.permute.xlu0 %1689 }
  0x99   : > { %v5021_v5 = vrot.slane %v2815_v50, 9  ;;  %v2435_v7 = vrot.slane %v2433_v14, 5  ;;  %v2439_v0 = vrot.slane %v2437_v4, 4  ;;  %v5324_v43 = vld [vmem:[#allocation2 + $0x48] sm:$0xff]   ;;  %v744_v63 = vrot.slane %v5920_v23, 4 }
  0x9a   : > { %v2426_v31 = vrot.slane %v2424_v18, 4  ;;  %v2429_v47 = vrot.slane %v2427_v57, 5  ;;  %3064 = vrot.lane.b32.xlu0 %v5036_v48, %s5384_s11  ;;  %v2935_v44 = vrot.slane %v2933_v12, 4  ;;  %v991_v58 = vld [vmem:[#allocation2 + $0x54] sm:$0xf]  ;;  %v743_v28 = vsel %vm5541_vm14, %v735_v52, %v742_v56 }
  0x9b   : > { %v2440_v53 = vor.u32 %v2439_v0, %v2435_v7  ;;  %v992_v24 = vsel %vm5531_vm13, %v734_v3, %v991_v58  ;;  %v3311_v61 = vld [vmem:[#allocation2 + $0x48] sm:$0xf]  ;;  %v3312_v54 = vld [vmem:[#allocation2 + $0x4c] sm:$0xf]  ;;  %v5943_v35 = vmul.f32 %v5751_v60, %v320_v15  ;;  %994 = vst.msk [vmem:[#allocation2 + $0x58] sm:$0xf] %vm406_vm0, %v743_v28  ;;  %v2934_v17 = vsel %vm5467_vm8, %v5021_v5, %v2933_v12 }
  0x9c   : > { %v2272_v20 = vld [vmem:[#allocation2 + $0x50] sm:$0x1]  ;;  %v2430_v51 = vor.u32 %v2429_v47, %v2426_v31  ;;  %993 = vst [vmem:[#allocation2 + $0x54] sm:$0xf] %v992_v24  ;;  %v3444_v36 = vshrl.u32 %v3311_v61, 16  ;;  %v3447_v45 = vshll.u32 %v3311_v61, 16  ;;  %v321_v0 = vsub.f32 %v5954_v30, %v5808_v59 }
  0x9d   : > { %v2817_v22 = vld [vmem:[#allocation2 + $0x50] sm:$0x1]  ;;  %v2443_v27 = vshll.u32 %v2272_v20, 16  ;;  %v2441_v11 = vrot.slane %v2440_v53, 4  ;;  %v995_v62 = vld [vmem:[#allocation2 + $0x5c] sm:$0x1] }
  0x9e   : > { %v2936_v37 = vrot.slane %v2817_v22, 5  ;;  %v3313_v25 = vld [vmem:[#allocation2 + $0x50] sm:$0x1]  ;;  %v2431_v29 = vrot.slane %v2430_v51, 4  ;;  %3242 = vrot.lane.b32.xlu0 %v5324_v43, %s5383_s10  ;;  %v3453_v39 = vshll.u32 %v3312_v54, 16  ;;  %v3457_v60 = vshrl.u32 %v3312_v54, 16 }
  0x9f   : > { %v2445_v38 = vrot.slane %v2443_v27, 5  ;;  %v3856_v42 = vld [vmem:[#allocation2 + $0x48] sm:$0xe]  ;;  %v3446_v48 = vrot.slane %v3444_v36, 4  ;;  %v3449_v23 = vrot.slane %v3447_v45, 5  ;;  %v3463_v18 = vshll.u32 %v3313_v25, 16  ;;  %v5958_v14 = vpop.permute.xlu1 %2192 }
  0xa0   : > { %v2436_v46 = vsel %vm5523_vm12, %v2431_v29, %v2435_v7  ;;  %v2937_v10 = vsel %vm5467_vm8, %v2935_v44, %v2936_v37  ;;  %v3857_v49 = vld [vmem:[#allocation2 + $0x4c] sm:$0xf]  ;;  %v3455_v3 = vrot.slane %v3453_v39, 5  ;;  %v3459_v55 = vrot.slane %v3457_v60, 4  ;;  %v1224_v57 = vld [vmem:[#allocation2 + $0x48] sm:$0xf] }
  0xa1   : > { %v2446_v50 = vsel %vm5523_vm12, %v2441_v11, %v2445_v38  ;;  %v3450_v34 = vor.u32 %v3449_v23, %v3446_v48  ;;  %v996_v5 = vsel %vm5439_vm3, %v744_v63, %v995_v62  ;;  %v3858_v12 = vld [vmem:[#allocation2 + $0x50] sm:$0x1]  ;;  %v5084_v56 = vrot.slane %v3856_v42, 9  ;;  %v1225_v37 = vld [vmem:[#allocation2 + $0x4c] sm:$0xf] }
  0xa2   : > { %v5005_v4 = vcombine.low %v2436_v46, %v2446_v50  ;;  %v3460_v15 = vor.u32 %v3459_v55, %v3455_v3  ;;  %v3465_v31 = vrot.slane %v3463_v18, 5  ;;  %997 = vst [vmem:[#allocation2 + $0x5c] sm:$0x1] %v996_v5  ;;  %v3970_v47 = vrot.slane %v3857_v49, 5  ;;  %v5962_v7 = vpop.permute.xlu0 %2190  ;;  %v3315_v20 = vld [vmem:[#allocation2 + $0x58] sm:$0xf] }
  0xa3   : > { %v5037_v43 = vcombine.low %v2934_v17, %v2937_v10  ;;  %v3451_v44 = vrot.slane %v3450_v34, 4  ;;  %v3314_v52 = vld [vmem:[#allocation2 + $0x54] sm:$0xf]  ;;  %v1402_v58 = vshrl.u32 %v1224_v57, 16  ;;  %v5970_v63 = vpack.c.bf16 %v388_v6, %v388_v6  ;;  %v1226_v25 = vld [vmem:[#allocation2 + $0x50] sm:$0x1] }
  0xa4   : > { %2745 = vrot.lane.b32.xlu1 %v5005_v4, %s5386_s13  ;;  %v3461_v19 = vrot.slane %v3460_v15, 4  ;;  %v3971_v51 = vsel %vm5467_vm8, %v5084_v56, %v3970_v47  ;;  %v3973_v53 = vrot.slane %v3858_v12, 5  ;;  %v5977_v22 = vpack.c.bf16 %v389_v41, %v389_v41  ;;  %v5325_v41 = vld [vmem:[#allocation2 + $0x54] sm:$0xff]  }
  0xa5   : > { %v3456_v24 = vsel %vm5523_vm12, %v3451_v44, %v3455_v3  ;;  %v3468_v61 = vshrl.u32 %v3314_v52, 16  ;;  %v3471_v27 = vshll.u32 %v3314_v52, 16  ;;  %v3477_v16 = vshll.u32 %v3315_v20, 16  ;;  %v5983_v11 = vpop.permute.xlu1 %3236  ;;  %v3859_v17 = vld [vmem:[#allocation2 + $0x54] sm:$0xe] }
  0xa6   : > { %v3466_v6 = vsel %vm5523_vm12, %v3461_v19, %v3465_v31  ;;  %v3481_v28 = vshrl.u32 %v3315_v20, 16  ;;  %v3972_v54 = vrot.slane %v3970_v47, 4  ;;  %v1404_v29 = vrot.slane %v1402_v58, 4  ;;  %v5985_v40 = vpop.permute.xlu0 %3234  ;;  %v3860_v10 = vld [vmem:[#allocation2 + $0x58] sm:$0xf] }
  0xa7   : > { %v5068_v36 = vcombine.low %v3456_v24, %v3466_v6  ;;  %v3470_v45 = vrot.slane %v3468_v61, 4  ;;  %v3473_v62 = vrot.slane %v3471_v27, 5  ;;  %v3479_v38 = vrot.slane %v3477_v16, 5  ;;  %v1227_v55 = vld [vmem:[#allocation2 + $0x54] sm:$0xf] }
  0xa8   : > { %3066 = vrot.lane.b32.xlu1 %v5037_v43, %s5384_s11  ;;  %v3483_v39 = vrot.slane %v3481_v28, 4  ;;  %v3974_v60 = vsel %vm5467_vm8, %v3972_v54, %v3973_v53  ;;  %v1405_v42 = vshll.u32 %v1224_v57, 16  ;;  %v1411_v46 = vshll.u32 %v1225_v37, 16  ;;  %v1228_v24 = vld [vmem:[#allocation2 + $0x58] sm:$0xf] }
  0xa9   : > { %3787 = vrot.lane.b32.xlu0 %v5068_v36, %s5387_s14  ;;  %v3316_v48 = vld [vmem:[#allocation2 + $0x5c] sm:$0x1]  ;;  %v3474_v23 = vor.u32 %v3473_v62, %v3470_v45  ;;  %v5100_v49 = vcombine.low %v3971_v51, %v3974_v60  ;;  %v1415_v50 = vshrl.u32 %v1225_v37, 16  ;;  %v1421_v3 = vshll.u32 %v1226_v25, 16  ;;  %v1772_v16 = vld [vmem:[#allocation2 + $0x48] sm:$0xe] }
  0xaa   : > { %v3484_v18 = vor.u32 %v3483_v39, %v3479_v38  ;;  %v3487_v4 = vshll.u32 %v3316_v48, 16  ;;  %v1407_v34 = vrot.slane %v1405_v42, 5  ;;  %v1413_v5 = vrot.slane %v1411_v46, 5  ;;  %v3861_v12 = vld [vmem:[#allocation2 + $0x5c] sm:$0x1]  ;;  %v5991_v56 = vpop.permute.xlu0 %2194 }
  0xab   : > { %v3475_v57 = vrot.slane %v3474_v23, 4  ;;  %v1417_v15 = vrot.slane %v1415_v50, 4  ;;  %v1423_v31 = vrot.slane %v1421_v3, 5  ;;  %v5085_v47 = vrot.slane %v3859_v17, 9  ;;  %v1229_v61 = vld [vmem:[#allocation2 + $0x5c] sm:$0x1] }
  0xac   : > { %3244 = vrot.lane.b32.xlu1 %v5325_v41, %s5383_s10  ;;  %v3485_v43 = vrot.slane %v3484_v18, 4  ;;  %v3489_v44 = vrot.slane %v3487_v4, 5  ;;  %v1408_v52 = vor.u32 %v1407_v34, %v1404_v29  ;;  %v3977_v58 = vrot.slane %v3860_v10, 5  ;;  %v1773_v25 = vld [vmem:[#allocation2 + $0x4c] sm:$0xf] }
  0xad   : > { %v5994_v19 = vpop.permute.xlu1 %2196  ;;  %v3480_v20 = vsel %vm5523_vm12, %v3475_v57, %v3479_v38  ;;  %4108 = vrot.lane.b32.xlu0 %v5100_v49, %s5385_s12  ;;  %v1418_v51 = vor.u32 %v1417_v15, %v1413_v5  ;;  %v3980_v53 = vrot.slane %v3861_v12, 5  ;;  %v1426_v27 = vshrl.u32 %v1227_v55, 16  ;;  %v1774_v42 = vld [vmem:[#allocation2 + $0x50] sm:$0x1]  ;;  %v1775_v46 = vld [vmem:[#allocation2 + $0x54] sm:$0xe] }
  0xae   : > { %v3490_v37 = vsel %vm5523_vm12, %v3485_v43, %v3489_v44  ;;  %v1409_v6 = vrot.slane %v1408_v52, 4  ;;  %v3978_v28 = vsel %vm5467_vm8, %v5085_v47, %v3977_v58  ;;  %v3979_v54 = vrot.slane %v3977_v58, 4  ;;  %v6003_v29 = vpop.permute.xlu0 %3056  ;;  %v1776_v3 = vld [vmem:[#allocation2 + $0x58] sm:$0xf] }
  0xaf   : > { %v5069_v41 = vcombine.low %v3480_v20, %v3490_v37  ;;  %v1419_v36 = vrot.slane %v1418_v51, 4  ;;  %v1428_v45 = vrot.slane %v1426_v27, 4  ;;  %v1429_v62 = vshll.u32 %v1227_v55, 16  ;;  %v1777_v55 = vld [vmem:[#allocation2 + $0x5c] sm:$0x1] }
  0xb0   : > { %v1414_v38 = vsel %vm5523_vm12, %v1409_v6, %v1413_v5  ;;  %v3981_v17 = vsel %vm5467_vm8, %v3979_v54, %v3980_v53  ;;  %v1435_v39 = vshll.u32 %v1228_v24, 16  ;;  %v1439_v60 = vshrl.u32 %v1228_v24, 16  ;;  %v6027_v54 = vld [vmem:[%s5474_s28 + $0x98] sm:$0xff] }
  0xb1   : > { %v6009_v10 = vpop.permute.xlu1 %2015  ;;  %3789 = vrot.lane.b32.xlu1 %v5069_v41, %s5387_s14  ;;  %v1424_v48 = vsel %vm5523_vm12, %v1419_v36, %v1423_v31  ;;  %v5101_v23 = vcombine.low %v3978_v28, %v3981_v17  ;;  %v1431_v49 = vrot.slane %v1429_v62, 5  ;;  %v1445_v50 = vshll.u32 %v1229_v61, 16  ;;  %v998_v28 = vld [vmem:[#allocation2 + $0x60] sm:$0xf]  ;;  %v2274_v17 = vld [vmem:[#allocation2 + $0x58] sm:$0xf] }
  0xb2   : > { %v4942_v18 = vcombine.low %v1414_v38, %v1424_v48  ;;  %v1437_v4 = vrot.slane %v1435_v39, 5  ;;  %v1441_v34 = vrot.slane %v1439_v60, 4  ;;  %v4958_v5 = vrot.slane %v1772_v16, 9  ;;  %v6014_v12 = vpop.permute.xlu0 %4100  ;;  %v2273_v38 = vld [vmem:[#allocation2 + $0x54] sm:$0xf] }
  0xb3   : > { %4110 = vrot.lane.b32.xlu0 %v5101_v23, %s5385_s12  ;;  %v1432_v57 = vor.u32 %v1431_v49, %v1428_v45  ;;  %v1447_v15 = vrot.slane %v1445_v50, 5  ;;  %v1897_v47 = vrot.slane %v1773_v25, 5  ;;  %v1900_v43 = vrot.slane %v1774_v42, 5  ;;  %v6041_v48 = vld [vmem:[#allocation2 + $0x54] sm:$0xe] }
  0xb4   : > { %v1442_v44 = vor.u32 %v1441_v34, %v1437_v4  ;;  %v4959_v31 = vrot.slane %v1775_v46, 9  ;;  %v1904_v52 = vrot.slane %v1776_v3, 5  ;;  %v1907_v58 = vrot.slane %v1777_v55, 5  ;;  %v2275_v46 = vld [vmem:[#allocation2 + $0x5c] sm:$0x1]  ;;  %v5326_v50 = vld [vmem:[#allocation2 + $0x54] sm:$0xff]  }
  0xb5   : > { %v6017_v20 = vpop.permute.xlu1 %3058  ;;  %1701 = vrot.lane.b32.xlu1 %v4942_v18, %s5381_s8  ;;  %v1433_v51 = vrot.slane %v1432_v57, 4  ;;  %v1898_v53 = vsel %vm5467_vm8, %v4958_v5, %v1897_v47  ;;  %v1899_v24 = vrot.slane %v1897_v47, 4  ;;  %v746_v61 = vshrl.u32 %v5970_v63, 16  ;;  %v1002_v18 = vld [vmem:[#allocation2 + $0x68] sm:$0x1] }
  0xb6   : > { %v1443_v27 = vrot.slane %v1442_v44, 4  ;;  %v1905_v16 = vsel %vm5467_vm8, %v4959_v31, %v1904_v52  ;;  %v1906_v37 = vrot.slane %v1904_v52, 4  ;;  %v749_v6 = vshll.u32 %v5970_v63, 16  ;;  %v6050_v47 = vld [vmem:[#allocation2 + $0x5c] sm:$0x1]  ;;  %v5333_v44 = vld [vmem:[#allocation2 + $0xc] sm:$0xff]  }
  0xb7   : > { %v6029_v25 = vpop.permute.xlu0 %4102  ;;  %v1438_v41 = vsel %vm5523_vm12, %v1433_v51, %v1437_v4  ;;  %v1901_v36 = vsel %vm5467_vm8, %v1899_v24, %v1900_v43  ;;  %v748_v45 = vrot.slane %v746_v61, 7  ;;  %v754_v62 = vshrl.u32 %v5977_v22, 16  ;;  %v6045_v4 = vld [vmem:[#allocation2 + $0x58] sm:$0xf]  ;;  %v5328_v43 = vld [vmem:[#allocation2] sm:$0xff]   ;;  %v5343_v61 = vld [vmem:[#allocation2 + $0x30] sm:$0xff]  }
  0xb8   : > { %v1448_v39 = vsel %vm5523_vm12, %v1443_v27, %v1447_v15  ;;  %v4974_v63 = vcombine.low %v1898_v53, %v1901_v36  ;;  %v1908_v60 = vsel %vm5467_vm8, %v1906_v37, %v1907_v58  ;;  %v757_v42 = vshll.u32 %v5977_v22, 16  ;;  %v5336_v31 = vld [vmem:[#allocation2 + $0x18] sm:$0xff]   ;;  %v5338_v24 = vld [vmem:[#allocation2 + $0x24] sm:$0xff]   ;;  %1190 = vst.msk [vmem:[#allocation3] sm:$0xff] %vm7155_vm15, %v5328_v43  ;;  %1191 = vst.msk [vmem:[#allocation3 + $0x8] sm:$0xff] %vm7155_vm15, %v5333_v44 }
  0xb9   : > { %v6043_v23 = vpop.permute.xlu1 %2019  ;;  %v4943_v49 = vcombine.low %v1438_v41, %v1448_v39  ;;  %v751_v3 = vor.u32 %v749_v6, %v748_v45  ;;  %v752_v55 = vrot.slane %v748_v45, 4  ;;  %v322_v34 = vsub.f32 %v6027_v54, %v5808_v59  ;;  %1192 = vst.msk [vmem:[#allocation3 + $0x10] sm:$0xff] %vm7155_vm15, %v5336_v31  ;;  %1193 = vst.msk [vmem:[#allocation3 + $0x18] sm:$0xff] %vm7155_vm15, %v5338_v24  ;;  %v6093_v43 = vld [vmem:[%s5474_s28 + $0xa8] sm:$0xff] }
  0xba   : > { %2025 = vrot.lane.b32.xlu0 %v4974_v63, %s5380_s7  ;;  %v756_v5 = vrot.slane %v754_v62, 7  ;;  %v2448_v57 = vshrl.u32 %v2273_v38, 16  ;;  %v2451_v22 = vshll.u32 %v2273_v38, 16  ;;  %v2457_v15 = vshll.u32 %v2274_v17, 16  ;;  %v5344_v62 = vld [vmem:[#allocation2 + $0x3c] sm:$0xff]   ;;  %1194 = vst.msk [vmem:[#allocation3 + $0x20] sm:$0xff] %vm7155_vm15, %v5343_v61 }
  0xbb   : > { %1703 = vrot.lane.b32.xlu1 %v4943_v49, %s5381_s8  ;;  %v4975_v52 = vcombine.low %v1905_v16, %v1908_v60  ;;  %v999_v58 = vsel %vm5531_vm13, %v751_v3, %v998_v28  ;;  %v2461_v51 = vshrl.u32 %v2274_v17, 16  ;;  %v2467_v53 = vshll.u32 %v2275_v46, 16  ;;  %v6057_v45 = vpop.permute.xlu0 %2017  ;;  %v445_v46 = vld [vmem:[#allocation2 + $0x6c] sm:$0x1]  ;;  %1195 = vst.msk [vmem:[#allocation3 + $0x28] sm:$0xff] %vm7155_vm15, %v5344_v62  ;;  %v6123_v62 = vld [vmem:[%s5474_s28 + $0xb0] sm:$0xff] }
  0xbc   : > { %v759_v27 = vor.u32 %v757_v42, %v756_v5  ;;  %v761_v37 = vrot.slane %v756_v5, 4  ;;  %1000 = vst [vmem:[#allocation2 + $0x60] sm:$0xf] %v999_v58  ;;  %v2450_v6 = vrot.slane %v2448_v57, 4  ;;  %v2453_v41 = vrot.slane %v2451_v22, 5 }
  0xbd   : > { %v6055_v36 = vpop.permute.xlu1 %2737  ;;  %v2459_v38 = vrot.slane %v2457_v15, 5  ;;  %v2463_v39 = vrot.slane %v2461_v51, 4  ;;  %v5022_v16 = vrot.slane %v6041_v48, 9  ;;  %v2940_v28 = vrot.slane %v6045_v4, 5 }
  0xbe   : > { %2202 = vrot.lane.b32.xlu0 %v5326_v50, %s5382_s9  ;;  %v760_v17 = vsel %vm5541_vm14, %v752_v55, %v759_v27  ;;  %v2454_v63 = vor.u32 %v2453_v41, %v2450_v6  ;;  %v2469_v60 = vrot.slane %v2467_v53, 5  ;;  %v1003_v42 = vsel %vm5439_vm3, %v761_v37, %v1002_v18 }
  0xbf   : > { %2027 = vrot.lane.b32.xlu1 %v4975_v52, %s5380_s7  ;;  %1001 = vst.msk [vmem:[#allocation2 + $0x64] sm:$0xf] %vm406_vm0, %v760_v17  ;;  %v2464_v49 = vor.u32 %v2463_v39, %v2459_v38  ;;  %1004 = vst [vmem:[#allocation2 + $0x68] sm:$0x1] %v1003_v42  ;;  %v2942_v48 = vrot.slane %v2940_v28, 4  ;;  %v2943_v3 = vrot.slane %v6050_v47, 5  ;;  %v2941_v31 = vsel %vm5467_vm8, %v5022_v16, %v2940_v28 }
  0xc0   : > { %v2455_v50 = vrot.slane %v2454_v63, 4  ;;  %vm1737_vm1 = vcmask 64544   ;;  %v390_v55 = vmax.f32 %v5936_v26, 0.0  ;;  %v391_v4 = vmax.f32 %v5943_v35, 0.0  ;;  %v6090_v47 = vld [vmem:[%s5474_s28 + $0xa0] sm:$0xff] }
  0xc1   : > { %v6072_v18 = vpop.permute.xlu1 %3781  ;;  %v2465_v5 = vrot.slane %v2464_v49, 4  ;;  %1738 = vst.msk [vmem:[#allocation3] sm:$0xff] %vm1737_vm1, %v5940_v32  ;;  %v446_v26 = vsel %vm5439_vm3, 0, %v445_v46  ;;  %vm2061_vm2 = vcmask 97344   ;;  %v2944_v52 = vsel %vm5467_vm8, %v2942_v48, %v2943_v3 }
  0xc2   : > { %v2460_v35 = vsel %vm5523_vm12, %v2455_v50, %v2459_v38  ;;  %447 = vst [vmem:[#allocation2 + $0x6c] sm:$0x1] %v446_v26  ;;  %v5184_v57 = vpack.c.bf16 %v390_v55, %v390_v55  ;;  %v6085_v22 = vpack.c.bf16 %v391_v4, %v391_v4  ;;  %2062 = vst.msk [vmem:[#allocation3] sm:$0xff] %vm2061_vm2, %v5928_v2  ;;  %v1692_v15 = vpop.permute.xlu0 %1691  ;;  %v6104_v2 = vld [vmem:[%s7150_s2] ss:$0 sm:$0xff]  ;;  %v6126_v38 = vld [vmem:[%s5474_s28 + $0xb8] sm:$0xff] }
  0xc3   : > { %v2470_v32 = vsel %vm5523_vm12, %v2465_v5, %v2469_v60  ;;  %v2276_v44 = vld [vmem:[#allocation2 + $0x60] sm:$0xf]  ;;  %v6110_v51 = vmul.f32 %v6104_v2, %v321_v0  ;;  %1739 = vst.msk [vmem:[#allocation3 + $0x8] sm:$0xff] %vm1737_vm1, %v1692_v15  ;;  %v6117_v27 = vmul.f32 %v6104_v2, %v322_v34  ;;  %v5038_v34 = vcombine.low %v2941_v31, %v2944_v52 }
  0xc4   : > { %v2821_v58 = vld [vmem:[#allocation2 + $0x60] sm:$0xe]  ;;  %v5006_v53 = vcombine.low %v2460_v35, %v2470_v32  ;;  %v2472_v24 = vshrl.u32 %v2276_v44, 16  ;;  %v2475_v61 = vshll.u32 %v2276_v44, 16  ;;  %2063 = vst.msk [vmem:[#allocation3 + $0x8] sm:$0xff] %vm2061_vm2, %v6009_v10  ;;  %v763_v6 = vshrl.u32 %v5184_v57, 16 }
  0xc5   : > { %v5023_v37 = vrot.slane %v2821_v58, 9  ;;  %v766_v30 = vshll.u32 %v5184_v57, 16  ;;  %v771_v0 = vshrl.u32 %v6085_v22, 16  ;;  %v1694_v41 = vpop.permute.xlu1 %1693  ;;  %v323_v28 = vsub.f32 %v6090_v47, %v5808_v59  ;;  %v3317_v49 = vld [vmem:[#allocation2 + $0x60] sm:$0xf] }
  0xc6   : > { %v5327_v39 = vld [vmem:[#allocation2 + $0x60] sm:$0xff]   ;;  %2747 = vrot.lane.b32.xlu0 %v5006_v53, %s5386_s13  ;;  %v2474_v16 = vrot.slane %v2472_v24, 4  ;;  %v324_v10 = vsub.f32 %v6093_v43, %v5808_v59  ;;  %1740 = vst.msk [vmem:[#allocation3 + $0x10] sm:$0xff] %vm1737_vm1, %v1694_v41  ;;  %v2278_v17 = vld [vmem:[#allocation2 + $0x68] sm:$0x1]  ;;  %v2477_v63 = vrot.slane %v2475_v61, 5 }
  0xc7   : > { %v2277_v54 = vld [vmem:[#allocation2 + $0x64] sm:$0xf]  ;;  %v774_v46 = vshll.u32 %v6085_v22, 16  ;;  %2064 = vst.msk [vmem:[#allocation3 + $0x10] sm:$0xff] %vm2061_vm2, %v6057_v45  ;;  %2204 = vrot.lane.b32.xlu1 %v5327_v39, %s5382_s9  ;;  %v2491_v48 = vshll.u32 %v2278_v17, 16  ;;  %v765_v55 = vrot.slane %v763_v6, 7 }
  0xc8   : > { %v2481_v60 = vshll.u32 %v2277_v54, 16  ;;  %v2485_v42 = vshrl.u32 %v2277_v54, 16  ;;  %v2822_v3 = vld [vmem:[#allocation2 + $0x64] sm:$0xf]  ;;  %v2823_v50 = vld [vmem:[#allocation2 + $0x68] sm:$0x1]  ;;  %v2478_v35 = vor.u32 %v2477_v63, %v2474_v16 }
  0xc9   : > { %v6141_v4 = vld [vmem:[%s7149_s1] ss:$0 sm:$0xff]  ;;  %v2947_v22 = vrot.slane %v2822_v3, 5  ;;  %v2493_v15 = vrot.slane %v2491_v48, 5  ;;  %v2950_v32 = vrot.slane %v2823_v50, 5  ;;  %v768_v31 = vor.u32 %v766_v30, %v765_v55 }
  0xca   : > { %v325_v5 = vsub.f32 %v6123_v62, %v6141_v4  ;;  %v326_v26 = vsub.f32 %v6126_v38, %v6141_v4  ;;  %v2483_v57 = vrot.slane %v2481_v60, 5  ;;  %v2487_v45 = vrot.slane %v2485_v42, 4  ;;  %3068 = vrot.lane.b32.xlu0 %v5038_v34, %s5384_s11  ;;  %v5329_v44 = vld [vmem:[#allocation2 + $0x60] sm:$0xff]   ;;  %v1005_v58 = vld [vmem:[#allocation2 + $0x6c] sm:$0xf] }
  0xcb   : > { %v769_v52 = vrot.slane %v765_v55, 4  ;;  %v2479_v53 = vrot.slane %v2478_v35, 4  ;;  %v6150_v61 = vsel %vm5467_vm8, %v5023_v37, %v2947_v22  ;;  %v2949_v6 = vrot.slane %v2947_v22, 4  ;;  %v501_v41 = vld [vmem:[#allocation2 + $0x74] sm:$0x1]  ;;  %v6170_v35 = vpop.permute.xlu0 %2735 }
  0xcc   : > { %v2488_v24 = vor.u32 %v2487_v45, %v2483_v57  ;;  %v6152_v39 = vrot.slane %v771_v0, 7  ;;  %v1006_v54 = vsel %vm5531_vm13, %v768_v31, %v1005_v58  ;;  %vm2238_vm4 = vcmask 130144   ;;  %v3318_v16 = vld [vmem:[#allocation2 + $0x64] sm:$0xf]  ;;  %v3319_v37 = vld [vmem:[#allocation2 + $0x68] sm:$0x1] }
  0xcd   : > { %v3492_v34 = vshrl.u32 %v3317_v49, 16  ;;  %v2484_v30 = vsel %vm5523_vm12, %v2479_v53, %v2483_v57  ;;  %v2951_v63 = vsel %vm5467_vm8, %v2949_v6, %v2950_v32  ;;  %1007 = vst [vmem:[#allocation2 + $0x6c] sm:$0xf] %v1006_v54  ;;  %2239 = vst.msk [vmem:[#allocation3] sm:$0xff] %vm2238_vm4, %v5962_v7  ;;  %v3495_v0 = vshll.u32 %v3317_v49, 16 }
  0xce   : > { %v2489_v17 = vrot.slane %v2488_v24, 4  ;;  %v3862_v60 = vld [vmem:[#allocation2 + $0x60] sm:$0xe]  ;;  %2240 = vst.msk [vmem:[#allocation3 + $0x8] sm:$0xff] %vm2238_vm4, %v5958_v14  ;;  %2241 = vst.msk [vmem:[#allocation3 + $0x10] sm:$0xff] %vm2238_vm4, %v5991_v56  ;;  %v5039_v42 = vcombine.low %v6150_v61, %v2951_v63  ;;  %3246 = vrot.lane.b32.xlu0 %v5329_v44, %s5383_s10  ;;  %v776_v48 = vor.u32 %v774_v46, %v6152_v39  ;;  %v778_v3 = vrot.slane %v6152_v39, 4 }
  0xcf   : > { %v3494_v50 = vrot.slane %v3492_v34, 4  ;;  %v3863_v55 = vld [vmem:[#allocation2 + $0x64] sm:$0xf]  ;;  %v3864_v7 = vld [vmem:[#allocation2 + $0x68] sm:$0x1]  ;;  %v3497_v14 = vrot.slane %v3495_v0, 5  ;;  %v1696_v22 = vpop.permute.xlu1 %1695 }
  0xd0   : > { %v2494_v49 = vsel %vm5523_vm12, %v2489_v17, %v2493_v15  ;;  %v3501_v57 = vshll.u32 %v3318_v16, 16  ;;  %v3505_v45 = vshrl.u32 %v3318_v16, 16  ;;  %v1230_v56 = vld [vmem:[#allocation2 + $0x60] sm:$0xf]  ;;  %v777_v44 = vsel %vm5541_vm14, %v769_v52, %v776_v48  ;;  %v1231_v58 = vld [vmem:[#allocation2 + $0x64] sm:$0xf] }
  0xd1   : > { %v5007_v32 = vcombine.low %v2484_v30, %v2494_v49  ;;  %v3511_v46 = vshll.u32 %v3319_v37, 16  ;;  %v502_v31 = vsel %vm5453_vm7, 0, %v501_v41  ;;  %1741 = vst.msk [vmem:[#allocation3 + $0x18] sm:$0xff] %vm1737_vm1, %v1696_v22  ;;  %v3498_v53 = vor.u32 %v3497_v14, %v3494_v50  ;;  %v1232_v14 = vld [vmem:[#allocation2 + $0x68] sm:$0x1] }
  0xd2   : > { %1008 = vst.msk [vmem:[#allocation2 + $0x70] sm:$0xf] %vm406_vm0, %v777_v44  ;;  %v3503_v15 = vrot.slane %v3501_v57, 5  ;;  %v3507_v24 = vrot.slane %v3505_v45, 4  ;;  %503 = vst [vmem:[#allocation2 + $0x74] sm:$0x1] %v502_v31 }
  0xd3   : > { %v5086_v61 = vrot.slane %v3862_v60, 9  ;;  %2065 = vst.msk [vmem:[#allocation3 + $0x18] sm:$0xff] %vm2061_vm2, %v6043_v23  ;;  %2749 = vrot.lane.b32.xlu1 %v5007_v32, %s5386_s13  ;;  %v3513_v52 = vrot.slane %v3511_v46, 5  ;;  %v3984_v6 = vrot.slane %v3863_v55, 5  ;;  %v3987_v54 = vrot.slane %v3864_v7, 5  ;;  %v6193_v48 = vpop.permute.xlu0 %3779 }
  0xd4   : > { %v1450_v16 = vshrl.u32 %v1230_v56, 16  ;;  %2242 = vst.msk [vmem:[#allocation3 + $0x18] sm:$0xff] %vm2238_vm4, %v5994_v19  ;;  %v3499_v41 = vrot.slane %v3498_v53, 4  ;;  %v3508_v34 = vor.u32 %v3507_v24, %v3503_v15  ;;  %v1453_v30 = vshll.u32 %v1230_v56, 16  ;;  %v3320_v63 = vld [vmem:[#allocation2 + $0x6c] sm:$0xf] }
  0xd5   : > { %v1459_v17 = vshll.u32 %v1231_v58, 16  ;;  %v3985_v37 = vsel %vm5467_vm8, %v5086_v61, %v3984_v6  ;;  %v3986_v0 = vrot.slane %v3984_v6, 4  ;;  %v6191_v23 = vmul.f32 %v6104_v2, %v323_v28  ;;  %v1233_v32 = vld [vmem:[#allocation2 + $0x6c] sm:$0xf] }
  0xd6   : > { %v1452_v60 = vrot.slane %v1450_v16, 4  ;;  %v3504_v19 = vsel %vm5523_vm12, %v3499_v41, %v3503_v15  ;;  %v3509_v50 = vrot.slane %v3508_v34, 4  ;;  %v3516_v55 = vshrl.u32 %v3320_v63, 16  ;;  %v3865_v41 = vld [vmem:[#allocation2 + $0x6c] sm:$0xe] }
  0xd7   : > { %v3519_v7 = vshll.u32 %v3320_v63, 16  ;;  %3070 = vrot.lane.b32.xlu1 %v5039_v42, %s5384_s11  ;;  %v3988_v49 = vsel %vm5467_vm8, %v3986_v0, %v3987_v54  ;;  %v1455_v57 = vrot.slane %v1453_v30, 5  ;;  %v6200_v45 = vrot.slane %v1459_v17, 5  ;;  %v6210_v24 = vpop.permute.xlu0 %2739  ;;  %v6223_v54 = vld [vmem:[%s5474_s28 + $0xc0] sm:$0xff] }
  0xd8   : > { %v1463_v47 = vshrl.u32 %v1231_v58, 16  ;;  %v3514_v28 = vsel %vm5523_vm12, %v3509_v50, %v3513_v52  ;;  %v3518_v56 = vrot.slane %v3516_v55, 4  ;;  %v6208_v42 = vmul.f32 %v6104_v2, %v324_v10  ;;  %v1778_v34 = vld [vmem:[#allocation2 + $0x60] sm:$0xe] }
  0xd9   : > { %v3521_v22 = vrot.slane %v3519_v7, 5  ;;  %v5330_v44 = vld [vmem:[#allocation2 + $0x6c] sm:$0xff]   ;;  %v5070_v46 = vcombine.low %v3504_v19, %v3514_v28  ;;  %v1009_v31 = vld [vmem:[#allocation2 + $0x74] sm:$0x1]  ;;  %v1456_v53 = vor.u32 %v1455_v57, %v1452_v60  ;;  %v6216_v58 = vmul.f32 %v6104_v2, %v325_v5 }
  0xda   : > { %v1465_v15 = vrot.slane %v1463_v47, 4  ;;  %v1010_v59 = vsel %vm5439_vm3, %v778_v3, %v1009_v31  ;;  %v3321_v43 = vld [vmem:[#allocation2 + $0x70] sm:$0xf]  ;;  %v5102_v61 = vcombine.low %v3985_v37, %v3988_v49  ;;  %v1469_v52 = vshll.u32 %v1232_v14, 16  ;;  %v1779_v37 = vld [vmem:[#allocation2 + $0x64] sm:$0xf] }
  0xdb   : > { %v3522_v10 = vor.u32 %v3521_v22, %v3518_v56  ;;  %v3866_v6 = vld [vmem:[#allocation2 + $0x70] sm:$0xf]  ;;  %3248 = vrot.lane.b32.xlu1 %v5330_v44, %s5383_s10  ;;  %3791 = vrot.lane.b32.xlu0 %v5070_v46, %s5387_s14  ;;  %1011 = vst [vmem:[#allocation2 + $0x74] sm:$0x1] %v1010_v59  ;;  %v3525_v62 = vshll.u32 %v3321_v43, 16  ;;  %v3529_v5 = vshrl.u32 %v3321_v43, 16  ;;  %v6232_v0 = vmul.f32 %v6104_v2, %v326_v26  ;;  %v6236_v28 = vpop.permute.xlu0 %3060 }
  0xdc   : > { %v1457_v16 = vrot.slane %v1456_v53, 4  ;;  %v1466_v39 = vor.u32 %v1465_v15, %v6200_v45  ;;  %v1471_v3 = vrot.slane %v1469_v52, 5  ;;  %v3991_v30 = vrot.slane %v3866_v6, 5  ;;  %v1234_v17 = vld [vmem:[#allocation2 + $0x70] sm:$0xf] }
  0xdd   : > { %v1474_v63 = vshrl.u32 %v1233_v32, 16  ;;  %v3527_v60 = vrot.slane %v3525_v62, 5  ;;  %v3531_v19 = vrot.slane %v3529_v5, 4  ;;  %v327_v55 = vsub.f32 %v6223_v54, %v6141_v4  ;;  %v1780_v47 = vld [vmem:[#allocation2 + $0x68] sm:$0x1] }
  0xde   : > { %v1467_v50 = vrot.slane %v1466_v39, 4  ;;  %v3523_v7 = vrot.slane %v3522_v10, 4  ;;  %v5087_v49 = vrot.slane %v3865_v41, 9  ;;  %v1477_v57 = vshll.u32 %v1233_v32, 16  ;;  %v1781_v10 = vld [vmem:[#allocation2 + $0x6c] sm:$0xe] }
  0xdf   : > { %v1476_v14 = vrot.slane %v1474_v63, 4  ;;  %v3532_v56 = vor.u32 %v3531_v19, %v3527_v60  ;;  %4112 = vrot.lane.b32.xlu0 %v5102_v61, %s5385_s12  ;;  %v1462_v38 = vsel %vm5523_vm12, %v1457_v16, %v6200_v45  ;;  %v1483_v22 = vshll.u32 %v1234_v17, 16 }
  0xe0   : > { %v1472_v26 = vsel %vm5523_vm12, %v1467_v50, %v1471_v3  ;;  %v3993_v44 = vrot.slane %v3991_v30, 4  ;;  %v1479_v46 = vrot.slane %v1477_v57, 5  ;;  %v1487_v31 = vshrl.u32 %v1234_v17, 16  ;;  %v1782_v17 = vld [vmem:[#allocation2 + $0x70] sm:$0xf] }
  0xe1   : > { %v4960_v53 = vrot.slane %v1778_v34, 9  ;;  %v3533_v15 = vrot.slane %v3532_v56, 4  ;;  %v1485_v32 = vrot.slane %v1483_v22, 5  ;;  %v1911_v59 = vrot.slane %v1779_v37, 5  ;;  %v2279_v56 = vld [vmem:[#allocation2 + $0x6c] sm:$0xf] }
  0xe2   : > { %v1914_v43 = vrot.slane %v1780_v47, 5  ;;  %v3322_v52 = vld [vmem:[#allocation2 + $0x74] sm:$0x1]  ;;  %v3528_v61 = vsel %vm5523_vm12, %v3523_v7, %v3527_v60  ;;  %v6246_v6 = vcombine.low %v1462_v38, %v1472_v26  ;;  %v3992_v62 = vsel %vm5467_vm8, %v5087_v49, %v3991_v30  ;;  %v6252_v7 = vpop.permute.xlu0 %3238  ;;  %v448_v47 = vld [vmem:[#allocation2 + $0x78] sm:$0x1] }
  0xe3   : > { %v3867_v45 = vld [vmem:[#allocation2 + $0x74] sm:$0x1]  ;;  %v1480_v16 = vor.u32 %v1479_v46, %v1476_v14  ;;  %v3535_v39 = vshll.u32 %v3322_v52, 16  ;;  %v1489_v34 = vrot.slane %v1487_v31, 4  ;;  %v1912_v37 = vsel %vm5467_vm8, %v4960_v53, %v1911_v59 }
  0xe4   : > { %v1235_v5 = vld [vmem:[#allocation2 + $0x74] sm:$0x1]  ;;  %v3994_v41 = vrot.slane %v3867_v45, 5  ;;  %v1913_v19 = vrot.slane %v1911_v59, 4  ;;  %v4961_v60 = vrot.slane %v1781_v10, 9  ;;  %v1918_v46 = vrot.slane %v1782_v17, 5 }
  0xe5   : > { %v1493_v3 = vshll.u32 %v1235_v5, 16  ;;  %v1481_v63 = vrot.slane %v1480_v16, 4  ;;  %v1783_v50 = vld [vmem:[#allocation2 + $0x74] sm:$0x1]  ;;  %v3537_v57 = vrot.slane %v3535_v39, 5  ;;  %v1490_v49 = vor.u32 %v1489_v34, %v1485_v32  ;;  %v5349_v39 = vld [vmem:[#allocation2 + $0x48] sm:$0xff]  }
  0xe6   : > { %v3995_v30 = vsel %vm5467_vm8, %v3993_v44, %v3994_v41  ;;  %v1915_v22 = vsel %vm5467_vm8, %v1913_v19, %v1914_v43  ;;  %v1921_v10 = vrot.slane %v1783_v50, 5  ;;  %v6265_v44 = vsel %vm5467_vm8, %v4961_v60, %v1918_v46  ;;  %v5331_v19 = vld [vmem:[#allocation2 + $0x6c] sm:$0xff]   ;;  %1196 = vst.msk [vmem:[#allocation3 + $0x30] sm:$0xff] %vm7155_vm15, %v5349_v39 }
  0xe7   : > { %v1495_v14 = vrot.slane %v1493_v3, 5  ;;  %v5103_v38 = vcombine.low %v3992_v62, %v3995_v30  ;;  %v1486_v26 = vsel %vm5523_vm12, %v1481_v63, %v1485_v32  ;;  %v3538_v31 = vsel %vm5523_vm12, %v3533_v15, %v3537_v57  ;;  %v2280_v62 = vld [vmem:[#allocation2 + $0x70] sm:$0xf]  ;;  %v6268_v5 = vpop.permute.xlu1 %2741  ;;  %v2281_v3 = vld [vmem:[#allocation2 + $0x74] sm:$0x1] }
  0xe8   : > { %v1491_v53 = vrot.slane %v1490_v49, 4  ;;  %v4976_v59 = vcombine.low %v1912_v37, %v1915_v22  ;;  %v5071_v52 = vcombine.low %v3528_v61, %v3538_v31  ;;  %v1920_v45 = vrot.slane %v1918_v46, 4  ;;  %v504_v63 = vld [vmem:[#allocation2 + $0x80] sm:$0x1]  ;;  %v2824_v30 = vld [vmem:[#allocation2 + $0x6c] sm:$0xe] }
  0xe9   : > { %4114 = vrot.lane.b32.xlu0 %v5103_v38, %s5385_s12  ;;  %v392_v32 = vmax.f32 %v6110_v51, 0.0  ;;  %v393_v15 = vmax.f32 %v6117_v27, 0.0  ;;  %v449_v61 = vsel %vm5439_vm3, 0, %v448_v47  ;;  %v2496_v16 = vshrl.u32 %v2279_v56, 16  ;;  %v6280_v37 = vpop.permute.xlu0 %3783 }
  0xea   : > { %v1496_v43 = vsel %vm5523_vm12, %v1491_v53, %v1495_v14  ;;  %3793 = vrot.lane.b32.xlu1 %v5071_v52, %s5387_s14  ;;  %v6278_v34 = vsel %vm5467_vm8, %v1920_v45, %v1921_v10  ;;  %450 = vst [vmem:[#allocation2 + $0x78] sm:$0x1] %v449_v61  ;;  %v2499_v17 = vshll.u32 %v2279_v56, 16  ;;  %v2505_v57 = vshll.u32 %v2280_v62, 16  ;;  %v2825_v56 = vld [vmem:[#allocation2 + $0x70] sm:$0xf] }
  0xeb   : > { %v4945_v41 = vcombine.low %v1486_v26, %v1496_v43  ;;  %v5186_v51 = vpack.c.bf16 %v392_v32, %v392_v32  ;;  %v4977_v27 = vcombine.low %v6265_v44, %v6278_v34  ;;  %v5187_v50 = vpack.c.bf16 %v393_v15, %v393_v15  ;;  %v3063_v26 = vpop.permute.xlu1 %3062  ;;  %v5350_v10 = vld [vmem:[#allocation2 + $0x54] sm:$0xff]  }
  0xec   : > { %v2498_v60 = vrot.slane %v2496_v16, 4  ;;  %v2501_v47 = vrot.slane %v2499_v17, 5  ;;  %v2509_v38 = vshrl.u32 %v2280_v62, 16  ;;  %v2507_v31 = vrot.slane %v2505_v57, 5  ;;  %v2826_v62 = vld [vmem:[#allocation2 + $0x74] sm:$0x1] }
  0xed   : > { %2029 = vrot.lane.b32.xlu0 %v4976_v59, %s5380_s7  ;;  %v780_v49 = vshrl.u32 %v5186_v51, 16  ;;  %v783_v14 = vshll.u32 %v5186_v51, 16  ;;  %v788_v22 = vshrl.u32 %v5187_v50, 16  ;;  %v791_v46 = vshll.u32 %v5187_v50, 16  ;;  %1197 = vst.msk [vmem:[#allocation3 + $0x38] sm:$0xff] %vm7155_vm15, %v5350_v10  ;;  %v6294_v17 = vpop.permute.xlu0 %4104 }
  0xee   : > { %v2515_v53 = vshll.u32 %v2281_v3, 16  ;;  %1705 = vrot.lane.b32.xlu1 %v6246_v6, %s5381_s8  ;;  %v2502_v45 = vor.u32 %v2501_v47, %v2498_v60  ;;  %v2511_v32 = vrot.slane %v2509_v38, 4  ;;  %v505_v59 = vsel %vm5453_vm7, 0, %v504_v63  ;;  %v6303_v47 = vld [vmem:[%s5474_s28 + $0xc8] sm:$0xff] }
  0xef   : > { %v782_v52 = vrot.slane %v780_v49, 7  ;;  %v6290_v43 = vrot.slane %v788_v22, 7  ;;  %506 = vst [vmem:[#allocation2 + $0x80] sm:$0x1] %v505_v59  ;;  %v5024_v61 = vrot.slane %v2824_v30, 9  ;;  %v2954_v16 = vrot.slane %v2825_v56, 5  ;;  %v3241_v49 = vpop.permute.xlu1 %3240 }
  0xf0   : > { %v2517_v15 = vrot.slane %v2515_v53, 5  ;;  %v2503_v51 = vrot.slane %v2502_v45, 4  ;;  %v2512_v3 = vor.u32 %v2511_v32, %v2507_v31  ;;  %v2957_v56 = vrot.slane %v2826_v62, 5  ;;  %v451_v22 = vld [vmem:[#allocation2 + $0x84] sm:$0x1] }
  0xf1   : > { %2206 = vrot.lane.b32.xlu0 %v5331_v19, %s5382_s9  ;;  %v785_v39 = vor.u32 %v783_v14, %v782_v52  ;;  %v786_v6 = vrot.slane %v782_v52, 4  ;;  %v793_v63 = vor.u32 %v791_v46, %v6290_v43  ;;  %v795_v50 = vrot.slane %v6290_v43, 4  ;;  %v1012_v60 = vld [vmem:[#allocation2 + $0x78] sm:$0xf]  ;;  %v507_v46 = vld [vmem:[#allocation2 + $0x8c] sm:$0x1] }
  0xf2   : > { %v6300_v57 = vsel %vm5467_vm8, %v5024_v61, %v2954_v16  ;;  %v2956_v30 = vrot.slane %v2954_v16, 4  ;;  %1707 = vrot.lane.b32.xlu1 %v4945_v41, %s5381_s8  ;;  %v2508_v14 = vsel %vm5523_vm12, %v2503_v51, %v2507_v31  ;;  %v2513_v38 = vrot.slane %v2512_v3, 4  ;;  %v5340_v41 = vld [vmem:[%s7151_s3 + $0x10] ss:$0 sps:$4 sm:$0x33]   ;;  %v6394_v43 = vld [vmem:[%s5474_s28 + $0xd8] sm:$0xff] }
  0xf3   : > { %v1013_v19 = vsel %vm5531_vm13, %v785_v39, %v1012_v60  ;;  %v794_v53 = vsel %vm5541_vm14, %v786_v6, %v793_v63  ;;  %vm7158_vm5 = vcmask 162944   ;;  %vm7157_vm6 = vcmask 195744   ;;  %v454_v52 = vld [vmem:[#allocation2 + $0x90] sm:$0x1] }
  0xf4   : > { %1014 = vst [vmem:[#allocation2 + $0x78] sm:$0xf] %v1013_v19  ;;  %vm7156_vm9 = vcmask 228544   ;;  %1015 = vst.msk [vmem:[#allocation2 + $0x7c] sm:$0xf] %vm406_vm0, %v794_v53  ;;  %v2518_v31 = vsel %vm5523_vm12, %v2513_v38, %v2517_v15  ;;  %v6320_v10 = vsel %vm5467_vm8, %v2956_v30, %v2957_v56  ;;  %vm3827_vm10 = vcmask 261344  }
  0xf5   : > { %2785 = vst.msk [vmem:[#allocation3 + $0x8] sm:$0xff] %vm7158_vm5, %v6055_v36  ;;  %2784 = vst.msk [vmem:[#allocation3] sm:$0xff] %vm7158_vm5, %v6170_v35  ;;  %v328_v45 = vsub.f32 %v6303_v47, %v6141_v4  ;;  %v5008_v32 = vcombine.low %v2508_v14, %v2518_v31  ;;  %vm4148_vm11 = vcmask 294144   ;;  %v394_v36 = vmax.f32 %v6191_v23, 0.0  ;;  %v510_v35 = vld [vmem:[#allocation2 + $0x98] sm:$0x1] }
  0xf6   : > { %2786 = vst.msk [vmem:[#allocation3 + $0x10] sm:$0xff] %vm7158_vm5, %v6210_v24  ;;  %2787 = vst.msk [vmem:[#allocation3 + $0x18] sm:$0xff] %vm7158_vm5, %v6268_v5  ;;  %v395_v59 = vmax.f32 %v6208_v42, 0.0  ;;  %2031 = vrot.lane.b32.xlu1 %v4977_v27, %s5380_s7  ;;  %v1016_v24 = vld [vmem:[#allocation2 + $0x80] sm:$0x1]  ;;  %v508_v23 = vsel %vm5453_vm7, 0, %v507_v46  ;;  %v4107_v42 = vpop.permute.xlu0 %4106  ;;  %v6401_v51 = vmul.f32 %v6104_v2, %v327_v55  ;;  %v330_v55 = vsub.f32 %v6394_v43, %v6141_v4 }
  0xf7   : > { %3106 = vst.msk [vmem:[#allocation3 + $0x8] sm:$0xff] %vm7157_vm6, %v6017_v20  ;;  %3105 = vst.msk [vmem:[#allocation3] sm:$0xff] %vm7157_vm6, %v6003_v29  ;;  %v5040_v20 = vcombine.low %v6300_v57, %v6320_v10  ;;  %v452_v29 = vsel %vm5439_vm3, 0, %v451_v22  ;;  %vm4257_vm15 = vcmask 1041408   ;;  %2751 = vrot.lane.b32.xlu0 %v5008_v32, %s5386_s13  ;;  %v3786_v44 = vpop.permute.xlu1 %3785  ;;  %v455_v5 = vsel %vm5439_vm3, 0, %v454_v52 }
  0xf8   : > { %3107 = vst.msk [vmem:[#allocation3 + $0x10] sm:$0xff] %vm7157_vm6, %v6236_v28  ;;  %3108 = vst.msk [vmem:[#allocation3 + $0x18] sm:$0xff] %vm7157_vm6, %v3063_v26  ;;  %v6365_v28 = vpack.c.bf16 %v395_v59, %v395_v59  ;;  %5295 = vmatprep.subr.msk.bf16.mxu0 %vm4257_vm15, %v5340_v41  ;;  %v511_v34 = vsel %vm5453_vm7, 0, %v510_v35  ;;  %5296 = vmatprep.subr.msk.bf16.mxu1 %vm4257_vm15, %v5340_v41  ;;  %v6410_v54 = vmul.f32 %v6104_v2, %v328_v45 }
  0xf9   : > { %3284 = vst.msk [vmem:[#allocation3 + $0x8] sm:$0xff] %vm7156_vm9, %v5983_v11  ;;  %3283 = vst.msk [vmem:[#allocation3] sm:$0xff] %vm7156_vm9, %v5985_v40  ;;  %v1017_v11 = vsel %vm5439_vm3, %v795_v50, %v1016_v24  ;;  %v6363_v40 = vpack.c.bf16 %v394_v36, %v394_v36  ;;  %v526_v33 = vsel %vm5453_vm7, 0, %v525_v21 }
  0xfa   : > { %3285 = vst.msk [vmem:[#allocation3 + $0x10] sm:$0xff] %vm7156_vm9, %v6252_v7  ;;  %3286 = vst.msk [vmem:[#allocation3 + $0x18] sm:$0xff] %vm7156_vm9, %v3241_v49  ;;  %v4259_v7 = vsel %vm4257_vm15, %v5340_v41, 0  ;;  %vm4208_vm9 = vcmask 293888   ;;  %v805_v27 = vshrl.u32 %v6365_v28, 16  ;;  %v808_v26 = vshll.u32 %v6365_v28, 16  ;;  %v2022_v3 = vpop.permute.xlu0 %2021 }
  0xfb   : > { %3829 = vst.msk [vmem:[#allocation3 + $0x8] sm:$0xff] %vm3827_vm10, %v6072_v18  ;;  %453 = vst [vmem:[#allocation2 + $0x84] sm:$0x1] %v452_v29  ;;  %5256 = vmatpush3.bf16.msra.mxu0 %v4259_v7  ;;  %v396_v18 = vmax.f32 %v6216_v58, 0.0  ;;  %5294 = vmatpush3.bf16.msra.mxu1 %v4259_v7  ;;  %v2282_v15 = vld [vmem:[#allocation2 + $0x78] sm:$0xf]  ;;  %v1698_v6 = vpop.permute.xlu1 %1697 }
  0xfc   : > { %509 = vst [vmem:[#allocation2 + $0x8c] sm:$0x1] %v508_v23  ;;  %3828 = vst.msk [vmem:[#allocation3] sm:$0xff] %vm3827_vm10, %v6193_v48  ;;  %v397_v48 = vmax.f32 %v6232_v0, 0.0  ;;  %v2827_v62 = vld [vmem:[#allocation2 + $0x78] sm:$0xe]  ;;  %3072 = vrot.lane.b32.xlu0 %v5040_v20, %s5384_s11 }
  0xfd   : > { %3830 = vst.msk [vmem:[#allocation3 + $0x10] sm:$0xff] %vm3827_vm10, %v6280_v37  ;;  %1018 = vst [vmem:[#allocation2 + $0x80] sm:$0x1] %v1017_v11  ;;  %v800_v37 = vshll.u32 %v6363_v40, 16  ;;  %v5332_v61 = vld [vmem:[#allocation2 + $0x78] sm:$0xff]   ;;  %v2520_v39 = vshrl.u32 %v2282_v15, 16 }
  0xfe   : > { %4150 = vst.msk [vmem:[#allocation3 + $0x8] sm:$0xff] %vm4148_vm11, %v6029_v25  ;;  %4149 = vst.msk [vmem:[#allocation3] sm:$0xff] %vm4148_vm11, %v6014_v12  ;;  %v290_v25 = vld [vmem:[%s5474_s28 + $0xd0] sm:$0xff]  ;;  %v797_v12 = vshrl.u32 %v6363_v40, 16  ;;  %v2283_v16 = vld [vmem:[#allocation2 + $0x7c] sm:$0xf]  ;;  %2208 = vrot.lane.b32.xlu1 %v5332_v61, %s5382_s9  ;;  %v2199_v45 = vpop.permute.xlu0 %2198 }
  0xff   : > { %3831 = vst.msk [vmem:[#allocation3 + $0x18] sm:$0xff] %vm3827_vm10, %v3786_v44  ;;  %456 = vst [vmem:[#allocation2 + $0x90] sm:$0x1] %v455_v5  ;;  %v2523_v63 = vshll.u32 %v2282_v15, 16  ;;  %v2529_v50 = vshll.u32 %v2283_v16, 16  ;;  %v2533_v60 = vshrl.u32 %v2283_v16, 16  ;;  %v1700_v52 = vpop.permute.xlu1 %1699 }
 0x100   : > { %4151 = vst.msk [vmem:[#allocation3 + $0x10] sm:$0xff] %vm4148_vm11, %v6294_v17  ;;  %512 = vst [vmem:[#allocation2 + $0x98] sm:$0x1] %v511_v34  ;;  %v329_v17 = vsub.f32 %v290_v25, %v6141_v4  ;;  %v2828_v57 = vld [vmem:[#allocation2 + $0x7c] sm:$0xf]  ;;  %v5025_v30 = vrot.slane %v2827_v62, 9 }
 0x101   : > { %4152 = vst.msk [vmem:[#allocation3 + $0x18] sm:$0xff] %vm4148_vm11, %v4107_v42  ;;  %v2522_v49 = vrot.slane %v2520_v39, 4  ;;  %v2961_v19 = vrot.slane %v2828_v57, 5  ;;  %v2525_v14 = vrot.slane %v2523_v63, 5  ;;  %v2531_v38 = vrot.slane %v2529_v50, 5  ;;  %v5334_v22 = vld [vmem:[#allocation2 + $0x78] sm:$0xff]  }
 0x102   : > { %1742 = vst.msk [vmem:[#allocation3 + $0x20] sm:$0xff] %vm1737_vm1, %v1698_v6  ;;  %v2535_v56 = vrot.slane %v2533_v60, 4  ;;  %v799_v46 = vrot.slane %v797_v12, 7  ;;  %v807_v10 = vrot.slane %v805_v27, 7  ;;  %v6420_v32 = vmul.f32 %v6104_v2, %v329_v17  ;;  %3250 = vrot.lane.b32.xlu0 %v5334_v22, %s5383_s10  ;;  %v1019_v20 = vld [vmem:[#allocation2 + $0x84] sm:$0xf] }
 0x103   : > { %2066 = vst.msk [vmem:[#allocation3 + $0x20] sm:$0xff] %vm2061_vm2, %v2022_v3  ;;  %v6417_v31 = vsel %vm5467_vm8, %v5025_v30, %v2961_v19  ;;  %v2963_v47 = vrot.slane %v2961_v19, 4  ;;  %v2526_v36 = vor.u32 %v2525_v14, %v2522_v49  ;;  %v3323_v29 = vld [vmem:[#allocation2 + $0x78] sm:$0xf]  ;;  %v3324_v28 = vld [vmem:[#allocation2 + $0x7c] sm:$0xf]  ;;  %v2024_v39 = vpop.permute.xlu1 %2023 }
 0x104   : > { %v2284_v53 = vld [vmem:[#allocation2 + $0x80] sm:$0x1]  ;;  %v2536_v59 = vor.u32 %v2535_v56, %v2531_v38  ;;  %1743 = vst.msk [vmem:[#allocation3 + $0x28] sm:$0xff] %vm1737_vm1, %v1700_v52  ;;  %v802_v23 = vor.u32 %v800_v37, %v799_v46  ;;  %v803_v42 = vrot.slane %v799_v46, 4  ;;  %v810_v11 = vor.u32 %v808_v26, %v807_v10  ;;  %v1023_v25 = vld [vmem:[#allocation2 + $0x8c] sm:$0x1] }
 0x105   : > { %v2829_v41 = vld [vmem:[#allocation2 + $0x80] sm:$0x1]  ;;  %v2539_v35 = vshll.u32 %v2284_v53, 16  ;;  %2243 = vst.msk [vmem:[#allocation3 + $0x20] sm:$0xff] %vm2238_vm4, %v2199_v45  ;;  %v812_v40 = vrot.slane %v807_v10, 4  ;;  %v2527_v2 = vrot.slane %v2526_v36, 4 }
 0x106   : > { %v2964_v24 = vrot.slane %v2829_v41, 5  ;;  %v3325_v7 = vld [vmem:[#allocation2 + $0x80] sm:$0x1]  ;;  %v2537_v44 = vrot.slane %v2536_v59, 4  ;;  %v4165_v12 = vld [vmem:[#allocation3] sm:$0xff]  ;;  %v811_v15 = vsel %vm5541_vm14, %v803_v42, %v810_v11  ;;  %v1020_v37 = vsel %vm5531_vm13, %v802_v23, %v1019_v20  ;;  %2067 = vst.msk [vmem:[#allocation3 + $0x28] sm:$0xff] %vm2061_vm2, %v2024_v39 }
 0x107   : > { %v2541_v5 = vrot.slane %v2539_v35, 5  ;;  %v3540_v26 = vshrl.u32 %v3323_v29, 16  ;;  %v3868_v62 = vld [vmem:[#allocation2 + $0x78] sm:$0xe]  ;;  %v3869_v61 = vld [vmem:[#allocation2 + $0x7c] sm:$0xf]  ;;  %5257 = vmatprep.mubr.msk.bf16.mxu0 %vm4208_vm9, %v4165_v12  ;;  %v2532_v6 = vsel %vm5523_vm12, %v2527_v2, %v2531_v38  ;;  %v1024_v46 = vsel %vm5439_vm3, %v812_v40, %v1023_v25 }
 0x108   : > { %v2965_v34 = vsel %vm5467_vm8, %v2963_v47, %v2964_v24  ;;  %v4166_v16 = vld [vmem:[#allocation3 + $0x8] sm:$0xff]  ;;  %1021 = vst [vmem:[#allocation2 + $0x84] sm:$0xf] %v1020_v37  ;;  %1022 = vst.msk [vmem:[#allocation2 + $0x88] sm:$0xf] %vm406_vm0, %v811_v15  ;;  %v3543_v17 = vshll.u32 %v3323_v29, 16  ;;  %v2744_v35 = vpop.permute.xlu0 %2743  ;;  %v6457_v12 = vpack.c.bf16 %v396_v18, %v396_v18  ;;  %v6462_v15 = vpack.c.bf16 %v397_v48, %v397_v48 }
 0x109   : > { %v5041_v27 = vcombine.low %v6417_v31, %v2965_v34  ;;  %v2542_v3 = vsel %vm5523_vm12, %v2537_v44, %v2541_v5  ;;  %v3549_v63 = vshll.u32 %v3324_v28, 16  ;;  %v3870_v50 = vld [vmem:[#allocation2 + $0x80] sm:$0x1]  ;;  %v1236_v60 = vld [vmem:[#allocation2 + $0x78] sm:$0xf]  ;;  %5258 = vmatmul.mubr.msk.bf16.vlgmr.msra.gmra.mrb[0].mxu0 %vm4208_vm9, %v4166_v16  ;;  %v3542_v30 = vrot.slane %v3540_v26, 4  ;;  %v2201_v2 = vpop.permute.xlu1 %2200 }
 0x10a   : > { %v5009_v57 = vcombine.low %v2532_v6, %v2542_v3  ;;  %v3553_v49 = vshrl.u32 %v3324_v28, 16  ;;  %v3559_v19 = vshll.u32 %v3325_v7, 16  ;;  %v1237_v14 = vld [vmem:[#allocation2 + $0x7c] sm:$0xf]  ;;  %v4167_v38 = vld [vmem:[#allocation3 + $0x10] sm:$0xff]  ;;  %v3545_v56 = vrot.slane %v3543_v17, 5 }
 0x10b   : > { %v3551_v22 = vrot.slane %v3549_v63, 5  ;;  %v5088_v53 = vrot.slane %v3868_v62, 9  ;;  %5261 = vmatprep.mubr.msk.bf16.mxu0 %vm4208_vm9, %v4167_v38  ;;  %1025 = vst [vmem:[#allocation2 + $0x8c] sm:$0x1] %v1024_v46  ;;  %v3998_v47 = vrot.slane %v3869_v61, 5  ;;  %v4001_v10 = vrot.slane %v3870_v50, 5 }
 0x10c   : > { %2753 = vrot.lane.b32.xlu1 %v5009_v57, %s5386_s13  ;;  %v3555_v41 = vrot.slane %v3553_v49, 4  ;;  %v3561_v31 = vrot.slane %v3559_v19, 5  ;;  %v3546_v52 = vor.u32 %v3545_v56, %v3542_v30  ;;  %v1498_v45 = vshrl.u32 %v1236_v60, 16  ;;  %v4168_v42 = vld [vmem:[#allocation3 + $0x18] sm:$0xff]  ;;  %2788 = vst.msk [vmem:[#allocation3 + $0x20] sm:$0xff] %vm7158_vm5, %v2744_v35  ;;  %v3065_v58 = vpop.permute.xlu0 %3064 }
 0x10d   : > { %v1501_v36 = vshll.u32 %v1236_v60, 16  ;;  %v1507_v59 = vshll.u32 %v1237_v14, 16  ;;  %v6446_v20 = vsel %vm5467_vm8, %v5088_v53, %v3998_v47  ;;  %v4000_v29 = vrot.slane %v3998_v47, 4  ;;  %v1238_v25 = vld [vmem:[#allocation2 + $0x80] sm:$0x1]  ;;  %2244 = vst.msk [vmem:[#allocation3 + $0x28] sm:$0xff] %vm2238_vm4, %v2201_v2 }
 0x10e   : > { %v3556_v24 = vor.u32 %v3555_v41, %v3551_v22  ;;  %v1511_v23 = vshrl.u32 %v1237_v14, 16  ;;  %v3547_v11 = vrot.slane %v3546_v52, 4  ;;  %v1500_v40 = vrot.slane %v1498_v45, 4  ;;  %3109 = vst.msk [vmem:[#allocation3 + $0x20] sm:$0xff] %vm7157_vm6, %v3065_v58  ;;  %v1786_v2 = vld [vmem:[#allocation2 + $0x80] sm:$0x1] }
 0x10f   : > { %v1503_v28 = vrot.slane %v1501_v36, 5  ;;  %v6449_v7 = vrot.slane %v1507_v59, 5  ;;  %v5335_v44 = vld [vmem:[#allocation2 + $0x84] sm:$0xff]   ;;  %v4002_v34 = vsel %vm5467_vm8, %v4000_v29, %v4001_v10  ;;  %v1517_v53 = vshll.u32 %v1238_v25, 16  ;;  %v1784_v29 = vld [vmem:[#allocation2 + $0x78] sm:$0xe] }
 0x110   : > { %3074 = vrot.lane.b32.xlu1 %v5041_v27, %s5384_s11  ;;  %v3557_v5 = vrot.slane %v3556_v24, 4  ;;  %v3552_v27 = vsel %vm5523_vm12, %v3547_v11, %v3551_v22  ;;  %v3326_v37 = vld [vmem:[#allocation2 + $0x84] sm:$0xf]  ;;  %v3327_v26 = vld [vmem:[#allocation2 + $0x88] sm:$0xf]  ;;  %v5104_v62 = vcombine.low %v6446_v20, %v4002_v34  ;;  %v1513_v16 = vrot.slane %v1511_v23, 4 }
 0x111   : > { %v1504_v61 = vor.u32 %v1503_v28, %v1500_v40  ;;  %5262 = vmatmul.mubr.msk.bf16.gmra.mrb[4].mxu0 %vm4208_vm9, %v4168_v42  ;;  %v3564_v18 = vshrl.u32 %v3326_v37, 16  ;;  %v3567_v48 = vshll.u32 %v3326_v37, 16  ;;  %v3573_v39 = vshll.u32 %v3327_v26, 16  ;;  %v3871_v6 = vld [vmem:[#allocation2 + $0x84] sm:$0xe] }
 0x112   : > { %v3562_v0 = vsel %vm5523_vm12, %v3557_v5, %v3561_v31  ;;  %v3328_v17 = vld [vmem:[#allocation2 + $0x8c] sm:$0x1]  ;;  %v3577_v63 = vshrl.u32 %v3327_v26, 16  ;;  %v1514_v60 = vor.u32 %v1513_v16, %v6449_v7  ;;  %v3872_v57 = vld [vmem:[#allocation2 + $0x88] sm:$0xf]  ;;  %v3243_v31 = vpop.permute.xlu0 %3242  ;;  %v5089_v52 = vrot.slane %v3871_v6, 9 }
 0x113   : > { %v5072_v3 = vcombine.low %v3552_v27, %v3562_v0  ;;  %v1505_v50 = vrot.slane %v1504_v61, 4  ;;  %v3566_v30 = vrot.slane %v3564_v18, 4  ;;  %v3569_v49 = vrot.slane %v3567_v48, 5  ;;  %v3873_v38 = vld [vmem:[#allocation2 + $0x8c] sm:$0x1] }
 0x114   : > { %3252 = vrot.lane.b32.xlu1 %v5335_v44, %s5383_s10  ;;  %v3575_v19 = vrot.slane %v3573_v39, 5  ;;  %v3583_v14 = vshll.u32 %v3328_v17, 16  ;;  %v3579_v56 = vrot.slane %v3577_v63, 4  ;;  %v1515_v46 = vrot.slane %v1514_v60, 4  ;;  %v1239_v41 = vld [vmem:[#allocation2 + $0x84] sm:$0xf] }
 0x115   : > { %3795 = vrot.lane.b32.xlu0 %v5072_v3, %s5387_s14  ;;  %v1510_v22 = vsel %vm5523_vm12, %v1505_v50, %v6449_v7  ;;  %v3570_v47 = vor.u32 %v3569_v49, %v3566_v30  ;;  %v4005_v45 = vrot.slane %v3872_v57, 5  ;;  %v1240_v36 = vld [vmem:[#allocation2 + $0x88] sm:$0xf]  ;;  %vm7171_vm15 = vcmask 228544   ;;  %v1241_v40 = vld [vmem:[#allocation2 + $0x8c] sm:$0x1] }
 0x116   : > { %v3585_v10 = vrot.slane %v3583_v14, 5  ;;  %3287 = vst.msk [vmem:[#allocation3 + $0x20] sm:$0xff] %vm7171_vm15, %v3243_v31  ;;  %v3580_v59 = vor.u32 %v3579_v56, %v3575_v19  ;;  %v1519_v35 = vrot.slane %v1517_v53, 5  ;;  %v4008_v24 = vrot.slane %v3873_v38, 5  ;;  %v1785_v7 = vld [vmem:[#allocation2 + $0x7c] sm:$0xf]  ;;  %v2746_v6 = vpop.permute.xlu1 %2745 }
 0x117   : > { %v1522_v20 = vshrl.u32 %v1239_v41, 16  ;;  %v3571_v23 = vrot.slane %v3570_v47, 4  ;;  %v4006_v42 = vsel %vm5467_vm8, %v5089_v52, %v4005_v45  ;;  %v4007_v11 = vrot.slane %v4005_v45, 4  ;;  %v1787_v27 = vld [vmem:[#allocation2 + $0x84] sm:$0xe]  ;;  %2789 = vst.msk [vmem:[#allocation3 + $0x28] sm:$0xff] %vm7158_vm5, %v2746_v6 }
 0x118   : > { %v1525_v28 = vshll.u32 %v1239_v41, 16  ;;  %v3581_v44 = vrot.slane %v3580_v59, 4  ;;  %v1520_v5 = vsel %vm5523_vm12, %v1515_v46, %v1519_v35  ;;  %v1531_v25 = vshll.u32 %v1240_v36, 16  ;;  %v1788_v58 = vld [vmem:[#allocation2 + $0x88] sm:$0xf] }
 0x119   : > { %4116 = vrot.lane.b32.xlu0 %v5104_v62, %s5385_s12  ;;  %v1524_v34 = vrot.slane %v1522_v20, 4  ;;  %v3576_v37 = vsel %vm5523_vm12, %v3571_v23, %v3575_v19  ;;  %v4946_v26 = vcombine.low %v1510_v22, %v1520_v5  ;;  %v4009_v61 = vsel %vm5467_vm8, %v4007_v11, %v4008_v24  ;;  %v1789_v39 = vld [vmem:[#allocation2 + $0x8c] sm:$0x1]  ;;  %v2285_v31 = vld [vmem:[#allocation2 + $0x84] sm:$0xf] }
 0x11a   : > { %v1527_v16 = vrot.slane %v1525_v28, 5  ;;  %v3586_v0 = vsel %vm5523_vm12, %v3581_v44, %v3585_v10  ;;  %v5105_v18 = vcombine.low %v4006_v42, %v4009_v61  ;;  %v1533_v62 = vrot.slane %v1531_v25, 5  ;;  %v3067_v47 = vpop.permute.xlu1 %3066  ;;  %v2286_v59 = vld [vmem:[#allocation2 + $0x88] sm:$0xf]  ;;  %v6503_v35 = vld [vmem:[%s7150_s2] ss:$0 sm:$0xff] }
 0x11b   : > { %v1535_v48 = vshrl.u32 %v1240_v36, 16  ;;  %v5073_v3 = vcombine.low %v3576_v37, %v3586_v0  ;;  %v1541_v63 = vshll.u32 %v1241_v40, 16  ;;  %v4962_v50 = vrot.slane %v1784_v29, 9  ;;  %v1026_v36 = vld [vmem:[#allocation2 + $0x90] sm:$0xf]  ;;  %3110 = vst.msk [vmem:[#allocation3 + $0x28] sm:$0xff] %vm7157_vm6, %v3067_v47  ;;  %v3788_v40 = vpop.permute.xlu0 %3787 }
 0x11c   : > { %v1528_v17 = vor.u32 %v1527_v16, %v1524_v34  ;;  %v1925_v57 = vrot.slane %v1785_v7, 5  ;;  %v1928_v30 = vrot.slane %v1786_v2, 5  ;;  %v4963_v49 = vrot.slane %v1787_v27, 9  ;;  %v5355_v20 = vld [vmem:[#allocation2 + $0x60] sm:$0xff]   ;;  %v2287_v11 = vld [vmem:[#allocation2 + $0x8c] sm:$0x1] }
 0x11d   : > { %4118 = vrot.lane.b32.xlu0 %v5105_v18, %s5385_s12  ;;  %v1537_v60 = vrot.slane %v1535_v48, 4  ;;  %3797 = vrot.lane.b32.xlu1 %v5073_v3, %s5387_s14  ;;  %v1543_v14 = vrot.slane %v1541_v63, 5  ;;  %v1932_v38 = vrot.slane %v1788_v58, 5  ;;  %v1935_v56 = vrot.slane %v1789_v39, 5  ;;  %v5356_v28 = vld [vmem:[#allocation2 + $0x6c] sm:$0xff]   ;;  %3832 = vst.msk [vmem:[#allocation3 + $0x20] sm:$0xff] %vm3827_vm10, %v3788_v40 }
 0x11e   : > { %v1529_v19 = vrot.slane %v1528_v17, 4  ;;  %v1926_v46 = vsel %vm5467_vm8, %v4962_v50, %v1925_v57  ;;  %v1927_v53 = vrot.slane %v1925_v57, 4  ;;  %v814_v41 = vshrl.u32 %v6457_v12, 16  ;;  %v6518_v2 = vld [vmem:[#allocation2 + $0x84] sm:$0xe]  ;;  %v3245_v37 = vpop.permute.xlu1 %3244 }
 0x11f   : > { %v1538_v22 = vor.u32 %v1537_v60, %v1533_v62  ;;  %v1934_v52 = vrot.slane %v1932_v38, 4  ;;  %v817_v45 = vshll.u32 %v6457_v12, 16  ;;  %v6509_v24 = vmul.f32 %v6503_v35, %v330_v55  ;;  %v6520_v44 = vld [vmem:[#allocation2 + $0x88] sm:$0xf]  ;;  %v1030_v39 = vld [vmem:[#allocation2 + $0x98] sm:$0x1]  ;;  %v4109_v6 = vpop.permute.xlu0 %4108 }
 0x120   : > { %v1534_v10 = vsel %vm5523_vm12, %v1529_v19, %v1533_v62  ;;  %v1929_v12 = vsel %vm5467_vm8, %v1927_v53, %v1928_v30  ;;  %v816_v23 = vrot.slane %v814_v41, 7  ;;  %v822_v42 = vshrl.u32 %v6462_v15, 16  ;;  %v2832_v60 = vld [vmem:[#allocation2 + $0x8c] sm:$0x1]  ;;  %v457_v57 = vld [vmem:[#allocation2 + $0x9c] sm:$0x1] }
 0x121   : > { %v1539_v29 = vrot.slane %v1538_v22, 4  ;;  %1709 = vrot.lane.b32.xlu1 %v4946_v26, %s5381_s8  ;;  %v4978_v7 = vcombine.low %v1926_v46, %v1929_v12  ;;  %v1933_v4 = vsel %vm5467_vm8, %v4963_v49, %v1932_v38  ;;  %v825_v43 = vshll.u32 %v6462_v15, 16  ;;  %v5341_v26 = vld [vmem:[#allocation2 + $0x84] sm:$0xff]   ;;  %4153 = vst.msk [vmem:[#allocation3 + $0x20] sm:$0xff] %vm4148_vm11, %v4109_v6  ;;  %527 = vst [vmem:[#allocation2 + $0xd4] sm:$0x1] %v526_v33 }
 0x122   : > { %v2544_v55 = vshrl.u32 %v2285_v31, 16  ;;  %vm7172_vm15 = vcmask 31744   ;;  %v1936_v34 = vsel %vm5467_vm8, %v1934_v52, %v1935_v56  ;;  %v819_v25 = vor.u32 %v817_v45, %v816_v23  ;;  %v513_v38 = vld [vmem:[#allocation2 + $0xa4] sm:$0x1] }
 0x123   : > { %1198 = vst.msk [vmem:[#allocation3 + $0x40] sm:$0xff] %vm7172_vm15, %v5355_v20  ;;  %v1544_v5 = vsel %vm5523_vm12, %v1539_v29, %v1543_v14  ;;  %v820_v27 = vrot.slane %v816_v23, 4  ;;  %vm7173_vm6 = vmmov %vm7172_vm15  ;;  %2033 = vrot.lane.b32.xlu0 %v4978_v7, %s5380_s7  ;;  %v824_v61 = vrot.slane %v822_v42, 7  ;;  %v2547_v58 = vshll.u32 %v2285_v31, 16  ;;  %v3790_v52 = vpop.permute.xlu1 %3789  ;;  %v292_v29 = vld [vmem:[%s5474_s28 + $0xe0] sm:$0xff] }
 0x124   : > { %1199 = vst.msk [vmem:[#allocation3 + $0x48] sm:$0xff] %vm7173_vm6, %v5356_v28  ;;  %v4947_v15 = vcombine.low %v1534_v10, %v1544_v5  ;;  %v2546_v16 = vrot.slane %v2544_v55, 4  ;;  %vm7174_vm5 = vcmask 228544   ;;  %v1027_v0 = vsel %vm5531_vm13, %v819_v25, %v1026_v36 }
 0x125   : > { %3288 = vst.msk [vmem:[#allocation3 + $0x28] sm:$0xff] %vm7174_vm5, %v3245_v37  ;;  %v2553_v18 = vshll.u32 %v2286_v59, 16  ;;  %v2557_v62 = vshrl.u32 %v2286_v59, 16  ;;  %v2563_v48 = vshll.u32 %v2287_v11, 16  ;;  %v4979_v3 = vcombine.low %v1933_v4, %v1936_v34  ;;  %1028 = vst [vmem:[#allocation2 + $0x90] sm:$0xf] %v1027_v0 }
 0x126   : > { %1711 = vrot.lane.b32.xlu1 %v4947_v15, %s5381_s8  ;;  %v827_v17 = vor.u32 %v825_v43, %v824_v61  ;;  %v829_v63 = vrot.slane %v824_v61, 4  ;;  %v2549_v50 = vrot.slane %v2547_v58, 5  ;;  %v5026_v19 = vrot.slane %v6518_v2, 9  ;;  %3833 = vst.msk [vmem:[#allocation3 + $0x28] sm:$0xff] %vm3827_vm10, %v3790_v52  ;;  %v6567_v2 = vld [vmem:[%s7149_s1] ss:$0 sm:$0xff]  ;;  %vm7175_vm5 = vmmov %vm7173_vm6 }
 0x127   : > { %v2555_v30 = vrot.slane %v2553_v18, 5  ;;  %v2559_v49 = vrot.slane %v2557_v62, 4  ;;  %v2968_v14 = vrot.slane %v6520_v44, 5  ;;  %2210 = vrot.lane.b32.xlu0 %v5341_v26, %s5382_s9  ;;  %v2565_v46 = vrot.slane %v2563_v48, 5  ;;  %v1702_v55 = vpop.permute.xlu1 %1701  ;;  %v6574_v58 = vld [vmem:[%s5474_s28 + $0xe8] sm:$0xff]  ;;  %vm7176_vm6 = vmmov %vm7175_vm5 }
 0x128   : > { %v828_v56 = vsel %vm5541_vm14, %v820_v27, %v827_v17  ;;  %v2550_v22 = vor.u32 %v2549_v50, %v2546_v16  ;;  %v1031_v53 = vsel %vm5439_vm3, %v829_v63, %v1030_v39  ;;  %v2971_v47 = vrot.slane %v2832_v60, 5  ;;  %1744 = vst.msk [vmem:[#allocation3 + $0x30] sm:$0xff] %vm1737_vm1, %v1702_v55  ;;  %v4169_v37 = vld [vmem:[#allocation3 + $0x20] sm:$0xff]  ;;  %v5360_v55 = vld [vmem:[#allocation2 + $0x84] sm:$0xff]  }
 0x129   : > { %1029 = vst.msk [vmem:[#allocation2 + $0x94] sm:$0xf] %vm406_vm0, %v828_v56  ;;  %v2560_v41 = vor.u32 %v2559_v49, %v2555_v30  ;;  %1032 = vst [vmem:[#allocation2 + $0x98] sm:$0x1] %v1031_v53  ;;  %v2970_v31 = vrot.slane %v2968_v14, 4  ;;  %v398_v10 = vmax.f32 %v6401_v51, 0.0  ;;  %v4111_v51 = vpop.permute.xlu0 %4110  ;;  %v2969_v7 = vsel %vm5467_vm8, %v5026_v19, %v2968_v14  ;;  %5265 = vmatprep.mubr.msk.bf16.mxu0 %vm4208_vm9, %v4169_v37 }
 0x12a   : > { %2035 = vrot.lane.b32.xlu1 %v4979_v3, %s5380_s7  ;;  %v2551_v45 = vrot.slane %v2550_v22, 4  ;;  %v399_v36 = vmax.f32 %v6410_v54, 0.0  ;;  %v458_v59 = vsel %vm5439_vm3, 0, %v457_v57  ;;  %v514_v20 = vsel %vm5453_vm7, 0, %v513_v38  ;;  %4154 = vst.msk [vmem:[#allocation3 + $0x28] sm:$0xff] %vm4148_vm11, %v4111_v51 }
 0x12b   : > { %v2561_v12 = vrot.slane %v2560_v41, 4  ;;  %459 = vst [vmem:[#allocation2 + $0x9c] sm:$0x1] %v458_v59  ;;  %v5192_v23 = vpack.c.bf16 %v398_v10, %v398_v10  ;;  %515 = vst [vmem:[#allocation2 + $0xa4] sm:$0x1] %v514_v20  ;;  %v400_v54 = vmax.f32 %v6420_v32, 0.0  ;;  %v2972_v4 = vsel %vm5467_vm8, %v2970_v31, %v2971_v47 }
 0x12c   : > { %v2556_v42 = vsel %vm5523_vm12, %v2551_v45, %v2555_v30  ;;  %v6554_v11 = vpack.c.bf16 %v399_v36, %v399_v36  ;;  %v2288_v28 = vld [vmem:[#allocation2 + $0x90] sm:$0xf]  ;;  %v331_v44 = vsub.f32 %v292_v29, %v6567_v2  ;;  %v401_v27 = vmax.f32 %v6509_v24, 0.0  ;;  %v5359_v20 = vld [vmem:[#allocation2 + $0x78] sm:$0xff]   ;;  %1201 = vst.msk [vmem:[#allocation3 + $0x58] sm:$0xff] %vm7176_vm6, %v5360_v55 }
 0x12d   : > { %v2566_v40 = vsel %vm5523_vm12, %v2561_v12, %v2565_v46  ;;  %v2833_v43 = vld [vmem:[#allocation2 + $0x90] sm:$0xe]  ;;  %v2568_v34 = vshrl.u32 %v2288_v28, 16  ;;  %v2571_v25 = vshll.u32 %v2288_v28, 16  ;;  %v831_v26 = vshrl.u32 %v5192_v23, 16  ;;  %v2026_v56 = vpop.permute.xlu0 %2025  ;;  %v1704_v31 = vpop.permute.xlu1 %1703  ;;  %1200 = vst.msk [vmem:[#allocation3 + $0x50] sm:$0xff] %vm7175_vm5, %v5359_v20 }
 0x12e   : > { %v5010_v5 = vcombine.low %v2556_v42, %v2566_v40  ;;  %v5027_v15 = vrot.slane %v2833_v43, 9  ;;  %v834_v61 = vshll.u32 %v5192_v23, 16  ;;  %v839_v16 = vshrl.u32 %v6554_v11, 16  ;;  %v3329_v50 = vld [vmem:[#allocation2 + $0x90] sm:$0xf]  ;;  %2068 = vst.msk [vmem:[#allocation3 + $0x30] sm:$0xff] %vm2061_vm2, %v2026_v56 }
 0x12f   : > { %v2570_v62 = vrot.slane %v2568_v34, 4  ;;  %v5042_v48 = vcombine.low %v2969_v7, %v2972_v4  ;;  %v2573_v6 = vrot.slane %v2571_v25, 5  ;;  %v842_v63 = vshll.u32 %v6554_v11, 16  ;;  %1745 = vst.msk [vmem:[#allocation3 + $0x38] sm:$0xff] %vm1737_vm1, %v1704_v31 }
 0x130   : > { %v5342_v0 = vld [vmem:[#allocation2 + $0x90] sm:$0xff]   ;;  %2755 = vrot.lane.b32.xlu0 %v5010_v5, %s5386_s13  ;;  %v2290_v39 = vld [vmem:[#allocation2 + $0x98] sm:$0x1]  ;;  %v833_v19 = vrot.slane %v831_v26, 7  ;;  %v332_v14 = vsub.f32 %v6574_v58, %v6567_v2  ;;  %v6583_v38 = vmul.f32 %v6503_v35, %v331_v44  ;;  %v841_v11 = vrot.slane %v839_v16, 7 }
 0x131   : > { %v2289_v18 = vld [vmem:[#allocation2 + $0x94] sm:$0xf]  ;;  %2212 = vrot.lane.b32.xlu1 %v5342_v0, %s5382_s9  ;;  %v2587_v60 = vshll.u32 %v2290_v39, 16  ;;  %v2835_v30 = vld [vmem:[#allocation2 + $0x98] sm:$0x1]  ;;  %v2574_v22 = vor.u32 %v2573_v6, %v2570_v62  ;;  %v4170_v47 = vld [vmem:[#allocation3 + $0x28] sm:$0xff]  ;;  %v2203_v43 = vpop.permute.xlu0 %2202  ;;  %v2028_v26 = vpop.permute.xlu1 %2027 }
 0x132   : > { %v2577_v3 = vshll.u32 %v2289_v18, 16  ;;  %v2581_v17 = vshrl.u32 %v2289_v18, 16  ;;  %v2834_v57 = vld [vmem:[#allocation2 + $0x94] sm:$0xf]  ;;  %v2978_v52 = vrot.slane %v2835_v30, 5  ;;  %v836_v45 = vor.u32 %v834_v61, %v833_v19  ;;  %5266 = vmatmul.mubr.msk.bf16.gmra.mrb[8].mxu0 %vm4208_vm9, %v4170_v47  ;;  %2245 = vst.msk [vmem:[#allocation3 + $0x30] sm:$0xff] %vm2238_vm4, %v2203_v43 }
 0x133   : > { %v5345_v49 = vld [vmem:[#allocation2 + $0x90] sm:$0xff]   ;;  %v2975_v41 = vrot.slane %v2834_v57, 5  ;;  %v2589_v10 = vrot.slane %v2587_v60, 5  ;;  %v837_v36 = vrot.slane %v833_v19, 4  ;;  %v1033_v59 = vld [vmem:[#allocation2 + $0x9c] sm:$0xf]  ;;  %v844_v16 = vor.u32 %v842_v63, %v841_v11 }
 0x134   : > { %v2579_v46 = vrot.slane %v2577_v3, 5  ;;  %v2583_v53 = vrot.slane %v2581_v17, 4  ;;  %3076 = vrot.lane.b32.xlu0 %v5042_v48, %s5384_s11  ;;  %v2575_v29 = vrot.slane %v2574_v22, 4  ;;  %v3330_v42 = vld [vmem:[#allocation2 + $0x94] sm:$0xf]  ;;  %v1034_v40 = vsel %vm5531_vm13, %v836_v45, %v1033_v59  ;;  %2069 = vst.msk [vmem:[#allocation3 + $0x38] sm:$0xff] %vm2061_vm2, %v2028_v26 }
 0x135   : > { %v6591_v23 = vsel %vm5467_vm8, %v5027_v15, %v2975_v41  ;;  %v2977_v51 = vrot.slane %v2975_v41, 4  ;;  %v3331_v28 = vld [vmem:[#allocation2 + $0x98] sm:$0x1]  ;;  %v3588_v7 = vshrl.u32 %v3329_v50, 16  ;;  %v3591_v4 = vshll.u32 %v3329_v50, 16 }
 0x136   : > { %v2584_v12 = vor.u32 %v2583_v53, %v2579_v46  ;;  %v2580_v44 = vsel %vm5523_vm12, %v2575_v29, %v2579_v46  ;;  %1035 = vst [vmem:[#allocation2 + $0x9c] sm:$0xf] %v1034_v40  ;;  %v3597_v25 = vshll.u32 %v3330_v42, 16  ;;  %v1037_v37 = vld [vmem:[#allocation2 + $0xa4] sm:$0x1]  ;;  %v846_v0 = vrot.slane %v841_v11, 4 }
 0x137   : > { %v2979_v34 = vsel %vm5467_vm8, %v2977_v51, %v2978_v52  ;;  %v3874_v15 = vld [vmem:[#allocation2 + $0x90] sm:$0xe]  ;;  %v3590_v18 = vrot.slane %v3588_v7, 4  ;;  %v3875_v62 = vld [vmem:[#allocation2 + $0x94] sm:$0xf]  ;;  %v3593_v6 = vrot.slane %v3591_v4, 5  ;;  %v845_v63 = vsel %vm5541_vm14, %v837_v36, %v844_v16 }
 0x138   : > { %v2585_v5 = vrot.slane %v2584_v12, 4  ;;  %v5043_v61 = vcombine.low %v6591_v23, %v2979_v34  ;;  %3254 = vrot.lane.b32.xlu0 %v5345_v49, %s5383_s10  ;;  %v3876_v48 = vld [vmem:[#allocation2 + $0x98] sm:$0x1]  ;;  %v3599_v3 = vrot.slane %v3597_v25, 5  ;;  %v3601_v17 = vshrl.u32 %v3330_v42, 16  ;;  %v6613_v46 = vld [vmem:[%s5474_s28 + $0xf0] sm:$0xff]  ;;  %v2748_v51 = vpop.permute.xlu0 %2747 }
 0x139   : > { %v1242_v50 = vld [vmem:[#allocation2 + $0x90] sm:$0xf]  ;;  %v3607_v57 = vshll.u32 %v3331_v28, 16  ;;  %v1038_v30 = vsel %vm5439_vm3, %v846_v0, %v1037_v37  ;;  %1036 = vst.msk [vmem:[#allocation2 + $0xa0] sm:$0xf] %vm406_vm0, %v845_v63  ;;  %v3594_v49 = vor.u32 %v3593_v6, %v3590_v18  ;;  %v5090_v56 = vrot.slane %v3874_v15, 9 }
 0x13a   : > { %v2590_v39 = vsel %vm5523_vm12, %v2585_v5, %v2589_v10  ;;  %v3603_v19 = vrot.slane %v3601_v17, 4  ;;  %1039 = vst [vmem:[#allocation2 + $0xa4] sm:$0x1] %v1038_v30  ;;  %v4012_v22 = vrot.slane %v3875_v62, 5  ;;  %v4015_v41 = vrot.slane %v3876_v48, 5 }
 0x13b   : > { %v5011_v60 = vcombine.low %v2580_v44, %v2590_v39  ;;  %v3609_v53 = vrot.slane %v3607_v57, 5  ;;  %v1243_v31 = vld [vmem:[#allocation2 + $0x94] sm:$0xf]  ;;  %v1546_v47 = vshrl.u32 %v1242_v50, 16  ;;  %v1549_v10 = vshll.u32 %v1242_v50, 16  ;;  %v2205_v44 = vpop.permute.xlu1 %2204 }
 0x13c   : > { %v3595_v52 = vrot.slane %v3594_v49, 4  ;;  %v3604_v45 = vor.u32 %v3603_v19, %v3599_v3  ;;  %v4014_v36 = vrot.slane %v4012_v22, 4  ;;  %v6620_v59 = vmul.f32 %v6503_v35, %v332_v14  ;;  %v1244_v7 = vld [vmem:[#allocation2 + $0x98] sm:$0x1]  ;;  %2246 = vst.msk [vmem:[#allocation3 + $0x38] sm:$0xff] %vm2238_vm4, %v2205_v44  ;;  %v3069_v39 = vpop.permute.xlu0 %3068 }
 0x13d   : > { %2757 = vrot.lane.b32.xlu1 %v5011_v60, %s5386_s13  ;;  %v3332_v20 = vld [vmem:[#allocation2 + $0x9c] sm:$0xf]  ;;  %v6624_v29 = vsel %vm5467_vm8, %v5090_v56, %v4012_v22  ;;  %v1548_v12 = vrot.slane %v1546_v47, 4  ;;  %v1551_v23 = vrot.slane %v1549_v10, 5  ;;  %v333_v42 = vsub.f32 %v6613_v46, %v6567_v2  ;;  %v5361_v22 = vld [vmem:[#allocation2 + $0x90] sm:$0xff]  }
 0x13e   : > { %v3600_v11 = vsel %vm5523_vm12, %v3595_v52, %v3599_v3  ;;  %v3605_v40 = vrot.slane %v3604_v45, 4  ;;  %v3612_v28 = vshrl.u32 %v3332_v20, 16  ;;  %v3615_v58 = vshll.u32 %v3332_v20, 16  ;;  %v3877_v37 = vld [vmem:[#allocation2 + $0x9c] sm:$0xe] }
 0x13f   : > { %vm7177_vm15 = vcmask 162944   ;;  %v4016_v14 = vsel %vm5467_vm8, %v4014_v36, %v4015_v41  ;;  %v1552_v4 = vor.u32 %v1551_v23, %v1548_v12  ;;  %v1555_v43 = vshll.u32 %v1243_v31, 16  ;;  %v1245_v62 = vld [vmem:[#allocation2 + $0x9c] sm:$0xf] }
 0x140   : > { %2790 = vst.msk [vmem:[#allocation3 + $0x30] sm:$0xff] %vm7177_vm15, %v2748_v51  ;;  %v1559_v55 = vshrl.u32 %v1243_v31, 16  ;;  %v3610_v5 = vsel %vm5523_vm12, %v3605_v40, %v3609_v53  ;;  %v3614_v34 = vrot.slane %v3612_v28, 4  ;;  %v3617_v25 = vrot.slane %v3615_v58, 5  ;;  %v5346_v26 = vld [vmem:[#allocation2 + $0x9c] sm:$0xff]   ;;  %v3247_v52 = vpop.permute.xlu0 %3246 }
 0x141   : > { %3078 = vrot.lane.b32.xlu1 %v5043_v61, %s5384_s11  ;;  %v6639_v15 = vpack.c.bf16 %v400_v54, %v400_v54  ;;  %v5074_v61 = vcombine.low %v3600_v11, %v3610_v5  ;;  %v3333_v16 = vld [vmem:[#allocation2 + $0xa0] sm:$0xf]  ;;  %v5106_v0 = vcombine.low %v6624_v29, %v4016_v14  ;;  %v1553_v18 = vrot.slane %v1552_v4, 4  ;;  %v3334_v6 = vld [vmem:[#allocation2 + $0xa4] sm:$0x1] }
 0x142   : > { %v6646_v48 = vpack.c.bf16 %v401_v27, %v401_v27  ;;  %v3618_v32 = vor.u32 %v3617_v25, %v3614_v34  ;;  %v3621_v3 = vshll.u32 %v3333_v16, 16  ;;  %v3625_v54 = vshrl.u32 %v3333_v16, 16  ;;  %v3878_v57 = vld [vmem:[#allocation2 + $0xa0] sm:$0xf]  ;;  %v3879_v56 = vld [vmem:[#allocation2 + $0xa4] sm:$0x1] }
 0x143   : > { %v1557_v17 = vrot.slane %v1555_v43, 5  ;;  %vm7178_vm5 = vcmask 195744   ;;  %3799 = vrot.lane.b32.xlu0 %v5074_v61, %s5387_s14  ;;  %v3631_v50 = vshll.u32 %v3334_v6, 16  ;;  %v1561_v60 = vrot.slane %v1559_v55, 4  ;;  %v1246_v10 = vld [vmem:[#allocation2 + $0xa0] sm:$0xf] }
 0x144   : > { %3111 = vst.msk [vmem:[#allocation3 + $0x30] sm:$0xff] %vm7178_vm5, %v3069_v39  ;;  %v1565_v63 = vshll.u32 %v1244_v7, 16  ;;  %v5091_v24 = vrot.slane %v3877_v37, 9  ;;  %v3619_v30 = vrot.slane %v3618_v32, 4  ;;  %v3623_v27 = vrot.slane %v3621_v3, 5  ;;  %v5362_v45 = vld [vmem:[#allocation2 + $0x9c] sm:$0xff]  }
 0x145   : > { %3256 = vrot.lane.b32.xlu1 %v5346_v26, %s5383_s10  ;;  %v3627_v49 = vrot.slane %v3625_v54, 4  ;;  %v1558_v19 = vsel %vm5523_vm12, %v1553_v18, %v1557_v17  ;;  %v3633_v53 = vrot.slane %v3631_v50, 5  ;;  %v1562_v41 = vor.u32 %v1561_v60, %v1557_v17  ;;  %v1247_v12 = vld [vmem:[#allocation2 + $0xa4] sm:$0x1]  ;;  %v1790_v58 = vld [vmem:[#allocation2 + $0x90] sm:$0xe]  ;;  %v2750_v61 = vpop.permute.xlu1 %2749 }
 0x146   : > { %v1567_v31 = vrot.slane %v1565_v63, 5  ;;  %v4019_v47 = vrot.slane %v3878_v57, 5  ;;  %v3624_v36 = vsel %vm5523_vm12, %v3619_v30, %v3623_v27  ;;  %v4022_v29 = vrot.slane %v3879_v56, 5  ;;  %v1791_v14 = vld [vmem:[#allocation2 + $0x94] sm:$0xf] }
 0x147   : > { %v3628_v20 = vor.u32 %v3627_v49, %v3623_v27  ;;  %v1570_v23 = vshrl.u32 %v1245_v62, 16  ;;  %vm7179_vm6 = vcmask 228544   ;;  %vm7180_vm15 = vcmask 31744   ;;  %4120 = vrot.lane.b32.xlu0 %v5106_v0, %s5385_s12  ;;  %v1792_v37 = vld [vmem:[#allocation2 + $0x98] sm:$0x1] }
 0x148   : > { %3289 = vst.msk [vmem:[#allocation3 + $0x30] sm:$0xff] %vm7179_vm6, %v3247_v52  ;;  %v1563_v51 = vrot.slane %v1562_v41, 4  ;;  %v4020_v11 = vsel %vm5467_vm8, %v5091_v24, %v4019_v47  ;;  %v4021_v40 = vrot.slane %v4019_v47, 4  ;;  %v1573_v28 = vshll.u32 %v1245_v62, 16  ;;  %vm7181_vm5 = vmmov %vm7180_vm15  ;;  %v1793_v26 = vld [vmem:[#allocation2 + $0x9c] sm:$0xe] }
 0x149   : > { %1202 = vst.msk [vmem:[#allocation3 + $0x60] sm:$0xff] %vm7180_vm15, %v5361_v22  ;;  %v3629_v7 = vrot.slane %v3628_v20, 4  ;;  %v1572_v4 = vrot.slane %v1570_v23, 4  ;;  %v1579_v43 = vshll.u32 %v1246_v10, 16  ;;  %v1583_v55 = vshrl.u32 %v1246_v10, 16  ;;  %v3071_v56 = vpop.permute.xlu1 %3070  ;;  %v6683_v20 = vld [vmem:[%s5474_s28 + $0xf8] sm:$0xff] }
 0x14a   : > { %1203 = vst.msk [vmem:[#allocation3 + $0x68] sm:$0xff] %vm7181_vm5, %v5362_v45  ;;  %v1568_v44 = vsel %vm5523_vm12, %v1563_v51, %v1567_v31  ;;  %v4023_v5 = vsel %vm5467_vm8, %v4021_v40, %v4022_v29  ;;  %v1575_v34 = vrot.slane %v1573_v28, 5  ;;  %v1589_v25 = vshll.u32 %v1247_v12, 16  ;;  %v1794_v39 = vld [vmem:[#allocation2 + $0xa0] sm:$0xf] }
 0x14b   : > { %v3634_v16 = vsel %vm5523_vm12, %v3629_v7, %v3633_v53  ;;  %v4948_v0 = vcombine.low %v1558_v19, %v1568_v44  ;;  %v5107_v18 = vcombine.low %v4020_v11, %v4023_v5  ;;  %v1581_v62 = vrot.slane %v1579_v43, 5  ;;  %v1795_v6 = vld [vmem:[#allocation2 + $0xa4] sm:$0x1]  ;;  %v460_v50 = vld [vmem:[#allocation2 + $0xa8] sm:$0x1] }
 0x14c   : > { %vm7182_vm6 = vcmask 162944   ;;  %v5075_v32 = vcombine.low %v3624_v36, %v3634_v16  ;;  %v1576_v3 = vor.u32 %v1575_v34, %v1572_v4  ;;  %v1585_v54 = vrot.slane %v1583_v55, 4  ;;  %v2291_v36 = vld [vmem:[#allocation2 + $0x9c] sm:$0xf]  ;;  %v2292_v11 = vld [vmem:[#allocation2 + $0xa0] sm:$0xf] }
 0x14d   : > { %2791 = vst.msk [vmem:[#allocation3 + $0x38] sm:$0xff] %vm7182_vm6, %v2750_v61  ;;  %v1591_v17 = vrot.slane %v1589_v25, 5  ;;  %4122 = vrot.lane.b32.xlu0 %v5107_v18, %s5385_s12  ;;  %v4964_v60 = vrot.slane %v1790_v58, 9  ;;  %v1939_v63 = vrot.slane %v1791_v14, 5  ;;  %v1942_v57 = vrot.slane %v1792_v37, 5  ;;  %v3249_v43 = vpop.permute.xlu1 %3248  ;;  %v3792_v55 = vpop.permute.xlu0 %3791 }
 0x14e   : > { %v4965_v24 = vrot.slane %v1793_v26, 9  ;;  %3801 = vrot.lane.b32.xlu1 %v5075_v32, %s5387_s14  ;;  %v1577_v30 = vrot.slane %v1576_v3, 4  ;;  %v1586_v27 = vor.u32 %v1585_v54, %v1581_v62  ;;  %v1946_v49 = vrot.slane %v1794_v39, 5  ;;  %v2293_v7 = vld [vmem:[#allocation2 + $0xa4] sm:$0x1]  ;;  %3834 = vst.msk [vmem:[#allocation3 + $0x30] sm:$0xff] %vm3827_vm10, %v3792_v55 }
 0x14f   : > { %v1949_v19 = vrot.slane %v1795_v6, 5  ;;  %v1940_v22 = vsel %vm5467_vm8, %v4964_v60, %v1939_v63  ;;  %v1941_v53 = vrot.slane %v1939_v63, 4  ;;  %v461_v41 = vsel %vm5439_vm3, 0, %v460_v50  ;;  %v516_v4 = vld [vmem:[#allocation2 + $0xb0] sm:$0x1] }
 0x150   : > { %v848_v31 = vshrl.u32 %v6639_v15, 16  ;;  %vm7183_vm15 = vcmask 195744   ;;  %v1582_v47 = vsel %vm5523_vm12, %v1577_v30, %v1581_v62  ;;  %v1587_v10 = vrot.slane %v1586_v27, 4  ;;  %462 = vst [vmem:[#allocation2 + $0xa8] sm:$0x1] %v461_v41 }
 0x151   : > { %3112 = vst.msk [vmem:[#allocation3 + $0x38] sm:$0xff] %vm7183_vm15, %v3071_v56  ;;  %v6680_v52 = vsel %vm5467_vm8, %v4965_v24, %v1946_v49  ;;  %v1948_v45 = vrot.slane %v1946_v49, 4  ;;  %v1943_v29 = vsel %vm5467_vm8, %v1941_v53, %v1942_v57  ;;  %v851_v23 = vshll.u32 %v6639_v15, 16  ;;  %v5347_v15 = vld [vmem:[#allocation2 + $0x9c] sm:$0xff]   ;;  %v2838_v32 = vld [vmem:[#allocation2 + $0xa4] sm:$0x1]  ;;  %v4113_v57 = vpop.permute.xlu0 %4112 }
 0x152   : > { %v850_v12 = vrot.slane %v848_v31, 7  ;;  %v856_v51 = vshrl.u32 %v6646_v48, 16  ;;  %1713 = vrot.lane.b32.xlu1 %v4948_v0, %s5381_s8  ;;  %v1592_v40 = vsel %vm5523_vm12, %v1587_v10, %v1591_v17  ;;  %v4980_v28 = vcombine.low %v1940_v22, %v1943_v29  ;;  %v2836_v25 = vld [vmem:[#allocation2 + $0x9c] sm:$0xe]  ;;  %v2837_v0 = vld [vmem:[#allocation2 + $0xa0] sm:$0xf] }
 0x153   : > { %v1950_v58 = vsel %vm5467_vm8, %v1948_v45, %v1949_v19  ;;  %v859_v14 = vshll.u32 %v6646_v48, 16  ;;  %v4949_v44 = vcombine.low %v1582_v47, %v1592_v40  ;;  %vm7184_vm5 = vcmask 228544   ;;  %v463_v3 = vld [vmem:[#allocation2 + $0xb4] sm:$0x1]  ;;  %v519_v63 = vld [vmem:[#allocation2 + $0xbc] sm:$0x1] }
 0x154   : > { %v853_v5 = vor.u32 %v851_v23, %v850_v12  ;;  %v854_v34 = vrot.slane %v850_v12, 4  ;;  %3290 = vst.msk [vmem:[#allocation3 + $0x38] sm:$0xff] %vm7184_vm5, %v3249_v43  ;;  %v334_v37 = vsub.f32 %v6683_v20, %v6567_v2  ;;  %2037 = vrot.lane.b32.xlu0 %v4980_v28, %s5380_s7  ;;  %v858_v26 = vrot.slane %v856_v51, 7  ;;  %v466_v23 = vld [vmem:[#allocation2 + $0xc0] sm:$0x1] }
 0x155   : > { %v2592_v48 = vshrl.u32 %v2291_v36, 16  ;;  %v2595_v61 = vshll.u32 %v2291_v36, 16  ;;  %v2601_v16 = vshll.u32 %v2292_v11, 16  ;;  %v4981_v18 = vcombine.low %v6680_v52, %v1950_v58  ;;  %4155 = vst.msk [vmem:[#allocation3 + $0x30] sm:$0xff] %vm4148_vm11, %v4113_v57 }
 0x156   : > { %v2605_v62 = vshrl.u32 %v2292_v11, 16  ;;  %v2611_v39 = vshll.u32 %v2293_v7, 16  ;;  %v517_v6 = vsel %vm5453_vm7, 0, %v516_v4  ;;  %1715 = vrot.lane.b32.xlu1 %v4949_v44, %s5381_s8  ;;  %v861_v54 = vor.u32 %v859_v14, %v858_v26  ;;  %v522_v14 = vld [vmem:[#allocation2 + $0xc8] sm:$0x1] }
 0x157   : > { %v2594_v17 = vrot.slane %v2592_v48, 4  ;;  %v2597_v50 = vrot.slane %v2595_v61, 5  ;;  %518 = vst [vmem:[#allocation2 + $0xb0] sm:$0x1] %v517_v6  ;;  %v5028_v60 = vrot.slane %v2836_v25, 9  ;;  %v863_v24 = vrot.slane %v858_v26, 4 }
 0x158   : > { %v1040_v30 = vld [vmem:[#allocation2 + $0xa8] sm:$0xf]  ;;  %v2603_v27 = vrot.slane %v2601_v16, 5  ;;  %v2607_v49 = vrot.slane %v2605_v62, 4  ;;  %v2982_v19 = vrot.slane %v2837_v0, 5  ;;  %2214 = vrot.lane.b32.xlu0 %v5347_v15, %s5382_s9  ;;  %v862_v56 = vsel %vm5541_vm14, %v854_v34, %v861_v54 }
 0x159   : > { %v1041_v22 = vsel %vm5531_vm13, %v853_v5, %v1040_v30  ;;  %v2598_v53 = vor.u32 %v2597_v50, %v2594_v17  ;;  %v2985_v41 = vrot.slane %v2838_v32, 5  ;;  %1043 = vst.msk [vmem:[#allocation2 + $0xac] sm:$0xf] %vm406_vm0, %v862_v56  ;;  %v2613_v47 = vrot.slane %v2611_v39, 5 }
 0x15a   : > { %1042 = vst [vmem:[#allocation2 + $0xa8] sm:$0xf] %v1041_v22  ;;  %v2608_v31 = vor.u32 %v2607_v49, %v2603_v27  ;;  %v2984_v10 = vrot.slane %v2982_v19, 4  ;;  %v402_v52 = vmax.f32 %v6583_v38, 0.0  ;;  %2039 = vrot.lane.b32.xlu1 %v4981_v18, %s5380_s7  ;;  %v403_v36 = vmax.f32 %v6620_v59, 0.0 }
 0x15b   : > { %v2599_v45 = vrot.slane %v2598_v53, 4  ;;  %v464_v29 = vsel %vm5439_vm3, 0, %v463_v3  ;;  %v520_v12 = vsel %vm5453_vm7, 0, %v519_v63  ;;  %v6722_v38 = vmul.f32 %v6503_v35, %v333_v42  ;;  %v4115_v16 = vpop.permute.xlu0 %4114 }
 0x15c   : > { %v2609_v51 = vrot.slane %v2608_v31, 4  ;;  %465 = vst [vmem:[#allocation2 + $0xb4] sm:$0x1] %v464_v29  ;;  %v5196_v11 = vpack.c.bf16 %v402_v52, %v402_v52  ;;  %521 = vst [vmem:[#allocation2 + $0xbc] sm:$0x1] %v520_v12  ;;  %v2983_v40 = vsel %vm5467_vm8, %v5028_v60, %v2982_v19  ;;  %v2986_v28 = vsel %vm5467_vm8, %v2984_v10, %v2985_v41  ;;  %v4171_v34 = vld [vmem:[#allocation3 + $0x30] sm:$0xff]  ;;  %v3794_v39 = vpop.permute.xlu1 %3793 }
 0x15d   : > { %v2604_v59 = vsel %vm5523_vm12, %v2599_v45, %v2603_v27  ;;  %v5197_v58 = vpack.c.bf16 %v403_v36, %v403_v36  ;;  %v467_v42 = vsel %vm5439_vm3, 0, %v466_v23  ;;  %v6740_v5 = vmul.f32 %v6503_v35, %v334_v37  ;;  %5269 = vmatprep.mubr.msk.bf16.mxu0 %vm4208_vm9, %v4171_v34  ;;  %3835 = vst.msk [vmem:[#allocation3 + $0x38] sm:$0xff] %vm3827_vm10, %v3794_v39 }
 0x15e   : > { %v2614_v7 = vsel %vm5523_vm12, %v2609_v51, %v2613_v47  ;;  %v1044_v4 = vld [vmem:[#allocation2 + $0xb0] sm:$0x1]  ;;  %v865_v43 = vshrl.u32 %v5196_v11, 16  ;;  %v868_v46 = vshll.u32 %v5196_v11, 16  ;;  %468 = vst [vmem:[#allocation2 + $0xc0] sm:$0x1] %v467_v42  ;;  %v5044_v2 = vcombine.low %v2983_v40, %v2986_v28 }
 0x15f   : > { %v5012_v55 = vcombine.low %v2604_v59, %v2614_v7  ;;  %v1045_v44 = vsel %vm5439_vm3, %v863_v24, %v1044_v4  ;;  %v873_v15 = vshrl.u32 %v5197_v58, 16  ;;  %v876_v26 = vshll.u32 %v5197_v58, 16  ;;  %4156 = vst.msk [vmem:[#allocation3 + $0x38] sm:$0xff] %vm4148_vm11, %v4115_v16  ;;  %v2030_v57 = vpop.permute.xlu0 %2029 }
 0x160   : > { %1046 = vst [vmem:[#allocation2 + $0xb0] sm:$0x1] %v1045_v44  ;;  %v867_v25 = vrot.slane %v865_v43, 7  ;;  %v404_v48 = vmax.f32 %v6722_v38, 0.0  ;;  %v523_v61 = vsel %vm5453_vm7, 0, %v522_v14  ;;  %v405_v63 = vmax.f32 %v6740_v5, 0.0  ;;  %v1706_v47 = vpop.permute.xlu1 %1705 }
 0x161   : > { %v5348_v0 = vld [vmem:[#allocation2 + $0xa8] sm:$0xff]   ;;  %2759 = vrot.lane.b32.xlu0 %v5012_v55, %s5386_s13  ;;  %v6747_v20 = vrot.slane %v873_v15, 7  ;;  %524 = vst [vmem:[#allocation2 + $0xc8] sm:$0x1] %v523_v61  ;;  %1746 = vst.msk [vmem:[#allocation3 + $0x40] sm:$0xff] %vm1737_vm1, %v1706_v47  ;;  %vm7185_vm5 = vcmask 31744  }
 0x162   : > { %v2294_v35 = vld [vmem:[#allocation2 + $0xa8] sm:$0xf]  ;;  %v2295_v37 = vld [vmem:[#allocation2 + $0xac] sm:$0xf]  ;;  %v870_v62 = vor.u32 %v868_v46, %v867_v25  ;;  %2216 = vrot.lane.b32.xlu1 %v5348_v0, %s5382_s9  ;;  %v871_v53 = vrot.slane %v867_v25, 4  ;;  %2070 = vst.msk [vmem:[#allocation3 + $0x40] sm:$0xff] %vm2061_vm2, %v2030_v57  ;;  %v6792_v47 = vpack.c.bf16 %v405_v63, %v405_v63 }
 0x163   : > { %v2839_v18 = vld [vmem:[#allocation2 + $0xa8] sm:$0xe]  ;;  %v2616_v6 = vshrl.u32 %v2294_v35, 16  ;;  %v2619_v32 = vshll.u32 %v2294_v35, 16  ;;  %v2625_v3 = vshll.u32 %v2295_v37, 16  ;;  %v2629_v54 = vshrl.u32 %v2295_v37, 16  ;;  %v2207_v28 = vpop.permute.xlu0 %2206 }
 0x164   : > { %v2840_v17 = vld [vmem:[#allocation2 + $0xac] sm:$0xf]  ;;  %v878_v60 = vor.u32 %v876_v26, %v6747_v20  ;;  %v5029_v56 = vrot.slane %v2839_v18, 9  ;;  %v880_v41 = vrot.slane %v6747_v20, 4  ;;  %v1047_v31 = vld [vmem:[#allocation2 + $0xb4] sm:$0xf]  ;;  %v1708_v34 = vpop.permute.xlu1 %1707 }
 0x165   : > { %v2989_v50 = vrot.slane %v2840_v17, 5  ;;  %v2618_v24 = vrot.slane %v2616_v6, 4  ;;  %v2621_v30 = vrot.slane %v2619_v32, 5  ;;  %v2627_v27 = vrot.slane %v2625_v3, 5  ;;  %3080 = vrot.lane.b32.xlu0 %v5044_v2, %s5384_s11  ;;  %v5351_v19 = vld [vmem:[#allocation2 + $0xa8] sm:$0xff]   ;;  %2247 = vst.msk [vmem:[#allocation3 + $0x40] sm:$0xff] %vm2238_vm4, %v2207_v28 }
 0x166   : > { %v2631_v49 = vrot.slane %v2629_v54, 4  ;;  %v1048_v29 = vsel %vm5531_vm13, %v870_v62, %v1047_v31  ;;  %v3335_v12 = vld [vmem:[#allocation2 + $0xa8] sm:$0xf]  ;;  %v879_v11 = vsel %vm5541_vm14, %v871_v53, %v878_v60  ;;  %v3336_v59 = vld [vmem:[#allocation2 + $0xac] sm:$0xf]  ;;  %1747 = vst.msk [vmem:[#allocation3 + $0x48] sm:$0xff] %vm1737_vm1, %v1708_v34 }
 0x167   : > { %v2991_v22 = vrot.slane %v2989_v50, 4  ;;  %v2296_v10 = vld [vmem:[#allocation2 + $0xb0] sm:$0x1]  ;;  %v2622_v52 = vor.u32 %v2621_v30, %v2618_v24  ;;  %1049 = vst [vmem:[#allocation2 + $0xb4] sm:$0xf] %v1048_v29  ;;  %v3636_v7 = vshrl.u32 %v3335_v12, 16  ;;  %v2990_v42 = vsel %vm5467_vm8, %v5029_v56, %v2989_v50 }
 0x168   : > { %v2632_v45 = vor.u32 %v2631_v49, %v2627_v27  ;;  %v2841_v36 = vld [vmem:[#allocation2 + $0xb0] sm:$0x1]  ;;  %v2635_v23 = vshll.u32 %v2296_v10, 16  ;;  %1050 = vst.msk [vmem:[#allocation2 + $0xb8] sm:$0xf] %vm406_vm0, %v879_v11  ;;  %v3639_v4 = vshll.u32 %v3335_v12, 16  ;;  %v2032_v57 = vpop.permute.xlu1 %2031 }
 0x169   : > { %v2992_v51 = vrot.slane %v2841_v36, 5  ;;  %v3337_v40 = vld [vmem:[#allocation2 + $0xb0] sm:$0x1]  ;;  %v2623_v58 = vrot.slane %v2622_v52, 4  ;;  %3258 = vrot.lane.b32.xlu0 %v5351_v19, %s5383_s10  ;;  %v1051_v43 = vld [vmem:[#allocation2 + $0xbc] sm:$0x1]  ;;  %v6784_v19 = vpack.c.bf16 %v404_v48, %v404_v48  ;;  %v2752_v56 = vpop.permute.xlu0 %2751 }
 0x16a   : > { %v2633_v14 = vrot.slane %v2632_v45, 4  ;;  %v2637_v46 = vrot.slane %v2635_v23, 5  ;;  %v3645_v55 = vshll.u32 %v3336_v59, 16  ;;  %v3649_v44 = vshrl.u32 %v3336_v59, 16  ;;  %v3880_v15 = vld [vmem:[#allocation2 + $0xa8] sm:$0xe] }
 0x16b   : > { %v2628_v25 = vsel %vm5523_vm12, %v2623_v58, %v2627_v27  ;;  %v2993_v26 = vsel %vm5467_vm8, %v2991_v22, %v2992_v51  ;;  %v3638_v61 = vrot.slane %v3636_v7, 4  ;;  %v3641_v16 = vrot.slane %v3639_v4, 5  ;;  %v3881_v0 = vld [vmem:[#allocation2 + $0xac] sm:$0xf]  ;;  %v6774_v18 = vld [vmem:[#allocation2 + $0xa8] sm:$0xf] }
 0x16c   : > { %v2638_v2 = vsel %vm5523_vm12, %v2633_v14, %v2637_v46  ;;  %v3647_v20 = vrot.slane %v3645_v55, 5  ;;  %v3651_v35 = vrot.slane %v3649_v44, 4  ;;  %v3655_v37 = vshll.u32 %v3337_v40, 16  ;;  %v4172_v62 = vld [vmem:[#allocation3 + $0x38] sm:$0xff]  ;;  %2071 = vst.msk [vmem:[#allocation3 + $0x48] sm:$0xff] %vm2061_vm2, %v2032_v57  ;;  %v5363_v5 = vld [vmem:[#allocation2 + $0xa8] sm:$0xff]  }
 0x16d   : > { %v5013_v39 = vcombine.low %v2628_v25, %v2638_v2  ;;  %v3642_v6 = vor.u32 %v3641_v16, %v3638_v61  ;;  %v1052_v32 = vsel %vm5439_vm3, %v880_v41, %v1051_v43  ;;  %v3882_v3 = vld [vmem:[#allocation2 + $0xb0] sm:$0x1]  ;;  %v5092_v54 = vrot.slane %v3880_v15, 9  ;;  %5270 = vmatmul.mubr.msk.bf16.gmra.mrb[12].mxu0 %vm4208_vm9, %v4172_v62  ;;  %2792 = vst.msk [vmem:[#allocation3 + $0x40] sm:$0xff] %vm7182_vm6, %v2752_v56  ;;  %v1249_v45 = vld [vmem:[#allocation2 + $0xac] sm:$0xf]  ;;  %vm7186_vm6 = vmmov %vm7185_vm5 }
 0x16e   : > { %v3652_v17 = vor.u32 %v3651_v35, %v3647_v20  ;;  %v3657_v50 = vrot.slane %v3655_v37, 5  ;;  %1053 = vst [vmem:[#allocation2 + $0xbc] sm:$0x1] %v1052_v32  ;;  %v4026_v60 = vrot.slane %v3881_v0, 5  ;;  %v5045_v24 = vcombine.low %v2990_v42, %v2993_v26  ;;  %v3338_v27 = vld [vmem:[#allocation2 + $0xb4] sm:$0xf]  ;;  %v3073_v14 = vpop.permute.xlu0 %3072 }
 0x16f   : > { %2761 = vrot.lane.b32.xlu1 %v5013_v39, %s5386_s13  ;;  %v3643_v30 = vrot.slane %v3642_v6, 4  ;;  %v1594_v49 = vshrl.u32 %v6774_v18, 16  ;;  %v3339_v53 = vld [vmem:[#allocation2 + $0xb8] sm:$0xf]  ;;  %v4029_v31 = vrot.slane %v3882_v3, 5  ;;  %v3660_v48 = vshrl.u32 %v3338_v27, 16 }
 0x170   : > { %v3653_v22 = vrot.slane %v3652_v17, 4  ;;  %v4027_v41 = vsel %vm5467_vm8, %v5092_v54, %v4026_v60  ;;  %v3663_v10 = vshll.u32 %v3338_v27, 16  ;;  %v3669_v52 = vshll.u32 %v3339_v53, 16  ;;  %v1250_v23 = vld [vmem:[#allocation2 + $0xb0] sm:$0x1]  ;;  %v5352_v63 = vld [vmem:[#allocation2 + $0xb4] sm:$0xff]   ;;  %v2209_v16 = vpop.permute.xlu1 %2208 }
 0x171   : > { %v3648_v38 = vsel %vm5523_vm12, %v3643_v30, %v3647_v20  ;;  %v3673_v29 = vshrl.u32 %v3339_v53, 16  ;;  %v4028_v12 = vrot.slane %v4026_v60, 4  ;;  %v1596_v51 = vrot.slane %v1594_v49, 4  ;;  %v3883_v58 = vld [vmem:[#allocation2 + $0xb4] sm:$0xe]  ;;  %3113 = vst.msk [vmem:[#allocation3 + $0x40] sm:$0xff] %vm7183_vm15, %v3073_v14 }
 0x172   : > { %v3658_v36 = vsel %vm5523_vm12, %v3653_v22, %v3657_v50  ;;  %v3662_v59 = vrot.slane %v3660_v48, 4  ;;  %v3665_v40 = vrot.slane %v3663_v10, 5  ;;  %v3671_v28 = vrot.slane %v3669_v52, 5  ;;  %v3884_v42 = vld [vmem:[#allocation2 + $0xb8] sm:$0xf]  ;;  %1204 = vst.msk [vmem:[#allocation3 + $0x70] sm:$0xff] %vm7185_vm5, %v5363_v5 }
 0x173   : > { %3082 = vrot.lane.b32.xlu1 %v5045_v24, %s5384_s11  ;;  %v5076_v11 = vcombine.low %v3648_v38, %v3658_v36  ;;  %v3675_v7 = vrot.slane %v3673_v29, 4  ;;  %v4030_v4 = vsel %vm5467_vm8, %v4028_v12, %v4029_v31  ;;  %v1597_v43 = vshll.u32 %v6774_v18, 16  ;;  %v5364_v55 = vld [vmem:[#allocation2 + $0xb4] sm:$0xff]   ;;  %2248 = vst.msk [vmem:[#allocation3 + $0x48] sm:$0xff] %vm2238_vm4, %v2209_v16  ;;  %v1796_v56 = vld [vmem:[#allocation2 + $0xa8] sm:$0xe] }
 0x174   : > { %v1603_v46 = vshll.u32 %v1249_v45, 16  ;;  %v3666_v15 = vor.u32 %v3665_v40, %v3662_v59  ;;  %v5108_v34 = vcombine.low %v4027_v41, %v4030_v4  ;;  %v1607_v25 = vshrl.u32 %v1249_v45, 16  ;;  %v1251_v61 = vld [vmem:[#allocation2 + $0xb4] sm:$0xf]  ;;  %1205 = vst.msk [vmem:[#allocation3 + $0x78] sm:$0xff] %vm7186_vm6, %v5364_v55  ;;  %v3251_v50 = vpop.permute.xlu0 %3250 }
 0x175   : > { %3803 = vrot.lane.b32.xlu0 %v5076_v11, %s5387_s14  ;;  %v3340_v44 = vld [vmem:[#allocation2 + $0xbc] sm:$0x1]  ;;  %v1613_v26 = vshll.u32 %v1250_v23, 16  ;;  %v3676_v0 = vor.u32 %v3675_v7, %v3671_v28  ;;  %v1599_v20 = vrot.slane %v1597_v43, 5  ;;  %v5093_v6 = vrot.slane %v3883_v58, 9 }
 0x176   : > { %v3679_v2 = vshll.u32 %v3340_v44, 16  ;;  %v1605_v35 = vrot.slane %v1603_v46, 5  ;;  %v3885_v37 = vld [vmem:[#allocation2 + $0xbc] sm:$0x1]  ;;  %v3667_v18 = vrot.slane %v3666_v15, 4  ;;  %v1609_v62 = vrot.slane %v1607_v25, 4 }
 0x177   : > { %3260 = vrot.lane.b32.xlu1 %v5352_v63, %s5383_s10  ;;  %v1615_v39 = vrot.slane %v1613_v26, 5  ;;  %v3677_v32 = vrot.slane %v3676_v0, 4  ;;  %v1600_v54 = vor.u32 %v1599_v20, %v1596_v51  ;;  %v4033_v17 = vrot.slane %v3884_v42, 5  ;;  %v1252_v30 = vld [vmem:[#allocation2 + $0xb8] sm:$0xf] }
 0x178   : > { %v3681_v3 = vrot.slane %v3679_v2, 5  ;;  %v3672_v60 = vsel %vm5523_vm12, %v3667_v18, %v3671_v28  ;;  %v1610_v57 = vor.u32 %v1609_v62, %v1605_v35  ;;  %v4036_v24 = vrot.slane %v3885_v37, 5  ;;  %v1253_v27 = vld [vmem:[#allocation2 + $0xbc] sm:$0x1]  ;;  %v1797_v38 = vld [vmem:[#allocation2 + $0xac] sm:$0xf] }
 0x179   : > { %4124 = vrot.lane.b32.xlu0 %v5108_v34, %s5385_s12  ;;  %v1618_v49 = vshrl.u32 %v1251_v61, 16  ;;  %vm7187_vm15 = vcmask 228544   ;;  %v1601_v53 = vrot.slane %v1600_v54, 4  ;;  %v4034_v41 = vsel %vm5467_vm8, %v5093_v6, %v4033_v17  ;;  %v1798_v51 = vld [vmem:[#allocation2 + $0xb0] sm:$0x1] }
 0x17a   : > { %3291 = vst.msk [vmem:[#allocation3 + $0x40] sm:$0xff] %vm7187_vm15, %v3251_v50  ;;  %v3682_v22 = vsel %vm5523_vm12, %v3677_v32, %v3681_v3  ;;  %v4035_v31 = vrot.slane %v4033_v17, 4  ;;  %v1611_v10 = vrot.slane %v1610_v57, 4  ;;  %v1621_v45 = vshll.u32 %v1251_v61, 16  ;;  %v1799_v5 = vld [vmem:[#allocation2 + $0xb4] sm:$0xe]  ;;  %vm7192_vm7 = vmmov %vm7187_vm15 }
 0x17b   : > { %v5077_v48 = vcombine.low %v3672_v60, %v3682_v22  ;;  %v1620_v52 = vrot.slane %v1618_v49, 4  ;;  %v1606_v36 = vsel %vm5523_vm12, %v1601_v53, %v1605_v35  ;;  %v1627_v12 = vshll.u32 %v1252_v30, 16  ;;  %v1800_v28 = vld [vmem:[#allocation2 + $0xb8] sm:$0xf]  ;;  %v1801_v58 = vld [vmem:[#allocation2 + $0xbc] sm:$0x1] }
 0x17c   : > { %v4037_v29 = vsel %vm5467_vm8, %v4035_v31, %v4036_v24  ;;  %v1631_v23 = vshrl.u32 %v1252_v30, 16  ;;  %v1616_v63 = vsel %vm5523_vm12, %v1611_v10, %v1615_v39  ;;  %v1623_v59 = vrot.slane %v1621_v45, 5  ;;  %v2297_v35 = vld [vmem:[#allocation2 + $0xb4] sm:$0xf]  ;;  %v2298_v37 = vld [vmem:[#allocation2 + $0xb8] sm:$0xf] }
 0x17d   : > { %3805 = vrot.lane.b32.xlu1 %v5077_v48, %s5387_s14  ;;  %v5109_v11 = vcombine.low %v4034_v41, %v4037_v29  ;;  %v1637_v40 = vshll.u32 %v1253_v27, 16  ;;  %v4950_v14 = vcombine.low %v1606_v36, %v1616_v63  ;;  %v1629_v7 = vrot.slane %v1627_v12, 5  ;;  %v1054_v32 = vld [vmem:[#allocation2 + $0xc0] sm:$0xf]  ;;  %v2299_v27 = vld [vmem:[#allocation2 + $0xbc] sm:$0x1] }
 0x17e   : > { %v1633_v4 = vrot.slane %v1631_v23, 4  ;;  %v4966_v43 = vrot.slane %v1796_v56, 9  ;;  %v1624_v46 = vor.u32 %v1623_v59, %v1620_v52  ;;  %v1953_v55 = vrot.slane %v1797_v38, 5  ;;  %v2754_v15 = vpop.permute.xlu1 %2753  ;;  %v5353_v56 = vld [vmem:[#allocation2 + $0xb4] sm:$0xff]   ;;  %v1058_v12 = vld [vmem:[#allocation2 + $0xc8] sm:$0x1] }
 0x17f   : > { %4126 = vrot.lane.b32.xlu0 %v5109_v11, %s5385_s12  ;;  %v1639_v42 = vrot.slane %v1637_v40, 5  ;;  %v1956_v44 = vrot.slane %v1798_v51, 5  ;;  %v4967_v25 = vrot.slane %v1799_v5, 9  ;;  %v1960_v26 = vrot.slane %v1800_v28, 5  ;;  %v2842_v41 = vld [vmem:[#allocation2 + $0xb4] sm:$0xe] }
 0x180   : > { %v1634_v34 = vor.u32 %v1633_v4, %v1629_v7  ;;  %v1963_v61 = vrot.slane %v1801_v58, 5  ;;  %vm7188_vm5 = vcmask 162944   ;;  %v1625_v16 = vrot.slane %v1624_v46, 4  ;;  %v2843_v52 = vld [vmem:[#allocation2 + $0xb8] sm:$0xf] }
 0x181   : > { %2793 = vst.msk [vmem:[#allocation3 + $0x48] sm:$0xff] %vm7188_vm5, %v2754_v15  ;;  %1717 = vrot.lane.b32.xlu1 %v4950_v14, %s5381_s8  ;;  %v1954_v0 = vsel %vm5467_vm8, %v4966_v43, %v1953_v55  ;;  %v1955_v2 = vrot.slane %v1953_v55, 4  ;;  %v882_v20 = vshrl.u32 %v6784_v19, 16  ;;  %v1961_v62 = vsel %vm5467_vm8, %v4967_v25, %v1960_v26  ;;  %v469_v23 = vld [vmem:[#allocation2 + $0xcc] sm:$0x1] }
 0x182   : > { %v1635_v18 = vrot.slane %v1634_v34, 4  ;;  %v1962_v39 = vrot.slane %v1960_v26, 4  ;;  %v885_v6 = vshll.u32 %v6784_v19, 16  ;;  %v1630_v3 = vsel %vm5523_vm12, %v1625_v16, %v1629_v7  ;;  %v3075_v60 = vpop.permute.xlu1 %3074  ;;  %v2844_v40 = vld [vmem:[#allocation2 + $0xbc] sm:$0x1] }
 0x183   : > { %v1957_v54 = vsel %vm5467_vm8, %v1955_v2, %v1956_v44  ;;  %v884_v17 = vrot.slane %v882_v20, 7  ;;  %v890_v50 = vshrl.u32 %v6792_v47, 16  ;;  %v893_v19 = vshll.u32 %v6792_v47, 16  ;;  %v3345_v44 = vld [vmem:[#allocation2 + $0xd0] sm:$0xf] }
 0x184   : > { %v1640_v57 = vsel %vm5523_vm12, %v1635_v18, %v1639_v42  ;;  %v4982_v24 = vcombine.low %v1954_v0, %v1957_v54  ;;  %v1964_v30 = vsel %vm5467_vm8, %v1962_v39, %v1963_v61  ;;  %vm7189_vm6 = vcmask 195744  }
 0x185   : > { %3114 = vst.msk [vmem:[#allocation3 + $0x48] sm:$0xff] %vm7189_vm6, %v3075_v60  ;;  %v4951_v49 = vcombine.low %v1630_v3, %v1640_v57  ;;  %v887_v22 = vor.u32 %v885_v6, %v884_v17  ;;  %v888_v53 = vrot.slane %v884_v17, 4  ;;  %v892_v31 = vrot.slane %v890_v50, 7 }
 0x186   : > { %2041 = vrot.lane.b32.xlu0 %v4982_v24, %s5380_s7  ;;  %v2640_v38 = vshrl.u32 %v2297_v35, 16  ;;  %v2643_v48 = vshll.u32 %v2297_v35, 16  ;;  %v2649_v10 = vshll.u32 %v2298_v37, 16  ;;  %v4983_v45 = vcombine.low %v1961_v62, %v1964_v30  ;;  %v3253_v51 = vpop.permute.xlu1 %3252 }
 0x187   : > { %1719 = vrot.lane.b32.xlu1 %v4951_v49, %s5381_s8  ;;  %v1055_v47 = vsel %vm5531_vm13, %v887_v22, %v1054_v32  ;;  %v2653_v36 = vshrl.u32 %v2298_v37, 16  ;;  %v2659_v29 = vshll.u32 %v2299_v27, 16  ;;  %v895_v5 = vor.u32 %v893_v19, %v892_v31  ;;  %3292 = vst.msk [vmem:[#allocation3 + $0x48] sm:$0xff] %vm7187_vm15, %v3253_v51  ;;  %v3796_v28 = vpop.permute.xlu0 %3795  ;;  %s5167_s8 = sshll.u32 %s7208_s22, 7 }
 0x188   : > { %v897_v63 = vrot.slane %v892_v31, 4  ;;  %1056 = vst [vmem:[#allocation2 + $0xc0] sm:$0xf] %v1055_v47  ;;  %v2642_v11 = vrot.slane %v2640_v38, 4  ;;  %v2645_v59 = vrot.slane %v2643_v48, 5  ;;  %v2651_v58 = vrot.slane %v2649_v10, 5 }
 0x189   : > { %v2655_v14 = vrot.slane %v2653_v36, 4  ;;  %v5030_v7 = vrot.slane %v2842_v41, 9  ;;  %v2996_v4 = vrot.slane %v2843_v52, 5  ;;  %3836 = vst.msk [vmem:[#allocation3 + $0x40] sm:$0xff] %vm3827_vm10, %v3796_v28  ;;  %v896_v43 = vsel %vm5541_vm14, %v888_v53, %v895_v5 }
 0x18a   : > { %2218 = vrot.lane.b32.xlu0 %v5353_v56, %s5382_s9  ;;  %v2646_v46 = vor.u32 %v2645_v59, %v2642_v11  ;;  %v2661_v42 = vrot.slane %v2659_v29, 5  ;;  %v1059_v55 = vsel %vm5439_vm3, %v897_v63, %v1058_v12  ;;  %1057 = vst.msk [vmem:[#allocation2 + $0xc4] sm:$0xf] %vm406_vm0, %v896_v43  ;;  %v2999_v25 = vrot.slane %v2844_v40, 5  ;;  %vm7190_vm0 = vmmov %vm7188_vm5 }
 0x18b   : > { %2043 = vrot.lane.b32.xlu1 %v4983_v45, %s5380_s7  ;;  %v2656_v15 = vor.u32 %v2655_v14, %v2651_v58  ;;  %1060 = vst [vmem:[#allocation2 + $0xc8] sm:$0x1] %v1059_v55  ;;  %v2998_v34 = vrot.slane %v2996_v4, 4  ;;  %v470_v26 = vsel %vm5439_vm3, 0, %v469_v23  ;;  %v4117_v16 = vpop.permute.xlu0 %4116  ;;  %v3717_v2 = vshll.u32 %v3345_v44, 16  ;;  %vm7191_vm3 = vmmov %vm7189_vm6 }
 0x18c   : > { %v2647_v61 = vrot.slane %v2646_v46, 4  ;;  %471 = vst [vmem:[#allocation2 + $0xcc] sm:$0x1] %v470_v26  ;;  %v3721_v20 = vshrl.u32 %v3345_v44, 16  ;;  %4157 = vst.msk [vmem:[#allocation3 + $0x40] sm:$0xff] %vm4148_vm11, %v4117_v16  ;;  %v2997_v18 = vsel %vm5467_vm8, %v5030_v7, %v2996_v4  ;;  %vm4550_vm15 = vcmask 60416  }
 0x18d   : > { %v2657_v0 = vrot.slane %v2656_v15, 4  ;;  %v3000_v9 = vsel %vm5467_vm8, %v2998_v34, %v2999_v25  ;;  %v6870_v54 = vrot.slane %v3717_v2, 5  ;;  %vm7194_vm13 = vmmov %vm7191_vm3 }
 0x18e   : > { %v2652_v35 = vsel %vm5523_vm12, %v2647_v61, %v2651_v58  ;;  %v6872_v17 = vrot.slane %v3721_v20, 4  ;;  %v5046_v30 = vcombine.low %v2997_v18, %v3000_v9  ;;  %v3346_v61 = vld [vmem:[#allocation2 + $0xd4] sm:$0x1]  ;;  %vm7196_vm14 = vmmov %vm7190_vm0 }
 0x18f   : > { %v2662_v37 = vsel %vm5523_vm12, %v2657_v0, %v2661_v42  ;;  %v2300_v1 = vld [vmem:[#allocation2 + $0xc0] sm:$0xf]  ;;  %v4119_v3 = vpop.permute.xlu0 %4118  ;;  %v3798_v50 = vpop.permute.xlu1 %3797  ;;  %vm7197_vm5 = vmmov %vm7191_vm3 }
 0x190   : > { %v5014_v62 = vcombine.low %v2652_v35, %v2662_v37  ;;  %v2664_v39 = vshrl.u32 %v2300_v1, 16  ;;  %v2667_v6 = vshll.u32 %v2300_v1, 16  ;;  %v2845_v32 = vld [vmem:[#allocation2 + $0xc0] sm:$0xe]  ;;  %3837 = vst.msk [vmem:[#allocation3 + $0x48] sm:$0xff] %vm3827_vm10, %v3798_v50  ;;  %v3724_v33 = vor.u32 %v6872_v17, %v6870_v54  ;;  %vm7198_vm6 = vmmov %vm7192_vm7 }
 0x191   : > { %v5354_v60 = vld [vmem:[#allocation2 + $0xc0] sm:$0xff]   ;;  %v5031_v22 = vrot.slane %v2845_v32, 9  ;;  %4158 = vst.msk [vmem:[#allocation3 + $0x48] sm:$0xff] %vm4148_vm11, %v4119_v3  ;;  %v3890_v32 = vld [vmem:[#allocation2 + $0xd0] sm:$0xf]  ;;  %v3727_v50 = vshll.u32 %v3346_v61, 16 }
 0x192   : > { %2763 = vrot.lane.b32.xlu0 %v5014_v62, %s5386_s13  ;;  %v2301_v57 = vld [vmem:[#allocation2 + $0xc4] sm:$0xf]  ;;  %v2666_v24 = vrot.slane %v2664_v39, 4  ;;  %v2302_v19 = vld [vmem:[#allocation2 + $0xc8] sm:$0x1]  ;;  %v2669_v27 = vrot.slane %v2667_v6, 5  ;;  %2220 = vrot.lane.b32.xlu1 %v5354_v60, %s5382_s9 }
 0x193   : > { %v2673_v49 = vshll.u32 %v2301_v57, 16  ;;  %v2677_v56 = vshrl.u32 %v2301_v57, 16  ;;  %v3341_v53 = vld [vmem:[#allocation2 + $0xc0] sm:$0xf]  ;;  %v2683_v41 = vshll.u32 %v2302_v19, 16  ;;  %v1710_v36 = vpop.permute.xlu1 %1709  ;;  %v4173_v29 = vld [vmem:[#allocation3 + $0x40] sm:$0xff] }
 0x194   : > { %v2846_v31 = vld [vmem:[#allocation2 + $0xc4] sm:$0xf]  ;;  %v2847_v38 = vld [vmem:[#allocation2 + $0xc8] sm:$0x1]  ;;  %v2670_v10 = vor.u32 %v2669_v27, %v2666_v24  ;;  %1748 = vst.msk [vmem:[#allocation3 + $0x50] sm:$0xff] %vm1737_vm1, %v1710_v36  ;;  %5273 = vmatprep.mubr.msk.bf16.mxu1 %vm4208_vm9, %v4173_v29  ;;  %v3684_v58 = vshrl.u32 %v3341_v53, 16 }
 0x195   : > { %v5357_v48 = vld [vmem:[#allocation2 + $0xc0] sm:$0xff]   ;;  %v2675_v52 = vrot.slane %v2673_v49, 5  ;;  %v2679_v45 = vrot.slane %v2677_v56, 4  ;;  %v3003_v47 = vrot.slane %v2846_v31, 5  ;;  %v2685_v12 = vrot.slane %v2683_v41, 5  ;;  %v2034_v28 = vpop.permute.xlu0 %2033 }
 0x196   : > { %3084 = vrot.lane.b32.xlu0 %v5046_v30, %s5384_s11  ;;  %v3006_v23 = vrot.slane %v2847_v38, 5  ;;  %v3342_v51 = vld [vmem:[#allocation2 + $0xc4] sm:$0xf]  ;;  %v2671_v5 = vrot.slane %v2670_v10, 4  ;;  %v3343_v40 = vld [vmem:[#allocation2 + $0xc8] sm:$0x1] }
 0x197   : > { %v2680_v63 = vor.u32 %v2679_v45, %v2675_v52  ;;  %v3004_v11 = vsel %vm5467_vm8, %v5031_v22, %v3003_v47  ;;  %v3005_v59 = vrot.slane %v3003_v47, 4  ;;  %v3687_v14 = vshll.u32 %v3341_v53, 16  ;;  %v3344_v21 = vld [vmem:[#allocation2 + $0xcc] sm:$0xf]  ;;  %2072 = vst.msk [vmem:[#allocation3 + $0x50] sm:$0xff] %vm2061_vm2, %v2034_v28 }
 0x198   : > { %v3693_v7 = vshll.u32 %v3342_v51, 16  ;;  %v3697_v4 = vshrl.u32 %v3342_v51, 16  ;;  %v2676_v43 = vsel %vm5523_vm12, %v2671_v5, %v2675_v52  ;;  %v3703_v55 = vshll.u32 %v3343_v40, 16  ;;  %v3886_v44 = vld [vmem:[#allocation2 + $0xc0] sm:$0xe]  ;;  %v1712_v15 = vpop.permute.xlu1 %1711  ;;  %v5358_v47 = vld [vmem:[#allocation2 + $0xcc] sm:$0xff]  }
 0x199   : > { %v2681_v46 = vrot.slane %v2680_v63, 4  ;;  %v3007_v42 = vsel %vm5467_vm8, %v3005_v59, %v3006_v23  ;;  %v3686_v34 = vrot.slane %v3684_v58, 4  ;;  %v3689_v25 = vrot.slane %v3687_v14, 5  ;;  %1749 = vst.msk [vmem:[#allocation3 + $0x58] sm:$0xff] %vm1737_vm1, %v1712_v15  ;;  %v4174_v16 = vld [vmem:[#allocation3 + $0x48] sm:$0xff]  ;;  %v2211_v18 = vpop.permute.xlu0 %2210 }
 0x19a   : > { %3262 = vrot.lane.b32.xlu0 %v5357_v48, %s5383_s10  ;;  %v3695_v26 = vrot.slane %v3693_v7, 5  ;;  %v5047_v2 = vcombine.low %v3004_v11, %v3007_v42  ;;  %v3699_v20 = vrot.slane %v3697_v4, 4  ;;  %v3708_v35 = vshrl.u32 %v3344_v21, 16  ;;  %v3887_v37 = vld [vmem:[#allocation2 + $0xc4] sm:$0xf]  ;;  %5274 = vmatmul.mubr.msk.bf16.vlgmr.msra.gmra.mrb[0].mxu1 %vm4208_vm9, %v4174_v16  ;;  %2249 = vst.msk [vmem:[#allocation3 + $0x50] sm:$0xff] %vm2238_vm4, %v2211_v18 }
 0x19b   : > { %v2686_v0 = vsel %vm5523_vm12, %v2681_v46, %v2685_v12  ;;  %v3888_v1 = vld [vmem:[#allocation2 + $0xc8] sm:$0x1]  ;;  %v3690_v62 = vor.u32 %v3689_v25, %v3686_v34  ;;  %v3705_v39 = vrot.slane %v3703_v55, 5  ;;  %v3711_v6 = vshll.u32 %v3344_v21, 16  ;;  %v3889_v48 = vld [vmem:[#allocation2 + $0xcc] sm:$0xe] }
 0x19c   : > { %v5015_v9 = vcombine.low %v2676_v43, %v2686_v0  ;;  %v3700_v3 = vor.u32 %v3699_v20, %v3695_v26  ;;  %v3710_v17 = vrot.slane %v3708_v35, 4  ;;  %v5094_v60 = vrot.slane %v3886_v44, 9  ;;  %v2036_v57 = vpop.permute.xlu1 %2035  ;;  %v3891_v10 = vld [vmem:[#allocation2 + $0xd4] sm:$0x1] }
 0x19d   : > { %v3691_v24 = vrot.slane %v3690_v62, 4  ;;  %v3713_v30 = vrot.slane %v3711_v6, 5  ;;  %v4040_v19 = vrot.slane %v3887_v37, 5  ;;  %v4043_v27 = vrot.slane %v3888_v1, 5  ;;  %2073 = vst.msk [vmem:[#allocation3 + $0x58] sm:$0xff] %vm2061_vm2, %v2036_v57 }
 0x19e   : > { %2765 = vrot.lane.b32.xlu1 %v5015_v9, %s5386_s13  ;;  %v3701_v49 = vrot.slane %v3700_v3, 4  ;;  %v3725_v56 = vrot.slane %v3724_v33, 4  ;;  %v3729_v22 = vrot.slane %v3727_v50, 5  ;;  %v4047_v53 = vrot.slane %v3890_v32, 5  ;;  %v6945_v37 = vld [vmem:[%s7152_s4] ss:$0 sm:$0xff] }
 0x19f   : > { %v3696_v41 = vsel %vm5523_vm12, %v3691_v24, %v3695_v26  ;;  %v3714_v31 = vor.u32 %v3713_v30, %v3710_v17  ;;  %v4042_v38 = vrot.slane %v4040_v19, 4  ;;  %v4041_v45 = vsel %vm5467_vm8, %v5094_v60, %v4040_v19 }
 0x1a0   : > { %v3706_v52 = vsel %vm5523_vm12, %v3701_v49, %v3705_v39  ;;  %v3730_v23 = vsel %vm5523_vm12, %v3725_v56, %v3729_v22  ;;  %v5095_v51 = vrot.slane %v3889_v48, 9  ;;  %v4049_v5 = vrot.slane %v4047_v53, 4 }
 0x1a1   : > { %v5078_v36 = vcombine.low %v3696_v41, %v3706_v52  ;;  %v3715_v29 = vrot.slane %v3714_v31, 4  ;;  %v4044_v12 = vsel %vm5467_vm8, %v4042_v38, %v4043_v27  ;;  %v4050_v63 = vrot.slane %v3891_v10, 5 }
 0x1a2   : > { %3086 = vrot.lane.b32.xlu1 %v5047_v2, %s5384_s11  ;;  %v2756_v11 = vpop.permute.xlu0 %2755  ;;  %v5110_v40 = vcombine.low %v4041_v45, %v4044_v12  ;;  %v4048_v14 = vsel %vm5467_vm8, %v5095_v51, %v4047_v53  ;;  %s6953_s11 = scalar_lea.vmem %s7153_s5, %s5167_s8 }
 0x1a3   : > { %3807 = vrot.lane.b32.xlu0 %v5078_v36, %s5387_s14  ;;  %v3720_v59 = vsel %vm5523_vm12, %v3715_v29, %v6870_v54  ;;  %2794 = vst.msk [vmem:[#allocation3 + $0x50] sm:$0xff] %vm7190_vm0, %v2756_v11  ;;  %v2213_v28 = vpop.permute.xlu1 %2212  ;;  %v4051_v7 = vsel %vm5467_vm8, %v4049_v5, %v4050_v63  ;;  %vm7193_vm12 = vmmov %vm7190_vm0 }
 0x1a4   : > { %v5079_v58 = vcombine.low %v3720_v59, %v3730_v23  ;;  %2250 = vst.msk [vmem:[#allocation3 + $0x58] sm:$0xff] %vm2238_vm4, %v2213_v28  ;;  %v5111_v8 = vcombine.low %v4048_v14, %v4051_v7  ;;  %vm7195_vm8 = vmmov %vm7192_vm7 }
 0x1a6   : > { %3264 = vrot.lane.b32.xlu1 %v5358_v47, %s5383_s10  ;;  %v3077_v4 = vpop.permute.xlu0 %3076 }
 0x1a7   : > { %4128 = vrot.lane.b32.xlu0 %v5110_v40, %s5385_s12  ;;  %3115 = vst.msk [vmem:[#allocation3 + $0x50] sm:$0xff] %vm7191_vm3, %v3077_v4  ;;  %vm4615_vm3 = vcmask 64512  }
 0x1aa   : > { %3809 = vrot.lane.b32.xlu1 %v5079_v58, %s5387_s14  ;;  %v3255_v54 = vpop.permute.xlu0 %3254 }
 0x1ab   : > { %3293 = vst.msk [vmem:[#allocation3 + $0x50] sm:$0xff] %vm7192_vm7, %v3255_v54  ;;  %vm7199_vm7 = vmmov %vm7197_vm5 }
 0x1ae   : > { %4130 = vrot.lane.b32.xlu1 %v5111_v8, %s5385_s12  ;;  %s4885_s12 = sshll.u32 %s7208_s22, 1 }
 0x1af   : > { %v2758_v21 = vpop.permute.xlu1 %2757  ;;  %s262_s20 = scalar_lea.vmem %s7154_s6, %s4885_s12 }
 0x1b0   : > { %2795 = vst.msk [vmem:[#allocation3 + $0x58] sm:$0xff] %vm7193_vm12, %v2758_v21  ;;  %vm7200_vm12 = vmmov %vm7198_vm6 }
 0x1b3   : > { %v3079_v43 = vpop.permute.xlu1 %3078 }
 0x1b4   : > { %3116 = vst.msk [vmem:[#allocation3 + $0x58] sm:$0xff] %vm7194_vm13, %v3079_v43  ;;  %vm7201_vm13 = vmmov %vm7190_vm0 }
 0x1b5   : > { %v3800_v46 = vpop.permute.xlu0 %3799 }
 0x1b6   : > { %3838 = vst.msk [vmem:[#allocation3 + $0x50] sm:$0xff] %vm3827_vm10, %v3800_v46 }
 0x1b7   : > { %v3257_v13 = vpop.permute.xlu1 %3256 }
 0x1b8   : > { %3294 = vst.msk [vmem:[#allocation3 + $0x58] sm:$0xff] %vm7195_vm8, %v3257_v13  ;;  %vm7202_vm8 = vmmov %vm7197_vm5 }
 0x1b9   : > { %v4121_v42 = vpop.permute.xlu0 %4120 }
 0x1ba   : > { %4159 = vst.msk [vmem:[#allocation3 + $0x50] sm:$0xff] %vm4148_vm11, %v4121_v42 }
 0x1bf   : > { %v4123_v55 = vpop.permute.xlu0 %4122 }
 0x1c0   : > { %v3802_v44 = vpop.permute.xlu1 %3801 }
 0x1c1   : > { %3839 = vst.msk [vmem:[#allocation3 + $0x58] sm:$0xff] %vm3827_vm10, %v3802_v44  ;;  %v4175_v15 = vld [vmem:[#allocation3 + $0x50] sm:$0xff] }
 0x1c2   : > { %4160 = vst.msk [vmem:[#allocation3 + $0x58] sm:$0xff] %vm4148_vm11, %v4123_v55  ;;  %5277 = vmatprep.mubr.msk.bf16.mxu1 %vm4208_vm9, %v4175_v15 }
 0x1c4   : > { %v1714_v34 = vpop.permute.xlu1 %1713 }
 0x1c5   : > { %1750 = vst.msk [vmem:[#allocation3 + $0x60] sm:$0xff] %vm1737_vm1, %v1714_v34 }
 0x1c6   : > { %v2038_v25 = vpop.permute.xlu0 %2037 }
 0x1c7   : > { %2074 = vst.msk [vmem:[#allocation3 + $0x60] sm:$0xff] %vm2061_vm2, %v2038_v25 }
 0x1c8   : > { %v1716_v26 = vpop.permute.xlu1 %1715 }
 0x1c9   : > { %1751 = vst.msk [vmem:[#allocation3 + $0x68] sm:$0xff] %vm1737_vm1, %v1716_v26  ;;  %v4176_v61 = vld [vmem:[#allocation3 + $0x58] sm:$0xff] }
 0x1ca   : > { %v2215_v33 = vpop.permute.xlu0 %2214  ;;  %5278 = vmatmul.mubr.msk.bf16.gmra.mrb[4].mxu1 %vm4208_vm9, %v4176_v61 }
 0x1cb   : > { %2251 = vst.msk [vmem:[#allocation3 + $0x60] sm:$0xff] %vm2238_vm4, %v2215_v33 }
 0x1cc   : > { %v2040_v16 = vpop.permute.xlu1 %2039 }
 0x1cd   : > { %2075 = vst.msk [vmem:[#allocation3 + $0x68] sm:$0xff] %vm2061_vm2, %v2040_v16 }
 0x1d3   : > { %v2760_v0 = vpop.permute.xlu0 %2759 }
 0x1d4   : > { %2796 = vst.msk [vmem:[#allocation3 + $0x60] sm:$0xff] %vm7196_vm14, %v2760_v0  ;;  %v2217_v2 = vpop.permute.xlu1 %2216 }
 0x1d5   : > { %2252 = vst.msk [vmem:[#allocation3 + $0x68] sm:$0xff] %vm2238_vm4, %v2217_v2 }
 0x1d7   : > { %v3081_v20 = vpop.permute.xlu0 %3080 }
 0x1d8   : > { %3117 = vst.msk [vmem:[#allocation3 + $0x60] sm:$0xff] %vm7197_vm5, %v3081_v20 }
 0x1db   : > { %v3259_v35 = vpop.permute.xlu0 %3258 }
 0x1dc   : > { %3295 = vst.msk [vmem:[#allocation3 + $0x60] sm:$0xff] %vm7198_vm6, %v3259_v35  ;;  %v5259_v1 = vpop.f32.mrb[0].mxu0 }
 0x1dd   : > { %v4304_v18 = vadd.f32 %v5259_v1, %v6945_v37  ;;  %v4295_v9 = vpop.f32.mrb[1].mxu0 }
 0x1de   : > { %v4296_v62 = vadd.f32 %v6945_v37, %v4295_v9  ;;  %v5260_v39 = vpop.f32.mrb[2].mxu0 }
 0x1df   : > { %v5202_v6 = vpack.c.bf16 %v4304_v18, %v4304_v18  ;;  %v4307_v32 = vadd.f32 %v5260_v39, %v6945_v37  ;;  %v4298_v3 = vpop.f32.mrb[3].mxu0 }
 0x1e0   : > { %v5200_v50 = vpack.c.bf16 %v4296_v62, %v4296_v62  ;;  %v4299_v60 = vadd.f32 %v6945_v37, %v4298_v3 }
 0x1e1   : > { %v2762_v17 = vpop.permute.xlu1 %2761  ;;  %4553 = vst.msk [vmem:[%s6953_s11 + $0x8] sm:$0xf] %vm4550_vm15, %v5202_v6  ;;  %v4423_v57 = vpack.c.bf16 %v4307_v32, %v4304_v18  ;;  %v5203_v24 = vpack.c.bf16 %v4307_v32, %v4307_v32 }
 0x1e2   : > { %2797 = vst.msk [vmem:[#allocation3 + $0x68] sm:$0xff] %vm7190_vm0, %v2762_v17  ;;  %v4422_v30 = vpack.c.bf16 %v4299_v60, %v4296_v62  ;;  %v5201_v19 = vpack.c.bf16 %v4299_v60, %v4299_v60 }
 0x1e3   : > { %4551 = vst.msk [vmem:[%s6953_s11] sm:$0xf] %vm4550_vm15, %v5200_v50  ;;  %4554 = vst.msk [vmem:[%s6953_s11 + $0xc] sm:$0xf] %vm4550_vm15, %v5203_v24  ;;  %v4585_v27 = vunpack.c.l.bf16 %v4423_v57  ;;  %v4586_v49 = vunpack.c.h.bf16 %v4423_v57 }
 0x1e4   : > { %4552 = vst.msk [vmem:[%s6953_s11 + $0x4] sm:$0xf] %vm4550_vm15, %v5201_v19  ;;  %v4583_v22 = vunpack.c.l.bf16 %v4422_v30  ;;  %v4584_v53 = vunpack.c.h.bf16 %v4422_v30  ;;  %v5263_v41 = vpop.f32.mrb[4].mxu0 }
 0x1e5   : > { %v3083_v56 = vpop.permute.xlu1 %3082  ;;  %v4619_v31 = vsel %vm4615_vm3, %v4585_v27, 0.0  ;;  %v4687_v38 = vmul.f32 %v4585_v27, %v4585_v27  ;;  %v4311_v48 = vpop.f32.mrb[5].mxu0  ;;  %v4621_v12 = vsel %vm4615_vm3, %v4586_v49, 0.0  ;;  %v4688_v23 = vmul.f32 %v4586_v49, %v4586_v49 }
 0x1e6   : > { %3118 = vst.msk [vmem:[#allocation3 + $0x68] sm:$0xff] %vm7199_vm7, %v3083_v56  ;;  %v4616_v52 = vsel %vm4615_vm3, %v4583_v22, 0.0  ;;  %v4617_v45 = vsel %vm4615_vm3, %v4584_v53, 0.0  ;;  %v4685_v47 = vmul.f32 %v4583_v22, %v4583_v22  ;;  %v4686_v36 = vmul.f32 %v4584_v53, %v4584_v53  ;;  %v5264_v29 = vpop.f32.mrb[6].mxu0 }
 0x1e7   : > { %v3804_v10 = vpop.permute.xlu0 %3803  ;;  %v4618_v51 = vadd.f32 %v4617_v45, %v4616_v52  ;;  %v4320_v5 = vadd.f32 %v5263_v41, %v6945_v37  ;;  %v4314_v63 = vpop.f32.mrb[7].mxu0  ;;  %v4312_v28 = vadd.f32 %v6945_v37, %v4311_v48  ;;  %v4323_v58 = vadd.f32 %v5264_v29, %v6945_v37 }
 0x1e8   : > { %3840 = vst.msk [vmem:[#allocation3 + $0x60] sm:$0xff] %vm3827_vm10, %v3804_v10  ;;  %v4717_v59 = vsel %vm4615_vm3, %v4685_v47, 0.0  ;;  %v4718_v40 = vsel %vm4615_vm3, %v4686_v36, 0.0  ;;  %v4315_v8 = vadd.f32 %v6945_v37, %v4314_v63  ;;  %v4720_v21 = vsel %vm4615_vm3, %v4687_v38, 0.0 }
 0x1e9   : > { %v3261_v11 = vpop.permute.xlu1 %3260  ;;  %v4620_v14 = vadd.f32 %v4619_v31, %v4618_v51  ;;  %v4719_v7 = vadd.f32 %v4718_v40, %v4717_v59  ;;  %v5206_v4 = vpack.c.bf16 %v4320_v5, %v4320_v5  ;;  %v5204_v43 = vpack.c.bf16 %v4312_v28, %v4312_v28 }
 0x1ea   : > { %3296 = vst.msk [vmem:[#allocation3 + $0x68] sm:$0xff] %vm7200_vm12, %v3261_v11  ;;  %v4425_v13 = vpack.c.bf16 %v4323_v58, %v4320_v5  ;;  %v5207_v46 = vpack.c.bf16 %v4323_v58, %v4323_v58  ;;  %v4424_v55 = vpack.c.bf16 %v4315_v8, %v4312_v28  ;;  %v5205_v44 = vpack.c.bf16 %v4315_v8, %v4315_v8 }
 0x1eb   : > { %v4125_v54 = vpop.permute.xlu0 %4124  ;;  %v4721_v42 = vadd.f32 %v4720_v21, %v4719_v7  ;;  %4557 = vst.msk [vmem:[%s6953_s11 + $0x18] sm:$0xf] %vm4550_vm15, %v5206_v4  ;;  %v4622_v15 = vadd.f32 %v4621_v12, %v4620_v14  ;;  %v4722_v34 = vsel %vm4615_vm3, %v4688_v23, 0.0  ;;  %4555 = vst.msk [vmem:[%s6953_s11 + $0x10] sm:$0xf] %vm4550_vm15, %v5204_v43 }
 0x1ec   : > { %4161 = vst.msk [vmem:[#allocation3 + $0x60] sm:$0xff] %vm4148_vm11, %v4125_v54  ;;  %v4589_v25 = vunpack.c.l.bf16 %v4425_v13  ;;  %v4587_v26 = vunpack.c.l.bf16 %v4424_v55  ;;  %v4588_v61 = vunpack.c.h.bf16 %v4424_v55  ;;  %v4590_v0 = vunpack.c.h.bf16 %v4425_v13 }
 0x1ed   : > { %4558 = vst.msk [vmem:[%s6953_s11 + $0x1c] sm:$0xf] %vm4550_vm15, %v5207_v46  ;;  %4556 = vst.msk [vmem:[%s6953_s11 + $0x14] sm:$0xf] %vm4550_vm15, %v5205_v44  ;;  %v4723_v33 = vadd.f32 %v4722_v34, %v4721_v42 }
 0x1ee   : > { %v4623_v2 = vsel %vm4615_vm3, %v4587_v26, 0.0  ;;  %v4689_v20 = vmul.f32 %v4587_v26, %v4587_v26  ;;  %v4690_v35 = vmul.f32 %v4588_v61, %v4588_v61  ;;  %v4691_v9 = vmul.f32 %v4589_v25, %v4589_v25 }
 0x1ef   : > { %v3806_v16 = vpop.permute.xlu1 %3805  ;;  %v4624_v18 = vadd.f32 %v4623_v2, %v4622_v15  ;;  %v4625_v62 = vsel %vm4615_vm3, %v4588_v61, 0.0  ;;  %v4627_v50 = vsel %vm4615_vm3, %v4589_v25, 0.0  ;;  %v4692_v60 = vmul.f32 %v4590_v0, %v4590_v0 }
 0x1f0   : > { %3841 = vst.msk [vmem:[#allocation3 + $0x68] sm:$0xff] %vm3827_vm10, %v3806_v16  ;;  %v4724_v39 = vsel %vm4615_vm3, %v4689_v20, 0.0  ;;  %v4726_v57 = vsel %vm4615_vm3, %v4690_v35, 0.0  ;;  %v4629_v19 = vsel %vm4615_vm3, %v4590_v0, 0.0  ;;  %v4728_v27 = vsel %vm4615_vm3, %v4691_v9, 0.0 }
 0x1f1   : > { %v4127_v1 = vpop.permute.xlu0 %4126  ;;  %v4626_v3 = vadd.f32 %v4625_v62, %v4624_v18  ;;  %v4725_v17 = vadd.f32 %v4724_v39, %v4723_v33  ;;  %v4730_v53 = vsel %vm4615_vm3, %v4692_v60, 0.0 }
 0x1f2   : > { %4162 = vst.msk [vmem:[#allocation3 + $0x68] sm:$0xff] %vm4148_vm11, %v4127_v1 }
 0x1f3   : > { %v1718_v6 = vpop.permute.xlu1 %1717  ;;  %v4177_v32 = vld [vmem:[#allocation3 + $0x60] sm:$0xff]  ;;  %v4628_v24 = vadd.f32 %v4627_v50, %v4626_v3  ;;  %v4727_v30 = vadd.f32 %v4726_v57, %v4725_v17 }
 0x1f4   : > { %1752 = vst.msk [vmem:[#allocation3 + $0x70] sm:$0xff] %vm1737_vm1, %v1718_v6  ;;  %5281 = vmatprep.mubr.msk.bf16.mxu1 %vm4208_vm9, %v4177_v32 }
 0x1f5   : > { %v4729_v49 = vadd.f32 %v4728_v27, %v4727_v30  ;;  %v4630_v56 = vadd.f32 %v4629_v19, %v4628_v24 }
 0x1f7   : > { %v4731_v38 = vadd.f32 %v4730_v53, %v4729_v49 }
 0x1f8   : > { %v2042_v22 = vpop.permute.xlu0 %2041 }
 0x1f9   : > { %v1720_v41 = vpop.permute.xlu1 %1719  ;;  %2076 = vst.msk [vmem:[#allocation3 + $0x70] sm:$0xff] %vm2061_vm2, %v2042_v22  ;;  %v4178_v31 = vld [vmem:[#allocation3 + $0x68] sm:$0xff] }
 0x1fa   : > { %1753 = vst.msk [vmem:[#allocation3 + $0x78] sm:$0xff] %vm1737_vm1, %v1720_v41  ;;  %5282 = vmatmul.mubr.msk.bf16.gmra.mrb[8].mxu1 %vm4208_vm9, %v4178_v31  ;;  %vm7203_vm1 = vmmov %vm7198_vm6 }
 0x1fb   : > { %vm7206_vm14 = vmmov %vm7203_vm1 }
 0x1fc   : > { %v2219_v48 = vpop.permute.xlu0 %2218 }
 0x1fd   : > { %v2044_v10 = vpop.permute.xlu1 %2043  ;;  %2253 = vst.msk [vmem:[#allocation3 + $0x70] sm:$0xff] %vm2238_vm4, %v2219_v48 }
 0x1fe   : > { %2077 = vst.msk [vmem:[#allocation3 + $0x78] sm:$0xff] %vm2061_vm2, %v2044_v10  ;;  %vm7204_vm2 = vmmov %vm7190_vm0 }
 0x204   : > { %v2764_v52 = vpop.permute.xlu0 %2763  ;;  %v2221_v45 = vpop.permute.xlu1 %2220 }
 0x205   : > { %2798 = vst.msk [vmem:[#allocation3 + $0x70] sm:$0xff] %vm7201_vm13, %v2764_v52  ;;  %v5267_v36 = vpop.f32.mrb[8].mxu0 }
 0x206   : > { %2254 = vst.msk [vmem:[#allocation3 + $0x78] sm:$0xff] %vm2238_vm4, %v2221_v45  ;;  %v4336_v29 = vadd.f32 %v5267_v36, %v6945_v37  ;;  %v4327_v12 = vpop.f32.mrb[9].mxu0  ;;  %vm7205_vm4 = vmmov %vm7197_vm5 }
 0x207   : > { %v4328_v23 = vadd.f32 %v6945_v37, %v4327_v12  ;;  %v5268_v51 = vpop.f32.mrb[10].mxu0 }
 0x208   : > { %v3085_v47 = vpop.permute.xlu0 %3084  ;;  %v5210_v5 = vpack.c.bf16 %v4336_v29, %v4336_v29  ;;  %v4339_v63 = vadd.f32 %v5268_v51, %v6945_v37  ;;  %v4330_v11 = vpop.f32.mrb[11].mxu0 }
 0x209   : > { %3119 = vst.msk [vmem:[#allocation3 + $0x70] sm:$0xff] %vm7202_vm8, %v3085_v47  ;;  %v5208_v40 = vpack.c.bf16 %v4328_v23, %v4328_v23  ;;  %v4331_v28 = vadd.f32 %v6945_v37, %v4330_v11 }
 0x20a   : > { %4561 = vst.msk [vmem:[%s6953_s11 + $0x28] sm:$0xf] %vm4550_vm15, %v5210_v5  ;;  %v4427_v58 = vpack.c.bf16 %v4339_v63, %v4336_v29  ;;  %v5211_v14 = vpack.c.bf16 %v4339_v63, %v4339_v63 }
 0x20b   : > { %4559 = vst.msk [vmem:[%s6953_s11 + $0x20] sm:$0xf] %vm4550_vm15, %v5208_v40  ;;  %v4426_v7 = vpack.c.bf16 %v4331_v28, %v4328_v23  ;;  %v5209_v4 = vpack.c.bf16 %v4331_v28, %v4331_v28 }
 0x20c   : > { %v3263_v59 = vpop.permute.xlu0 %3262  ;;  %4562 = vst.msk [vmem:[%s6953_s11 + $0x2c] sm:$0xf] %vm4550_vm15, %v5211_v14  ;;  %v4593_v54 = vunpack.c.l.bf16 %v4427_v58  ;;  %v4594_v13 = vunpack.c.h.bf16 %v4427_v58 }
 0x20d   : > { %3297 = vst.msk [vmem:[#allocation3 + $0x70] sm:$0xff] %vm7203_vm1, %v3263_v59  ;;  %v4591_v21 = vunpack.c.l.bf16 %v4426_v7  ;;  %v4592_v43 = vunpack.c.h.bf16 %v4426_v7 }
 0x20e   : > { %4560 = vst.msk [vmem:[%s6953_s11 + $0x24] sm:$0xf] %vm4550_vm15, %v5209_v4  ;;  %v4695_v34 = vmul.f32 %v4593_v54, %v4593_v54  ;;  %v4635_v0 = vsel %vm4615_vm3, %v4593_v54, 0.0  ;;  %v4696_v2 = vmul.f32 %v4594_v13, %v4594_v13  ;;  %v4637_v9 = vsel %vm4615_vm3, %v4594_v13, 0.0 }
 0x20f   : > { %v4631_v46 = vsel %vm4615_vm3, %v4591_v21, 0.0  ;;  %v4693_v42 = vmul.f32 %v4591_v21, %v4591_v21  ;;  %v4694_v55 = vmul.f32 %v4592_v43, %v4592_v43  ;;  %v4633_v25 = vsel %vm4615_vm3, %v4592_v43, 0.0 }
 0x210   : > { %v2766_v8 = vpop.permute.xlu1 %2765  ;;  %v4632_v44 = vadd.f32 %v4631_v46, %v4630_v56  ;;  %v4736_v62 = vsel %vm4615_vm3, %v4695_v34, 0.0  ;;  %v4738_v3 = vsel %vm4615_vm3, %v4696_v2, 0.0 }
 0x211   : > { %2799 = vst.msk [vmem:[#allocation3 + $0x78] sm:$0xff] %vm7204_vm2, %v2766_v8  ;;  %v4732_v26 = vsel %vm4615_vm3, %v4693_v42, 0.0  ;;  %v4734_v20 = vsel %vm4615_vm3, %v4694_v55, 0.0 }
 0x212   : > { %v4634_v61 = vadd.f32 %v4633_v25, %v4632_v44  ;;  %v4733_v33 = vadd.f32 %v4732_v26, %v4731_v38 }
 0x214   : > { %v3087_v15 = vpop.permute.xlu1 %3086  ;;  %v4636_v35 = vadd.f32 %v4635_v0, %v4634_v61  ;;  %v4735_v1 = vadd.f32 %v4734_v20, %v4733_v33 }
 0x215   : > { %3120 = vst.msk [vmem:[#allocation3 + $0x78] sm:$0xff] %vm7205_vm4, %v3087_v15  ;;  %v3808_v16 = vpop.permute.xlu0 %3807 }
 0x216   : > { %3842 = vst.msk [vmem:[#allocation3 + $0x70] sm:$0xff] %vm3827_vm10, %v3808_v16  ;;  %v4737_v39 = vadd.f32 %v4736_v62, %v4735_v1  ;;  %v4638_v6 = vadd.f32 %v4637_v9, %v4636_v35 }
 0x218   : > { %v3265_v18 = vpop.permute.xlu1 %3264  ;;  %v4739_v17 = vadd.f32 %v4738_v3, %v4737_v39 }
 0x219   : > { %3298 = vst.msk [vmem:[#allocation3 + $0x78] sm:$0xff] %vm7206_vm14, %v3265_v18  ;;  %v4129_v32 = vpop.permute.xlu0 %4128 }
 0x21a   : > { %4163 = vst.msk [vmem:[#allocation3 + $0x70] sm:$0xff] %vm4148_vm11, %v4129_v32 }
 0x21c   : > { %v3810_v50 = vpop.permute.xlu1 %3809 }
 0x21d   : > { %3843 = vst.msk [vmem:[#allocation3 + $0x78] sm:$0xff] %vm3827_vm10, %v3810_v50  ;;  %vm4788_vm10 = vcmask 58368  }
 0x220   : > { %v4131_v60 = vpop.permute.xlu1 %4130 }
 0x221   : > { %4164 = vst.msk [vmem:[#allocation3 + $0x78] sm:$0xff] %vm4148_vm11, %v4131_v60  ;;  %v4179_v57 = vld [vmem:[#allocation3 + $0x70] sm:$0xff] }
 0x222   : > { %5285 = vmatprep.mubr.msk.bf16.mxu1 %vm4208_vm9, %v4179_v57 }
 0x228   : > { %v4180_v24 = vld [vmem:[#allocation3 + $0x78] sm:$0xff] }
 0x229   : > { %5286 = vmatmul.mubr.msk.bf16.gmra.mrb[12].mxu1 %vm4208_vm9, %v4180_v24  ;;  %vm4786_vm9 = vcmask 1040384  }
 0x240   : > { %v5271_v30 = vpop.f32.mrb[12].mxu0 }
 0x241   : > { %v4352_v19 = vadd.f32 %v5271_v30, %v6945_v37  ;;  %v4343_v27 = vpop.f32.mrb[13].mxu0 }
 0x242   : > { %v4344_v49 = vadd.f32 %v6945_v37, %v4343_v27  ;;  %v5272_v56 = vpop.f32.mrb[14].mxu0 }
 0x243   : > { %v5214_v22 = vpack.c.bf16 %v4352_v19, %v4352_v19  ;;  %v4355_v53 = vadd.f32 %v5272_v56, %v6945_v37  ;;  %v4346_v41 = vpop.f32.mrb[15].mxu0 }
 0x244   : > { %v5212_v31 = vpack.c.bf16 %v4344_v49, %v4344_v49  ;;  %v4347_v38 = vadd.f32 %v6945_v37, %v4346_v41 }
 0x245   : > { %4565 = vst.msk [vmem:[%s6953_s11 + $0x38] sm:$0xf] %vm4550_vm15, %v5214_v22  ;;  %v4429_v48 = vpack.c.bf16 %v4355_v53, %v4352_v19  ;;  %v5215_v10 = vpack.c.bf16 %v4355_v53, %v4355_v53 }
 0x246   : > { %4563 = vst.msk [vmem:[%s6953_s11 + $0x30] sm:$0xf] %vm4550_vm15, %v5212_v31  ;;  %v4428_v52 = vpack.c.bf16 %v4347_v38, %v4344_v49  ;;  %v5213_v45 = vpack.c.bf16 %v4347_v38, %v4347_v38 }
 0x247   : > { %4566 = vst.msk [vmem:[%s6953_s11 + $0x3c] sm:$0xf] %vm4550_vm15, %v5215_v10  ;;  %v4597_v47 = vunpack.c.l.bf16 %v4429_v48  ;;  %v4598_v12 = vunpack.c.h.bf16 %v4429_v48 }
 0x248   : > { %4564 = vst.msk [vmem:[%s6953_s11 + $0x34] sm:$0xf] %vm4550_vm15, %v5213_v45  ;;  %v4595_v36 = vunpack.c.l.bf16 %v4428_v52  ;;  %v4596_v29 = vunpack.c.h.bf16 %v4428_v52 }
 0x249   : > { %v4699_v11 = vmul.f32 %v4597_v47, %v4597_v47  ;;  %v4643_v14 = vsel %vm4615_vm3, %v4597_v47, 0.0  ;;  %v4700_v7 = vmul.f32 %v4598_v12, %v4598_v12  ;;  %v4645_v21 = vsel %vm4615_vm3, %v4598_v12, 0.0 }
 0x24a   : > { %v4639_v23 = vsel %vm4615_vm3, %v4595_v36, 0.0  ;;  %v4697_v51 = vmul.f32 %v4595_v36, %v4595_v36  ;;  %v4698_v5 = vmul.f32 %v4596_v29, %v4596_v29  ;;  %v4641_v59 = vsel %vm4615_vm3, %v4596_v29, 0.0 }
 0x24b   : > { %v4640_v63 = vadd.f32 %v4639_v23, %v4638_v6  ;;  %v4744_v43 = vsel %vm4615_vm3, %v4699_v11, 0.0  ;;  %v4746_v42 = vsel %vm4615_vm3, %v4700_v7, 0.0 }
 0x24c   : > { %v4740_v40 = vsel %vm4615_vm3, %v4697_v51, 0.0  ;;  %v4742_v4 = vsel %vm4615_vm3, %v4698_v5, 0.0 }
 0x24d   : > { %v4642_v28 = vadd.f32 %v4641_v59, %v4640_v63  ;;  %v4741_v58 = vadd.f32 %v4740_v40, %v4739_v17 }
 0x24f   : > { %v4644_v8 = vadd.f32 %v4643_v14, %v4642_v28  ;;  %v4743_v54 = vadd.f32 %v4742_v4, %v4741_v58 }
 0x251   : > { %v4745_v13 = vadd.f32 %v4744_v43, %v4743_v54  ;;  %v4646_v46 = vadd.f32 %v4645_v21, %v4644_v8 }
 0x253   : > { %v4747_v55 = vadd.f32 %v4746_v42, %v4745_v13 }
 0x26d   : > { %v5275_v44 = vpop.f32.mrb[0].mxu1 }
 0x26e   : > { %v4368_v15 = vadd.f32 %v5275_v44, %v6945_v37  ;;  %v4359_v34 = vpop.f32.mrb[1].mxu1 }
 0x26f   : > { %v4360_v25 = vadd.f32 %v6945_v37, %v4359_v34  ;;  %v5276_v26 = vpop.f32.mrb[2].mxu1 }
 0x270   : > { %v5218_v61 = vpack.c.bf16 %v4368_v15, %v4368_v15  ;;  %v4371_v33 = vadd.f32 %v5276_v26, %v6945_v37  ;;  %v4362_v16 = vpop.f32.mrb[3].mxu1 }
 0x271   : > { %v5216_v0 = vpack.c.bf16 %v4360_v25, %v4360_v25  ;;  %v4363_v2 = vadd.f32 %v6945_v37, %v4362_v16 }
 0x272   : > { %4569 = vst.msk [vmem:[%s6953_s11 + $0x48] sm:$0xf] %vm4550_vm15, %v5218_v61  ;;  %v4431_v20 = vpack.c.bf16 %v4371_v33, %v4368_v15  ;;  %v5219_v35 = vpack.c.bf16 %v4371_v33, %v4371_v33 }
 0x273   : > { %4567 = vst.msk [vmem:[%s6953_s11 + $0x40] sm:$0xf] %vm4550_vm15, %v5216_v0  ;;  %v4430_v1 = vpack.c.bf16 %v4363_v2, %v4360_v25  ;;  %v5217_v18 = vpack.c.bf16 %v4363_v2, %v4363_v2 }
 0x274   : > { %4570 = vst.msk [vmem:[%s6953_s11 + $0x4c] sm:$0xf] %vm4550_vm15, %v5219_v35  ;;  %v4601_v9 = vunpack.c.l.bf16 %v4431_v20  ;;  %v4602_v6 = vunpack.c.h.bf16 %v4431_v20 }
 0x275   : > { %4568 = vst.msk [vmem:[%s6953_s11 + $0x44] sm:$0xf] %vm4550_vm15, %v5217_v18  ;;  %v4599_v62 = vunpack.c.l.bf16 %v4430_v1  ;;  %v4600_v39 = vunpack.c.h.bf16 %v4430_v1 }
 0x276   : > { %v4703_v60 = vmul.f32 %v4601_v9, %v4601_v9  ;;  %v4651_v27 = vsel %vm4615_vm3, %v4601_v9, 0.0  ;;  %v4704_v49 = vmul.f32 %v4602_v6, %v4602_v6  ;;  %v4653_v41 = vsel %vm4615_vm3, %v4602_v6, 0.0 }
 0x277   : > { %v4647_v32 = vsel %vm4615_vm3, %v4599_v62, 0.0  ;;  %v4701_v3 = vmul.f32 %v4599_v62, %v4599_v62  ;;  %v4702_v17 = vmul.f32 %v4600_v39, %v4600_v39  ;;  %v4649_v57 = vsel %vm4615_vm3, %v4600_v39, 0.0 }
 0x278   : > { %v4648_v50 = vadd.f32 %v4647_v32, %v4646_v46  ;;  %v4752_v31 = vsel %vm4615_vm3, %v4703_v60, 0.0  ;;  %v4754_v10 = vsel %vm4615_vm3, %v4704_v49, 0.0 }
 0x279   : > { %v4748_v24 = vsel %vm4615_vm3, %v4701_v3, 0.0  ;;  %v4750_v56 = vsel %vm4615_vm3, %v4702_v17, 0.0 }
 0x27a   : > { %v4650_v30 = vadd.f32 %v4649_v57, %v4648_v50  ;;  %v4749_v19 = vadd.f32 %v4748_v24, %v4747_v55 }
 0x27c   : > { %v4652_v22 = vadd.f32 %v4651_v27, %v4650_v30  ;;  %v4751_v53 = vadd.f32 %v4750_v56, %v4749_v19 }
 0x27e   : > { %v4753_v38 = vadd.f32 %v4752_v31, %v4751_v53  ;;  %v4654_v48 = vadd.f32 %v4653_v41, %v4652_v22 }
 0x280   : > { %v4755_v52 = vadd.f32 %v4754_v10, %v4753_v38 }
 0x29d   : > { %v5279_v45 = vpop.f32.mrb[4].mxu1 }
 0x29e   : > { %v4384_v47 = vadd.f32 %v5279_v45, %v6945_v37  ;;  %v4375_v36 = vpop.f32.mrb[5].mxu1 }
 0x29f   : > { %v4376_v29 = vadd.f32 %v6945_v37, %v4375_v36  ;;  %v5280_v12 = vpop.f32.mrb[6].mxu1 }
 0x2a0   : > { %v5222_v23 = vpack.c.bf16 %v4384_v47, %v4384_v47  ;;  %v4387_v51 = vadd.f32 %v5280_v12, %v6945_v37  ;;  %v4378_v5 = vpop.f32.mrb[7].mxu1 }
 0x2a1   : > { %v5220_v63 = vpack.c.bf16 %v4376_v29, %v4376_v29  ;;  %v4379_v11 = vadd.f32 %v6945_v37, %v4378_v5 }
 0x2a2   : > { %4573 = vst.msk [vmem:[%s6953_s11 + $0x58] sm:$0xf] %vm4550_vm15, %v5222_v23  ;;  %v4433_v59 = vpack.c.bf16 %v4387_v51, %v4384_v47  ;;  %v5223_v40 = vpack.c.bf16 %v4387_v51, %v4387_v51 }
 0x2a3   : > { %4571 = vst.msk [vmem:[%s6953_s11 + $0x50] sm:$0xf] %vm4550_vm15, %v5220_v63  ;;  %v4432_v28 = vpack.c.bf16 %v4379_v11, %v4376_v29  ;;  %v5221_v58 = vpack.c.bf16 %v4379_v11, %v4379_v11 }
 0x2a4   : > { %4574 = vst.msk [vmem:[%s6953_s11 + $0x5c] sm:$0xf] %vm4550_vm15, %v5223_v40  ;;  %v4605_v14 = vunpack.c.l.bf16 %v4433_v59  ;;  %v4606_v8 = vunpack.c.h.bf16 %v4433_v59 }
 0x2a5   : > { %4572 = vst.msk [vmem:[%s6953_s11 + $0x54] sm:$0xf] %vm4550_vm15, %v5221_v58  ;;  %v4603_v7 = vunpack.c.l.bf16 %v4432_v28  ;;  %v4604_v4 = vunpack.c.h.bf16 %v4432_v28 }
 0x2a6   : > { %v4707_v46 = vmul.f32 %v4605_v14, %v4605_v14  ;;  %v4659_v34 = vsel %vm4615_vm3, %v4605_v14, 0.0  ;;  %v4708_v25 = vmul.f32 %v4606_v8, %v4606_v8  ;;  %v4661_v16 = vsel %vm4615_vm3, %v4606_v8, 0.0 }
 0x2a7   : > { %v4655_v54 = vsel %vm4615_vm3, %v4603_v7, 0.0  ;;  %v4705_v21 = vmul.f32 %v4603_v7, %v4603_v7  ;;  %v4706_v43 = vmul.f32 %v4604_v4, %v4604_v4  ;;  %v4657_v42 = vsel %vm4615_vm3, %v4604_v4, 0.0 }
 0x2a8   : > { %v4656_v13 = vadd.f32 %v4655_v54, %v4654_v48  ;;  %v4760_v0 = vsel %vm4615_vm3, %v4707_v46, 0.0  ;;  %v4762_v35 = vsel %vm4615_vm3, %v4708_v25, 0.0 }
 0x2a9   : > { %v4756_v55 = vsel %vm4615_vm3, %v4705_v21, 0.0  ;;  %v4758_v26 = vsel %vm4615_vm3, %v4706_v43, 0.0 }
 0x2aa   : > { %v4658_v44 = vadd.f32 %v4657_v42, %v4656_v13  ;;  %v4757_v15 = vadd.f32 %v4756_v55, %v4755_v52 }
 0x2ac   : > { %v4660_v61 = vadd.f32 %v4659_v34, %v4658_v44  ;;  %v4759_v33 = vadd.f32 %v4758_v26, %v4757_v15 }
 0x2ae   : > { %v4761_v2 = vadd.f32 %v4760_v0, %v4759_v33  ;;  %v4662_v20 = vadd.f32 %v4661_v16, %v4660_v61 }
 0x2b0   : > { %v4763_v1 = vadd.f32 %v4762_v35, %v4761_v2 }
 0x2cd   : > { %v5283_v18 = vpop.f32.mrb[8].mxu1 }
 0x2ce   : > { %v4400_v9 = vadd.f32 %v5283_v18, %v6945_v37  ;;  %v4391_v62 = vpop.f32.mrb[9].mxu1 }
 0x2cf   : > { %v4392_v39 = vadd.f32 %v6945_v37, %v4391_v62  ;;  %v5284_v6 = vpop.f32.mrb[10].mxu1 }
 0x2d0   : > { %v5226_v32 = vpack.c.bf16 %v4400_v9, %v4400_v9  ;;  %v4403_v3 = vadd.f32 %v5284_v6, %v6945_v37  ;;  %v4394_v17 = vpop.f32.mrb[11].mxu1 }
 0x2d1   : > { %v5224_v50 = vpack.c.bf16 %v4392_v39, %v4392_v39  ;;  %v4395_v60 = vadd.f32 %v6945_v37, %v4394_v17 }
 0x2d2   : > { %4577 = vst.msk [vmem:[%s6953_s11 + $0x68] sm:$0xf] %vm4550_vm15, %v5226_v32  ;;  %v4435_v57 = vpack.c.bf16 %v4403_v3, %v4400_v9  ;;  %v5227_v24 = vpack.c.bf16 %v4403_v3, %v4403_v3 }
 0x2d3   : > { %4575 = vst.msk [vmem:[%s6953_s11 + $0x60] sm:$0xf] %vm4550_vm15, %v5224_v50  ;;  %v4434_v30 = vpack.c.bf16 %v4395_v60, %v4392_v39  ;;  %v5225_v19 = vpack.c.bf16 %v4395_v60, %v4395_v60 }
 0x2d4   : > { %4578 = vst.msk [vmem:[%s6953_s11 + $0x6c] sm:$0xf] %vm4550_vm15, %v5227_v24  ;;  %v4609_v27 = vunpack.c.l.bf16 %v4435_v57  ;;  %v4610_v22 = vunpack.c.h.bf16 %v4435_v57 }
 0x2d5   : > { %4576 = vst.msk [vmem:[%s6953_s11 + $0x64] sm:$0xf] %vm4550_vm15, %v5225_v19  ;;  %v4607_v49 = vunpack.c.l.bf16 %v4434_v30  ;;  %v4608_v56 = vunpack.c.h.bf16 %v4434_v30 }
 0x2d6   : > { %v4711_v48 = vmul.f32 %v4609_v27, %v4609_v27  ;;  %v4667_v36 = vsel %vm4615_vm3, %v4609_v27, 0.0  ;;  %v4712_v29 = vmul.f32 %v4610_v22, %v4610_v22  ;;  %v4669_v5 = vsel %vm4615_vm3, %v4610_v22, 0.0 }
 0x2d7   : > { %v4663_v53 = vsel %vm4615_vm3, %v4607_v49, 0.0  ;;  %v4709_v41 = vmul.f32 %v4607_v49, %v4607_v49  ;;  %v4710_v31 = vmul.f32 %v4608_v56, %v4608_v56  ;;  %v4665_v10 = vsel %vm4615_vm3, %v4608_v56, 0.0 }
 0x2d8   : > { %v4664_v38 = vadd.f32 %v4663_v53, %v4662_v20  ;;  %v4768_v63 = vsel %vm4615_vm3, %v4711_v48, 0.0  ;;  %v4770_v40 = vsel %vm4615_vm3, %v4712_v29, 0.0 }
 0x2d9   : > { %v4764_v52 = vsel %vm4615_vm3, %v4709_v41, 0.0  ;;  %v4766_v12 = vsel %vm4615_vm3, %v4710_v31, 0.0 }
 0x2da   : > { %v4666_v45 = vadd.f32 %v4665_v10, %v4664_v38  ;;  %v4765_v47 = vadd.f32 %v4764_v52, %v4763_v1 }
 0x2dc   : > { %v4668_v23 = vadd.f32 %v4667_v36, %v4666_v45  ;;  %v4767_v51 = vadd.f32 %v4766_v12, %v4765_v47 }
 0x2de   : > { %v4769_v11 = vadd.f32 %v4768_v63, %v4767_v51  ;;  %v4670_v59 = vadd.f32 %v4669_v5, %v4668_v23 }
 0x2e0   : > { %v4771_v28 = vadd.f32 %v4770_v40, %v4769_v11 }
 0x2fc   : > { %v5287_v58 = vpop.f32.mrb[12].mxu1 }
 0x2fd   : > { %v4416_v14 = vadd.f32 %v5287_v58, %v6945_v37  ;;  %v4407_v7 = vpop.f32.mrb[13].mxu1 }
 0x2fe   : > { %v4408_v4 = vadd.f32 %v6945_v37, %v4407_v7  ;;  %v5288_v8 = vpop.f32.mrb[14].mxu1 }
 0x2ff   : > { %v5230_v54 = vpack.c.bf16 %v4416_v14, %v4416_v14  ;;  %v4419_v21 = vadd.f32 %v5288_v8, %v6945_v37  ;;  %v4410_v43 = vpop.f32.mrb[15].mxu1 }
 0x300   : > { %v5228_v13 = vpack.c.bf16 %v4408_v4, %v4408_v4  ;;  %v4411_v46 = vadd.f32 %v6945_v37, %v4410_v43 }
 0x301   : > { %4581 = vst.msk [vmem:[%s6953_s11 + $0x78] sm:$0xf] %vm4550_vm15, %v5230_v54  ;;  %v4437_v42 = vpack.c.bf16 %v4419_v21, %v4416_v14  ;;  %v5231_v55 = vpack.c.bf16 %v4419_v21, %v4419_v21 }
 0x302   : > { %4579 = vst.msk [vmem:[%s6953_s11 + $0x70] sm:$0xf] %vm4550_vm15, %v5228_v13  ;;  %v4436_v44 = vpack.c.bf16 %v4411_v46, %v4408_v4  ;;  %v5229_v15 = vpack.c.bf16 %v4411_v46, %v4411_v46 }
 0x303   : > { %4582 = vst.msk [vmem:[%s6953_s11 + $0x7c] sm:$0xf] %vm4550_vm15, %v5231_v55  ;;  %v4613_v34 = vunpack.c.l.bf16 %v4437_v42  ;;  %v4614_v61 = vunpack.c.h.bf16 %v4437_v42 }
 0x304   : > { %4580 = vst.msk [vmem:[%s6953_s11 + $0x74] sm:$0xf] %vm4550_vm15, %v5229_v15  ;;  %v4611_v25 = vunpack.c.l.bf16 %v4436_v44  ;;  %v4612_v26 = vunpack.c.h.bf16 %v4436_v44 }
 0x305   : > { %v4715_v2 = vmul.f32 %v4613_v34, %v4613_v34  ;;  %v4675_v9 = vsel %vm4615_vm3, %v4613_v34, 0.0  ;;  %v4716_v62 = vmul.f32 %v4614_v61, %v4614_v61  ;;  %v4677_v3 = vsel %vm4615_vm3, %v4614_v61, 0.0 }
 0x306   : > { %v4671_v33 = vsel %vm4615_vm3, %v4611_v25, 0.0  ;;  %v4713_v16 = vmul.f32 %v4611_v25, %v4611_v25  ;;  %v4714_v37 = vmul.f32 %v4612_v26, %v4612_v26  ;;  %v4673_v20 = vsel %vm4615_vm3, %v4612_v26, 0.0 }
 0x307   : > { %v4672_v0 = vadd.f32 %v4671_v33, %v4670_v59  ;;  %v4776_v17 = vsel %vm4615_vm3, %v4715_v2, 0.0  ;;  %v4778_v57 = vsel %vm4615_vm3, %v4716_v62, 0.0 }
 0x308   : > { %v4772_v35 = vsel %vm4615_vm3, %v4713_v16, 0.0  ;;  %v4774_v39 = vsel %vm4615_vm3, %v4714_v37, 0.0 }
 0x309   : > { %v4674_v1 = vadd.f32 %v4673_v20, %v4672_v0  ;;  %v4773_v18 = vadd.f32 %v4772_v35, %v4771_v28 }
 0x30b   : > { %v4676_v6 = vadd.f32 %v4675_v9, %v4674_v1  ;;  %v4775_v32 = vadd.f32 %v4774_v39, %v4773_v18 }
 0x30d   : > { %v4678_v50 = vadd.f32 %v4677_v3, %v4676_v6  ;;  %v4777_v60 = vadd.f32 %v4776_v17, %v4775_v32 }
 0x30f   : > { %v4679_v24 = vrot.slane %v4678_v50, 4  ;;  %v4779_v30 = vadd.f32 %v4778_v57, %v4777_v60 }
 0x311   : > { %v4680_v19 = vadd.f32 %v4679_v24, %v4678_v50  ;;  %v4780_v27 = vrot.slane %v4779_v30, 4 }
 0x313   : > { %v4681_v49 = vrot.slane %v4680_v19, 2  ;;  %v4781_v56 = vadd.f32 %v4780_v27, %v4779_v30 }
 0x315   : > { %v4682_v22 = vadd.f32 %v4681_v49, %v4680_v19  ;;  %v4782_v53 = vrot.slane %v4781_v56, 2 }
 0x317   : > { %v4683_v41 = vrot.slane %v4682_v22, 1  ;;  %v4783_v31 = vadd.f32 %v4782_v53, %v4781_v56 }
 0x319   : > { %v4784_v38 = vrot.slane %v4783_v31, 1  ;;  %v4684_v48 = vadd.f32 %v4683_v41, %v4682_v22 }
 0x31b   : > { %v4785_v10 = vadd.f32 %v4784_v38, %v4783_v31 }
 0x31d   : > { %v4787_v52 = vsel %vm4786_vm9, %v4684_v48, %v4785_v10 }
 0x31e   : > { %4789 = vst.msk [vmem:[%s262_s20] sm:$0x3] %vm4788_vm10, %v4787_v52 }
 0x31f PF: > { %s17_s21 = sadd.s32 1, %s5377_s21  }
 0x320   : > { %p14_p4 = scmp.ge.s32.totalorder %s17_s21, 4  }
 0x322   :  { %16 = sbr.rel (!%p14_p4) target bundleno = 1 (0x1), region = 85 }

// kernel: wide_basic_forward_nchw.5
= control target key start
LH: loop header
LB: loop body
LE: loop exit
PB: predicated region body
PF: predicated region fallthrough
CT: control target
= control target key end

     0   :  { %s5755_s27 = smov 0   ;;  %s7546_s0 = inlined_call_operand.vmem [shape: bf16[2,16,16,8], index: 0, kind: input, shape index: {}]   ;;  %s7547_s1 = inlined_call_operand.vmem [shape: f32[1,8], index: 1, kind: input, shape index: {}]   ;;  %s7548_s2 = inlined_call_operand.vmem [shape: f32[1,8], index: 2, kind: input, shape index: {}]   ;;  %s7549_s3 = inlined_call_operand.vmem [shape: bf16[72,8], index: 3, kind: input, shape index: {}]   ;;  %s7550_s4 = inlined_call_operand.vmem [shape: f32[1,8], index: 4, kind: input, shape index: {}]   ;;  %s7551_s5 = inlined_call_operand.vmem [shape: f32[2,16,16,4], index: 5, kind: input, shape index: {}]   ;;  %s7552_s6 = inlined_call_operand.vmem [shape: f32[4,8], index: 6, kind: input, shape index: {}]   ;;  %s7553_s7 = inlined_call_operand.vmem [shape: f32[1,8], index: 7, kind: input, shape index: {}]   ;;  %s7554_s8 = inlined_call_operand.vmem [shape: f32[2,16,16,8], index: 8, kind: output, shape index: {}]  }
   0x1 LB: > { %s5061_s28 = sadd.s32 4294967295, %s5699_s27   ;;  %p5065_p0 = scmp.ge.s32.totalorder %s5699_s27, 1  ;;  %s5699_s27 = sphi %s5755_s27, %s18_s27  }
   0x2   : > { %p272_p1 = scmp.lt.s32.totalorder %s5699_s27, 3 }
   0x4   : > { %p273_p2 = pnand %p5065_p0, %p272_p1 }
   0x5   : > { %vm501_vm0 = vcmask (!%p273_p2), 60416   ;;  %vm504_vm1 = vcmask (!%p273_p2), 57344   ;;  %vm511_vm2 = vsmask.f32 (!%p273_p2), 256  ;;  %v5701_v0 = vmov (!%p273_p2), 0   ;;  %p311_p3 = scmp.lt.s32.totalorder (!%p273_p2), %s5061_s28, 1 }
   0x6   : > { %276 = sbr.rel (%p273_p2) target bundleno = 780 (0x30c), region = 52  ;;  %502 = vst.msk [vmem:[#allocation2] sm:$0xf] (!%p273_p2), %vm501_vm0, %v5701_v0  ;;  %503 = vst.msk [vmem:[#allocation2 + $0x4] sm:$0xf] (!%p273_p2), %vm501_vm0, %v5701_v0  ;;  %vm1945_vm5 = vcmask (!%p273_p2), 1042432  }
   0x7   : > { %505 = vst.msk [vmem:[#allocation2 + $0x8] sm:$0x1] (!%p273_p2), %vm504_vm1, %v5701_v0  ;;  %509 = vst.msk [vmem:[#allocation2 + $0xd4] sm:$0x1] (!%p273_p2), %vm504_vm1, %v5701_v0  ;;  %vm567_vm4 = vsmask.f32 (!%p273_p2), 7938 }
   0x8   : > { %507 = vst.msk [vmem:[#allocation2 + $0xcc] sm:$0xf] (!%p273_p2), %vm501_vm0, %v5701_v0  ;;  %508 = vst.msk [vmem:[#allocation2 + $0xd0] sm:$0xf] (!%p273_p2), %vm501_vm0, %v5701_v0  ;;  %vm1946_vm6 = vcmask (!%p273_p2), 1046532   ;;  %s5702_s15 = smov (!%p273_p2), 16  }
   0x9   : > { %vm5771_vm3 = vmand (!%p273_p2), %vm504_vm1, %vm511_vm2  ;;  %v519_v2 = vld [vmem:[#allocation2 + $0x18] sm:$0x1] (!%p273_p2)  ;;  %v516_v4 = vld [vmem:[#allocation2 + $0xc] sm:$0x1] (!%p273_p2)  ;;  %vm1349_vm9 = vsmask.f32 (!%p273_p2), 3328 }
   0xa   : > { %v520_v3 = vsel (!%p273_p2), %vm5771_vm3, 0, %v519_v2  ;;  %v522_v5 = vld [vmem:[#allocation2 + $0x24] sm:$0x1] (!%p273_p2)  ;;  %v517_v6 = vsel (!%p273_p2), %vm5771_vm3, 0, %v516_v4  ;;  %v525_v8 = vld [vmem:[#allocation2 + $0x30] sm:$0x1] (!%p273_p2)  ;;  %vm5785_vm7 = vmand (!%p273_p2), %vm504_vm1, %vm567_vm4 }
   0xb   : > { %521 = vst [vmem:[#allocation2 + $0x18] sm:$0x1] (!%p273_p2), %v520_v3  ;;  %v523_v7 = vsel (!%p273_p2), %vm5771_vm3, 0, %v522_v5  ;;  %518 = vst [vmem:[#allocation2 + $0xc] sm:$0x1] (!%p273_p2), %v517_v6  ;;  %v526_v10 = vsel (!%p273_p2), %vm5771_vm3, 0, %v525_v8 }
   0xc   : > { %524 = vst [vmem:[#allocation2 + $0x24] sm:$0x1] (!%p273_p2), %v523_v7  ;;  %v572_v11 = vld [vmem:[#allocation2 + $0x14] sm:$0x1] (!%p273_p2)  ;;  %vm5794_vm8 = vmor (!%p273_p2), %vm1945_vm5, %vm1946_vm6  ;;  %v5806_v13 = vld [vmem:[%s7547_s1] ss:$0 sm:$0xff] (!%p273_p2) }
   0xd   : > { %s7643_s28 = smov (!%p311_p3, %s5061_s28), 1  ;;  %527 = vst [vmem:[#allocation2 + $0x30] sm:$0x1] %v526_v10  ;;  %v573_v14 = vsel %vm5785_vm7, 0, %v572_v11  ;;  %v1849_v16 = vld [vmem:[#allocation2] sm:$0xe]  ;;  %vm5854_vm13 = vmand %vm501_vm0, %vm567_vm4 }
   0xe   : > { %s5356_s29 = sshll.u32 %s7643_s28, 7  ;;  %v569_v15 = vld [vmem:[#allocation2 + $0x8] sm:$0x1]  ;;  %v1850_v17 = vld [vmem:[#allocation2 + $0x4] sm:$0xf]  ;;  %v5138_v19 = vrot.slane %v1849_v16, 9 }
   0xf   : > { %s5801_s10 = scalar_lea.vmem %s7546_s0, %s5356_s29  ;;  %574 = vst [vmem:[#allocation2 + $0x14] sm:$0x1] %v573_v14  ;;  %v570_v18 = vsel %vm5785_vm7, 0, %v569_v15  ;;  %v1950_v20 = vrot.slane %v1850_v17, 5  ;;  %v513_v21 = vld [vmem:[#allocation2] sm:$0x1] }
  0x10   : > { %v5455_v22 = vld [vmem:[%s5801_s10 + $0x8] sm:$0xff]   ;;  %571 = vst [vmem:[#allocation2 + $0x8] sm:$0x1] %v570_v18  ;;  %v514_v23 = vsel %vm5771_vm3, 0, %v513_v21  ;;  %v1302_v24 = vld [vmem:[#allocation2 + $0x4] sm:$0xf] }
  0x11   : > { %v5397_v25 = vunpack.c.l.bf16 %v5455_v22  ;;  %v5398_v26 = vunpack.c.h.bf16 %v5455_v22  ;;  %v5392_v27 = vld [vmem:[%s5801_s10] sm:$0xff]   ;;  %v5456_v28 = vld [vmem:[%s5801_s10 + $0x10] sm:$0xff]   ;;  %v1951_v29 = vsel %vm5794_vm8, %v5138_v19, %v1950_v20  ;;  %515 = vst [vmem:[#allocation2] sm:$0x1] %v514_v23  ;;  %vm1350_vm10 = vsmask.f32 7440 }
  0x12   : > { %v1362_v30 = vshll.u32 %v1302_v24, 16  ;;  %v1366_v31 = vshrl.u32 %v1302_v24, 16  ;;  %v5822_v32 = vld [vmem:[%s7548_s2] ss:$0 sm:$0xff]  ;;  %v5393_v35 = vunpack.c.l.bf16 %v5392_v27  ;;  %v5394_v36 = vunpack.c.h.bf16 %v5392_v27  ;;  %v5833_v45 = vld [vmem:[%s5801_s10 + $0x18] sm:$0xff]   ;;  %vm5847_vm12 = vmor %vm1349_vm9, %vm1350_vm10  ;;  %s5703_s16 = smov 8  }
  0x13   : > { %v400_v33 = vsub.f32 %v5397_v25, %v5806_v13  ;;  %v401_v34 = vsub.f32 %v5398_v26, %v5806_v13  ;;  %vm719_vm11 = vsmask.f32 4368  ;;  %v5401_v39 = vunpack.c.l.bf16 %v5456_v28  ;;  %v1051_v17 = vld [vmem:[#allocation2 + $0x18] sm:$0xf]  ;;  %s5704_s17 = smov 24   ;;  %s5705_s18 = smov 48  }
  0x14   : > { %v5826_v37 = vrot.slane %v1362_v30, 5  ;;  %v1368_v38 = vrot.slane %v1366_v31, 4  ;;  %v5402_v40 = vunpack.c.h.bf16 %v5456_v28  ;;  %v398_v43 = vsub.f32 %v5393_v35, %v5806_v13  ;;  %vm5863_vm14 = vmor %vm511_vm2, %vm719_vm11  ;;  %s5706_s19 = smov 40   ;;  %s5707_s20 = smov 64  }
  0x15   : > { %v439_v41 = vmul.f32 %v5822_v32, %v400_v33  ;;  %v440_v42 = vmul.f32 %v5822_v32, %v401_v34  ;;  %v399_v44 = vsub.f32 %v5394_v36, %v5806_v13  ;;  %v1952_v46 = vrot.slane %v1950_v20, 4  ;;  %s5708_s21 = smov 32   ;;  %s5709_s22 = smov 56  }
  0x16   : > { %v1369_v47 = vor.u32 %v1368_v38, %v5826_v37  ;;  %v402_v48 = vsub.f32 %v5401_v39, %v5806_v13  ;;  %v403_v49 = vsub.f32 %v5402_v40, %v5806_v13  ;;  %v437_v52 = vmul.f32 %v5822_v32, %v398_v43  ;;  %v1044_v39 = vld [vmem:[#allocation2 + $0xc] sm:$0xf]  ;;  %s5357_s30 = sshll.u32 %s7643_s28, 8 }
  0x17   : > { %v471_v50 = vmax.f32 %v439_v41, 0.0  ;;  %v472_v51 = vmax.f32 %v440_v42, 0.0  ;;  %v438_v53 = vmul.f32 %v5822_v32, %v399_v44  ;;  %v1851_v54 = vld [vmem:[#allocation2 + $0x8] sm:$0x1]  ;;  %v5405_v59 = vunpack.c.l.bf16 %v5833_v45  ;;  %s6604_s12 = scalar_lea.vmem %s7551_s5, %s5357_s30 }
  0x18   : > { %v1303_v55 = vld [vmem:[#allocation2 + $0x8] sm:$0x1]  ;;  %v1370_v56 = vrot.slane %v1369_v47, 4  ;;  %v441_v57 = vmul.f32 %v5822_v32, %v402_v48  ;;  %v442_v58 = vmul.f32 %v5822_v32, %v403_v49  ;;  %v1953_v60 = vrot.slane %v1851_v54, 5  ;;  %v1301_v61 = vld [vmem:[#allocation2] sm:$0xf] }
  0x19   : > { %v1372_v62 = vshll.u32 %v1303_v55, 16  ;;  %v5361_v63 = vpack.c.bf16 %v471_v50, %v471_v50  ;;  %v5362_v0 = vpack.c.bf16 %v472_v51, %v472_v51  ;;  %v1353_v2 = vshrl.u32 %v1301_v61, 16  ;;  %v575_v49 = vld [vmem:[#allocation2 + $0x20] sm:$0x1]  ;;  %v1048_v54 = vld [vmem:[#allocation2 + $0x14] sm:$0x1] }
  0x1a   : > { %v1356_v3 = vshll.u32 %v1301_v61, 16  ;;  %v469_v4 = vmax.f32 %v437_v52, 0.0  ;;  %v470_v5 = vmax.f32 %v438_v53, 0.0  ;;  %v1954_v6 = vsel %vm5794_vm8, %v1952_v46, %v1953_v60  ;;  %v4563_v18 = vld [vmem:[%s6604_s12 + $0xf0] sm:$0xff] }
  0x1b   : > { %v1374_v7 = vrot.slane %v1372_v62, 5  ;;  %v739_v8 = vshrl.u32 %v5361_v63, 16  ;;  %v742_v10 = vshll.u32 %v5361_v63, 16  ;;  %v5154_v11 = vcombine.low %v1951_v29, %v1954_v6  ;;  %v5458_v6 = vld [vmem:[%s5801_s10 + $0x20] sm:$0xff]  }
  0x1c   : > { %v1355_v14 = vrot.slane %v1353_v2, 4  ;;  %v1358_v15 = vrot.slane %v1356_v3, 5  ;;  %v747_v16 = vshrl.u32 %v5362_v0, 16  ;;  %v750_v20 = vshll.u32 %v5362_v0, 16  ;;  %v581_v0 = vld [vmem:[#allocation2 + $0x38] sm:$0x1] }
  0x1d   : > { %v741_v19 = vrot.slane %v739_v8, 7  ;;  %v5359_v21 = vpack.c.bf16 %v469_v4, %v469_v4  ;;  %v5406_v22 = vunpack.c.h.bf16 %v5833_v45  ;;  %2108 = vrot.lane.b32.xlu1 %v5154_v11, %s5702_s15  ;;  %v5360_v26 = vpack.c.bf16 %v470_v5, %v470_v5  ;;  %v1058_v8 = vld [vmem:[#allocation2 + $0x24] sm:$0xf]  ;;  %v5899_v11 = vld [vmem:[%s5801_s10 + $0x28] sm:$0xff]  }
  0x1e   : > { %v1359_v24 = vor.u32 %v1358_v15, %v1355_v14  ;;  %v5859_v25 = vrot.slane %v747_v16, 7  ;;  %v473_v27 = vmax.f32 %v441_v57, 0.0  ;;  %v1375_v35 = vsel %vm5847_vm12, %v1370_v56, %v1374_v7 }
  0x1f   : > { %v744_v29 = vor.u32 %v742_v10, %v741_v19  ;;  %v745_v30 = vrot.slane %v741_v19, 4  ;;  %v722_v31 = vshrl.u32 %v5359_v21, 16  ;;  %v725_v33 = vshll.u32 %v5359_v21, 16  ;;  %v528_v19 = vld [vmem:[#allocation2 + $0x3c] sm:$0x1] }
  0x20   : > { %v1360_v34 = vrot.slane %v1359_v24, 4  ;;  %v752_v36 = vor.u32 %v750_v20, %v5859_v25  ;;  %v730_v38 = vshrl.u32 %v5360_v26, 16  ;;  %v733_v42 = vshll.u32 %v5360_v26, 16 }
  0x21   : > { %v1052_v40 = vsel %vm5854_vm13, %v744_v29, %v1051_v17  ;;  %v724_v41 = vrot.slane %v722_v31, 7  ;;  %v474_v43 = vmax.f32 %v442_v58, 0.0  ;;  %v5363_v48 = vpack.c.bf16 %v473_v27, %v473_v27 }
  0x22   : > { %v1365_v44 = vsel %vm5847_vm12, %v1360_v34, %v5826_v37  ;;  %v753_v46 = vsel %vm5863_vm14, %v745_v30, %v752_v36  ;;  %1053 = vst [vmem:[#allocation2 + $0x18] sm:$0xf] %v1052_v40  ;;  %v732_v47 = vrot.slane %v730_v38, 7  ;;  %v578_v37 = vld [vmem:[#allocation2 + $0x2c] sm:$0x1]  ;;  %v404_v63 = vsub.f32 %v5405_v59, %v5806_v13 }
  0x23   : > { %v5122_v50 = vcombine.low %v1365_v44, %v1375_v35  ;;  %1054 = vst.msk [vmem:[#allocation2 + $0x1c] sm:$0xf] %vm501_vm0, %v753_v46  ;;  %v727_v51 = vor.u32 %v725_v33, %v724_v41  ;;  %v728_v52 = vrot.slane %v724_v41, 4  ;;  %v5364_v53 = vpack.c.bf16 %v474_v43, %v474_v43 }
  0x24   : > { %v735_v55 = vor.u32 %v733_v42, %v732_v47  ;;  %v737_v56 = vrot.slane %v732_v47, 4  ;;  %v756_v57 = vshrl.u32 %v5363_v48, 16  ;;  %v759_v58 = vshll.u32 %v5363_v48, 16 }
  0x25   : > { %1784 = vrot.lane.b32.xlu0 %v5122_v50, %s5703_s16  ;;  %v1045_v60 = vsel %vm5854_vm13, %v727_v51, %v1044_v39  ;;  %v764_v61 = vshrl.u32 %v5364_v53, 16  ;;  %v767_v62 = vshll.u32 %v5364_v53, 16  ;;  %v405_v4 = vsub.f32 %v5406_v22, %v5806_v13 }
  0x26   : > { %v736_v2 = vsel %vm5863_vm14, %v728_v52, %v735_v55  ;;  %1046 = vst [vmem:[#allocation2 + $0xc] sm:$0xf] %v1045_v60  ;;  %v758_v3 = vrot.slane %v756_v57, 7  ;;  %v1049_v5 = vsel %vm5771_vm3, %v737_v56, %v1048_v54  ;;  %v443_v45 = vmul.f32 %v5822_v32, %v404_v63  ;;  %v1065_v55 = vld [vmem:[#allocation2 + $0x30] sm:$0xf] }
  0x27   : > { %1047 = vst.msk [vmem:[#allocation2 + $0x10] sm:$0xf] %vm501_vm0, %v736_v2  ;;  %v5891_v7 = vrot.slane %v764_v61, 7  ;;  %1050 = vst [vmem:[#allocation2 + $0x14] sm:$0x1] %v1049_v5  ;;  %v576_v59 = vsel %vm5785_vm7, 0, %v575_v49  ;;  %v444_v16 = vmul.f32 %v5822_v32, %v405_v4  ;;  %v5409_v24 = vunpack.c.l.bf16 %v5458_v6 }
  0x28   : > { %v579_v10 = vsel %vm5785_vm7, 0, %v578_v37  ;;  %v761_v14 = vor.u32 %v759_v58, %v758_v3  ;;  %v762_v15 = vrot.slane %v758_v3, 4  ;;  %577 = vst [vmem:[#allocation2 + $0x20] sm:$0x1] %v576_v59  ;;  %v582_v17 = vsel %vm5785_vm7, 0, %v581_v0 }
  0x29   : > { %580 = vst [vmem:[#allocation2 + $0x2c] sm:$0x1] %v579_v10  ;;  %v754_v20 = vrot.slane %v5859_v25, 4  ;;  %v769_v21 = vor.u32 %v767_v62, %v5891_v7  ;;  %v475_v22 = vmax.f32 %v443_v45, 0.0  ;;  %583 = vst [vmem:[#allocation2 + $0x38] sm:$0x1] %v582_v17  ;;  %v5410_v30 = vunpack.c.h.bf16 %v5458_v6 }
  0x2a   : > { %v5634_v26 = vld [vmem:[#allocation2 + $0x18] sm:$0xff]   ;;  %v1059_v27 = vsel %vm5854_vm13, %v761_v14, %v1058_v8  ;;  %v476_v29 = vmax.f32 %v444_v16, 0.0  ;;  %v5413_v31 = vunpack.c.l.bf16 %v5899_v11  ;;  %v406_v38 = vsub.f32 %v5409_v24, %v5806_v13 }
  0x2b   : > { %v770_v33 = vsel %vm5863_vm14, %v762_v15, %v769_v21  ;;  %1060 = vst [vmem:[#allocation2 + $0x24] sm:$0xf] %v1059_v27  ;;  %v5365_v34 = vpack.c.bf16 %v475_v22, %v475_v22  ;;  %v3939_v35 = vld [vmem:[#allocation2 + $0x18] sm:$0xe]  ;;  %v3940_v36 = vld [vmem:[#allocation2 + $0x1c] sm:$0xf]  ;;  %2287 = vrot.lane.b32.xlu1 %v5634_v26, %s5704_s17  ;;  %v407_v49 = vsub.f32 %v5410_v30, %v5806_v13  ;;  %v5414_v50 = vunpack.c.h.bf16 %v5899_v11 }
  0x2c   : > { %v529_v39 = vsel %vm5771_vm3, 0, %v528_v19  ;;  %v771_v40 = vrot.slane %v5891_v7, 4  ;;  %1061 = vst.msk [vmem:[#allocation2 + $0x28] sm:$0xf] %vm501_vm0, %v770_v33  ;;  %v5366_v41 = vpack.c.bf16 %v476_v29, %v476_v29  ;;  %v5266_v42 = vrot.slane %v3939_v35, 9  ;;  %v5637_v52 = vld [vmem:[#allocation2 + $0x18] sm:$0xff]  }
  0x2d   : > { %v4037_v43 = vrot.slane %v3940_v36, 5  ;;  %v5917_v44 = vld [vmem:[#allocation2 + $0x18] sm:$0xe]  ;;  %530 = vst [vmem:[#allocation2 + $0x3c] sm:$0x1] %v529_v39  ;;  %v773_v46 = vshrl.u32 %v5365_v34, 16  ;;  %v5922_v57 = vmul.f32 %v5822_v32, %v406_v38  ;;  %v408_v0 = vsub.f32 %v5413_v31, %v5806_v13 }
  0x2e   : > { %v776_v47 = vshll.u32 %v5365_v34, 16  ;;  %v2895_v48 = vld [vmem:[#allocation2 + $0xc] sm:$0xe]  ;;  %v781_v53 = vshrl.u32 %v5366_v41, 16  ;;  %v784_v54 = vshll.u32 %v5366_v41, 16  ;;  %v5203_v6 = vrot.slane %v5917_v44, 9 }
  0x2f   : > { %v5635_v51 = vld [vmem:[#allocation2 + $0xc] sm:$0xff]   ;;  %v5202_v56 = vrot.slane %v2895_v48, 9  ;;  %v775_v58 = vrot.slane %v773_v46, 7  ;;  %v2897_v60 = vld [vmem:[#allocation2 + $0x14] sm:$0x1]  ;;  %v5926_v61 = vsel %vm5794_vm8, %v5266_v42, %v4037_v43  ;;  %v5928_v62 = vrot.slane %v4037_v43, 4 }
  0x30   : > { %v2896_v37 = vld [vmem:[#allocation2 + $0x10] sm:$0xf]  ;;  %v2899_v63 = vld [vmem:[#allocation2 + $0x1c] sm:$0xf]  ;;  %2285 = vrot.lane.b32.xlu0 %v5635_v51, %s5704_s17  ;;  %v5932_v2 = vrot.slane %v781_v53, 7  ;;  %v2996_v4 = vrot.slane %v2897_v60, 5  ;;  %v409_v14 = vsub.f32 %v5414_v50, %v5806_v13  ;;  %v5939_v19 = vmul.f32 %v5822_v32, %v407_v49 }
  0x31   : > { %v2993_v3 = vrot.slane %v2896_v37, 5  ;;  %v1852_v5 = vld [vmem:[#allocation2 + $0xc] sm:$0xe]  ;;  %v778_v8 = vor.u32 %v776_v47, %v775_v58  ;;  %v779_v45 = vrot.slane %v775_v58, 4  ;;  %v1853_v59 = vld [vmem:[#allocation2 + $0x10] sm:$0xf]  ;;  %v5946_v27 = vmul.f32 %v5822_v32, %v408_v0 }
  0x32   : > { %v1854_v10 = vld [vmem:[#allocation2 + $0x14] sm:$0x1]  ;;  %v5139_v11 = vrot.slane %v1852_v5, 9  ;;  %v786_v15 = vor.u32 %v784_v54, %v5932_v2  ;;  %v788_v16 = vrot.slane %v5932_v2, 4  ;;  %v1957_v26 = vrot.slane %v1853_v59, 5 }
  0x33   : > { %v2995_v17 = vrot.slane %v2993_v3, 4  ;;  %v5636_v21 = vld [vmem:[#allocation2 + $0x24] sm:$0xff]   ;;  %v1066_v22 = vsel %vm5854_vm13, %v778_v8, %v1065_v55  ;;  %v2994_v24 = vsel %vm5794_vm8, %v5202_v56, %v2993_v3  ;;  %v1960_v33 = vrot.slane %v1854_v10, 5  ;;  %v1055_v34 = vld [vmem:[#allocation2 + $0x20] sm:$0x1]  ;;  %v5460_v44 = vld [vmem:[%s5801_s10 + $0x30] sm:$0xff]  }
  0x34   : > { %3329 = vrot.lane.b32.xlu0 %v5637_v52, %s5705_s18  ;;  %v787_v29 = vsel %vm5863_vm14, %v779_v45, %v786_v15  ;;  %1067 = vst [vmem:[#allocation2 + $0x30] sm:$0xf] %v1066_v22  ;;  %v5639_v30 = vld [vmem:[#allocation2 + $0x24] sm:$0xff]   ;;  %v3000_v35 = vrot.slane %v2899_v63, 5  ;;  %3331 = vrot.lane.b32.xlu1 %v5636_v21, %s5705_s18  ;;  %v5957_v36 = vsel %vm5794_vm8, %v5139_v11, %v1957_v26  ;;  %v1959_v38 = vrot.slane %v1957_v26, 4  ;;  %v5993_v11 = vld [vmem:[%s5801_s10 + $0x38] sm:$0xff]  }
  0x35   : > { %v2997_v31 = vsel %vm5794_vm8, %v2995_v17, %v2996_v4  ;;  %1068 = vst.msk [vmem:[#allocation2 + $0x34] sm:$0xf] %vm501_vm0, %v787_v29  ;;  %v1056_v39 = vsel %vm5771_vm3, %v754_v20, %v1055_v34  ;;  %v1062_v41 = vld [vmem:[#allocation2 + $0x2c] sm:$0x1]  ;;  %v3942_v42 = vld [vmem:[#allocation2 + $0x24] sm:$0xe]  ;;  %v5964_v43 = vmul.f32 %v5822_v32, %v409_v14  ;;  %v5417_v60 = vunpack.c.l.bf16 %v5460_v44 }
  0x36   : > { %v5218_v46 = vcombine.low %v2994_v24, %v2997_v31  ;;  %1057 = vst [vmem:[#allocation2 + $0x20] sm:$0x1] %v1056_v39  ;;  %v3002_v47 = vrot.slane %v3000_v35, 4  ;;  %v1063_v48 = vsel %vm5771_vm3, %v771_v40, %v1062_v41  ;;  %v3943_v49 = vld [vmem:[#allocation2 + $0x28] sm:$0xf]  ;;  %v5267_v50 = vrot.slane %v3942_v42, 9 }
  0x37   : > { %v1858_v25 = vld [vmem:[#allocation2 + $0x24] sm:$0xe]  ;;  %v5973_v20 = vsel %vm5794_vm8, %v1959_v38, %v1960_v33  ;;  %v5977_v51 = vsel %vm5794_vm8, %v5203_v6, %v3000_v35  ;;  %1064 = vst [vmem:[#allocation2 + $0x2c] sm:$0x1] %v1063_v48  ;;  %v4044_v52 = vrot.slane %v3943_v49, 5  ;;  %v5418_v5 = vunpack.c.h.bf16 %v5460_v44 }
  0x38   : > { %v1859_v53 = vld [vmem:[#allocation2 + $0x28] sm:$0xf]  ;;  %v5141_v54 = vrot.slane %v1858_v25, 9  ;;  %v1855_v55 = vld [vmem:[#allocation2 + $0x18] sm:$0xe]  ;;  %2289 = vrot.lane.b32.xlu0 %v5639_v30, %s5704_s17  ;;  %v5155_v7 = vcombine.low %v5957_v36, %v5973_v20  ;;  %v410_v30 = vsub.f32 %v5417_v60, %v5806_v13  ;;  %v5421_v38 = vunpack.c.l.bf16 %v5993_v11 }
  0x39   : > { %v1971_v40 = vrot.slane %v1859_v53, 5  ;;  %v1856_v56 = vld [vmem:[#allocation2 + $0x1c] sm:$0xf]  ;;  %v5140_v58 = vrot.slane %v1855_v55, 9  ;;  %v2353_v37 = vld [vmem:[#allocation2 + $0x18] sm:$0xf]  ;;  %v5984_v63 = vsel %vm5794_vm8, %v5267_v50, %v4044_v52  ;;  %v6005_v36 = vsub.f32 %v5418_v5, %v5806_v13 }
  0x3a   : > { %v1964_v0 = vrot.slane %v1856_v56, 5  ;;  %v2354_v3 = vld [vmem:[#allocation2 + $0x1c] sm:$0xf]  ;;  %v2423_v4 = vshrl.u32 %v2353_v37, 16  ;;  %v4046_v6 = vrot.slane %v4044_v52, 4  ;;  %v2426_v45 = vshll.u32 %v2353_v37, 16 }
  0x3b   : > { %v5988_v8 = vsel %vm5794_vm8, %v5141_v54, %v1971_v40  ;;  %v2432_v59 = vshll.u32 %v2354_v3, 16  ;;  %v5990_v10 = vld [vmem:[#allocation2 + $0x24] sm:$0xf]  ;;  %v1973_v14 = vrot.slane %v1971_v40, 4  ;;  %v2436_v21 = vshrl.u32 %v2354_v3, 16 }
  0x3c   : > { %v1966_v15 = vrot.slane %v1964_v0, 4  ;;  %v2425_v17 = vrot.slane %v2423_v4, 4  ;;  %v5638_v22 = vld [vmem:[#allocation2 + $0x30] sm:$0xff]   ;;  %3151 = vrot.lane.b32.xlu0 %v5218_v46, %s5706_s19  ;;  %v2428_v24 = vrot.slane %v2426_v45, 5  ;;  %v3467_v29 = vshrl.u32 %v5990_v10, 16 }
  0x3d   : > { %v5996_v26 = vrot.slane %v2432_v59, 5  ;;  %v3941_v31 = vld [vmem:[#allocation2 + $0x20] sm:$0x1]  ;;  %v6002_v35 = vsel %vm5794_vm8, %v5140_v58, %v1964_v0  ;;  %v5422_v39 = vunpack.c.h.bf16 %v5993_v11  ;;  %2291 = vrot.lane.b32.xlu1 %v5638_v22, %s5704_s17  ;;  %v6011_v49 = vmul.f32 %v5822_v32, %v410_v30  ;;  %v3398_v60 = vld [vmem:[#allocation2 + $0x28] sm:$0xf] }
  0x3e   : > { %v2900_v33 = vld [vmem:[#allocation2 + $0x20] sm:$0x1]  ;;  %v4040_v41 = vrot.slane %v3941_v31, 5  ;;  %v3944_v44 = vld [vmem:[#allocation2 + $0x2c] sm:$0x1]  ;;  %v2429_v48 = vor.u32 %v2428_v24, %v2425_v17  ;;  %v2438_v13 = vrot.slane %v2436_v21, 4 }
  0x3f   : > { %v1857_v34 = vld [vmem:[#allocation2 + $0x20] sm:$0x1]  ;;  %v3003_v42 = vrot.slane %v2900_v33, 5  ;;  %v1860_v46 = vld [vmem:[#allocation2 + $0x2c] sm:$0x1]  ;;  %v4047_v50 = vrot.slane %v3944_v44, 5 }
  0x40   : > { %v1974_v25 = vrot.slane %v1860_v46, 5  ;;  %v1967_v20 = vrot.slane %v1857_v34, 5  ;;  %v2355_v52 = vld [vmem:[#allocation2 + $0x20] sm:$0x1]  ;;  %v4041_v53 = vsel %vm5794_vm8, %v5928_v62, %v4040_v41  ;;  %v2430_v55 = vrot.slane %v2429_v48, 4 }
  0x41   : > { %v3004_v54 = vsel %vm5794_vm8, %v3002_v47, %v3003_v42  ;;  %v2442_v40 = vshll.u32 %v2355_v52, 16  ;;  %v5282_v56 = vcombine.low %v5926_v61, %v4041_v53  ;;  %v4048_v32 = vsel %vm5794_vm8, %v4046_v6, %v4047_v50  ;;  %v3399_v0 = vld [vmem:[#allocation2 + $0x2c] sm:$0x1]  ;;  %2110 = vrot.lane.b32.xlu1 %v5155_v7, %s5702_s15  ;;  %v1305_v4 = vld [vmem:[#allocation2 + $0x10] sm:$0xf] }
  0x42   : > { %v5219_v58 = vcombine.low %v5977_v51, %v3004_v54  ;;  %v1975_v37 = vsel %vm5794_vm8, %v1973_v14, %v1974_v25  ;;  %v5283_v62 = vcombine.low %v5984_v63, %v4048_v32  ;;  %v1968_v3 = vsel %vm5794_vm8, %v1966_v15, %v1967_v20  ;;  %v1304_v51 = vld [vmem:[#allocation2 + $0xc] sm:$0xf]  ;;  %v1306_v17 = vld [vmem:[#allocation2 + $0x14] sm:$0x1]  ;;  %v1308_v42 = vld [vmem:[#allocation2 + $0x1c] sm:$0xf] }
  0x43   : > { %v5157_v47 = vcombine.low %v5988_v8, %v1975_v37  ;;  %v2435_v61 = vsel %vm5847_vm12, %v2430_v55, %v5996_v26  ;;  %4195 = vrot.lane.b32.xlu0 %v5282_v56, %s5707_s20  ;;  %v5156_v5 = vcombine.low %v6002_v35, %v1968_v3  ;;  %v2439_v7 = vor.u32 %v2438_v13, %v5996_v26  ;;  %v1307_v35 = vld [vmem:[#allocation2 + $0x18] sm:$0xf]  ;;  %v2905_v2 = vld [vmem:[#allocation2 + $0x34] sm:$0xf] }
  0x44   : > { %v2444_v6 = vrot.slane %v2442_v40, 5  ;;  %v3469_v63 = vrot.slane %v3467_v29, 4  ;;  %v3470_v8 = vshll.u32 %v5990_v10, 16  ;;  %v3476_v45 = vshll.u32 %v3398_v60, 16  ;;  %v1309_v40 = vld [vmem:[#allocation2 + $0x20] sm:$0x1] }
  0x45   : > { %v3480_v59 = vshrl.u32 %v3398_v60, 16  ;;  %v3486_v14 = vshll.u32 %v3399_v0, 16  ;;  %v2440_v15 = vrot.slane %v2439_v7, 4  ;;  %v1377_v21 = vshrl.u32 %v1304_v51, 16  ;;  %3153 = vrot.lane.b32.xlu1 %v5219_v58, %s5706_s19  ;;  %v2350_v0 = vld [vmem:[#allocation2 + $0xc] sm:$0xf] }
  0x46   : > { %v1380_v22 = vshll.u32 %v1304_v51, 16  ;;  %v1386_v24 = vshll.u32 %v1305_v4, 16  ;;  %v3472_v30 = vrot.slane %v3470_v8, 5  ;;  %v3478_v31 = vrot.slane %v3476_v45, 5  ;;  %v2351_v51 = vld [vmem:[#allocation2 + $0x10] sm:$0xf] }
  0x47   : > { %v3482_v33 = vrot.slane %v3480_v59, 4  ;;  %v3488_v34 = vrot.slane %v3486_v14, 5  ;;  %4197 = vrot.lane.b32.xlu0 %v5283_v62, %s5707_s20  ;;  %v2445_v10 = vsel %vm5847_vm12, %v2440_v15, %v2444_v6  ;;  %v1379_v26 = vrot.slane %v1377_v21, 4  ;;  %v2352_v45 = vld [vmem:[#allocation2 + $0x14] sm:$0x1] }
  0x48   : > { %v1382_v29 = vrot.slane %v1380_v22, 5  ;;  %v1388_v41 = vrot.slane %v1386_v24, 5  ;;  %v5187_v44 = vcombine.low %v2435_v61, %v2445_v10  ;;  %v3473_v46 = vor.u32 %v3472_v30, %v3469_v63  ;;  %v1310_v24 = vld [vmem:[#allocation2 + $0x24] sm:$0xf] }
  0x49   : > { %v3483_v48 = vor.u32 %v3482_v33, %v3478_v31  ;;  %v1390_v50 = vshrl.u32 %v1305_v4, 16  ;;  %v1396_v20 = vshll.u32 %v1306_v17, 16  ;;  %v1401_v52 = vshrl.u32 %v1307_v35, 16  ;;  %2114 = vrot.lane.b32.xlu1 %v5157_v47, %s5702_s15 }
  0x4a   : > { %v1383_v25 = vor.u32 %v1382_v29, %v1379_v26  ;;  %v1404_v13 = vshll.u32 %v1307_v35, 16  ;;  %v3474_v53 = vrot.slane %v3473_v46, 4  ;;  %v1410_v56 = vshll.u32 %v1308_v42, 16  ;;  %v1311_v35 = vld [vmem:[#allocation2 + $0x28] sm:$0xf] }
  0x4b   : > { %v3484_v54 = vrot.slane %v3483_v48, 4  ;;  %v1392_v55 = vrot.slane %v1390_v50, 4  ;;  %2112 = vrot.lane.b32.xlu0 %v5156_v5, %s5702_s15  ;;  %v1398_v32 = vrot.slane %v1396_v20, 5  ;;  %v1403_v37 = vrot.slane %v1401_v52, 4 }
  0x4c   : > { %v1384_v58 = vrot.slane %v1383_v25, 4  ;;  %v1406_v60 = vrot.slane %v1404_v13, 5  ;;  %v3479_v62 = vsel %vm5847_vm12, %v3474_v53, %v3478_v31  ;;  %v1412_v47 = vrot.slane %v1410_v56, 5  ;;  %v3394_v56 = vld [vmem:[#allocation2 + $0x18] sm:$0xf] }
  0x4d   : > { %v3489_v3 = vsel %vm5847_vm12, %v3484_v54, %v3488_v34  ;;  %v1393_v61 = vor.u32 %v1392_v55, %v1388_v41  ;;  %v1414_v5 = vshrl.u32 %v1308_v42, 16  ;;  %2832 = vrot.lane.b32.xlu1 %v5187_v44, %s5708_s21  ;;  %v1420_v8 = vshll.u32 %v1309_v40, 16  ;;  %v1312_v42 = vld [vmem:[#allocation2 + $0x2c] sm:$0x1] }
  0x4e   : > { %v5251_v4 = vcombine.low %v3479_v62, %v3489_v3  ;;  %v1389_v7 = vsel %vm5847_vm12, %v1384_v58, %v1388_v41  ;;  %v1407_v6 = vor.u32 %v1406_v60, %v1403_v37  ;;  %v2399_v59 = vshrl.u32 %v2350_v0, 16 }
  0x4f   : > { %v1394_v63 = vrot.slane %v1393_v61, 4  ;;  %v2402_v14 = vshll.u32 %v2350_v0, 16  ;;  %v1416_v17 = vrot.slane %v1414_v5, 4  ;;  %v2408_v21 = vshll.u32 %v2351_v51, 16  ;;  %v3395_v0 = vld [vmem:[#allocation2 + $0x1c] sm:$0xf] }
  0x50   : > { %v1408_v15 = vrot.slane %v1407_v6, 4  ;;  %v2412_v22 = vshrl.u32 %v2351_v51, 16  ;;  %v1422_v31 = vrot.slane %v1420_v8, 5  ;;  %v2401_v33 = vrot.slane %v2399_v59, 4 }
  0x51   : > { %v1399_v30 = vsel %vm5847_vm12, %v1394_v63, %v1398_v32  ;;  %v2404_v34 = vrot.slane %v2402_v14, 5  ;;  %v1417_v29 = vor.u32 %v1416_v17, %v1412_v47  ;;  %v2410_v41 = vrot.slane %v2408_v21, 5  ;;  %3876 = vrot.lane.b32.xlu1 %v5251_v4, %s5709_s22  ;;  %v2356_v14 = vld [vmem:[#allocation2 + $0x24] sm:$0xf] }
  0x52   : > { %v5123_v10 = vcombine.low %v1389_v7, %v1399_v30  ;;  %v1413_v26 = vsel %vm5847_vm12, %v1408_v15, %v1412_v47  ;;  %v2414_v46 = vrot.slane %v2412_v22, 4  ;;  %v2418_v48 = vshll.u32 %v2352_v45, 16  ;;  %v3396_v7 = vld [vmem:[#allocation2 + $0x20] sm:$0x1] }
  0x53   : > { %v2405_v44 = vor.u32 %v2404_v34, %v2401_v33  ;;  %v1425_v50 = vshrl.u32 %v1310_v24, 16  ;;  %v1418_v25 = vrot.slane %v1417_v29, 4  ;;  %v1428_v20 = vshll.u32 %v1310_v24, 16  ;;  %v2357_v34 = vld [vmem:[#allocation2 + $0x28] sm:$0xf] }
  0x54   : > { %1786 = vrot.lane.b32.xlu0 %v5123_v10, %s5703_s16  ;;  %v1434_v52 = vshll.u32 %v1311_v35, 16  ;;  %v1438_v13 = vshrl.u32 %v1311_v35, 16  ;;  %v2415_v54 = vor.u32 %v2414_v46, %v2410_v41  ;;  %v2420_v55 = vrot.slane %v2418_v48, 5 }
  0x55   : > { %v2406_v53 = vrot.slane %v2405_v44, 4  ;;  %v1427_v40 = vrot.slane %v1425_v50, 4  ;;  %v1423_v58 = vsel %vm5847_vm12, %v1418_v25, %v1422_v31  ;;  %v1430_v32 = vrot.slane %v1428_v20, 5  ;;  %v2359_v25 = vld [vmem:[#allocation2 + $0x30] sm:$0xf] }
  0x56   : > { %v1436_v37 = vrot.slane %v1434_v52, 5  ;;  %v1440_v60 = vrot.slane %v1438_v13, 4  ;;  %v5124_v62 = vcombine.low %v1413_v26, %v1423_v58  ;;  %v2416_v61 = vrot.slane %v2415_v54, 4  ;;  %v2358_v26 = vld [vmem:[#allocation2 + $0x2c] sm:$0x1] }
  0x57   : > { %v2411_v3 = vsel %vm5847_vm12, %v2406_v53, %v2410_v41  ;;  %v1444_v47 = vshll.u32 %v1312_v42, 16  ;;  %v1431_v51 = vor.u32 %v1430_v32, %v1427_v40  ;;  %v3443_v6 = vshrl.u32 %v3394_v56, 16  ;;  %v1069_v42 = vld [vmem:[#allocation2 + $0x38] sm:$0x1]  ;;  %v2360_v54 = vld [vmem:[#allocation2 + $0x34] sm:$0xf] }
  0x58   : > { %v1441_v4 = vor.u32 %v1440_v60, %v1436_v37  ;;  %v3446_v5 = vshll.u32 %v3394_v56, 16  ;;  %1788 = vrot.lane.b32.xlu1 %v5124_v62, %s5703_s16  ;;  %v2421_v63 = vsel %vm5847_vm12, %v2416_v61, %v2420_v55  ;;  %v3452_v45 = vshll.u32 %v3395_v0, 16  ;;  %v2901_v55 = vld [vmem:[#allocation2 + $0x24] sm:$0xe]  ;;  %v2903_v60 = vld [vmem:[#allocation2 + $0x2c] sm:$0x1] }
  0x59   : > { %v1446_v8 = vrot.slane %v1444_v47, 5  ;;  %v3456_v59 = vshrl.u32 %v3395_v0, 16  ;;  %v5186_v15 = vcombine.low %v2411_v3, %v2421_v63  ;;  %v1432_v17 = vrot.slane %v1431_v51, 4  ;;  %v2904_v47 = vld [vmem:[#allocation2 + $0x30] sm:$0xe] }
  0x5a   : > { %v1442_v21 = vrot.slane %v1441_v4, 4  ;;  %v3445_v22 = vrot.slane %v3443_v6, 4  ;;  %v3448_v24 = vrot.slane %v3446_v5, 5  ;;  %v3454_v30 = vrot.slane %v3452_v45, 5 }
  0x5b   : > { %v3458_v31 = vrot.slane %v3456_v59, 4  ;;  %v3462_v33 = vshll.u32 %v3396_v7, 16  ;;  %2830 = vrot.lane.b32.xlu0 %v5186_v15, %s5708_s21  ;;  %v1437_v35 = vsel %vm5847_vm12, %v1432_v17, %v1436_v37  ;;  %v2447_v29 = vshrl.u32 %v2356_v14, 16  ;;  %v2902_v37 = vld [vmem:[#allocation2 + $0x28] sm:$0xf] }
  0x5c   : > { %v1447_v10 = vsel %vm5847_vm12, %v1442_v21, %v1446_v8  ;;  %v2450_v41 = vshll.u32 %v2356_v14, 16  ;;  %v3449_v46 = vor.u32 %v3448_v24, %v3445_v22  ;;  %v2456_v13 = vshll.u32 %v2357_v34, 16 }
  0x5d   : > { %v5125_v44 = vcombine.low %v1437_v35, %v1447_v10  ;;  %v3459_v48 = vor.u32 %v3458_v31, %v3454_v30  ;;  %v3464_v50 = vrot.slane %v3462_v33, 5  ;;  %v2449_v20 = vrot.slane %v2447_v29, 4 }
  0x5e   : > { %v2452_v52 = vrot.slane %v2450_v41, 5  ;;  %v2460_v53 = vshrl.u32 %v2357_v34, 16  ;;  %v3450_v40 = vrot.slane %v3449_v46, 4  ;;  %v2466_v58 = vshll.u32 %v2358_v26, 16  ;;  %v3400_v41 = vld [vmem:[#allocation2 + $0x30] sm:$0xf] }
  0x5f   : > { %1790 = vrot.lane.b32.xlu1 %v5125_v44, %s5703_s16  ;;  %v3460_v56 = vrot.slane %v3459_v48, 4  ;;  %v1070_v32 = vsel %vm5771_vm3, %v788_v16, %v1069_v42  ;;  %v2458_v62 = vrot.slane %v2456_v13, 5  ;;  %v2471_v61 = vshrl.u32 %v2359_v25, 16 }
  0x60   : > { %v2453_v0 = vor.u32 %v2452_v52, %v2449_v20  ;;  %v2462_v3 = vrot.slane %v2460_v53, 4  ;;  %1071 = vst [vmem:[#allocation2 + $0x38] sm:$0x1] %v1070_v32  ;;  %v3455_v51 = vsel %vm5847_vm12, %v3450_v40, %v3454_v30  ;;  %v2468_v7 = vrot.slane %v2466_v58, 5 }
  0x61   : > { %v3465_v4 = vsel %vm5847_vm12, %v3460_v56, %v3464_v50  ;;  %v2474_v6 = vshll.u32 %v2359_v25, 16  ;;  %v2473_v8 = vrot.slane %v2471_v61, 4  ;;  %v2480_v59 = vshll.u32 %v2360_v54, 16 }
  0x62   : > { %v5250_v5 = vcombine.low %v3455_v51, %v3465_v4  ;;  %v2454_v63 = vrot.slane %v2453_v0, 4  ;;  %v2463_v16 = vor.u32 %v2462_v3, %v2458_v62  ;;  %v2484_v14 = vshrl.u32 %v2360_v54, 16  ;;  %v3401_v54 = vld [vmem:[#allocation2 + $0x34] sm:$0xf] }
  0x63   : > { %v2476_v45 = vrot.slane %v2474_v6, 5  ;;  %v5204_v15 = vrot.slane %v2901_v55, 9  ;;  %v3007_v22 = vrot.slane %v2902_v37, 5  ;;  %v3010_v24 = vrot.slane %v2903_v60, 5 }
  0x64   : > { %3874 = vrot.lane.b32.xlu0 %v5250_v5, %s5709_s22  ;;  %v2459_v17 = vsel %vm5847_vm12, %v2454_v63, %v2458_v62  ;;  %v2464_v21 = vrot.slane %v2463_v16, 4  ;;  %v2482_v31 = vrot.slane %v2480_v59, 5  ;;  %v2486_v33 = vrot.slane %v2484_v14, 4  ;;  %v1072_v16 = vld [vmem:[#allocation2 + $0x3c] sm:$0xf] }
  0x65   : > { %v2477_v30 = vor.u32 %v2476_v45, %v2473_v8  ;;  %v5205_v34 = vrot.slane %v2904_v47, 9  ;;  %v3008_v10 = vsel %vm5794_vm8, %v5204_v15, %v3007_v22  ;;  %v3009_v26 = vrot.slane %v3007_v22, 4  ;;  %v3945_v59 = vld [vmem:[#allocation2 + $0x30] sm:$0xe]  ;;  %v3946_v22 = vld [vmem:[#allocation2 + $0x34] sm:$0xf] }
  0x66   : > { %v2469_v35 = vsel %vm5847_vm12, %v2464_v21, %v2468_v7  ;;  %v3014_v29 = vrot.slane %v2905_v2, 5  ;;  %v2487_v48 = vor.u32 %v2486_v33, %v2482_v31  ;;  %v477_v25 = vmax.f32 %v5922_v57, 0.0  ;;  %v584_v2 = vld [vmem:[#allocation2 + $0x44] sm:$0x1] }
  0x67   : > { %v5188_v42 = vcombine.low %v2459_v17, %v2469_v35  ;;  %v2361_v44 = vld [vmem:[#allocation2 + $0x38] sm:$0x1]  ;;  %v2478_v46 = vrot.slane %v2477_v30, 4  ;;  %v3011_v52 = vsel %vm5794_vm8, %v3009_v26, %v3010_v24  ;;  %v478_v57 = vmax.f32 %v5939_v19, 0.0  ;;  %v5640_v19 = vld [vmem:[#allocation2 + $0x30] sm:$0xff]  }
  0x68   : > { %v2906_v50 = vld [vmem:[#allocation2 + $0x38] sm:$0x1]  ;;  %v2490_v20 = vshll.u32 %v2361_v44, 16  ;;  %v3015_v13 = vsel %vm5794_vm8, %v5205_v34, %v3014_v29  ;;  %v3016_v53 = vrot.slane %v3014_v29, 4  ;;  %v2488_v40 = vrot.slane %v2487_v48, 4 }
  0x69   : > { %2834 = vrot.lane.b32.xlu0 %v5188_v42, %s5708_s21  ;;  %v2483_v55 = vsel %vm5847_vm12, %v2478_v46, %v2482_v31  ;;  %v5220_v56 = vcombine.low %v3008_v10, %v3011_v52  ;;  %v3017_v58 = vrot.slane %v2906_v50, 5  ;;  %v5367_v37 = vpack.c.bf16 %v477_v25, %v477_v25  ;;  %v3402_v6 = vld [vmem:[#allocation2 + $0x38] sm:$0x1]  ;;  %v1314_v50 = vld [vmem:[#allocation2 + $0x34] sm:$0xf] }
  0x6a   : > { %v2492_v32 = vrot.slane %v2490_v20, 5  ;;  %v3491_v60 = vshrl.u32 %v3400_v41, 16  ;;  %v3494_v62 = vshll.u32 %v3400_v41, 16  ;;  %v3500_v3 = vshll.u32 %v3401_v54, 16  ;;  %v3947_v34 = vld [vmem:[#allocation2 + $0x38] sm:$0x1] }
  0x6b   : > { %v3018_v0 = vsel %vm5794_vm8, %v3016_v53, %v3017_v58  ;;  %v3504_v61 = vshrl.u32 %v3401_v54, 16  ;;  %v5368_v4 = vpack.c.bf16 %v478_v57, %v478_v57  ;;  %v790_v7 = vshrl.u32 %v5367_v37, 16  ;;  %v1313_v41 = vld [vmem:[#allocation2 + $0x30] sm:$0xf]  ;;  %v1315_v53 = vld [vmem:[#allocation2 + $0x38] sm:$0x1] }
  0x6c   : > { %v2493_v47 = vsel %vm5847_vm12, %v2488_v40, %v2492_v32  ;;  %v5221_v51 = vcombine.low %v3015_v13, %v3018_v0  ;;  %v793_v63 = vshll.u32 %v5367_v37, 16  ;;  %v3493_v8 = vrot.slane %v3491_v60, 4  ;;  %v1861_v60 = vld [vmem:[#allocation2 + $0x30] sm:$0xe] }
  0x6d   : > { %v5189_v5 = vcombine.low %v2483_v55, %v2493_v47  ;;  %3155 = vrot.lane.b32.xlu0 %v5220_v56, %s5706_s19  ;;  %v3496_v45 = vrot.slane %v3494_v62, 5  ;;  %v792_v14 = vrot.slane %v790_v7, 7  ;;  %v798_v15 = vshrl.u32 %v5368_v4, 16  ;;  %v1862_v47 = vld [vmem:[#allocation2 + $0x34] sm:$0xf] }
  0x6e   : > { %v801_v17 = vshll.u32 %v5368_v4, 16  ;;  %v3502_v21 = vrot.slane %v3500_v3, 5  ;;  %v3506_v30 = vrot.slane %v3504_v61, 4  ;;  %v3510_v31 = vshll.u32 %v3402_v6, 16 }
  0x6f   : > { %2836 = vrot.lane.b32.xlu1 %v5189_v5, %s5708_s21  ;;  %v3497_v24 = vor.u32 %v3496_v45, %v3493_v8  ;;  %v585_v33 = vsel %vm5785_vm7, 0, %v584_v2  ;;  %v795_v35 = vor.u32 %v793_v63, %v792_v14  ;;  %v796_v10 = vrot.slane %v792_v14, 4  ;;  %v531_v5 = vld [vmem:[#allocation2 + $0x48] sm:$0x1] }
  0x70   : > { %v800_v26 = vrot.slane %v798_v15, 7  ;;  %586 = vst [vmem:[#allocation2 + $0x44] sm:$0x1] %v585_v33  ;;  %v5268_v29 = vrot.slane %v3945_v59, 9  ;;  %v3507_v44 = vor.u32 %v3506_v30, %v3502_v21  ;;  %v3512_v46 = vrot.slane %v3510_v31, 5 }
  0x71   : > { %3333 = vrot.lane.b32.xlu0 %v5640_v19, %s5705_s18  ;;  %v3498_v42 = vrot.slane %v3497_v24, 4  ;;  %v4051_v48 = vrot.slane %v3946_v22, 5  ;;  %v1073_v52 = vsel %vm5854_vm13, %v795_v35, %v1072_v16  ;;  %v4054_v13 = vrot.slane %v3947_v34, 5 }
  0x72   : > { %v803_v25 = vor.u32 %v801_v17, %v800_v26  ;;  %v805_v20 = vrot.slane %v800_v26, 4  ;;  %1074 = vst [vmem:[#allocation2 + $0x3c] sm:$0xf] %v1073_v52  ;;  %v3508_v55 = vrot.slane %v3507_v44, 4  ;;  %v1449_v32 = vshrl.u32 %v1313_v41, 16 }
  0x73   : > { %3157 = vrot.lane.b32.xlu1 %v5221_v51, %s5706_s19  ;;  %v3503_v54 = vsel %vm5847_vm12, %v3498_v42, %v3502_v21  ;;  %v4052_v40 = vsel %vm5794_vm8, %v5268_v29, %v4051_v48  ;;  %v4053_v56 = vrot.slane %v4051_v48, 4  ;;  %v1452_v57 = vshll.u32 %v1313_v41, 16  ;;  %v1863_v51 = vld [vmem:[#allocation2 + $0x38] sm:$0x1] }
  0x74   : > { %v804_v58 = vsel %vm5863_vm14, %v796_v10, %v803_v25  ;;  %v1458_v37 = vshll.u32 %v1314_v50, 16  ;;  %v3513_v0 = vsel %vm5847_vm12, %v3508_v55, %v3512_v46  ;;  %v1462_v3 = vshrl.u32 %v1314_v50, 16  ;;  %v6129_v10 = vld [vmem:[%s7548_s2] ss:$0 sm:$0xff] }
  0x75   : > { %1075 = vst.msk [vmem:[#allocation2 + $0x40] sm:$0xf] %vm501_vm0, %v804_v58  ;;  %v4055_v62 = vsel %vm5794_vm8, %v4053_v56, %v4054_v13  ;;  %v1468_v61 = vshll.u32 %v1315_v53, 16  ;;  %v5252_v4 = vcombine.low %v3503_v54, %v3513_v0  ;;  %v1451_v6 = vrot.slane %v1449_v32, 4  ;;  %v6154_v32 = vld [vmem:[%s7547_s1] ss:$0 sm:$0xff] }
  0x76   : > { %v5284_v7 = vcombine.low %v4052_v40, %v4055_v62  ;;  %v1454_v2 = vrot.slane %v1452_v57, 5  ;;  %v1460_v63 = vrot.slane %v1458_v37, 5  ;;  %v1464_v16 = vrot.slane %v1462_v3, 4 }
  0x77   : > { %v1076_v19 = vld [vmem:[#allocation2 + $0x44] sm:$0x1]  ;;  %v1470_v8 = vrot.slane %v1468_v61, 5  ;;  %v5142_v45 = vrot.slane %v1861_v60, 9  ;;  %3878 = vrot.lane.b32.xlu0 %v5252_v4, %s5709_s22  ;;  %v1978_v15 = vrot.slane %v1862_v47, 5  ;;  %v1981_v17 = vrot.slane %v1863_v51, 5 }
  0x78   : > { %v1077_v59 = vsel %vm5771_vm3, %v805_v20, %v1076_v19  ;;  %v1455_v14 = vor.u32 %v1454_v2, %v1451_v6  ;;  %v1465_v21 = vor.u32 %v1464_v16, %v1460_v63  ;;  %v479_v22 = vmax.f32 %v5946_v27, 0.0 }
  0x79   : > { %1078 = vst [vmem:[#allocation2 + $0x44] sm:$0x1] %v1077_v59  ;;  %v480_v24 = vmax.f32 %v5964_v43, 0.0  ;;  %v532_v30 = vsel %vm5771_vm3, 0, %v531_v5  ;;  %v3403_v31 = vld [vmem:[#allocation2 + $0x3c] sm:$0xf]  ;;  %v6124_v34 = vsel %vm5794_vm8, %v5142_v45, %v1978_v15  ;;  %v6133_v27 = vmul.f32 %v6129_v10, %v6005_v36 }
  0x7a   : > { %v1456_v33 = vrot.slane %v1455_v14, 4  ;;  %v1980_v35 = vrot.slane %v1978_v15, 4  ;;  %533 = vst [vmem:[#allocation2 + $0x48] sm:$0x1] %v532_v30  ;;  %v3515_v43 = vshrl.u32 %v3403_v31, 16  ;;  %v3518_v26 = vshll.u32 %v3403_v31, 16 }
  0x7b   : > { %v1466_v29 = vrot.slane %v1465_v21, 4  ;;  %v3948_v41 = vld [vmem:[#allocation2 + $0x3c] sm:$0xe]  ;;  %v6135_v42 = vpack.c.bf16 %v479_v22, %v479_v22  ;;  %4199 = vrot.lane.b32.xlu0 %v5284_v7, %s5707_s20  ;;  %v6144_v36 = vpack.c.bf16 %v480_v24, %v480_v24  ;;  %v6159_v57 = vsub.f32 %v5421_v38, %v6154_v32 }
  0x7c   : > { %v5641_v44 = vld [vmem:[#allocation2 + $0x3c] sm:$0xff]   ;;  %v1461_v48 = vsel %vm5847_vm12, %v1456_v33, %v1460_v63  ;;  %v5269_v50 = vrot.slane %v3948_v41, 9  ;;  %v6142_v25 = vsel %vm5794_vm8, %v1980_v35, %v1981_v17  ;;  %v3517_v20 = vrot.slane %v3515_v43, 4 }
  0x7d   : > { %v3404_v46 = vld [vmem:[#allocation2 + $0x40] sm:$0xf]  ;;  %v3520_v52 = vrot.slane %v3518_v26, 5  ;;  %3335 = vrot.lane.b32.xlu1 %v5641_v44, %s5705_s18  ;;  %v1471_v55 = vsel %vm5847_vm12, %v1466_v29, %v1470_v8  ;;  %v1316_v56 = vld [vmem:[#allocation2 + $0x3c] sm:$0xf]  ;;  %v5158_v58 = vcombine.low %v6124_v34, %v6142_v25  ;;  %v6168_v38 = vsub.f32 %v5422_v39, %v6154_v32 }
  0x7e   : > { %v3524_v13 = vshll.u32 %v3404_v46, 16  ;;  %v3528_v53 = vshrl.u32 %v3404_v46, 16  ;;  %v3949_v54 = vld [vmem:[#allocation2 + $0x40] sm:$0xf]  ;;  %v6161_v62 = vcombine.low %v1461_v48, %v1471_v55  ;;  %v1473_v7 = vshrl.u32 %v1316_v56, 16 }
  0x7f   : > { %v4058_v40 = vrot.slane %v3949_v54, 5  ;;  %v3521_v37 = vor.u32 %v3520_v52, %v3517_v20  ;;  %v1317_v3 = vld [vmem:[#allocation2 + $0x40] sm:$0xf]  ;;  %v1864_v6 = vld [vmem:[#allocation2 + $0x3c] sm:$0xe]  ;;  %v1476_v59 = vshll.u32 %v1316_v56, 16 }
  0x80   : > { %v3526_v60 = vrot.slane %v3524_v13, 5  ;;  %v3530_v0 = vrot.slane %v3528_v53, 4  ;;  %v3405_v61 = vld [vmem:[#allocation2 + $0x44] sm:$0x1]  ;;  %v1865_v2 = vld [vmem:[#allocation2 + $0x40] sm:$0xf] }
  0x81   : > { %v3950_v47 = vld [vmem:[#allocation2 + $0x44] sm:$0x1]  ;;  %v4059_v51 = vsel %vm5794_vm8, %v5269_v50, %v4058_v40  ;;  %v4060_v4 = vrot.slane %v4058_v40, 4  ;;  %v3522_v5 = vrot.slane %v3521_v37, 4  ;;  %v3534_v63 = vshll.u32 %v3405_v61, 16 }
  0x82   : > { %v3531_v19 = vor.u32 %v3530_v0, %v3526_v60  ;;  %v4061_v16 = vrot.slane %v3950_v47, 5  ;;  %v1318_v8 = vld [vmem:[#allocation2 + $0x44] sm:$0x1]  ;;  %v1475_v45 = vrot.slane %v1473_v7, 4  ;;  %v1482_v14 = vshll.u32 %v1317_v3, 16 }
  0x83   : > { %v1486_v15 = vshrl.u32 %v1317_v3, 16  ;;  %v1866_v17 = vld [vmem:[#allocation2 + $0x44] sm:$0x1]  ;;  %v3527_v21 = vsel %vm5847_vm12, %v3522_v5, %v3526_v60  ;;  %v3536_v24 = vrot.slane %v3534_v63, 5  ;;  %v1478_v30 = vrot.slane %v1476_v59, 5 }
  0x84   : > { %v3532_v22 = vrot.slane %v3531_v19, 4  ;;  %v4062_v11 = vsel %vm5794_vm8, %v4060_v4, %v4061_v16  ;;  %v1484_v31 = vrot.slane %v1482_v14, 5  ;;  %v1492_v43 = vshll.u32 %v1318_v8, 16  ;;  %v2362_v50 = vld [vmem:[#allocation2 + $0x3c] sm:$0xf]  ;;  %v5653_v7 = vld [vmem:[%s7549_s3] sm:$0xff]  }
  0x85   : > { %v5285_v39 = vcombine.low %v4059_v51, %v4062_v11  ;;  %v1488_v33 = vrot.slane %v1486_v15, 4  ;;  %v5143_v26 = vrot.slane %v1864_v6, 9  ;;  %v1985_v29 = vrot.slane %v1865_v2, 5  ;;  %v1079_v37 = vld [vmem:[#allocation2 + $0x48] sm:$0xf]  ;;  %v5642_v2 = vld [vmem:[#allocation2 + $0x3c] sm:$0xff]   ;;  %5524 = vmatprep.subr.bf16.mxu0 %v5653_v7 }
  0x86   : > { %v3537_v35 = vsel %vm5847_vm12, %v3532_v22, %v3536_v24  ;;  %v1479_v44 = vor.u32 %v1478_v30, %v1475_v45  ;;  %v1988_v48 = vrot.slane %v1866_v17, 5  ;;  %v1494_v20 = vrot.slane %v1492_v43, 5  ;;  %v2363_v60 = vld [vmem:[#allocation2 + $0x40] sm:$0xf]  ;;  %v587_v0 = vld [vmem:[#allocation2 + $0x50] sm:$0x1]  ;;  %5525 = vmatpush3.bf16.msra.mxu0 %v5653_v7 }
  0x87   : > { %v5253_v41 = vcombine.low %v3527_v21, %v3537_v35  ;;  %4201 = vrot.lane.b32.xlu0 %v5285_v39, %s5707_s20  ;;  %v1489_v46 = vor.u32 %v1488_v33, %v1484_v31  ;;  %v6179_v52 = vsel %vm5794_vm8, %v5143_v26, %v1985_v29  ;;  %v1987_v13 = vrot.slane %v1985_v29, 4  ;;  %v2364_v51 = vld [vmem:[#allocation2 + $0x44] sm:$0x1]  ;;  %v2907_v19 = vld [vmem:[#allocation2 + $0x3c] sm:$0xe]  ;;  %v5656_v17 = vld [vmem:[%s7549_s3 + $0x8] sm:$0xff]  }
  0x88   : > { %v807_v53 = vshrl.u32 %v6135_v42, 16  ;;  %v1480_v54 = vrot.slane %v1479_v44, 4  ;;  %v810_v40 = vshll.u32 %v6135_v42, 16  ;;  %v815_v56 = vshrl.u32 %v6144_v36, 16  ;;  %v2908_v59 = vld [vmem:[#allocation2 + $0x40] sm:$0xf]  ;;  %5526 = vmatprep.subr.bf16.mxu0 %v5656_v17 }
  0x89   : > { %3880 = vrot.lane.b32.xlu1 %v5253_v41, %s5709_s22  ;;  %v1490_v55 = vrot.slane %v1489_v46, 4  ;;  %v6187_v3 = vsel %vm5794_vm8, %v1987_v13, %v1988_v48  ;;  %v818_v47 = vshll.u32 %v6144_v36, 16  ;;  %v2495_v4 = vshrl.u32 %v2362_v50, 16  ;;  %v2909_v15 = vld [vmem:[#allocation2 + $0x44] sm:$0x1] }
  0x8a   : > { %v809_v61 = vrot.slane %v807_v53, 7  ;;  %v1485_v42 = vsel %vm5847_vm12, %v1480_v54, %v1484_v31  ;;  %v5159_v36 = vcombine.low %v6179_v52, %v6187_v3  ;;  %v6203_v5 = vrot.slane %v815_v56, 7  ;;  %v534_v11 = vld [vmem:[#allocation2 + $0x54] sm:$0x1]  ;;  %v590_v35 = vld [vmem:[#allocation2 + $0x5c] sm:$0x1]  ;;  %5527 = vmatpush3.bf16.msra.mxu0 %v5656_v17 }
  0x8b   : > { %v1495_v6 = vsel %vm5847_vm12, %v1490_v55, %v1494_v20  ;;  %2116 = vrot.lane.b32.xlu0 %v5158_v58, %s5702_s15  ;;  %v2497_v45 = vrot.slane %v2495_v4, 4  ;;  %v2498_v25 = vshll.u32 %v2362_v50, 16  ;;  %v2504_v58 = vshll.u32 %v2363_v60, 16  ;;  %v537_v20 = vld [vmem:[#allocation2 + $0x60] sm:$0x1] }
  0x8c   : > { %v5127_v63 = vcombine.low %v1485_v42, %v1495_v6  ;;  %v812_v16 = vor.u32 %v810_v40, %v809_v61  ;;  %v813_v8 = vrot.slane %v809_v61, 4  ;;  %v820_v14 = vor.u32 %v818_v47, %v6203_v5 }
  0x8d   : > { %1792 = vrot.lane.b32.xlu1 %v6161_v62, %s5703_s16  ;;  %v822_v34 = vrot.slane %v6203_v5, 4  ;;  %v2508_v22 = vshrl.u32 %v2363_v60, 16  ;;  %v2514_v24 = vshll.u32 %v2364_v51, 16  ;;  %v588_v62 = vsel %vm5785_vm7, 0, %v587_v0  ;;  %v6242_v60 = vld [vmem:[%s5801_s10 + $0x48] sm:$0xff]  }
  0x8e   : > { %v1080_v21 = vsel %vm5854_vm13, %v812_v16, %v1079_v37  ;;  %v821_v39 = vsel %vm5863_vm14, %v813_v8, %v820_v14  ;;  %v2500_v30 = vrot.slane %v2498_v25, 5  ;;  %v2506_v31 = vrot.slane %v2504_v58, 5  ;;  %589 = vst [vmem:[#allocation2 + $0x50] sm:$0x1] %v588_v62  ;;  %v5462_v37 = vld [vmem:[%s5801_s10 + $0x40] sm:$0xff]  }
  0x8f   : > { %2293 = vrot.lane.b32.xlu0 %v5642_v2, %s5704_s17  ;;  %1081 = vst [vmem:[#allocation2 + $0x48] sm:$0xf] %v1080_v21  ;;  %v5206_v33 = vrot.slane %v2907_v19, 9  ;;  %1082 = vst.msk [vmem:[#allocation2 + $0x4c] sm:$0xf] %vm501_vm0, %v821_v39  ;;  %v2510_v43 = vrot.slane %v2508_v22, 4  ;;  %v6238_v56 = vmul.f32 %v6129_v10, %v6159_v57  ;;  %v6248_v61 = vmul.f32 %v6129_v10, %v6168_v38 }
  0x90   : > { %v2516_v26 = vrot.slane %v2514_v24, 5  ;;  %v3021_v29 = vrot.slane %v2908_v59, 5  ;;  %v3024_v41 = vrot.slane %v2909_v15, 5  ;;  %v2501_v44 = vor.u32 %v2500_v30, %v2497_v45 }
  0x91   : > { %1794 = vrot.lane.b32.xlu1 %v5127_v63, %s5703_s16  ;;  %v481_v46 = vmax.f32 %v6011_v49, 0.0  ;;  %v482_v48 = vmax.f32 %v6133_v27, 0.0  ;;  %v535_v50 = vsel %vm5771_vm3, 0, %v534_v11  ;;  %v2511_v52 = vor.u32 %v2510_v43, %v2506_v31  ;;  %v5659_v49 = vld [vmem:[%s7549_s3 + $0x10] sm:$0xff]  }
  0x92   : > { %v6227_v13 = vsel %vm5794_vm8, %v5206_v33, %v3021_v29  ;;  %v3023_v53 = vrot.slane %v3021_v29, 4  ;;  %536 = vst [vmem:[#allocation2 + $0x54] sm:$0x1] %v535_v50  ;;  %v591_v54 = vsel %vm5785_vm7, 0, %v590_v35  ;;  %v2502_v27 = vrot.slane %v2501_v44, 4  ;;  %5528 = vmatprep.subr.bf16.mxu0 %v5659_v49 }
  0x93   : > { %v5371_v55 = vpack.c.bf16 %v481_v46, %v481_v46  ;;  %v6234_v40 = vpack.c.bf16 %v482_v48, %v482_v48  ;;  %592 = vst [vmem:[#allocation2 + $0x5c] sm:$0x1] %v591_v54  ;;  %v2512_v0 = vrot.slane %v2511_v52, 4  ;;  %v538_v47 = vsel %vm5771_vm3, 0, %v537_v20  ;;  %5529 = vmatpush3.bf16.msra.mxu0 %v5659_v49 }
  0x94   : > { %v3025_v3 = vsel %vm5794_vm8, %v3023_v53, %v3024_v41  ;;  %v2507_v57 = vsel %vm5847_vm12, %v2502_v27, %v2506_v31  ;;  %539 = vst [vmem:[#allocation2 + $0x60] sm:$0x1] %v538_v47  ;;  %v5425_v2 = vunpack.c.l.bf16 %v5462_v37  ;;  %v5426_v19 = vunpack.c.h.bf16 %v5462_v37 }
  0x95   : > { %2118 = vrot.lane.b32.xlu1 %v5159_v36, %s5702_s15  ;;  %v5222_v51 = vcombine.low %v6227_v13, %v3025_v3  ;;  %v824_v4 = vshrl.u32 %v5371_v55, 16  ;;  %v827_v7 = vshll.u32 %v5371_v55, 16  ;;  %v2517_v42 = vsel %vm5847_vm12, %v2512_v0, %v2516_v26  ;;  %v1083_v38 = vld [vmem:[#allocation2 + $0x50] sm:$0x1]  ;;  %v5661_v55 = vld [vmem:[%s7549_s3 + $0x18] sm:$0xff]  }
  0x96   : > { %v2365_v6 = vld [vmem:[#allocation2 + $0x48] sm:$0xf]  ;;  %v5429_v63 = vunpack.c.l.bf16 %v6242_v60  ;;  %v5190_v36 = vcombine.low %v2507_v57, %v2517_v42  ;;  %v1084_v8 = vsel %vm5771_vm3, %v822_v34, %v1083_v38  ;;  %v2366_v45 = vld [vmem:[#allocation2 + $0x4c] sm:$0xf]  ;;  %v5430_v14 = vunpack.c.h.bf16 %v6242_v60  ;;  %5530 = vmatprep.subr.bf16.mxu0 %v5661_v55 }
  0x97   : > { %v5643_v16 = vld [vmem:[#allocation2 + $0x48] sm:$0xff]   ;;  %v2519_v59 = vshrl.u32 %v2365_v6, 16  ;;  %1085 = vst [vmem:[#allocation2 + $0x50] sm:$0x1] %v1084_v8  ;;  %v2522_v25 = vshll.u32 %v2365_v6, 16  ;;  %v2528_v58 = vshll.u32 %v2366_v45, 16  ;;  %v6265_v21 = vsub.f32 %v5425_v2, %v6154_v32  ;;  %v6289_v57 = vpop.permute.xlu0 %1784  ;;  %v6296_v8 = vpop.permute.xlu1 %2108  ;;  %5531 = vmatpush3.bf16.msra.mxu0 %v5661_v55 }
  0x98   : > { %v2532_v15 = vshrl.u32 %v2366_v45, 16  ;;  %v2910_v17 = vld [vmem:[#allocation2 + $0x48] sm:$0xe]  ;;  %2838 = vrot.lane.b32.xlu0 %v5190_v36, %s5708_s21  ;;  %v2911_v22 = vld [vmem:[#allocation2 + $0x4c] sm:$0xf]  ;;  %v6270_v34 = vsub.f32 %v5426_v19, %v6154_v32  ;;  %v6273_v62 = vsub.f32 %v5429_v63, %v6154_v32  ;;  %v826_v33 = vrot.slane %v824_v4, 7 }
  0x99   : > { %2295 = vrot.lane.b32.xlu1 %v5643_v16, %s5704_s17  ;;  %v2521_v5 = vrot.slane %v2519_v59, 4  ;;  %v5207_v24 = vrot.slane %v2910_v17, 9  ;;  %v2524_v11 = vrot.slane %v2522_v25, 5  ;;  %v6275_v39 = vrot.slane %v2528_v58, 5  ;;  %v1086_v26 = vld [vmem:[#allocation2 + $0x54] sm:$0xf] }
  0x9a   : > { %v2534_v30 = vrot.slane %v2532_v15, 4  ;;  %v3028_v31 = vrot.slane %v2911_v22, 5  ;;  %v832_v35 = vshrl.u32 %v6234_v40, 16  ;;  %v835_v43 = vshll.u32 %v6234_v40, 16  ;;  %v5644_v50 = vld [vmem:[#allocation2 + $0x48] sm:$0xff]  }
  0x9b   : > { %v483_v29 = vmax.f32 %v6238_v56, 0.0  ;;  %v2525_v41 = vor.u32 %v2524_v11, %v2521_v5  ;;  %v3406_v20 = vld [vmem:[#allocation2 + $0x48] sm:$0xf]  ;;  %v3407_v52 = vld [vmem:[#allocation2 + $0x4c] sm:$0xf]  ;;  %v829_v13 = vor.u32 %v827_v7, %v826_v33  ;;  %v830_v53 = vrot.slane %v826_v33, 4 }
  0x9c   : > { %v2535_v44 = vor.u32 %v2534_v30, %v6275_v39  ;;  %v6283_v46 = vsel %vm5794_vm8, %v5207_v24, %v3028_v31  ;;  %v3030_v48 = vrot.slane %v3028_v31, 4  ;;  %3159 = vrot.lane.b32.xlu0 %v5222_v51, %s5706_s19  ;;  %v834_v54 = vrot.slane %v832_v35, 7  ;;  %v1090_v27 = vld [vmem:[#allocation2 + $0x5c] sm:$0x1]  ;;  %v3951_v47 = vld [vmem:[#allocation2 + $0x48] sm:$0xe] }
  0x9d   : > { %v3539_v49 = vshrl.u32 %v3406_v20, 16  ;;  %v2526_v40 = vrot.slane %v2525_v41, 4  ;;  %v3542_v0 = vshll.u32 %v3406_v20, 16  ;;  %v3548_v3 = vshll.u32 %v3407_v52, 16  ;;  %v3952_v15 = vld [vmem:[#allocation2 + $0x4c] sm:$0xf]  ;;  %v6315_v55 = vpop.permute.xlu1 %2287 }
  0x9e   : > { %v2536_v37 = vrot.slane %v2535_v44, 4  ;;  %v2367_v4 = vld [vmem:[#allocation2 + $0x50] sm:$0x1]  ;;  %v837_v38 = vor.u32 %v835_v43, %v834_v54  ;;  %v839_v51 = vrot.slane %v834_v54, 4  ;;  %v1087_v7 = vsel %vm5854_vm13, %v829_v13, %v1086_v26  ;;  %v1320_v43 = vld [vmem:[#allocation2 + $0x4c] sm:$0xf] }
  0x9f   : > { %v2912_v42 = vld [vmem:[#allocation2 + $0x50] sm:$0x1]  ;;  %v3541_v6 = vrot.slane %v3539_v49, 4  ;;  %v2531_v2 = vsel %vm5847_vm12, %v2526_v40, %v6275_v39  ;;  %v2538_v19 = vshll.u32 %v2367_v4, 16  ;;  %1088 = vst [vmem:[#allocation2 + $0x54] sm:$0xf] %v1087_v7  ;;  %v6325_v4 = vmul.f32 %v6129_v10, %v6265_v21 }
  0xa0   : > { %v3031_v63 = vrot.slane %v2912_v42, 5  ;;  %v3408_v16 = vld [vmem:[#allocation2 + $0x50] sm:$0x1]  ;;  %v3544_v36 = vrot.slane %v3542_v0, 5  ;;  %3337 = vrot.lane.b32.xlu0 %v5644_v50, %s5705_s18  ;;  %v838_v45 = vsel %vm5863_vm14, %v830_v53, %v837_v38  ;;  %v3550_v59 = vrot.slane %v3548_v3, 5 }
  0xa1   : > { %v3552_v25 = vshrl.u32 %v3407_v52, 16  ;;  %v3558_v58 = vshll.u32 %v3408_v16, 16  ;;  %v2540_v17 = vrot.slane %v2538_v19, 5  ;;  %1089 = vst.msk [vmem:[#allocation2 + $0x58] sm:$0xf] %vm501_vm0, %v838_v45  ;;  %v1091_v24 = vsel %vm5771_vm3, %v839_v51, %v1090_v27 }
  0xa2   : > { %v3032_v5 = vsel %vm5794_vm8, %v3030_v48, %v3031_v63  ;;  %v3545_v22 = vor.u32 %v3544_v36, %v3541_v6  ;;  %v3953_v11 = vld [vmem:[#allocation2 + $0x50] sm:$0x1]  ;;  %v1319_v39 = vld [vmem:[#allocation2 + $0x48] sm:$0xf]  ;;  %1092 = vst [vmem:[#allocation2 + $0x5c] sm:$0x1] %v1091_v24  ;;  %v6309_v50 = vpop.permute.xlu0 %2285  ;;  %v6337_v21 = vmul.f32 %v6129_v10, %v6270_v34 }
  0xa3   : > { %v5223_v30 = vcombine.low %v6283_v46, %v3032_v5  ;;  %v3554_v31 = vrot.slane %v3552_v25, 4  ;;  %v3560_v33 = vrot.slane %v3558_v58, 5  ;;  %v5270_v35 = vrot.slane %v3951_v47, 9  ;;  %v1321_v0 = vld [vmem:[#allocation2 + $0x50] sm:$0x1] }
  0xa4   : > { %v2541_v26 = vsel %vm5847_vm12, %v2536_v37, %v2540_v17  ;;  %v3546_v41 = vrot.slane %v3545_v22, 4  ;;  %v4065_v44 = vrot.slane %v3952_v15, 5  ;;  %v4068_v48 = vrot.slane %v3953_v11, 5 }
  0xa5   : > { %v5191_v20 = vcombine.low %v2531_v2, %v2541_v26  ;;  %v3555_v52 = vor.u32 %v3554_v31, %v3550_v59  ;;  %v1497_v13 = vshrl.u32 %v1319_v39, 16  ;;  %v1500_v53 = vshll.u32 %v1319_v39, 16 }
  0xa6   : > { %v3551_v46 = vsel %vm5847_vm12, %v3546_v41, %v3550_v59  ;;  %v4066_v54 = vsel %vm5794_vm8, %v5270_v35, %v4065_v44  ;;  %v4067_v49 = vrot.slane %v4065_v44, 4  ;;  %v1506_v27 = vshll.u32 %v1320_v43, 16  ;;  %v3409_v37 = vld [vmem:[#allocation2 + $0x54] sm:$0xf]  ;;  %v6329_v2 = vpop.permute.xlu0 %3329  ;;  %v6341_v35 = vpop.permute.xlu1 %3331 }
  0xa7   : > { %2840 = vrot.lane.b32.xlu1 %v5191_v20, %s5708_s21  ;;  %v3556_v40 = vrot.slane %v3555_v52, 4  ;;  %v1499_v3 = vrot.slane %v1497_v13, 4  ;;  %v6321_v47 = vpack.c.bf16 %v483_v29, %v483_v29  ;;  %v3563_v42 = vshrl.u32 %v3409_v37, 16  ;;  %v3954_v6 = vld [vmem:[#allocation2 + $0x54] sm:$0xe] }
  0xa8   : > { %v3566_v38 = vshll.u32 %v3409_v37, 16  ;;  %v4069_v51 = vsel %vm5794_vm8, %v4067_v49, %v4068_v48  ;;  %v1502_v7 = vrot.slane %v1500_v53, 5  ;;  %v3410_v56 = vld [vmem:[#allocation2 + $0x58] sm:$0xf]  ;;  %v6333_v29 = vrot.slane %v1506_v27, 5 }
  0xa9   : > { %v3561_v19 = vsel %vm5847_vm12, %v3556_v40, %v3560_v33  ;;  %v5286_v63 = vcombine.low %v4066_v54, %v4069_v51  ;;  %v3411_v36 = vld [vmem:[#allocation2 + $0x5c] sm:$0x1]  ;;  %v3565_v45 = vrot.slane %v3563_v42, 4  ;;  %v3572_v25 = vshll.u32 %v3410_v56, 16  ;;  %v5645_v58 = vld [vmem:[#allocation2 + $0x54] sm:$0xff]  }
  0xaa   : > { %v5254_v16 = vcombine.low %v3551_v46, %v3561_v19  ;;  %v3568_v59 = vrot.slane %v3566_v38, 5  ;;  %v3576_v15 = vshrl.u32 %v3410_v56, 16  ;;  %v3582_v17 = vshll.u32 %v3411_v36, 16  ;;  %v3955_v24 = vld [vmem:[#allocation2 + $0x58] sm:$0xf]  ;;  %v6343_v26 = vpop.permute.xlu0 %2289 }
  0xab   : > { %3161 = vrot.lane.b32.xlu1 %v5223_v30, %s5706_s19  ;;  %v1503_v5 = vor.u32 %v1502_v7, %v1499_v3  ;;  %v1510_v22 = vshrl.u32 %v1320_v43, 16  ;;  %v3574_v39 = vrot.slane %v3572_v25, 5  ;;  %v1516_v31 = vshll.u32 %v1321_v0, 16  ;;  %v3956_v34 = vld [vmem:[#allocation2 + $0x5c] sm:$0x1] }
  0xac   : > { %3882 = vrot.lane.b32.xlu0 %v5254_v16, %s5709_s22  ;;  %v3569_v11 = vor.u32 %v3568_v59, %v3565_v45  ;;  %v5271_v33 = vrot.slane %v3954_v6, 9  ;;  %v3578_v41 = vrot.slane %v3576_v15, 4  ;;  %v3584_v44 = vrot.slane %v3582_v17, 5  ;;  %v1322_v20 = vld [vmem:[#allocation2 + $0x54] sm:$0xf] }
  0xad   : > { %v1504_v30 = vrot.slane %v1503_v5, 4  ;;  %v1512_v48 = vrot.slane %v1510_v22, 4  ;;  %v1518_v13 = vrot.slane %v1516_v31, 5  ;;  %v4072_v43 = vrot.slane %v3955_v24, 5  ;;  %v1323_v46 = vld [vmem:[#allocation2 + $0x58] sm:$0xf] }
  0xae   : > { %v3570_v52 = vrot.slane %v3569_v11, 4  ;;  %v4075_v53 = vrot.slane %v3956_v34, 5  ;;  %v3579_v54 = vor.u32 %v3578_v41, %v3574_v39  ;;  %v1324_v40 = vld [vmem:[#allocation2 + $0x5c] sm:$0x1]  ;;  %v1521_v37 = vshrl.u32 %v1322_v20, 16 }
  0xaf   : > { %3339 = vrot.lane.b32.xlu1 %v5645_v58, %s5705_s18  ;;  %v1509_v49 = vsel %vm5847_vm12, %v1504_v30, %v6333_v29  ;;  %v1513_v27 = vor.u32 %v1512_v48, %v6333_v29  ;;  %v4073_v3 = vsel %vm5794_vm8, %v5271_v33, %v4072_v43  ;;  %v4074_v42 = vrot.slane %v4072_v43, 4  ;;  %v1867_v51 = vld [vmem:[#allocation2 + $0x48] sm:$0xe]  ;;  %v1868_v7 = vld [vmem:[#allocation2 + $0x4c] sm:$0xf]  ;;  %v6355_v29 = vpop.permute.xlu0 %3151  ;;  %v6359_v58 = vpop.permute.xlu1 %2291 }
  0xb0   : > { %v3575_v0 = vsel %vm5847_vm12, %v3570_v52, %v3574_v39  ;;  %4203 = vrot.lane.b32.xlu0 %v5286_v63, %s5707_s20  ;;  %v1524_v38 = vshll.u32 %v1322_v20, 16  ;;  %v1869_v6 = vld [vmem:[#allocation2 + $0x50] sm:$0x1]  ;;  %v3580_v19 = vrot.slane %v3579_v54, 4  ;;  %v1523_v16 = vrot.slane %v1521_v37, 4 }
  0xb1   : > { %v1514_v56 = vrot.slane %v1513_v27, 4  ;;  %v1530_v36 = vshll.u32 %v1323_v46, 16  ;;  %v4076_v45 = vsel %vm5794_vm8, %v4074_v42, %v4075_v53  ;;  %v1534_v25 = vshrl.u32 %v1323_v46, 16  ;;  %v1870_v24 = vld [vmem:[#allocation2 + $0x54] sm:$0xe] }
  0xb2   : > { %v1526_v59 = vrot.slane %v1524_v38, 5  ;;  %v1540_v63 = vshll.u32 %v1324_v40, 16  ;;  %v3585_v15 = vsel %vm5847_vm12, %v3580_v19, %v3584_v44  ;;  %v5287_v5 = vcombine.low %v4073_v3, %v4076_v45  ;;  %v1871_v11 = vld [vmem:[#allocation2 + $0x58] sm:$0xf]  ;;  %v1872_v41 = vld [vmem:[#allocation2 + $0x5c] sm:$0x1] }
  0xb3   : > { %v1519_v17 = vsel %vm5847_vm12, %v1514_v56, %v1518_v13  ;;  %v1532_v22 = vrot.slane %v1530_v36, 5  ;;  %v5255_v39 = vcombine.low %v3575_v0, %v3585_v15  ;;  %v1536_v33 = vrot.slane %v1534_v25, 4  ;;  %v6367_v46 = vpop.permute.xlu1 %2110  ;;  %v2368_v37 = vld [vmem:[#allocation2 + $0x54] sm:$0xf]  ;;  %v2369_v56 = vld [vmem:[#allocation2 + $0x58] sm:$0xf] }
  0xb4   : > { %v5128_v31 = vcombine.low %v1509_v49, %v1519_v17  ;;  %v1527_v34 = vor.u32 %v1526_v59, %v1523_v16  ;;  %4205 = vrot.lane.b32.xlu0 %v5287_v5, %s5707_s20  ;;  %v1542_v30 = vrot.slane %v1540_v63, 5  ;;  %v5144_v48 = vrot.slane %v1867_v51, 9  ;;  %v593_v16 = vld [vmem:[#allocation2 + $0x68] sm:$0x1]  ;;  %v5646_v25 = vld [vmem:[#allocation2 + $0x54] sm:$0xff]  }
  0xb5   : > { %v1992_v20 = vrot.slane %v1868_v7, 5  ;;  %v1995_v52 = vrot.slane %v1869_v6, 5  ;;  %3884 = vrot.lane.b32.xlu1 %v5255_v39, %s5709_s22  ;;  %v1537_v43 = vor.u32 %v1536_v33, %v1532_v22  ;;  %v5145_v13 = vrot.slane %v1870_v24, 9  ;;  %v6372_v0 = vpop.permute.xlu0 %4195  ;;  %v1093_v63 = vld [vmem:[#allocation2 + $0x60] sm:$0xf] }
  0xb6   : > { %v1528_v44 = vrot.slane %v1527_v34, 4  ;;  %v1999_v53 = vrot.slane %v1871_v11, 5  ;;  %v2002_v27 = vrot.slane %v1872_v41, 5  ;;  %v484_v40 = vmax.f32 %v6248_v61, 0.0  ;;  %v2370_v15 = vld [vmem:[#allocation2 + $0x5c] sm:$0x1] }
  0xb7   : > { %v1993_v54 = vsel %vm5794_vm8, %v5144_v48, %v1992_v20  ;;  %v1994_v49 = vrot.slane %v1992_v20, 4  ;;  %v1538_v42 = vrot.slane %v1537_v43, 4  ;;  %v841_v19 = vshrl.u32 %v6321_v47, 16  ;;  %v6389_v5 = vpop.permute.xlu1 %3153  ;;  %v2913_v39 = vld [vmem:[#allocation2 + $0x54] sm:$0xe]  ;;  %v5648_v20 = vld [vmem:[#allocation2] sm:$0xff]  }
  0xb8   : > { %v1533_v3 = vsel %vm5847_vm12, %v1528_v44, %v1532_v22  ;;  %v6378_v38 = vsel %vm5794_vm8, %v5145_v13, %v1999_v53  ;;  %v2001_v51 = vrot.slane %v1999_v53, 4  ;;  %v5374_v6 = vpack.c.bf16 %v484_v40, %v484_v40  ;;  %v5658_v44 = vld [vmem:[#allocation2 + $0x18] sm:$0xff]  }
  0xb9   : > { %v1996_v7 = vsel %vm5794_vm8, %v1994_v49, %v1995_v52  ;;  %v844_v61 = vshll.u32 %v6321_v47, 16  ;;  %1796 = vrot.lane.b32.xlu1 %v5128_v31, %s5703_s16  ;;  %v1543_v36 = vsel %vm5847_vm12, %v1538_v42, %v1542_v30  ;;  %v2543_v17 = vshrl.u32 %v2368_v37, 16  ;;  %v2914_v31 = vld [vmem:[#allocation2 + $0x58] sm:$0xf]  ;;  %v6392_v34 = vpop.permute.xlu0 %4197  ;;  %v5654_v52 = vld [vmem:[#allocation2 + $0xc] sm:$0xff]  }
  0xba   : > { %v5160_v45 = vcombine.low %v1993_v54, %v1996_v7  ;;  %v2003_v59 = vsel %vm5794_vm8, %v2001_v51, %v2002_v27  ;;  %v5129_v22 = vcombine.low %v1533_v3, %v1543_v36  ;;  %v843_v24 = vrot.slane %v841_v19, 7  ;;  %v2915_v49 = vld [vmem:[#allocation2 + $0x5c] sm:$0x1]  ;;  %v5660_v27 = vld [vmem:[#allocation2 + $0x24] sm:$0xff]   ;;  %v5665_v51 = vld [vmem:[#allocation2 + $0x30] sm:$0xff]  }
  0xbb   : > { %v5161_v47 = vcombine.low %v6378_v38, %v2003_v59  ;;  %v849_v11 = vshrl.u32 %v5374_v6, 16  ;;  %v852_v33 = vshll.u32 %v5374_v6, 16  ;;  %v2545_v41 = vrot.slane %v2543_v17, 4  ;;  %v5666_v7 = vld [vmem:[#allocation2 + $0x3c] sm:$0xff]  }
  0xbc   : > { %2120 = vrot.lane.b32.xlu0 %v5160_v45, %s5702_s15  ;;  %v2546_v30 = vshll.u32 %v2368_v37, 16  ;;  %v2552_v48 = vshll.u32 %v2369_v56, 16  ;;  %v846_v43 = vor.u32 %v844_v61, %v843_v24  ;;  %v847_v13 = vrot.slane %v843_v24, 4  ;;  %v6400_v37 = vpop.permute.xlu1 %2114 }
  0xbd   : > { %v6395_v53 = vrot.slane %v849_v11, 7  ;;  %v2556_v54 = vshrl.u32 %v2369_v56, 16  ;;  %1798 = vrot.lane.b32.xlu1 %v5129_v22, %s5703_s16  ;;  %v2562_v42 = vshll.u32 %v2370_v15, 16  ;;  %v594_v38 = vsel %vm5785_vm7, 0, %v593_v16  ;;  %v540_v15 = vld [vmem:[#allocation2 + $0x6c] sm:$0x1]  ;;  %v6409_v11 = vpop.permute.xlu0 %2112 }
  0xbe   : > { %v2548_v40 = vrot.slane %v2546_v30, 5  ;;  %v2554_v3 = vrot.slane %v2552_v48, 5  ;;  %v1094_v61 = vsel %vm5854_vm13, %v846_v43, %v1093_v63  ;;  %595 = vst [vmem:[#allocation2 + $0x68] sm:$0x1] %v594_v38  ;;  %v5208_v59 = vrot.slane %v2913_v39, 9  ;;  %v6437_v43 = vld [vmem:[%s5801_s10 + $0x58] sm:$0xff]  }
  0xbf   : > { %v854_v6 = vor.u32 %v852_v33, %v6395_v53  ;;  %v856_v19 = vrot.slane %v6395_v53, 4  ;;  %v2558_v56 = vrot.slane %v2556_v54, 4  ;;  %1095 = vst [vmem:[#allocation2 + $0x60] sm:$0xf] %v1094_v61  ;;  %v2564_v45 = vrot.slane %v2562_v42, 5 }
  0xc0   : > { %2297 = vrot.lane.b32.xlu0 %v5646_v25, %s5704_s17  ;;  %v2549_v36 = vor.u32 %v2548_v40, %v2545_v41  ;;  %v3035_v16 = vrot.slane %v2914_v31, 5  ;;  %v3038_v24 = vrot.slane %v2915_v49, 5  ;;  %vm7555_vm15 = vcmask 64512   ;;  %v6418_v31 = vpop.permute.xlu1 %2832  ;;  %v596_v48 = vld [vmem:[#allocation2 + $0x74] sm:$0x1] }
  0xc1   : > { %v855_v17 = vsel %vm5863_vm14, %v847_v13, %v854_v6  ;;  %v2559_v22 = vor.u32 %v2558_v56, %v2554_v3  ;;  %2122 = vrot.lane.b32.xlu1 %v5161_v47, %s5702_s15  ;;  %vm1832_vm1 = vcmask 130112   ;;  %1285 = vst.msk [vmem:[#allocation3] sm:$0xff] %vm7555_vm15, %v5648_v20  ;;  %1286 = vst.msk [vmem:[#allocation3 + $0x8] sm:$0xff] %vm7555_vm15, %v5654_v52  ;;  %v485_v33 = vmax.f32 %v6325_v4, 0.0 }
  0xc2   : > { %1096 = vst.msk [vmem:[#allocation2 + $0x64] sm:$0xf] %vm501_vm0, %v855_v17  ;;  %v2550_v63 = vrot.slane %v2549_v36, 4  ;;  %v6415_v25 = vsel %vm5794_vm8, %v5208_v59, %v3035_v16  ;;  %v3037_v39 = vrot.slane %v3035_v16, 4  ;;  %v486_v41 = vmax.f32 %v6337_v21, 0.0 }
  0xc3   : > { %1287 = vst.msk [vmem:[#allocation3 + $0x10] sm:$0xff] %vm7555_vm15, %v5658_v44  ;;  %1288 = vst.msk [vmem:[#allocation3 + $0x18] sm:$0xff] %vm7555_vm15, %v5660_v27  ;;  %v2560_v47 = vrot.slane %v2559_v22, 4  ;;  %v541_v30 = vsel %vm5771_vm3, 0, %v540_v15  ;;  %vm2156_vm2 = vcmask 195712   ;;  %vm7558_vm4 = vcmask 261312  }
  0xc4   : > { %1289 = vst.msk [vmem:[#allocation3 + $0x20] sm:$0xff] %vm7555_vm15, %v5665_v51  ;;  %1290 = vst.msk [vmem:[#allocation3 + $0x28] sm:$0xff] %vm7555_vm15, %v5666_v7  ;;  %v2555_v20 = vsel %vm5847_vm12, %v2550_v63, %v2554_v3  ;;  %v3039_v52 = vsel %vm5794_vm8, %v3037_v39, %v3038_v24  ;;  %v5464_v44 = vld [vmem:[%s5801_s10 + $0x50] sm:$0xff]   ;;  %v5375_v21 = vpack.c.bf16 %v485_v33, %v485_v33  ;;  %v597_v49 = vsel %vm5785_vm7, 0, %v596_v48  ;;  %v6457_v3 = vpop.permute.xlu1 %3876 }
  0xc5   : > { %1833 = vst.msk [vmem:[#allocation3] sm:$0xff] %vm1832_vm1, %v6289_v57  ;;  %542 = vst [vmem:[#allocation2 + $0x6c] sm:$0x1] %v541_v30  ;;  %v2565_v57 = vsel %vm5847_vm12, %v2560_v47, %v2564_v45  ;;  %v5224_v4 = vcombine.low %v6415_v25, %v3039_v52  ;;  %v6442_v13 = vpack.c.bf16 %v486_v41, %v486_v41  ;;  %v1097_v54 = vld [vmem:[#allocation2 + $0x68] sm:$0x1]  ;;  %v5433_v51 = vunpack.c.l.bf16 %v5464_v44 }
  0xc6   : > { %2157 = vst.msk [vmem:[#allocation3] sm:$0xff] %vm2156_vm2, %v6296_v8  ;;  %v5192_v53 = vcombine.low %v2555_v20, %v2565_v57  ;;  %v417_v27 = vsub.f32 %v5430_v14, %v6154_v32  ;;  %v6455_v40 = vmul.f32 %v6129_v10, %v6273_v62  ;;  %v1098_v8 = vsel %vm5771_vm3, %v856_v19, %v1097_v54  ;;  %v2371_v42 = vld [vmem:[#allocation2 + $0x60] sm:$0xf] }
  0xc7   : > { %2334 = vst.msk [vmem:[#allocation3] sm:$0xff] %vm7558_vm4, %v6309_v50  ;;  %v2916_v38 = vld [vmem:[#allocation2 + $0x60] sm:$0xe]  ;;  %598 = vst [vmem:[#allocation2 + $0x74] sm:$0x1] %v597_v49  ;;  %v1787_v50 = vpop.permute.xlu0 %1786  ;;  %v5434_v7 = vunpack.c.h.bf16 %v5464_v44  ;;  %v5437_v6 = vunpack.c.l.bf16 %v6437_v43  ;;  %v2567_v60 = vshrl.u32 %v2371_v42, 16  ;;  %v418_v59 = vsub.f32 %v5433_v51, %v6154_v32 }
  0xc8   : > { %2842 = vrot.lane.b32.xlu0 %v5192_v53, %s5708_s21  ;;  %1099 = vst [vmem:[#allocation2 + $0x68] sm:$0x1] %v1098_v8  ;;  %v2570_v14 = vshll.u32 %v2371_v42, 16  ;;  %v5209_v62 = vrot.slane %v2916_v38, 9  ;;  %v858_v61 = vshrl.u32 %v5375_v21, 16  ;;  %1834 = vst.msk [vmem:[#allocation3 + $0x8] sm:$0xff] %vm1832_vm1, %v1787_v50  ;;  %v6465_v45 = vmul.f32 %v6129_v10, %v417_v27 }
  0xc9   : > { %v5647_v56 = vld [vmem:[#allocation2 + $0x60] sm:$0xff]   ;;  %v861_v19 = vshll.u32 %v5375_v21, 16  ;;  %2158 = vst.msk [vmem:[#allocation3 + $0x8] sm:$0xff] %vm2156_vm2, %v6367_v46  ;;  %v419_v16 = vsub.f32 %v5434_v7, %v6154_v32  ;;  %v2569_v15 = vrot.slane %v2567_v60, 4  ;;  %v866_v39 = vshrl.u32 %v6442_v13, 16 }
  0xca   : > { %v2372_v36 = vld [vmem:[#allocation2 + $0x64] sm:$0xf]  ;;  %v2572_v17 = vrot.slane %v2570_v14, 5  ;;  %2335 = vst.msk [vmem:[#allocation3 + $0x8] sm:$0xff] %vm7558_vm4, %v6315_v55  ;;  %2299 = vrot.lane.b32.xlu1 %v5647_v56, %s5704_s17  ;;  %v860_v10 = vrot.slane %v858_v61, 7  ;;  %v869_v30 = vshll.u32 %v6442_v13, 16  ;;  %v1789_v20 = vpop.permute.xlu1 %1788  ;;  %v5438_v7 = vunpack.c.h.bf16 %v6437_v43 }
  0xcb   : > { %v2576_v22 = vshll.u32 %v2372_v36, 16  ;;  %v2580_v24 = vshrl.u32 %v2372_v36, 16  ;;  %v2917_v63 = vld [vmem:[#allocation2 + $0x64] sm:$0xf]  ;;  %v6478_v46 = vld [vmem:[%s7548_s2] ss:$0 sm:$0xff] }
  0xcc   : > { %v3042_v25 = vrot.slane %v2917_v63, 5  ;;  %v6481_v32 = vmul.f32 %v6478_v46, %v418_v59  ;;  %v2573_v47 = vor.u32 %v2572_v17, %v2569_v15  ;;  %3163 = vrot.lane.b32.xlu0 %v5224_v4, %s5706_s19  ;;  %v5649_v55 = vld [vmem:[#allocation2 + $0x60] sm:$0xff]   ;;  %v1100_v48 = vld [vmem:[#allocation2 + $0x6c] sm:$0xf]  ;;  %v863_v57 = vor.u32 %v861_v19, %v860_v10  ;;  %1835 = vst.msk [vmem:[#allocation3 + $0x10] sm:$0xff] %vm1832_vm1, %v1789_v20 }
  0xcd   : > { %v2578_v33 = vrot.slane %v2576_v22, 5  ;;  %v2582_v41 = vrot.slane %v2580_v24, 4  ;;  %v864_v21 = vrot.slane %v860_v10, 4  ;;  %v3412_v53 = vld [vmem:[#allocation2 + $0x60] sm:$0xf]  ;;  %v868_v27 = vrot.slane %v866_v39, 7  ;;  %v6509_v15 = vpop.permute.xlu0 %2830 }
  0xce   : > { %v6487_v52 = vsel %vm5794_vm8, %v5209_v62, %v3042_v25  ;;  %v3044_v44 = vrot.slane %v3042_v25, 4  ;;  %v2574_v54 = vrot.slane %v2573_v47, 4  ;;  %v3413_v8 = vld [vmem:[#allocation2 + $0x64] sm:$0xf]  ;;  %v3587_v4 = vshrl.u32 %v3412_v53, 16  ;;  %2159 = vst.msk [vmem:[#allocation3 + $0x10] sm:$0xff] %vm2156_vm2, %v6409_v11 }
  0xcf   : > { %v2583_v49 = vor.u32 %v2582_v41, %v2578_v33  ;;  %v2373_v13 = vld [vmem:[#allocation2 + $0x68] sm:$0x1]  ;;  %v1101_v38 = vsel %vm5854_vm13, %v863_v57, %v1100_v48  ;;  %v1104_v50 = vld [vmem:[#allocation2 + $0x74] sm:$0x1]  ;;  %v6495_v51 = vmul.f32 %v6478_v46, %v419_v16  ;;  %2336 = vst.msk [vmem:[#allocation3 + $0x10] sm:$0xff] %vm7558_vm4, %v6343_v26  ;;  %v871_v26 = vor.u32 %v869_v30, %v868_v27 }
  0xd0   : > { %v2918_v42 = vld [vmem:[#allocation2 + $0x68] sm:$0x1]  ;;  %v6503_v60 = vld [vmem:[%s7547_s1] ss:$0 sm:$0xff]  ;;  %v2579_v14 = vsel %vm5847_vm12, %v2574_v54, %v2578_v33  ;;  %v2586_v61 = vshll.u32 %v2373_v13, 16  ;;  %3341 = vrot.lane.b32.xlu0 %v5649_v55, %s5705_s18  ;;  %v873_v19 = vrot.slane %v868_v27, 4 }
  0xd1   : > { %v420_v11 = vsub.f32 %v5437_v6, %v6503_v60  ;;  %v2584_v62 = vrot.slane %v2583_v49, 4  ;;  %v3045_v56 = vrot.slane %v2918_v42, 5  ;;  %1102 = vst [vmem:[#allocation2 + $0x6c] sm:$0xf] %v1101_v38  ;;  %v3414_v36 = vld [vmem:[#allocation2 + $0x68] sm:$0x1]  ;;  %v1791_v25 = vpop.permute.xlu1 %1790  ;;  %v872_v39 = vsel %vm5863_vm14, %v864_v21, %v871_v26 }
  0xd2   : > { %v3589_v43 = vrot.slane %v3587_v4, 4  ;;  %v3590_v59 = vshll.u32 %v3412_v53, 16  ;;  %v3957_v16 = vld [vmem:[#allocation2 + $0x60] sm:$0xe]  ;;  %v2588_v17 = vrot.slane %v2586_v61, 5  ;;  %v3596_v22 = vshll.u32 %v3413_v8, 16 }
  0xd3   : > { %v3046_v6 = vsel %vm5794_vm8, %v3044_v44, %v3045_v56  ;;  %v3600_v24 = vshrl.u32 %v3413_v8, 16  ;;  %v3958_v63 = vld [vmem:[#allocation2 + $0x64] sm:$0xf]  ;;  %v3606_v33 = vshll.u32 %v3414_v36, 16  ;;  %v3959_v41 = vld [vmem:[#allocation2 + $0x68] sm:$0x1]  ;;  %v1105_v44 = vsel %vm5771_vm3, %v873_v19, %v1104_v50 }
  0xd4   : > { %v5225_v10 = vcombine.low %v6487_v52, %v3046_v6  ;;  %v3592_v47 = vrot.slane %v3590_v59, 5  ;;  %v1325_v55 = vld [vmem:[#allocation2 + $0x60] sm:$0xf]  ;;  %1836 = vst.msk [vmem:[#allocation3 + $0x18] sm:$0xff] %vm1832_vm1, %v1791_v25  ;;  %v2589_v30 = vsel %vm5847_vm12, %v2584_v62, %v2588_v17  ;;  %v3598_v48 = vrot.slane %v3596_v22, 5 }
  0xd5   : > { %1103 = vst.msk [vmem:[#allocation2 + $0x70] sm:$0xf] %vm501_vm0, %v872_v39  ;;  %v3602_v20 = vrot.slane %v3600_v24, 4  ;;  %v5193_v52 = vcombine.low %v2579_v14, %v2589_v30  ;;  %v3608_v21 = vrot.slane %v3606_v33, 5  ;;  %1106 = vst [vmem:[#allocation2 + $0x74] sm:$0x1] %v1105_v44  ;;  %v6533_v14 = vmul.f32 %v6478_v46, %v420_v11 }
  0xd6   : > { %2160 = vst.msk [vmem:[#allocation3 + $0x18] sm:$0xff] %vm2156_vm2, %v6400_v37  ;;  %v3593_v57 = vor.u32 %v3592_v47, %v3589_v43  ;;  %v5272_v53 = vrot.slane %v3957_v16, 9  ;;  %v4079_v49 = vrot.slane %v3958_v63, 5  ;;  %v4082_v27 = vrot.slane %v3959_v41, 5  ;;  %v1326_v8 = vld [vmem:[#allocation2 + $0x64] sm:$0xf]  ;;  %v6527_v50 = vpop.permute.xlu0 %3874 }
  0xd7   : > { %2337 = vst.msk [vmem:[#allocation3 + $0x18] sm:$0xff] %vm7558_vm4, %v6359_v58  ;;  %v3603_v54 = vor.u32 %v3602_v20, %v3598_v48  ;;  %v1545_v4 = vshrl.u32 %v1325_v55, 16  ;;  %2844 = vrot.lane.b32.xlu1 %v5193_v52, %s5708_s21  ;;  %v1548_v38 = vshll.u32 %v1325_v55, 16  ;;  %v6530_v37 = vsub.f32 %v5438_v7, %v6503_v60  ;;  %v1327_v19 = vld [vmem:[#allocation2 + $0x68] sm:$0x1] }
  0xd8   : > { %v3594_v13 = vrot.slane %v3593_v57, 4  ;;  %v3415_v42 = vld [vmem:[#allocation2 + $0x6c] sm:$0xf]  ;;  %v4080_v56 = vsel %vm5794_vm8, %v5272_v53, %v4079_v49  ;;  %v4081_v26 = vrot.slane %v4079_v49, 4  ;;  %v1554_v11 = vshll.u32 %v1326_v8, 16 }
  0xd9   : > { %v3604_v62 = vrot.slane %v3603_v54, 4  ;;  %v3611_v58 = vshrl.u32 %v3415_v42, 16  ;;  %v3614_v61 = vshll.u32 %v3415_v42, 16  ;;  %v1547_v43 = vrot.slane %v1545_v4, 4  ;;  %v3960_v6 = vld [vmem:[#allocation2 + $0x6c] sm:$0xe] }
  0xda   : > { %v3599_v36 = vsel %vm5847_vm12, %v3594_v13, %v3598_v48  ;;  %v1550_v59 = vrot.slane %v1548_v38, 5  ;;  %v4083_v25 = vsel %vm5794_vm8, %v4081_v26, %v4082_v27  ;;  %v1558_v47 = vshrl.u32 %v1326_v8, 16  ;;  %v1328_v20 = vld [vmem:[#allocation2 + $0x6c] sm:$0xf] }
  0xdb   : > { %v3609_v7 = vsel %vm5847_vm12, %v3604_v62, %v3608_v21  ;;  %v3613_v16 = vrot.slane %v3611_v58, 4  ;;  %v3616_v17 = vrot.slane %v3614_v61, 5  ;;  %3165 = vrot.lane.b32.xlu1 %v5225_v10, %s5706_s19  ;;  %v5288_v48 = vcombine.low %v4080_v56, %v4083_v25  ;;  %v6544_v44 = vpop.permute.xlu0 %2834  ;;  %v1875_v25 = vld [vmem:[#allocation2 + $0x68] sm:$0x1] }
  0xdc   : > { %v5650_v22 = vld [vmem:[#allocation2 + $0x6c] sm:$0xff]   ;;  %v5256_v24 = vcombine.low %v3599_v36, %v3609_v7  ;;  %v1551_v39 = vor.u32 %v1550_v59, %v1547_v43  ;;  %v3417_v33 = vld [vmem:[#allocation2 + $0x74] sm:$0x1]  ;;  %v1556_v57 = vrot.slane %v1554_v11, 5  ;;  %v1560_v21 = vrot.slane %v1558_v47, 4 }
  0xdd   : > { %v3416_v63 = vld [vmem:[#allocation2 + $0x70] sm:$0xf]  ;;  %v3617_v41 = vor.u32 %v3616_v17, %v3613_v16  ;;  %v3630_v52 = vshll.u32 %v3417_v33, 16  ;;  %v1564_v4 = vshll.u32 %v1327_v19, 16  ;;  %v3962_v8 = vld [vmem:[#allocation2 + $0x74] sm:$0x1] }
  0xde   : > { %v3620_v55 = vshll.u32 %v3416_v63, 16  ;;  %v3624_v30 = vshrl.u32 %v3416_v63, 16  ;;  %3886 = vrot.lane.b32.xlu0 %v5256_v24, %s5709_s22  ;;  %v1552_v10 = vrot.slane %v1551_v39, 4  ;;  %v3961_v53 = vld [vmem:[#allocation2 + $0x70] sm:$0xf]  ;;  %v1561_v38 = vor.u32 %v1560_v21, %v1556_v57 }
  0xdf   : > { %v3618_v54 = vrot.slane %v3617_v41, 4  ;;  %3343 = vrot.lane.b32.xlu1 %v5650_v22, %s5705_s18  ;;  %v3632_v13 = vrot.slane %v3630_v52, 5  ;;  %v5273_v62 = vrot.slane %v3960_v6, 9  ;;  %v1329_v58 = vld [vmem:[#allocation2 + $0x70] sm:$0xf]  ;;  %v1566_v36 = vrot.slane %v1564_v4, 5  ;;  %v6553_v11 = vpop.permute.xlu0 %3155 }
  0xe0   : > { %v3622_v49 = vrot.slane %v3620_v55, 5  ;;  %v3626_v27 = vrot.slane %v3624_v30, 4  ;;  %v1557_v42 = vsel %vm5847_vm12, %v1552_v10, %v1556_v57  ;;  %v4086_v26 = vrot.slane %v3961_v53, 5  ;;  %v1873_v16 = vld [vmem:[#allocation2 + $0x60] sm:$0xe] }
  0xe1   : > { %v1562_v43 = vrot.slane %v1561_v38, 4  ;;  %v4089_v19 = vrot.slane %v3962_v8, 5  ;;  %v1569_v59 = vshrl.u32 %v1328_v20, 16  ;;  %v1572_v7 = vshll.u32 %v1328_v20, 16  ;;  %v1874_v17 = vld [vmem:[#allocation2 + $0x64] sm:$0xf] }
  0xe2   : > { %v3623_v61 = vsel %vm5847_vm12, %v3618_v54, %v3622_v49  ;;  %v3627_v56 = vor.u32 %v3626_v27, %v3622_v49  ;;  %4207 = vrot.lane.b32.xlu0 %v5288_v48, %s5707_s20  ;;  %v4087_v6 = vsel %vm5794_vm8, %v5273_v62, %v4086_v26  ;;  %v4088_v24 = vrot.slane %v4086_v26, 4  ;;  %v1330_v47 = vld [vmem:[#allocation2 + $0x74] sm:$0x1]  ;;  %v1876_v10 = vld [vmem:[#allocation2 + $0x6c] sm:$0xe] }
  0xe3   : > { %v1578_v63 = vshll.u32 %v1329_v58, 16  ;;  %v1567_v39 = vsel %vm5847_vm12, %v1562_v43, %v1566_v36  ;;  %v1571_v33 = vrot.slane %v1569_v59, 4  ;;  %v1574_v41 = vrot.slane %v1572_v7, 5  ;;  %v1877_v57 = vld [vmem:[#allocation2 + $0x70] sm:$0xf]  ;;  %v6565_v43 = vpop.permute.xlu0 %3333 }
  0xe4   : > { %v3628_v22 = vrot.slane %v3627_v56, 4  ;;  %v1582_v55 = vshrl.u32 %v1329_v58, 16  ;;  %v5130_v48 = vcombine.low %v1557_v42, %v1567_v39  ;;  %v4090_v20 = vsel %vm5794_vm8, %v4088_v24, %v4089_v19  ;;  %v1878_v27 = vld [vmem:[#allocation2 + $0x74] sm:$0x1]  ;;  %v543_v58 = vld [vmem:[#allocation2 + $0x78] sm:$0x1] }
  0xe5   : > { %v1580_v52 = vrot.slane %v1578_v63, 5  ;;  %v5289_v53 = vcombine.low %v4087_v6, %v4090_v20  ;;  %v1575_v54 = vor.u32 %v1574_v41, %v1571_v33  ;;  %v1588_v4 = vshll.u32 %v1330_v47, 16  ;;  %v2374_v26 = vld [vmem:[#allocation2 + $0x6c] sm:$0xf] }
  0xe6   : > { %v3633_v30 = vsel %vm5847_vm12, %v3628_v22, %v3632_v13  ;;  %v1584_v49 = vrot.slane %v1582_v55, 4  ;;  %v5146_v8 = vrot.slane %v1873_v16, 9  ;;  %v2006_v38 = vrot.slane %v1874_v17, 5  ;;  %v2375_v16 = vld [vmem:[#allocation2 + $0x70] sm:$0xf]  ;;  %v6569_v17 = vpop.permute.xlu1 %2836 }
  0xe7   : > { %v5257_v21 = vcombine.low %v3623_v61, %v3633_v30  ;;  %v2009_v62 = vrot.slane %v1875_v25, 5  ;;  %4209 = vrot.lane.b32.xlu0 %v5289_v53, %s5707_s20  ;;  %v1576_v13 = vrot.slane %v1575_v54, 4  ;;  %v5147_v56 = vrot.slane %v1876_v10, 9  ;;  %v2919_v53 = vld [vmem:[#allocation2 + $0x6c] sm:$0xe] }
  0xe8   : > { %v1585_v42 = vor.u32 %v1584_v49, %v1580_v52  ;;  %v2013_v36 = vrot.slane %v1877_v57, 5  ;;  %v1590_v61 = vrot.slane %v1588_v4, 5  ;;  %v2007_v19 = vsel %vm5794_vm8, %v5146_v8, %v2006_v38  ;;  %v5651_v54 = vld [vmem:[#allocation2 + $0x6c] sm:$0xff]  }
  0xe9   : > { %3888 = vrot.lane.b32.xlu1 %v5257_v21, %s5709_s22  ;;  %v2008_v59 = vrot.slane %v2006_v38, 4  ;;  %v2016_v7 = vrot.slane %v1878_v27, 5  ;;  %v1581_v22 = vsel %vm5847_vm12, %v1576_v13, %v1580_v52  ;;  %v487_v39 = vmax.f32 %v6455_v40, 0.0  ;;  %v2376_v21 = vld [vmem:[#allocation2 + $0x74] sm:$0x1]  ;;  %v6587_v8 = vpop.permute.xlu0 %3878  ;;  %v5671_v38 = vld [vmem:[#allocation2 + $0x48] sm:$0xff]  }
  0xea   : > { %v1586_v6 = vrot.slane %v1585_v42, 4  ;;  %v2014_v24 = vsel %vm5794_vm8, %v5147_v56, %v2013_v36  ;;  %v2015_v63 = vrot.slane %v2013_v36, 4  ;;  %v488_v47 = vmax.f32 %v6465_v45, 0.0  ;;  %v599_v45 = vld [vmem:[#allocation2 + $0x80] sm:$0x1]  ;;  %v3158_v36 = vpop.permute.xlu1 %3157  ;;  %1291 = vst.msk [vmem:[#allocation3 + $0x30] sm:$0xff] %vm7555_vm15, %v5671_v38 }
  0xeb   : > { %v2010_v25 = vsel %vm5794_vm8, %v2008_v59, %v2009_v62  ;;  %v544_v33 = vsel %vm5771_vm3, 0, %v543_v58  ;;  %v2591_v20 = vshrl.u32 %v2374_v26, 16  ;;  %v5377_v57 = vpack.c.bf16 %v487_v39, %v487_v39  ;;  %v2920_v56 = vld [vmem:[#allocation2 + $0x70] sm:$0xf]  ;;  %v2921_v39 = vld [vmem:[#allocation2 + $0x74] sm:$0x1] }
  0xec   : > { %v1591_v41 = vsel %vm5847_vm12, %v1586_v6, %v1590_v61  ;;  %v5162_v55 = vcombine.low %v2007_v19, %v2010_v25  ;;  %v2017_v30 = vsel %vm5794_vm8, %v2015_v63, %v2016_v7  ;;  %545 = vst [vmem:[#allocation2 + $0x78] sm:$0x1] %v544_v33  ;;  %v5378_v40 = vpack.c.bf16 %v488_v47, %v488_v47  ;;  %v5672_v33 = vld [vmem:[#allocation2 + $0x54] sm:$0xff]  }
  0xed   : > { %1800 = vrot.lane.b32.xlu1 %v5130_v48, %s5703_s16  ;;  %v5131_v52 = vcombine.low %v1581_v22, %v1591_v41  ;;  %v5163_v10 = vcombine.low %v2014_v24, %v2017_v30  ;;  %v2593_v48 = vrot.slane %v2591_v20, 4  ;;  %v2594_v49 = vshll.u32 %v2374_v26, 16  ;;  %1292 = vst.msk [vmem:[#allocation3 + $0x38] sm:$0xff] %vm7555_vm15, %v5672_v33 }
  0xee   : > { %2124 = vrot.lane.b32.xlu0 %v5162_v55, %s5702_s15  ;;  %v2600_v27 = vshll.u32 %v2375_v16, 16  ;;  %v2604_v4 = vshrl.u32 %v2375_v16, 16  ;;  %v875_v62 = vshrl.u32 %v5377_v57, 16  ;;  %v878_v58 = vshll.u32 %v5377_v57, 16 }
  0xef   : > { %v883_v13 = vshrl.u32 %v5378_v40, 16  ;;  %v886_v42 = vshll.u32 %v5378_v40, 16  ;;  %v2596_v61 = vrot.slane %v2594_v49, 5  ;;  %v2610_v7 = vshll.u32 %v2376_v21, 16 }
  0xf0   : > { %v2602_v19 = vrot.slane %v2600_v27, 5  ;;  %v2606_v59 = vrot.slane %v2604_v4, 4  ;;  %v877_v26 = vrot.slane %v875_v62, 7  ;;  %v600_v22 = vsel %vm5785_vm7, 0, %v599_v45  ;;  %v546_v27 = vld [vmem:[#allocation2 + $0x84] sm:$0x1]  ;;  %v3336_v4 = vpop.permute.xlu1 %3335 }
  0xf1   : > { %1802 = vrot.lane.b32.xlu1 %v5131_v52, %s5703_s16  ;;  %v6592_v16 = vrot.slane %v883_v13, 7  ;;  %v5210_v6 = vrot.slane %v2919_v53, 9  ;;  %v2597_v24 = vor.u32 %v2596_v61, %v2593_v48  ;;  %v2612_v25 = vrot.slane %v2610_v7, 5  ;;  %601 = vst [vmem:[#allocation2 + $0x80] sm:$0x1] %v600_v22  ;;  %v4200_v53 = vpop.permute.xlu0 %4199  ;;  %v4534_v61 = vld [vmem:[%s6604_s12 + $0x8] sm:$0xff] }
  0xf2   : > { %2301 = vrot.lane.b32.xlu0 %v5651_v54, %s5704_s17  ;;  %v2607_v63 = vor.u32 %v2606_v59, %v2602_v19  ;;  %v3049_v47 = vrot.slane %v2920_v56, 5  ;;  %v880_v41 = vor.u32 %v878_v58, %v877_v26  ;;  %v881_v55 = vrot.slane %v877_v26, 4  ;;  %v5662_v58 = vld [vmem:[%s7549_s3 + $0x20] ss:$0 sps:$4 sm:$0xff]   ;;  %v549_v13 = vld [vmem:[#allocation2 + $0x90] sm:$0x1] }
  0xf3   : > { %v888_v30 = vor.u32 %v886_v42, %v6592_v16  ;;  %v890_v20 = vrot.slane %v6592_v16, 4  ;;  %v1107_v52 = vld [vmem:[#allocation2 + $0x78] sm:$0xf]  ;;  %v2598_v57 = vrot.slane %v2597_v24, 4  ;;  %v3052_v49 = vrot.slane %v2921_v39, 5  ;;  %v6698_v7 = vld [vmem:[%s5801_s10 + $0x68] sm:$0xff]  }
  0xf4   : > { %v2608_v40 = vrot.slane %v2607_v63, 4  ;;  %v6609_v21 = vsel %vm5794_vm8, %v5210_v6, %v3049_v47  ;;  %v3051_v45 = vrot.slane %v3049_v47, 4  ;;  %v1108_v48 = vsel %vm5854_vm13, %v880_v41, %v1107_v52  ;;  %v6701_v26 = vld [vmem:[%s5801_s10 + $0x70] sm:$0xff]   ;;  %v4537_v63 = vld [vmem:[%s6604_s12 + $0x20] sm:$0xff] }
  0xf5   : > { %2126 = vrot.lane.b32.xlu1 %v5163_v10, %s5702_s15  ;;  %v889_v54 = vsel %vm5863_vm14, %v881_v55, %v888_v30  ;;  %vm7557_vm5 = vcmask 326912   ;;  %v602_v10 = vld [vmem:[#allocation2 + $0x8c] sm:$0x1]  ;;  %1109 = vst [vmem:[#allocation2 + $0x78] sm:$0xf] %v1108_v48  ;;  %v2603_v38 = vsel %vm5847_vm12, %v2598_v57, %v2602_v19  ;;  %vm7556_vm6 = vcmask 392512  }
  0xf6   : > { %1110 = vst.msk [vmem:[#allocation2 + $0x7c] sm:$0xf] %vm501_vm0, %v889_v54  ;;  %v2613_v62 = vsel %vm5847_vm12, %v2608_v40, %v2612_v25  ;;  %vm3377_vm9 = vcmask 458112   ;;  %v6634_v56 = vsel %vm5794_vm8, %v3051_v45, %v3052_v49  ;;  %vm3922_vm10 = vcmask 523712  }
  0xf7   : > { %2880 = vst.msk [vmem:[#allocation3 + $0x8] sm:$0xff] %vm7557_vm5, %v6418_v31  ;;  %2879 = vst.msk [vmem:[#allocation3] sm:$0xff] %vm7557_vm5, %v6509_v15  ;;  %v5194_v42 = vcombine.low %v2603_v38, %v2613_v62  ;;  %vm4243_vm11 = vcmask 589312   ;;  %v4565_v31 = vld [vmem:[%s7552_s6] sm:$0xf]  ;;  %vm4368_vm15 = vcmask 1043456   ;;  %v5445_v57 = vunpack.c.l.bf16 %v6698_v7 }
  0xf8   : > { %2881 = vst.msk [vmem:[#allocation3 + $0x10] sm:$0xff] %vm7557_vm5, %v6544_v44  ;;  %2882 = vst.msk [vmem:[#allocation3 + $0x18] sm:$0xff] %vm7557_vm5, %v6569_v17  ;;  %v4533_v15 = vld [vmem:[%s6604_s12] sm:$0xff]  ;;  %v5226_v44 = vcombine.low %v6609_v21, %v6634_v56  ;;  %v547_v17 = vsel %vm5771_vm3, 0, %v546_v27  ;;  %vm4319_vm5 = vcmask 588800   ;;  %5566 = vmatprep.subr.msk.mxu1 %vm4368_vm15, %v4565_v31  ;;  %5616 = vmatprep.subr.msk.bf16.mxu0 %vm4368_vm15, %v5662_v58  ;;  %v550_v19 = vsel %vm5771_vm3, 0, %v549_v13 }
  0xf9   : > { %3201 = vst.msk [vmem:[#allocation3 + $0x8] sm:$0xff] %vm7556_vm6, %v6389_v5  ;;  %3200 = vst.msk [vmem:[#allocation3] sm:$0xff] %vm7556_vm6, %v6355_v29  ;;  %v489_v5 = vmax.f32 %v6481_v32, 0.0  ;;  %v490_v29 = vmax.f32 %v6495_v51, 0.0  ;;  %2846 = vrot.lane.b32.xlu0 %v5194_v42, %s5708_s21  ;;  %v603_v32 = vsel %vm5785_vm7, 0, %v602_v10  ;;  %5567 = vmatpush3.msk.msra.mxu1 %vm4368_vm15, %v4565_v31  ;;  %v5446_v40 = vunpack.c.h.bf16 %v6698_v7  ;;  %v4538_v27 = vld [vmem:[%s6604_s12 + $0x28] sm:$0xff] }
  0xfa   : > { %3202 = vst.msk [vmem:[#allocation3 + $0x10] sm:$0xff] %vm7556_vm6, %v6553_v11  ;;  %3203 = vst.msk [vmem:[#allocation3 + $0x18] sm:$0xff] %vm7556_vm6, %v3158_v36  ;;  %v605_v11 = vld [vmem:[#allocation2 + $0x98] sm:$0x1]  ;;  %vm4566_vm6 = vcmask 31744   ;;  %v491_v36 = vmax.f32 %v6533_v14, 0.0  ;;  %v5449_v21 = vunpack.c.l.bf16 %v6701_v26  ;;  %v5450_v13 = vunpack.c.h.bf16 %v6701_v26 }
  0xfb   : > { %3379 = vst.msk [vmem:[#allocation3 + $0x8] sm:$0xff] %vm3377_vm9, %v6341_v35  ;;  %3378 = vst.msk [vmem:[#allocation3] sm:$0xff] %vm3377_vm9, %v6329_v2  ;;  %v1111_v35 = vld [vmem:[#allocation2 + $0x80] sm:$0x1]  ;;  %v6676_v51 = vpack.c.bf16 %v490_v29, %v490_v29  ;;  %5568 = vmatprep.mubr.msk.f32.mxu1 %vm4566_vm6, %v4533_v15  ;;  %v606_v59 = vsel %vm5785_vm7, 0, %v605_v11  ;;  %v4536_v14 = vld [vmem:[%s6604_s12 + $0x18] sm:$0xff]  ;;  %v3881_v24 = vpop.permute.xlu1 %3880 }
  0xfc   : > { %3380 = vst.msk [vmem:[#allocation3 + $0x10] sm:$0xff] %vm3377_vm9, %v6565_v43  ;;  %3381 = vst.msk [vmem:[#allocation3 + $0x18] sm:$0xff] %vm3377_vm9, %v3336_v4  ;;  %v1112_v2 = vsel %vm5771_vm3, %v890_v20, %v1111_v35  ;;  %v4535_v43 = vld [vmem:[%s6604_s12 + $0x10] sm:$0xff]  ;;  %5569 = vmatmul.mubr.msk.f32.vlgmr.msra.gmra.mrb[0].mxu1 %vm4566_vm6, %v4534_v61  ;;  %v6712_v47 = vpack.c.bf16 %v491_v36, %v491_v36  ;;  %v2377_v41 = vld [vmem:[#allocation2 + $0x78] sm:$0xf] }
  0xfd   : > { %3924 = vst.msk [vmem:[#allocation3 + $0x8] sm:$0xff] %vm3922_vm10, %v6457_v3  ;;  %548 = vst [vmem:[#allocation2 + $0x84] sm:$0x1] %v547_v17  ;;  %v6674_v3 = vpack.c.bf16 %v489_v5, %v489_v5  ;;  %v900_v6 = vshrl.u32 %v6676_v51, 16  ;;  %v5652_v25 = vld [vmem:[#allocation2 + $0x78] sm:$0xff]   ;;  %3167 = vrot.lane.b32.xlu0 %v5226_v44, %s5706_s19  ;;  %5571 = vmatprep.mubr.msk.f32.mxu1 %vm4566_vm6, %v4535_v43  ;;  %v2615_v45 = vshrl.u32 %v2377_v41, 16 }
  0xfe   : > { %3923 = vst.msk [vmem:[#allocation3] sm:$0xff] %vm3922_vm10, %v6527_v50  ;;  %3925 = vst.msk [vmem:[#allocation3 + $0x10] sm:$0xff] %vm3922_vm10, %v6587_v8  ;;  %v4370_v50 = vsel %vm4368_vm15, %v5662_v58, 0  ;;  %v6686_v8 = vld [vmem:[%s5801_s10 + $0x60] sm:$0xff]   ;;  %v2378_v55 = vld [vmem:[#allocation2 + $0x7c] sm:$0xf]  ;;  %2303 = vrot.lane.b32.xlu1 %v5652_v25, %s5704_s17 }
  0xff   : > { %4245 = vst.msk [vmem:[#allocation3 + $0x8] sm:$0xff] %vm4243_vm11, %v6392_v34  ;;  %604 = vst [vmem:[#allocation2 + $0x8c] sm:$0x1] %v603_v32  ;;  %v4202_v34 = vpop.permute.xlu0 %4201  ;;  %v892_v16 = vshrl.u32 %v6674_v3, 16  ;;  %v895_v22 = vshll.u32 %v6674_v3, 16  ;;  %5533 = vmatpush3.bf16.msra.mxu0 %v4370_v50  ;;  %v5441_v33 = vunpack.c.l.bf16 %v6686_v8  ;;  %v5442_v20 = vunpack.c.h.bf16 %v6686_v8  ;;  %v1793_v62 = vpop.permute.xlu1 %1792  ;;  %v4539_v58 = vld [vmem:[%s6604_s12 + $0x30] sm:$0xff] }
 0x100   : > { %4244 = vst.msk [vmem:[#allocation3] sm:$0xff] %vm4243_vm11, %v6372_v0  ;;  %4246 = vst.msk [vmem:[#allocation3 + $0x10] sm:$0xff] %vm4243_vm11, %v4200_v53  ;;  %v460_v0 = vmul.f32 %v6478_v46, %v6530_v37  ;;  %v903_v37 = vshll.u32 %v6676_v51, 16  ;;  %v2922_v30 = vld [vmem:[#allocation2 + $0x78] sm:$0xe]  ;;  %v2618_v53 = vshll.u32 %v2377_v41, 16  ;;  %5572 = vmatmul.mubr.msk.f32.gmra.mrb[2].mxu1 %vm4566_vm6, %v4536_v14 }
 0x101   : > { %1113 = vst [vmem:[#allocation2 + $0x80] sm:$0x1] %v1112_v2  ;;  %551 = vst [vmem:[#allocation2 + $0x90] sm:$0x1] %v550_v19  ;;  %v2624_v54 = vshll.u32 %v2378_v55, 16  ;;  %v2628_v48 = vshrl.u32 %v2378_v55, 16  ;;  %5574 = vmatprep.mubr.msk.f32.mxu1 %vm4566_vm6, %v4537_v63  ;;  %v6736_v32 = vsub.f32 %v5441_v33, %v6503_v60 }
 0x102   : > { %607 = vst [vmem:[#allocation2 + $0x98] sm:$0x1] %v606_v59  ;;  %v492_v39 = vmax.f32 %v460_v0, 0.0  ;;  %3926 = vst.msk [vmem:[#allocation3 + $0x18] sm:$0xff] %vm3922_vm10, %v3881_v24  ;;  %v2923_v49 = vld [vmem:[#allocation2 + $0x7c] sm:$0xf]  ;;  %v6746_v24 = vsub.f32 %v5442_v20, %v6503_v60 }
 0x103   : > { %4247 = vst.msk [vmem:[#allocation3 + $0x18] sm:$0xff] %vm4243_vm11, %v4202_v34  ;;  %v2117_v52 = vpop.permute.xlu0 %2116  ;;  %v5211_v10 = vrot.slane %v2922_v30, 9  ;;  %v3056_v4 = vrot.slane %v2923_v49, 5  ;;  %v2617_v42 = vrot.slane %v2615_v45, 4  ;;  %v2620_v56 = vrot.slane %v2618_v53, 5  ;;  %v5655_v44 = vld [vmem:[#allocation2 + $0x78] sm:$0xff]   ;;  %v1795_v14 = vpop.permute.xlu1 %1794 }
 0x104   : > { %v6724_v38 = vpack.c.bf16 %v492_v39, %v492_v39  ;;  %v2626_v31 = vrot.slane %v2624_v54, 5  ;;  %v2630_v15 = vrot.slane %v2628_v48, 4  ;;  %1837 = vst.msk [vmem:[#allocation3 + $0x20] sm:$0xff] %vm1832_vm1, %v1793_v62  ;;  %v894_v35 = vrot.slane %v892_v16, 7  ;;  %3345 = vrot.lane.b32.xlu0 %v5655_v44, %s5705_s18  ;;  %v1114_v0 = vld [vmem:[#allocation2 + $0x84] sm:$0xf]  ;;  %5575 = vmatmul.mubr.msk.f32.gmra.mrb[4].mxu1 %vm4566_vm6, %v4538_v27 }
 0x105   : > { %v6732_v61 = vsel %vm5794_vm8, %v5211_v10, %v3056_v4  ;;  %v3058_v11 = vrot.slane %v3056_v4, 4  ;;  %2161 = vst.msk [vmem:[#allocation3 + $0x20] sm:$0xff] %vm2156_vm2, %v2117_v52  ;;  %v2621_v50 = vor.u32 %v2620_v56, %v2617_v42  ;;  %v902_v59 = vrot.slane %v900_v6, 7  ;;  %v3418_v16 = vld [vmem:[#allocation2 + $0x78] sm:$0xf]  ;;  %v4541_v25 = vld [vmem:[%s6604_s12 + $0x40] sm:$0xff]  ;;  %5577 = vmatprep.mubr.msk.f32.mxu1 %vm4566_vm6, %v4539_v58 }
 0x106   : > { %v2631_v43 = vor.u32 %v2630_v15, %v2626_v31  ;;  %v897_v36 = vor.u32 %v895_v22, %v894_v35  ;;  %v898_v19 = vrot.slane %v894_v35, 4  ;;  %v4540_v63 = vld [vmem:[%s6604_s12 + $0x38] sm:$0xff]  ;;  %v4261_v55 = vld [vmem:[#allocation3 + $0x8] sm:$0xff]  ;;  %1838 = vst.msk [vmem:[#allocation3 + $0x28] sm:$0xff] %vm1832_vm1, %v1795_v14  ;;  %v1118_v45 = vld [vmem:[#allocation2 + $0x8c] sm:$0x1] }
 0x107   : > { %v4260_v5 = vld [vmem:[#allocation3] sm:$0xff]  ;;  %v2294_v2 = vpop.permute.xlu0 %2293  ;;  %v2622_v39 = vrot.slane %v2621_v50, 4  ;;  %v905_v6 = vor.u32 %v903_v37, %v902_v59  ;;  %v907_v30 = vrot.slane %v902_v59, 4  ;;  %v4262_v53 = vld [vmem:[#allocation3 + $0x10] sm:$0xff]  ;;  %v3635_v49 = vshrl.u32 %v3418_v16, 16 }
 0x108   : > { %v2379_v29 = vld [vmem:[#allocation2 + $0x80] sm:$0x1]  ;;  %5534 = vmatprep.mubr.msk.bf16.mxu0 %vm4319_vm5, %v4260_v5  ;;  %2338 = vst.msk [vmem:[#allocation3 + $0x20] sm:$0xff] %vm7558_vm4, %v2294_v2  ;;  %v2632_v33 = vrot.slane %v2631_v43, 4  ;;  %v3419_v22 = vld [vmem:[#allocation2 + $0x7c] sm:$0xf]  ;;  %v1115_v20 = vsel %vm5854_vm13, %v897_v36, %v1114_v0  ;;  %5578 = vmatmul.mubr.msk.f32.gmra.mrb[6].mxu1 %vm4566_vm6, %v4540_v63 }
 0x109   : > { %v2924_v17 = vld [vmem:[#allocation2 + $0x80] sm:$0x1]  ;;  %v2634_v34 = vshll.u32 %v2379_v29, 16  ;;  %5535 = vmatmul.mubr.msk.bf16.vlgmr.msra.gmra.mrb[0].mxu0 %vm4319_vm5, %v4261_v55  ;;  %v2627_v54 = vsel %vm5847_vm12, %v2622_v39, %v2626_v31  ;;  %1116 = vst [vmem:[#allocation2 + $0x84] sm:$0xf] %v1115_v20  ;;  %v3638_v27 = vshll.u32 %v3418_v16, 16  ;;  %v906_v4 = vsel %vm5863_vm14, %v898_v19, %v905_v6  ;;  %v2119_v31 = vpop.permute.xlu1 %2118  ;;  %5580 = vmatprep.mubr.msk.f32.mxu1 %vm4566_vm6, %v4541_v25 }
 0x10a   : > { %v3059_v8 = vrot.slane %v2924_v17, 5  ;;  %v3420_v52 = vld [vmem:[#allocation2 + $0x80] sm:$0x1]  ;;  %v3963_v51 = vld [vmem:[#allocation2 + $0x78] sm:$0xe]  ;;  %5538 = vmatprep.mubr.msk.bf16.mxu0 %vm4319_vm5, %v4262_v53  ;;  %v3644_v62 = vshll.u32 %v3419_v22, 16  ;;  %v1119_v29 = vsel %vm5771_vm3, %v907_v30, %v1118_v45  ;;  %v6794_v45 = vmul.f32 %v6478_v46, %v6736_v32 }
 0x10b   : > { %v2636_v41 = vrot.slane %v2634_v34, 5  ;;  %v3964_v37 = vld [vmem:[#allocation2 + $0x7c] sm:$0xf]  ;;  %v3648_v58 = vshrl.u32 %v3419_v22, 16  ;;  %v3965_v42 = vld [vmem:[#allocation2 + $0x80] sm:$0x1]  ;;  %v2839_v39 = vpop.permute.xlu0 %2838 }
 0x10c   : > { %v6753_v3 = vsel %vm5794_vm8, %v3058_v11, %v3059_v8  ;;  %v1331_v56 = vld [vmem:[#allocation2 + $0x78] sm:$0xf]  ;;  %1117 = vst.msk [vmem:[#allocation2 + $0x88] sm:$0xf] %vm501_vm0, %v906_v4  ;;  %v3637_v15 = vrot.slane %v3635_v49, 4  ;;  %v3640_v44 = vrot.slane %v3638_v27, 5 }
 0x10d   : > { %v5227_v60 = vcombine.low %v6732_v61, %v6753_v3  ;;  %v2637_v48 = vsel %vm5847_vm12, %v2632_v33, %v2636_v41  ;;  %v3654_v5 = vshll.u32 %v3420_v52, 16  ;;  %2162 = vst.msk [vmem:[#allocation3 + $0x28] sm:$0xff] %vm2156_vm2, %v2119_v31  ;;  %v4542_v17 = vld [vmem:[%s6604_s12 + $0x48] sm:$0xff]  ;;  %v4543_v61 = vld [vmem:[%s6604_s12 + $0x50] sm:$0xff]  ;;  %v3646_v11 = vrot.slane %v3644_v62, 5  ;;  %v2296_v25 = vpop.permute.xlu1 %2295  ;;  %v4544_v55 = vld [vmem:[%s6604_s12 + $0x58] sm:$0xff] }
 0x10e   : > { %v5195_v10 = vcombine.low %v2627_v54, %v2637_v48  ;;  %v3650_v35 = vrot.slane %v3648_v58, 4  ;;  %1120 = vst [vmem:[#allocation2 + $0x8c] sm:$0x1] %v1119_v29  ;;  %v5274_v2 = vrot.slane %v3963_v51, 9  ;;  %v4093_v50 = vrot.slane %v3964_v37, 5  ;;  %v4263_v19 = vld [vmem:[#allocation3 + $0x18] sm:$0xff]  ;;  %5581 = vmatmul.mubr.msk.f32.gmra.mrb[8].mxu1 %vm4566_vm6, %v4542_v17 }
 0x10f   : > { %v1332_v43 = vld [vmem:[#allocation2 + $0x7c] sm:$0xf]  ;;  %v3641_v34 = vor.u32 %v3640_v44, %v3637_v15  ;;  %v3656_v8 = vrot.slane %v3654_v5, 5  ;;  %v4096_v0 = vrot.slane %v3965_v42, 5  ;;  %v1593_v36 = vshrl.u32 %v1331_v56, 16  ;;  %2339 = vst.msk [vmem:[#allocation3 + $0x28] sm:$0xff] %vm7558_vm4, %v2296_v25  ;;  %5583 = vmatprep.mubr.msk.f32.mxu1 %vm4566_vm6, %v4543_v61  ;;  %v3160_v58 = vpop.permute.xlu0 %3159 }
 0x110   : > { %2848 = vrot.lane.b32.xlu1 %v5195_v10, %s5708_s21  ;;  %v3651_v59 = vor.u32 %v3650_v35, %v3646_v11  ;;  %v6782_v16 = vsel %vm5794_vm8, %v5274_v2, %v4093_v50  ;;  %v4095_v14 = vrot.slane %v4093_v50, 4  ;;  %v1596_v63 = vshll.u32 %v1331_v56, 16  ;;  %v3421_v30 = vld [vmem:[#allocation2 + $0x84] sm:$0xf]  ;;  %v1333_v49 = vld [vmem:[#allocation2 + $0x80] sm:$0x1] }
 0x111   : > { %v3642_v33 = vrot.slane %v3641_v34, 4  ;;  %v1595_v41 = vrot.slane %v1593_v36, 4  ;;  %v1602_v3 = vshll.u32 %v1332_v43, 16  ;;  %v1606_v22 = vshrl.u32 %v1332_v43, 16  ;;  %5539 = vmatmul.mubr.msk.bf16.gmra.mrb[4].mxu0 %vm4319_vm5, %v4263_v19  ;;  %v3966_v27 = vld [vmem:[#allocation2 + $0x84] sm:$0xe] }
 0x112   : > { %vm7571_vm15 = vcmask 326912   ;;  %v3652_v6 = vrot.slane %v3651_v59, 4  ;;  %v4097_v20 = vsel %vm5794_vm8, %v4095_v14, %v4096_v0  ;;  %v1598_v52 = vrot.slane %v1596_v63, 5  ;;  %5584 = vmatmul.mubr.msk.f32.gmra.mrb[10].mxu1 %vm4566_vm6, %v4544_v55  ;;  %v1334_v5 = vld [vmem:[#allocation2 + $0x84] sm:$0xf] }
 0x113   : > { %2883 = vst.msk [vmem:[#allocation3 + $0x20] sm:$0xff] %vm7571_vm15, %v2839_v39  ;;  %v3647_v53 = vsel %vm5847_vm12, %v3642_v33, %v3646_v11  ;;  %v3659_v54 = vshrl.u32 %v3421_v30, 16  ;;  %v3662_v48 = vshll.u32 %v3421_v30, 16  ;;  %v5657_v51 = vld [vmem:[#allocation2 + $0x84] sm:$0xff]   ;;  %v5290_v32 = vcombine.low %v6782_v16, %v4097_v20  ;;  %v3338_v59 = vpop.permute.xlu0 %3337  ;;  %v1880_v55 = vld [vmem:[#allocation2 + $0x7c] sm:$0xf] }
 0x114   : > { %3169 = vrot.lane.b32.xlu1 %v5227_v60, %s5706_s19  ;;  %v6801_v60 = vmul.f32 %v6478_v46, %v6746_v24  ;;  %v3657_v37 = vsel %vm5847_vm12, %v3652_v6, %v3656_v8  ;;  %v3422_v10 = vld [vmem:[#allocation2 + $0x88] sm:$0xf]  ;;  %v1599_v4 = vor.u32 %v1598_v52, %v1595_v41  ;;  %v1604_v62 = vrot.slane %v1602_v3, 5 }
 0x115   : > { %v5258_v42 = vcombine.low %v3647_v53, %v3657_v37  ;;  %v3423_v56 = vld [vmem:[#allocation2 + $0x8c] sm:$0x1]  ;;  %v3661_v31 = vrot.slane %v3659_v54, 4  ;;  %v3664_v15 = vrot.slane %v3662_v48, 5  ;;  %v3668_v44 = vshll.u32 %v3422_v10, 16 }
 0x116   : > { %vm7572_vm15 = vcmask 392512   ;;  %v3672_v46 = vshrl.u32 %v3422_v10, 16  ;;  %v3678_v24 = vshll.u32 %v3423_v56, 16  ;;  %v1600_v29 = vrot.slane %v1599_v4, 4  ;;  %v3967_v61 = vld [vmem:[#allocation2 + $0x88] sm:$0xf] }
 0x117   : > { %3204 = vst.msk [vmem:[#allocation3 + $0x20] sm:$0xff] %vm7572_vm15, %v3160_v58  ;;  %v1608_v17 = vrot.slane %v1606_v22, 4  ;;  %3890 = vrot.lane.b32.xlu0 %v5258_v42, %s5709_s22  ;;  %v3665_v11 = vor.u32 %v3664_v15, %v3661_v31  ;;  %v3670_v35 = vrot.slane %v3668_v44, 5  ;;  %v1612_v2 = vshll.u32 %v1333_v49, 16  ;;  %v3968_v50 = vld [vmem:[#allocation2 + $0x8c] sm:$0x1] }
 0x118   : > { %3347 = vrot.lane.b32.xlu1 %v5657_v51, %s5705_s18  ;;  %v5275_v43 = vrot.slane %v3966_v27, 9  ;;  %v3674_v34 = vrot.slane %v3672_v46, 4  ;;  %v3680_v8 = vrot.slane %v3678_v24, 5  ;;  %v1605_v0 = vsel %vm5847_vm12, %v1600_v29, %v1604_v62  ;;  %v1335_v19 = vld [vmem:[#allocation2 + $0x88] sm:$0xf]  ;;  %3382 = vst.msk [vmem:[#allocation3 + $0x20] sm:$0xff] %vm3377_vm9, %v3338_v59 }
 0x119   : > { %v1609_v36 = vor.u32 %v1608_v17, %v1604_v62  ;;  %v3666_v16 = vrot.slane %v3665_v11, 4  ;;  %v1614_v14 = vrot.slane %v1612_v2, 5  ;;  %v4100_v63 = vrot.slane %v3967_v61, 5  ;;  %v1879_v22 = vld [vmem:[#allocation2 + $0x78] sm:$0xe]  ;;  %v2841_v44 = vpop.permute.xlu1 %2840  ;;  %v5677_v61 = vld [vmem:[#allocation2 + $0x60] sm:$0xff]  }
 0x11a   : > { %v4103_v25 = vrot.slane %v3968_v50, 5  ;;  %v3675_v39 = vor.u32 %v3674_v34, %v3670_v35  ;;  %v1617_v41 = vshrl.u32 %v1334_v5, 16  ;;  %v1620_v3 = vshll.u32 %v1334_v5, 16  ;;  %v1336_v52 = vld [vmem:[#allocation2 + $0x8c] sm:$0x1] }
 0x11b   : > { %v1610_v33 = vrot.slane %v1609_v36, 4  ;;  %v3671_v6 = vsel %vm5847_vm12, %v3666_v16, %v3670_v35  ;;  %4211 = vrot.lane.b32.xlu0 %v5290_v32, %s5707_s20  ;;  %v4101_v30 = vsel %vm5794_vm8, %v5275_v43, %v4100_v63  ;;  %v4102_v20 = vrot.slane %v4100_v63, 4  ;;  %v1881_v62 = vld [vmem:[#allocation2 + $0x80] sm:$0x1]  ;;  %v1882_v32 = vld [vmem:[#allocation2 + $0x84] sm:$0xe] }
 0x11c   : > { %v1626_v53 = vshll.u32 %v1335_v19, 16  ;;  %v3676_v54 = vrot.slane %v3675_v39, 4  ;;  %v1619_v49 = vrot.slane %v1617_v41, 4  ;;  %v1622_v27 = vrot.slane %v1620_v3, 5  ;;  %v1883_v15 = vld [vmem:[#allocation2 + $0x88] sm:$0xf] }
 0x11d   : > { %v1615_v48 = vsel %vm5847_vm12, %v1610_v33, %v1614_v14  ;;  %v4104_v37 = vsel %vm5794_vm8, %v4102_v20, %v4103_v25  ;;  %v1630_v4 = vshrl.u32 %v1335_v19, 16  ;;  %v1636_v31 = vshll.u32 %v1336_v52, 16  ;;  %v1884_v17 = vld [vmem:[#allocation2 + $0x8c] sm:$0x1]  ;;  %v2380_v36 = vld [vmem:[#allocation2 + $0x84] sm:$0xf]  ;;  %v3162_v25 = vpop.permute.xlu1 %3161 }
 0x11e   : > { %v5132_v51 = vcombine.low %v1605_v0, %v1615_v48  ;;  %v1628_v10 = vrot.slane %v1626_v53, 5  ;;  %v3681_v58 = vsel %vm5847_vm12, %v3676_v54, %v3680_v8  ;;  %v5291_v42 = vcombine.low %v4101_v30, %v4104_v37  ;;  %v2381_v63 = vld [vmem:[#allocation2 + $0x88] sm:$0xf]  ;;  %v3883_v30 = vpop.permute.xlu0 %3882 }
 0x11f   : > { %v1623_v56 = vor.u32 %v1622_v27, %v1619_v49  ;;  %v5259_v5 = vcombine.low %v3671_v6, %v3681_v58  ;;  %v1632_v46 = vrot.slane %v1630_v4, 4  ;;  %v5148_v24 = vrot.slane %v1879_v22, 9  ;;  %v1121_v22 = vld [vmem:[#allocation2 + $0x90] sm:$0xf]  ;;  %v6842_v6 = vld [vmem:[#allocation2 + $0x84] sm:$0xe] }
 0x120   : > { %v2020_v29 = vrot.slane %v1880_v55, 5  ;;  %vm7573_vm15 = vcmask 326912   ;;  %4213 = vrot.lane.b32.xlu0 %v5291_v42, %s5707_s20  ;;  %v1638_v35 = vrot.slane %v1636_v31, 5  ;;  %v2023_v2 = vrot.slane %v1881_v62, 5  ;;  %v6840_v55 = vld [vmem:[#allocation2 + $0x8c] sm:$0x1] }
 0x121   : > { %2884 = vst.msk [vmem:[#allocation3 + $0x28] sm:$0xff] %vm7573_vm15, %v2841_v44  ;;  %v1624_v11 = vrot.slane %v1623_v56, 4  ;;  %v5149_v50 = vrot.slane %v1882_v32, 9  ;;  %3892 = vrot.lane.b32.xlu1 %v5259_v5, %s5709_s22  ;;  %v1633_v43 = vor.u32 %v1632_v46, %v1628_v10  ;;  %v2027_v0 = vrot.slane %v1883_v15, 5  ;;  %v5663_v4 = vld [vmem:[#allocation2 + $0x84] sm:$0xff]   ;;  %v3340_v42 = vpop.permute.xlu1 %3339 }
 0x122   : > { %v2021_v34 = vsel %vm5794_vm8, %v5148_v24, %v2020_v29  ;;  %v2022_v8 = vrot.slane %v2020_v29, 4  ;;  %vm7574_vm4 = vcmask 64512   ;;  %v2030_v59 = vrot.slane %v1884_v17, 5  ;;  %3927 = vst.msk [vmem:[#allocation3 + $0x20] sm:$0xff] %vm3922_vm10, %v3883_v30  ;;  %v2926_v32 = vld [vmem:[#allocation2 + $0x88] sm:$0xf]  ;;  %v4204_v5 = vpop.permute.xlu0 %4203 }
 0x123   : > { %1293 = vst.msk [vmem:[#allocation3 + $0x40] sm:$0xff] %vm7574_vm4, %v5677_v61  ;;  %v1629_v19 = vsel %vm5847_vm12, %v1624_v11, %v1628_v10  ;;  %v909_v16 = vshrl.u32 %v6712_v47, 16  ;;  %v912_v14 = vshll.u32 %v6712_v47, 16  ;;  %v1634_v39 = vrot.slane %v1633_v43, 4  ;;  %v5678_v47 = vld [vmem:[#allocation2 + $0x6c] sm:$0xff]   ;;  %v4545_v46 = vld [vmem:[%s6604_s12 + $0x60] sm:$0xff] }
 0x124   : > { %v2024_v33 = vsel %vm5794_vm8, %v2022_v8, %v2023_v2  ;;  %v6838_v41 = vsel %vm5794_vm8, %v5149_v50, %v2027_v0  ;;  %v2029_v3 = vrot.slane %v2027_v0, 4  ;;  %vm7575_vm4 = vcmask 392512   ;;  %v2927_v58 = vld [vmem:[#allocation2 + $0x8c] sm:$0x1]  ;;  %v1125_v11 = vld [vmem:[#allocation2 + $0x98] sm:$0x1]  ;;  %5586 = vmatprep.mubr.msk.f32.mxu1 %vm4566_vm6, %v4545_v46 }
 0x125   : > { %3205 = vst.msk [vmem:[#allocation3 + $0x28] sm:$0xff] %vm7575_vm4, %v3162_v25  ;;  %v5164_v20 = vcombine.low %v2021_v34, %v2024_v33  ;;  %v911_v52 = vrot.slane %v909_v16, 7  ;;  %v917_v53 = vshrl.u32 %v6724_v38, 16  ;;  %v920_v54 = vshll.u32 %v6724_v38, 16  ;;  %1804 = vrot.lane.b32.xlu1 %v5132_v51, %s5703_s16  ;;  %v4546_v24 = vld [vmem:[%s6604_s12 + $0x68] sm:$0xff] }
 0x126   : > { %v1639_v48 = vsel %vm5847_vm12, %v1634_v39, %v1638_v35  ;;  %v2031_v49 = vsel %vm5794_vm8, %v2029_v3, %v2030_v59  ;;  %v2639_v27 = vshrl.u32 %v2380_v36, 16  ;;  %v2642_v37 = vshll.u32 %v2380_v36, 16  ;;  %3383 = vst.msk [vmem:[#allocation3 + $0x28] sm:$0xff] %vm3377_vm9, %v3340_v42  ;;  %v552_v8 = vld [vmem:[#allocation2 + $0x9c] sm:$0x1]  ;;  %5587 = vmatmul.mubr.msk.f32.gmra.mrb[12].mxu1 %vm4566_vm6, %v4546_v24 }
 0x127   : > { %vm7576_vm15 = vcmask 64512   ;;  %v5133_v10 = vcombine.low %v1629_v19, %v1639_v48  ;;  %2128 = vrot.lane.b32.xlu0 %v5164_v20, %s5702_s15  ;;  %v5165_v38 = vcombine.low %v6838_v41, %v2031_v49  ;;  %v914_v62 = vor.u32 %v912_v14, %v911_v52  ;;  %4248 = vst.msk [vmem:[#allocation3 + $0x20] sm:$0xff] %vm4243_vm11, %v4204_v5  ;;  %v608_v59 = vld [vmem:[#allocation2 + $0xa4] sm:$0x1]  ;;  %v6871_v16 = vld [vmem:[%s7547_s1] ss:$0 sm:$0xff] }
 0x128   : > { %1294 = vst.msk [vmem:[#allocation3 + $0x48] sm:$0xff] %vm7576_vm15, %v5678_v47  ;;  %v915_v51 = vrot.slane %v911_v52, 4  ;;  %v919_v56 = vrot.slane %v917_v53, 7  ;;  %v2641_v31 = vrot.slane %v2639_v27, 4  ;;  %v2644_v15 = vrot.slane %v2642_v37, 5  ;;  %v4547_v41 = vld [vmem:[%s6604_s12 + $0x70] sm:$0xff]  ;;  %v3885_v53 = vpop.permute.xlu1 %3884  ;;  %vm7577_vm4 = vmmov %vm7576_vm15 }
 0x129   : > { %v2648_v44 = vshll.u32 %v2381_v63, 16  ;;  %v1122_v29 = vsel %vm5854_vm13, %v914_v62, %v1121_v22  ;;  %v2652_v17 = vshrl.u32 %v2381_v63, 16  ;;  %v2658_v61 = vshll.u32 %v6840_v55, 16  ;;  %1806 = vrot.lane.b32.xlu1 %v5133_v10, %s5703_s16  ;;  %v4548_v3 = vld [vmem:[%s6604_s12 + $0x78] sm:$0xff]  ;;  %5589 = vmatprep.mubr.msk.f32.mxu1 %vm4566_vm6, %v4547_v41  ;;  %3928 = vst.msk [vmem:[#allocation3 + $0x28] sm:$0xff] %vm3922_vm10, %v3885_v53  ;;  %vm7578_vm15 = vmmov %vm7577_vm4 }
 0x12a   : > { %v5212_v35 = vrot.slane %v6842_v6, 9  ;;  %v922_v2 = vor.u32 %v920_v54, %v919_v56  ;;  %v924_v50 = vrot.slane %v919_v56, 4  ;;  %1123 = vst [vmem:[#allocation2 + $0x90] sm:$0xf] %v1122_v29  ;;  %v2645_v43 = vor.u32 %v2644_v15, %v2641_v31  ;;  %5590 = vmatmul.mubr.msk.f32.gmra.mrb[14].mxu1 %vm4566_vm6, %v4548_v3 }
 0x12b   : > { %v2650_v34 = vrot.slane %v2648_v44, 5  ;;  %2305 = vrot.lane.b32.xlu0 %v5663_v4, %s5704_s17  ;;  %v2654_v0 = vrot.slane %v2652_v17, 4  ;;  %v3063_v36 = vrot.slane %v2926_v32, 5  ;;  %v3066_v19 = vrot.slane %v2927_v58, 5  ;;  %v5681_v32 = vld [vmem:[#allocation2 + $0x78] sm:$0xff]   ;;  %v5682_v58 = vld [vmem:[#allocation2 + $0x84] sm:$0xff]  }
 0x12c   : > { %v424_v14 = vsub.f32 %v5445_v57, %v6871_v16  ;;  %v923_v63 = vsel %vm5863_vm14, %v915_v51, %v922_v2  ;;  %v2646_v25 = vrot.slane %v2645_v43, 4  ;;  %v1126_v39 = vsel %vm5771_vm3, %v924_v50, %v1125_v11  ;;  %v4206_v57 = vpop.permute.xlu0 %4205  ;;  %v6922_v51 = vld [vmem:[%s5801_s10 + $0x78] sm:$0xff]   ;;  %v1797_v29 = vpop.permute.xlu1 %1796  ;;  %1295 = vst.msk [vmem:[#allocation3 + $0x50] sm:$0xff] %vm7577_vm4, %v5681_v32  ;;  %v4549_v17 = vld [vmem:[%s6604_s12 + $0x80] sm:$0xff] }
 0x12d   : > { %v493_v33 = vmax.f32 %v6794_v45, 0.0  ;;  %1124 = vst.msk [vmem:[#allocation2 + $0x94] sm:$0xf] %vm501_vm0, %v923_v63  ;;  %v2655_v22 = vor.u32 %v2654_v0, %v2650_v34  ;;  %v2660_v55 = vrot.slane %v2658_v61, 5  ;;  %1127 = vst [vmem:[#allocation2 + $0x98] sm:$0x1] %v1126_v39  ;;  %2130 = vrot.lane.b32.xlu1 %v5165_v38, %s5702_s15  ;;  %v6889_v47 = vsel %vm5794_vm8, %v5212_v35, %v3063_v36 }
 0x12e   : > { %v3065_v6 = vrot.slane %v3063_v36, 4  ;;  %v494_v30 = vmax.f32 %v6801_v60, 0.0  ;;  %v553_v45 = vsel %vm5771_vm3, 0, %v552_v8  ;;  %v609_v52 = vsel %vm5785_vm7, 0, %v608_v59  ;;  %v6915_v38 = vld [vmem:[%s7548_s2] ss:$0 sm:$0xff]  ;;  %5592 = vmatprep.mubr.msk.f32.mxu1 %vm4566_vm6, %v4549_v17 }
 0x12f   : > { %v6893_v20 = vpack.c.bf16 %v493_v33, %v493_v33  ;;  %v2651_v60 = vsel %vm5847_vm12, %v2646_v25, %v2650_v34  ;;  %v2656_v54 = vrot.slane %v2655_v22, 4  ;;  %554 = vst [vmem:[#allocation2 + $0x9c] sm:$0x1] %v553_v45  ;;  %610 = vst [vmem:[#allocation2 + $0xa4] sm:$0x1] %v609_v52  ;;  %v425_v10 = vsub.f32 %v5446_v40, %v6871_v16  ;;  %v4264_v62 = vld [vmem:[#allocation3 + $0x20] sm:$0xff] }
 0x130   : > { %v6902_v48 = vsel %vm5794_vm8, %v3065_v6, %v3066_v19  ;;  %v6904_v49 = vpack.c.bf16 %v494_v30, %v494_v30  ;;  %v6918_v4 = vmul.f32 %v6915_v38, %v424_v14  ;;  %4249 = vst.msk [vmem:[#allocation3 + $0x28] sm:$0xff] %vm4243_vm11, %v4206_v57  ;;  %v426_v31 = vsub.f32 %v5449_v21, %v6871_v16  ;;  %v2121_v0 = vpop.permute.xlu0 %2120 }
 0x131   : > { %v926_v27 = vshrl.u32 %v6893_v20, 16  ;;  %v929_v37 = vshll.u32 %v6893_v20, 16  ;;  %v2661_v7 = vsel %vm5847_vm12, %v2656_v54, %v2660_v55  ;;  %v2383_v40 = vld [vmem:[#allocation2 + $0x90] sm:$0xf]  ;;  %v5228_v42 = vcombine.low %v6889_v47, %v6902_v48  ;;  %5542 = vmatprep.mubr.msk.bf16.mxu0 %vm4319_vm5, %v4264_v62  ;;  %1296 = vst.msk [vmem:[#allocation3 + $0x58] sm:$0xff] %vm7578_vm15, %v5682_v58  ;;  %v1799_v55 = vpop.permute.xlu1 %1798 }
 0x132   : > { %v2928_v56 = vld [vmem:[#allocation2 + $0x90] sm:$0xe]  ;;  %v427_v15 = vsub.f32 %v5450_v13, %v6871_v16  ;;  %v5196_v44 = vcombine.low %v2651_v60, %v2661_v7  ;;  %v2663_v5 = vshrl.u32 %v2383_v40, 16  ;;  %v2666_v46 = vshll.u32 %v2383_v40, 16  ;;  %1839 = vst.msk [vmem:[#allocation3 + $0x30] sm:$0xff] %vm1832_vm1, %v1797_v29  ;;  %1840 = vst.msk [vmem:[#allocation3 + $0x38] sm:$0xff] %vm1832_vm1, %v1799_v55 }
 0x133   : > { %v5213_v24 = vrot.slane %v2928_v56, 9  ;;  %v6938_v61 = vrot.slane %v926_v27, 7  ;;  %v934_v21 = vshrl.u32 %v6904_v49, 16  ;;  %v937_v11 = vshll.u32 %v6904_v49, 16  ;;  %v6942_v26 = vld [vmem:[#allocation2 + $0x90] sm:$0xf] }
 0x134   : > { %v495_v13 = vmax.f32 %v6918_v4, 0.0  ;;  %v5664_v35 = vld [vmem:[#allocation2 + $0x90] sm:$0xff]   ;;  %2850 = vrot.lane.b32.xlu0 %v5196_v44, %s5708_s21  ;;  %v2665_v50 = vrot.slane %v2663_v5, 4  ;;  %v6949_v43 = vmul.f32 %v6915_v38, %v425_v10  ;;  %v6952_v34 = vmul.f32 %v6915_v38, %v426_v31  ;;  %v2385_v36 = vld [vmem:[#allocation2 + $0x98] sm:$0x1]  ;;  %2163 = vst.msk [vmem:[#allocation3 + $0x30] sm:$0xff] %vm2156_vm2, %v2121_v0  ;;  %v2298_v49 = vpop.permute.xlu0 %2297 }
 0x135   : > { %v2384_v2 = vld [vmem:[#allocation2 + $0x94] sm:$0xf]  ;;  %v6955_v8 = vmul.f32 %v6915_v38, %v427_v15  ;;  %v2668_v19 = vrot.slane %v2666_v46, 5  ;;  %v5453_v63 = vunpack.c.l.bf16 %v6922_v51  ;;  %2307 = vrot.lane.b32.xlu1 %v5664_v35, %s5704_s17  ;;  %v2682_v25 = vshll.u32 %v2385_v36, 16  ;;  %v2930_v33 = vld [vmem:[#allocation2 + $0x98] sm:$0x1]  ;;  %v2123_v15 = vpop.permute.xlu1 %2122 }
 0x136   : > { %v2672_v59 = vshll.u32 %v2384_v2, 16  ;;  %v2676_v14 = vshrl.u32 %v2384_v2, 16  ;;  %v2929_v39 = vld [vmem:[#allocation2 + $0x94] sm:$0xf]  ;;  %v931_v3 = vor.u32 %v929_v37, %v6938_v61  ;;  %v932_v22 = vrot.slane %v6938_v61, 4  ;;  %2164 = vst.msk [vmem:[#allocation3 + $0x38] sm:$0xff] %vm2156_vm2, %v2123_v15 }
 0x137   : > { %v5667_v41 = vld [vmem:[#allocation2 + $0x90] sm:$0xff]   ;;  %v5454_v6 = vunpack.c.h.bf16 %v6922_v51  ;;  %v2669_v30 = vor.u32 %v2668_v19, %v2665_v50  ;;  %v3070_v45 = vrot.slane %v2929_v39, 5  ;;  %v4265_v20 = vld [vmem:[#allocation3 + $0x28] sm:$0xff]  ;;  %v2684_v52 = vrot.slane %v2682_v25, 5  ;;  %v1128_v54 = vld [vmem:[#allocation2 + $0x9c] sm:$0xf] }
 0x138   : > { %v2674_v57 = vrot.slane %v2672_v59, 5  ;;  %v2678_v47 = vrot.slane %v2676_v14, 4  ;;  %3171 = vrot.lane.b32.xlu0 %v5228_v42, %s5706_s19  ;;  %v3073_v53 = vrot.slane %v2930_v33, 5  ;;  %v936_v60 = vrot.slane %v934_v21, 7  ;;  %5543 = vmatmul.mubr.msk.bf16.gmra.mrb[8].mxu0 %vm4319_vm5, %v4265_v20  ;;  %v3425_v32 = vld [vmem:[#allocation2 + $0x94] sm:$0xf] }
 0x139   : > { %v3683_v48 = vshrl.u32 %v6942_v26, 16  ;;  %v2670_v27 = vrot.slane %v2669_v30, 4  ;;  %v6969_v10 = vsel %vm5794_vm8, %v5213_v24, %v3070_v45  ;;  %v3072_v62 = vrot.slane %v3070_v45, 4  ;;  %v3426_v42 = vld [vmem:[#allocation2 + $0x98] sm:$0x1] }
 0x13a   : > { %v2679_v37 = vor.u32 %v2678_v47, %v2674_v57  ;;  %vm7579_vm4 = vcmask 261312   ;;  %v939_v58 = vor.u32 %v937_v11, %v936_v60  ;;  %v941_v7 = vrot.slane %v936_v60, 4  ;;  %v1132_v31 = vld [vmem:[#allocation2 + $0xa4] sm:$0x1]  ;;  %v3969_v29 = vld [vmem:[#allocation2 + $0x90] sm:$0xe] }
 0x13b   : > { %2340 = vst.msk [vmem:[#allocation3 + $0x30] sm:$0xff] %vm7579_vm4, %v2298_v49  ;;  %v1129_v40 = vsel %vm5854_vm13, %v931_v3, %v1128_v54  ;;  %v3685_v56 = vrot.slane %v3683_v48, 4  ;;  %v2675_v44 = vsel %vm5847_vm12, %v2670_v27, %v2674_v57  ;;  %v3074_v46 = vsel %vm5794_vm8, %v3072_v62, %v3073_v53  ;;  %v3970_v35 = vld [vmem:[#allocation2 + $0x94] sm:$0xf]  ;;  %v3971_v2 = vld [vmem:[#allocation2 + $0x98] sm:$0x1]  ;;  %v2843_v53 = vpop.permute.xlu0 %2842 }
 0x13c   : > { %v2680_v5 = vrot.slane %v2679_v37, 4  ;;  %1130 = vst [vmem:[#allocation2 + $0x9c] sm:$0xf] %v1129_v40  ;;  %v3686_v24 = vshll.u32 %v6942_v26, 16  ;;  %v5229_v17 = vcombine.low %v6969_v10, %v3074_v46  ;;  %3349 = vrot.lane.b32.xlu0 %v5667_v41, %s5705_s18  ;;  %v940_v61 = vsel %vm5863_vm14, %v932_v22, %v939_v58  ;;  %v1337_v19 = vld [vmem:[#allocation2 + $0x90] sm:$0xf] }
 0x13d   : > { %v3692_v21 = vshll.u32 %v3425_v32, 16  ;;  %v3696_v11 = vshrl.u32 %v3425_v32, 16  ;;  %1131 = vst.msk [vmem:[#allocation2 + $0xa0] sm:$0xf] %vm501_vm0, %v940_v61  ;;  %v3702_v0 = vshll.u32 %v3426_v42, 16  ;;  %v1133_v36 = vsel %vm5771_vm3, %v941_v7, %v1132_v31  ;;  %v4550_v41 = vld [vmem:[%s6604_s12 + $0x88] sm:$0xff] }
 0x13e   : > { %v2685_v50 = vsel %vm5847_vm12, %v2680_v5, %v2684_v52  ;;  %v3688_v26 = vrot.slane %v3686_v24, 5  ;;  %v6989_v59 = vld [vmem:[#allocation2 + $0x94] sm:$0xf]  ;;  %1134 = vst [vmem:[#allocation2 + $0xa4] sm:$0x1] %v1133_v36  ;;  %v5276_v33 = vrot.slane %v3969_v29, 9  ;;  %5593 = vmatmul.mubr.msk.f32.gmra.mrb[16].mxu1 %vm4566_vm6, %v4550_v41  ;;  %v7007_v32 = vpack.c.bf16 %v495_v13, %v495_v13 }
 0x13f   : > { %v5197_v14 = vcombine.low %v2675_v44, %v2685_v50  ;;  %v3694_v25 = vrot.slane %v3692_v21, 5  ;;  %v3698_v39 = vrot.slane %v3696_v11, 4  ;;  %v3704_v22 = vrot.slane %v3702_v0, 5  ;;  %v4551_v57 = vld [vmem:[%s6604_s12 + $0x90] sm:$0xff]  ;;  %v4552_v60 = vld [vmem:[%s6604_s12 + $0x98] sm:$0xff]  ;;  %v2300_v44 = vpop.permute.xlu1 %2299  ;;  %v3164_v24 = vpop.permute.xlu0 %3163 }
 0x140   : > { %v3689_v3 = vor.u32 %v3688_v26, %v3685_v56  ;;  %v4107_v55 = vrot.slane %v3970_v35, 5  ;;  %v4110_v30 = vrot.slane %v3971_v2, 5  ;;  %v1641_v45 = vshrl.u32 %v1337_v19, 16  ;;  %5595 = vmatprep.mubr.msk.f32.mxu1 %vm4566_vm6, %v4551_v57  ;;  %v1339_v31 = vld [vmem:[#allocation2 + $0x98] sm:$0x1]  ;;  %2341 = vst.msk [vmem:[#allocation3 + $0x38] sm:$0xff] %vm7579_vm4, %v2300_v44 }
 0x141   : > { %2852 = vrot.lane.b32.xlu1 %v5197_v14, %s5708_s21  ;;  %v3699_v47 = vor.u32 %v3698_v39, %v3694_v25  ;;  %v1644_v20 = vshll.u32 %v1337_v19, 16  ;;  %v1650_v52 = vshll.u32 %v6989_v59, 16  ;;  %v1654_v27 = vshrl.u32 %v6989_v59, 16  ;;  %v5683_v59 = vld [vmem:[#allocation2 + $0x90] sm:$0xff]  }
 0x142   : > { %v3690_v54 = vrot.slane %v3689_v3, 4  ;;  %v7000_v48 = vsel %vm5794_vm8, %v5276_v33, %v4107_v55  ;;  %v4109_v49 = vrot.slane %v4107_v55, 4  ;;  %vm7580_vm15 = vcmask 326912   ;;  %5596 = vmatmul.mubr.msk.f32.gmra.mrb[18].mxu1 %vm4566_vm6, %v4552_v60 }
 0x143   : > { %2885 = vst.msk [vmem:[#allocation3 + $0x30] sm:$0xff] %vm7580_vm15, %v2843_v53  ;;  %v3700_v37 = vrot.slane %v3699_v47, 4  ;;  %v3427_v10 = vld [vmem:[#allocation2 + $0x9c] sm:$0xf]  ;;  %v1643_v62 = vrot.slane %v1641_v45, 4  ;;  %v7012_v58 = vsub.f32 %v5453_v63, %v6871_v16  ;;  %v1646_v46 = vrot.slane %v1644_v20, 5 }
 0x144   : > { %v3695_v7 = vsel %vm5847_vm12, %v3690_v54, %v3694_v25  ;;  %v3707_v40 = vshrl.u32 %v3427_v10, 16  ;;  %v3710_v42 = vshll.u32 %v3427_v10, 16  ;;  %v4111_v56 = vsel %vm5794_vm8, %v4109_v49, %v4110_v30  ;;  %v3972_v15 = vld [vmem:[#allocation2 + $0x9c] sm:$0xe]  ;;  %v3428_v63 = vld [vmem:[#allocation2 + $0xa0] sm:$0xf] }
 0x145   : > { %3173 = vrot.lane.b32.xlu1 %v5229_v17, %s5706_s19  ;;  %v5668_v4 = vld [vmem:[#allocation2 + $0x9c] sm:$0xff]   ;;  %v3705_v13 = vsel %vm5847_vm12, %v3700_v37, %v3704_v22  ;;  %v5292_v5 = vcombine.low %v7000_v48, %v4111_v56  ;;  %v7027_v29 = vsub.f32 %v5454_v6, %v6871_v16  ;;  %v3429_v21 = vld [vmem:[#allocation2 + $0xa4] sm:$0x1]  ;;  %v3716_v35 = vshll.u32 %v3428_v63, 16  ;;  %v3342_v22 = vpop.permute.xlu0 %3341 }
 0x146   : > { %v5260_v61 = vcombine.low %v3695_v7, %v3705_v13  ;;  %v3709_v11 = vrot.slane %v3707_v40, 4  ;;  %v3712_v17 = vrot.slane %v3710_v42, 5  ;;  %v1340_v2 = vld [vmem:[#allocation2 + $0x9c] sm:$0xf]  ;;  %vm7581_vm15 = vcmask 392512  }
 0x147   : > { %3206 = vst.msk [vmem:[#allocation3 + $0x30] sm:$0xff] %vm7581_vm15, %v3164_v24  ;;  %v3720_v50 = vshrl.u32 %v3428_v63, 16  ;;  %v3726_v26 = vshll.u32 %v3429_v21, 16  ;;  %v1647_v0 = vor.u32 %v1646_v46, %v1643_v62  ;;  %v1652_v36 = vrot.slane %v1650_v52, 5  ;;  %v3973_v19 = vld [vmem:[#allocation2 + $0xa0] sm:$0xf] }
 0x148   : > { %3894 = vrot.lane.b32.xlu0 %v5260_v61, %s5709_s22  ;;  %v3713_v14 = vor.u32 %v3712_v17, %v3709_v11  ;;  %v3718_v51 = vrot.slane %v3716_v35, 5  ;;  %v1656_v16 = vrot.slane %v1654_v27, 4  ;;  %v1660_v6 = vshll.u32 %v1339_v31, 16  ;;  %v3974_v25 = vld [vmem:[#allocation2 + $0xa4] sm:$0x1]  ;;  %3384 = vst.msk [vmem:[#allocation3 + $0x30] sm:$0xff] %vm3377_vm9, %v3342_v22 }
 0x149   : > { %3351 = vrot.lane.b32.xlu1 %v5668_v4, %s5705_s18  ;;  %v3722_v39 = vrot.slane %v3720_v50, 4  ;;  %v3728_v33 = vrot.slane %v3726_v26, 5  ;;  %v1648_v41 = vrot.slane %v1647_v0, 4  ;;  %v5277_v3 = vrot.slane %v3972_v15, 9  ;;  %v1341_v45 = vld [vmem:[#allocation2 + $0xa0] sm:$0xf] }
 0x14a   : > { %vm7582_vm4 = vcmask 64512   ;;  %v3714_v55 = vrot.slane %v3713_v14, 4  ;;  %v1657_v30 = vor.u32 %v1656_v16, %v1652_v36  ;;  %v1662_v57 = vrot.slane %v1660_v6, 5  ;;  %v5684_v20 = vld [vmem:[#allocation2 + $0x9c] sm:$0xff]   ;;  %v1342_v54 = vld [vmem:[#allocation2 + $0xa4] sm:$0x1] }
 0x14b   : > { %1297 = vst.msk [vmem:[#allocation3 + $0x60] sm:$0xff] %vm7582_vm4, %v5683_v59  ;;  %v4114_v47 = vrot.slane %v3973_v19, 5  ;;  %v3723_v52 = vor.u32 %v3722_v39, %v3718_v51  ;;  %v1653_v53 = vsel %vm5847_vm12, %v1648_v41, %v1652_v36  ;;  %v4117_v60 = vrot.slane %v3974_v25, 5  ;;  %v1885_v62 = vld [vmem:[#allocation2 + $0x90] sm:$0xe]  ;;  %vm7583_vm15 = vmmov %vm7582_vm4  ;;  %v4553_v35 = vld [vmem:[%s6604_s12 + $0xa0] sm:$0xff]  ;;  %v2845_v36 = vpop.permute.xlu1 %2844 }
 0x14c   : > { %v1665_v48 = vshrl.u32 %v1340_v2, 16  ;;  %v3719_v49 = vsel %vm5847_vm12, %v3714_v55, %v3718_v51  ;;  %4215 = vrot.lane.b32.xlu0 %v5292_v5, %s5707_s20  ;;  %v1658_v27 = vrot.slane %v1657_v30, 4  ;;  %v1886_v7 = vld [vmem:[#allocation2 + $0x94] sm:$0xf]  ;;  %1298 = vst.msk [vmem:[#allocation3 + $0x68] sm:$0xff] %vm7583_vm15, %v5684_v20  ;;  %v1668_v56 = vshll.u32 %v1340_v2, 16  ;;  %5598 = vmatprep.mubr.msk.f32.mxu1 %vm4566_vm6, %v4553_v35 }
 0x14d   : > { %v4115_v37 = vsel %vm5794_vm8, %v5277_v3, %v4114_v47  ;;  %v4116_v10 = vrot.slane %v4114_v47, 4  ;;  %v3724_v40 = vrot.slane %v3723_v52, 4  ;;  %v1674_v31 = vshll.u32 %v1341_v45, 16  ;;  %v1887_v63 = vld [vmem:[#allocation2 + $0x98] sm:$0x1]  ;;  %v4554_v6 = vld [vmem:[%s6604_s12 + $0xa8] sm:$0xff] }
 0x14e   : > { %v1667_v42 = vrot.slane %v1665_v48, 4  ;;  %v1663_v15 = vsel %vm5847_vm12, %v1658_v27, %v1662_v57  ;;  %v1678_v4 = vshrl.u32 %v1341_v45, 16  ;;  %v1684_v13 = vshll.u32 %v1342_v54, 16  ;;  %v1888_v5 = vld [vmem:[#allocation2 + $0x9c] sm:$0xe]  ;;  %5599 = vmatmul.mubr.msk.f32.gmra.mrb[20].mxu1 %vm4566_vm6, %v4554_v6  ;;  %v4555_v3 = vld [vmem:[%s6604_s12 + $0xb0] sm:$0xff] }
 0x14f   : > { %v4118_v44 = vsel %vm5794_vm8, %v4116_v10, %v4117_v60  ;;  %v3729_v46 = vsel %vm5847_vm12, %v3724_v40, %v3728_v33  ;;  %v5134_v24 = vcombine.low %v1653_v53, %v1663_v15  ;;  %v1670_v21 = vrot.slane %v1668_v56, 5  ;;  %v1889_v11 = vld [vmem:[#allocation2 + $0xa0] sm:$0xf]  ;;  %v1890_v17 = vld [vmem:[#allocation2 + $0xa4] sm:$0x1]  ;;  %5601 = vmatprep.mubr.msk.f32.mxu1 %vm4566_vm6, %v4555_v3  ;;  %v3166_v53 = vpop.permute.xlu1 %3165 }
 0x150   : > { %v5293_v61 = vcombine.low %v4115_v37, %v4118_v44  ;;  %v5261_v2 = vcombine.low %v3719_v49, %v3729_v46  ;;  %v1676_v50 = vrot.slane %v1674_v31, 5  ;;  %v1680_v26 = vrot.slane %v1678_v4, 4  ;;  %v555_v16 = vld [vmem:[#allocation2 + $0xa8] sm:$0x1]  ;;  %v2386_v49 = vld [vmem:[#allocation2 + $0x9c] sm:$0xf]  ;;  %v3887_v56 = vpop.permute.xlu0 %3886 }
 0x151   : > { %v1686_v0 = vrot.slane %v1684_v13, 5  ;;  %v1671_v19 = vor.u32 %v1670_v21, %v1667_v42  ;;  %v5150_v59 = vrot.slane %v1885_v62, 9  ;;  %v2034_v14 = vrot.slane %v1886_v7, 5  ;;  %v2387_v27 = vld [vmem:[#allocation2 + $0xa0] sm:$0xf]  ;;  %3929 = vst.msk [vmem:[#allocation3 + $0x30] sm:$0xff] %vm3922_vm10, %v3887_v56 }
 0x152   : > { %4217 = vrot.lane.b32.xlu0 %v5293_v61, %s5707_s20  ;;  %v2037_v51 = vrot.slane %v1887_v63, 5  ;;  %vm7584_vm4 = vcmask 326912   ;;  %3896 = vrot.lane.b32.xlu1 %v5261_v2, %s5709_s22  ;;  %v1681_v25 = vor.u32 %v1680_v26, %v1676_v50  ;;  %v5151_v39 = vrot.slane %v1888_v5, 9  ;;  %v5669_v7 = vld [vmem:[#allocation2 + $0x9c] sm:$0xff]   ;;  %v611_v42 = vld [vmem:[#allocation2 + $0xb0] sm:$0x1] }
 0x153   : > { %2886 = vst.msk [vmem:[#allocation3 + $0x38] sm:$0xff] %vm7584_vm4, %v2845_v36  ;;  %v2041_v33 = vrot.slane %v1889_v11, 5  ;;  %v2044_v41 = vrot.slane %v1890_v17, 5  ;;  %v1672_v22 = vrot.slane %v1671_v19, 4  ;;  %v2035_v55 = vsel %vm5794_vm8, %v5150_v59, %v2034_v14  ;;  %v2388_v13 = vld [vmem:[#allocation2 + $0xa4] sm:$0x1] }
 0x154   : > { %v2036_v30 = vrot.slane %v2034_v14, 4  ;;  %v496_v57 = vmax.f32 %v6949_v43, 0.0  ;;  %v1682_v47 = vrot.slane %v1681_v25, 4  ;;  %v556_v52 = vsel %vm5771_vm3, 0, %v555_v16  ;;  %v2931_v63 = vld [vmem:[#allocation2 + $0x9c] sm:$0xe]  ;;  %v4208_v59 = vpop.permute.xlu0 %4207 }
 0x155   : > { %v7062_v45 = vsel %vm5794_vm8, %v5151_v39, %v2041_v33  ;;  %v2043_v20 = vrot.slane %v2041_v33, 4  ;;  %v1677_v60 = vsel %vm5847_vm12, %v1672_v22, %v1676_v50  ;;  %557 = vst [vmem:[#allocation2 + $0xa8] sm:$0x1] %v556_v52  ;;  %v943_v48 = vshrl.u32 %v7007_v32, 16  ;;  %v2932_v21 = vld [vmem:[#allocation2 + $0xa0] sm:$0xf] }
 0x156   : > { %v2038_v54 = vsel %vm5794_vm8, %v2036_v30, %v2037_v51  ;;  %v5386_v43 = vpack.c.bf16 %v496_v57, %v496_v57  ;;  %vm7585_vm15 = vcmask 392512   ;;  %1808 = vrot.lane.b32.xlu1 %v5134_v24, %s5703_s16  ;;  %v1687_v37 = vsel %vm5847_vm12, %v1682_v47, %v1686_v0  ;;  %v2933_v50 = vld [vmem:[#allocation2 + $0xa4] sm:$0x1]  ;;  %v4556_v14 = vld [vmem:[%s6604_s12 + $0xb8] sm:$0xff]  ;;  %v558_v25 = vld [vmem:[#allocation2 + $0xb4] sm:$0x1] }
 0x157   : > { %3207 = vst.msk [vmem:[#allocation3 + $0x38] sm:$0xff] %vm7585_vm15, %v3166_v53  ;;  %v5166_v10 = vcombine.low %v2035_v55, %v2038_v54  ;;  %v2045_v62 = vsel %vm5794_vm8, %v2043_v20, %v2044_v41  ;;  %v946_v40 = vshll.u32 %v7007_v32, 16  ;;  %v5135_v31 = vcombine.low %v1677_v60, %v1687_v37  ;;  %v3344_v32 = vpop.permute.xlu1 %3343  ;;  %v614_v39 = vld [vmem:[#allocation2 + $0xbc] sm:$0x1]  ;;  %5602 = vmatmul.mubr.msk.f32.gmra.mrb[22].mxu1 %vm4566_vm6, %v4556_v14  ;;  %v617_v56 = vld [vmem:[#allocation2 + $0xc8] sm:$0x1] }
 0x158   : > { %v5167_v15 = vcombine.low %v7062_v45, %v2045_v62  ;;  %v945_v44 = vrot.slane %v943_v48, 7  ;;  %v951_v4 = vshrl.u32 %v5386_v43, 16  ;;  %v954_v5 = vshll.u32 %v5386_v43, 16  ;;  %3385 = vst.msk [vmem:[#allocation3 + $0x38] sm:$0xff] %vm3377_vm9, %v3344_v32  ;;  %v561_v62 = vld [vmem:[#allocation2 + $0xc0] sm:$0x1] }
 0x159   : > { %2132 = vrot.lane.b32.xlu0 %v5166_v10, %s5702_s15  ;;  %v2687_v46 = vshrl.u32 %v2386_v49, 16  ;;  %v2690_v24 = vshll.u32 %v2386_v49, 16  ;;  %v2696_v61 = vshll.u32 %v2387_v27, 16  ;;  %v2700_v2 = vshrl.u32 %v2387_v27, 16  ;;  %4250 = vst.msk [vmem:[#allocation3 + $0x30] sm:$0xff] %vm4243_vm11, %v4208_v59 }
 0x15a   : > { %v948_v11 = vor.u32 %v946_v40, %v945_v44  ;;  %v949_v17 = vrot.slane %v945_v44, 4  ;;  %v7081_v35 = vrot.slane %v951_v4, 7  ;;  %1810 = vrot.lane.b32.xlu1 %v5135_v31, %s5703_s16  ;;  %v2706_v19 = vshll.u32 %v2388_v13, 16 }
 0x15b   : > { %v2689_v26 = vrot.slane %v2687_v46, 4  ;;  %v2692_v0 = vrot.slane %v2690_v24, 5  ;;  %v2698_v36 = vrot.slane %v2696_v61, 5  ;;  %v2702_v16 = vrot.slane %v2700_v2, 4 }
 0x15c   : > { %v956_v51 = vor.u32 %v954_v5, %v7081_v35  ;;  %v612_v6 = vsel %vm5785_vm7, 0, %v611_v42  ;;  %v7091_v33 = vmul.f32 %v6915_v38, %v7012_v58  ;;  %v1135_v41 = vld [vmem:[#allocation2 + $0xa8] sm:$0xf]  ;;  %v2708_v22 = vrot.slane %v2706_v19, 5 }
 0x15d   : > { %2309 = vrot.lane.b32.xlu0 %v5669_v7, %s5704_s17  ;;  %v2693_v3 = vor.u32 %v2692_v0, %v2689_v26  ;;  %613 = vst [vmem:[#allocation2 + $0xb0] sm:$0x1] %v612_v6  ;;  %v5214_v55 = vrot.slane %v2931_v63, 9  ;;  %v3077_v30 = vrot.slane %v2932_v21, 5  ;;  %v1136_v47 = vsel %vm5854_vm13, %v948_v11, %v1135_v41  ;;  %v4210_v7 = vpop.permute.xlu0 %4209 }
 0x15e   : > { %v957_v57 = vsel %vm5863_vm14, %v949_v17, %v956_v51  ;;  %v2703_v58 = vor.u32 %v2702_v16, %v2698_v36  ;;  %v3080_v45 = vrot.slane %v2933_v50, 5  ;;  %2134 = vrot.lane.b32.xlu1 %v5167_v15, %s5702_s15  ;;  %v958_v20 = vrot.slane %v7081_v35, 4  ;;  %1137 = vst [vmem:[#allocation2 + $0xa8] sm:$0xf] %v1136_v47 }
 0x15f   : > { %1138 = vst.msk [vmem:[#allocation2 + $0xac] sm:$0xf] %vm501_vm0, %v957_v57  ;;  %v2694_v52 = vrot.slane %v2693_v3, 4  ;;  %v3079_v53 = vrot.slane %v3077_v30, 4  ;;  %v497_v60 = vmax.f32 %v6952_v34, 0.0  ;;  %v498_v43 = vmax.f32 %v6955_v8, 0.0  ;;  %v3889_v8 = vpop.permute.xlu1 %3888 }
 0x160   : > { %v2704_v54 = vrot.slane %v2703_v58, 4  ;;  %v559_v48 = vsel %vm5771_vm3, 0, %v558_v25  ;;  %v615_v49 = vsel %vm5785_vm7, 0, %v614_v39  ;;  %v3078_v37 = vsel %vm5794_vm8, %v5214_v55, %v3077_v30  ;;  %3930 = vst.msk [vmem:[#allocation3 + $0x38] sm:$0xff] %vm3922_vm10, %v3889_v8  ;;  %v4266_v13 = vld [vmem:[#allocation3 + $0x30] sm:$0xff] }
 0x161   : > { %v2699_v27 = vsel %vm5847_vm12, %v2694_v52, %v2698_v36  ;;  %v3081_v10 = vsel %vm5794_vm8, %v3079_v53, %v3080_v45  ;;  %560 = vst [vmem:[#allocation2 + $0xb4] sm:$0x1] %v559_v48  ;;  %v5387_v34 = vpack.c.bf16 %v497_v60, %v497_v60  ;;  %616 = vst [vmem:[#allocation2 + $0xbc] sm:$0x1] %v615_v49  ;;  %v499_v24 = vmax.f32 %v7091_v33, 0.0  ;;  %v2125_v36 = vpop.permute.xlu0 %2124 }
 0x162   : > { %v2709_v40 = vsel %vm5847_vm12, %v2704_v54, %v2708_v22  ;;  %v5388_v42 = vpack.c.bf16 %v498_v43, %v498_v43  ;;  %v7120_v4 = vmul.f32 %v6915_v38, %v7027_v29  ;;  %4251 = vst.msk [vmem:[#allocation3 + $0x38] sm:$0xff] %vm4243_vm11, %v4210_v7  ;;  %v5230_v5 = vcombine.low %v3078_v37, %v3081_v10 }
 0x163   : > { %v5198_v31 = vcombine.low %v2699_v27, %v2709_v40  ;;  %v960_v15 = vshrl.u32 %v5387_v34, 16  ;;  %v963_v44 = vshll.u32 %v5387_v34, 16  ;;  %v562_v61 = vsel %vm5771_vm3, 0, %v561_v62  ;;  %5546 = vmatprep.mubr.msk.bf16.mxu0 %vm4319_vm5, %v4266_v13  ;;  %v1801_v11 = vpop.permute.xlu1 %1800 }
 0x164   : > { %v1139_v63 = vld [vmem:[#allocation2 + $0xb0] sm:$0x1]  ;;  %v968_v46 = vshrl.u32 %v5388_v42, 16  ;;  %v971_v29 = vshll.u32 %v5388_v42, 16  ;;  %563 = vst [vmem:[#allocation2 + $0xc0] sm:$0x1] %v562_v61 }
 0x165   : > { %2854 = vrot.lane.b32.xlu0 %v5198_v31, %s5708_s21  ;;  %v1140_v21 = vsel %vm5771_vm3, %v958_v20, %v1139_v63  ;;  %v962_v38 = vrot.slane %v960_v15, 7  ;;  %v618_v32 = vsel %vm5785_vm7, 0, %v617_v56  ;;  %1841 = vst.msk [vmem:[#allocation3 + $0x40] sm:$0xff] %vm1832_vm1, %v1801_v11  ;;  %v2389_v2 = vld [vmem:[#allocation2 + $0xa8] sm:$0xf]  ;;  %v500_v39 = vmax.f32 %v7120_v4, 0.0  ;;  %v2302_v60 = vpop.permute.xlu0 %2301 }
 0x166   : > { %v5670_v17 = vld [vmem:[#allocation2 + $0xa8] sm:$0xff]   ;;  %1141 = vst [vmem:[#allocation2 + $0xb0] sm:$0x1] %v1140_v21  ;;  %v970_v35 = vrot.slane %v968_v46, 7  ;;  %619 = vst [vmem:[#allocation2 + $0xc8] sm:$0x1] %v618_v32  ;;  %v7157_v11 = vpack.c.bf16 %v499_v24, %v499_v24 }
 0x167   : > { %v2390_v50 = vld [vmem:[#allocation2 + $0xac] sm:$0xf]  ;;  %v7133_v26 = vld [vmem:[#allocation2 + $0xa8] sm:$0xe]  ;;  %v965_v0 = vor.u32 %v963_v44, %v962_v38  ;;  %2311 = vrot.lane.b32.xlu1 %v5670_v17, %s5704_s17  ;;  %v2711_v19 = vshrl.u32 %v2389_v2, 16  ;;  %v2714_v59 = vshll.u32 %v2389_v2, 16  ;;  %v1803_v41 = vpop.permute.xlu1 %1802 }
 0x168   : > { %v2720_v14 = vshll.u32 %v2390_v50, 16  ;;  %v2724_v51 = vshrl.u32 %v2390_v50, 16  ;;  %v2935_v16 = vld [vmem:[#allocation2 + $0xac] sm:$0xf]  ;;  %2165 = vst.msk [vmem:[#allocation3 + $0x40] sm:$0xff] %vm2156_vm2, %v2125_v36  ;;  %v973_v25 = vor.u32 %v971_v29, %v970_v35  ;;  %v5215_v58 = vrot.slane %v7133_v26, 9 }
 0x169   : > { %3175 = vrot.lane.b32.xlu0 %v5230_v5, %s5706_s19  ;;  %v3084_v6 = vrot.slane %v2935_v16, 5  ;;  %v2713_v3 = vrot.slane %v2711_v19, 4  ;;  %v2716_v22 = vrot.slane %v2714_v59, 5  ;;  %v5673_v57 = vld [vmem:[#allocation2 + $0xa8] sm:$0xff]   ;;  %1842 = vst.msk [vmem:[#allocation3 + $0x48] sm:$0xff] %vm1832_vm1, %v1803_v41  ;;  %v4267_v47 = vld [vmem:[#allocation3 + $0x38] sm:$0xff] }
 0x16a   : > { %v2722_v55 = vrot.slane %v2720_v14, 5  ;;  %v2726_v30 = vrot.slane %v2724_v51, 4  ;;  %v966_v20 = vrot.slane %v962_v38, 4  ;;  %v975_v52 = vrot.slane %v970_v35, 4  ;;  %v1142_v53 = vld [vmem:[#allocation2 + $0xb4] sm:$0xf]  ;;  %5547 = vmatmul.mubr.msk.bf16.gmra.mrb[12].mxu0 %vm4319_vm5, %v4267_v47 }
 0x16b   : > { %v3086_v45 = vrot.slane %v3084_v6, 4  ;;  %v2717_v54 = vor.u32 %v2716_v22, %v2713_v3  ;;  %v1143_v48 = vsel %vm5854_vm13, %v965_v0, %v1142_v53  ;;  %v3430_v49 = vld [vmem:[#allocation2 + $0xa8] sm:$0xf]  ;;  %v3431_v27 = vld [vmem:[#allocation2 + $0xac] sm:$0xf]  ;;  %vm7586_vm4 = vcmask 261312   ;;  %v2127_v40 = vpop.permute.xlu1 %2126  ;;  %v2847_v14 = vpop.permute.xlu0 %2846 }
 0x16c   : > { %v2727_v43 = vor.u32 %v2726_v30, %v2722_v55  ;;  %v1146_v37 = vld [vmem:[#allocation2 + $0xbc] sm:$0x1]  ;;  %2342 = vst.msk [vmem:[#allocation3 + $0x40] sm:$0xff] %vm7586_vm4, %v2302_v60  ;;  %v974_v62 = vsel %vm5863_vm14, %v966_v20, %v973_v25  ;;  %1144 = vst [vmem:[#allocation2 + $0xb4] sm:$0xf] %v1143_v48  ;;  %v3731_v44 = vshrl.u32 %v3430_v49, 16  ;;  %v3085_v17 = vsel %vm5794_vm8, %v5215_v58, %v3084_v6 }
 0x16d   : > { %v2391_v10 = vld [vmem:[#allocation2 + $0xb0] sm:$0x1]  ;;  %3353 = vrot.lane.b32.xlu0 %v5673_v57, %s5705_s18  ;;  %v1147_v7 = vsel %vm5771_vm3, %v975_v52, %v1146_v37  ;;  %v2718_v42 = vrot.slane %v2717_v54, 4  ;;  %1145 = vst.msk [vmem:[#allocation2 + $0xb8] sm:$0xf] %vm501_vm0, %v974_v62  ;;  %v3734_v13 = vshll.u32 %v3430_v49, 16  ;;  %v7169_v22 = vpack.c.bf16 %v500_v39, %v500_v39 }
 0x16e   : > { %v2936_v34 = vld [vmem:[#allocation2 + $0xb0] sm:$0x1]  ;;  %v2728_v56 = vrot.slane %v2727_v43, 4  ;;  %v2730_v31 = vshll.u32 %v2391_v10, 16  ;;  %1148 = vst [vmem:[#allocation2 + $0xbc] sm:$0x1] %v1147_v7 }
 0x16f   : > { %v3432_v8 = vld [vmem:[#allocation2 + $0xb0] sm:$0x1]  ;;  %v3087_v15 = vrot.slane %v2936_v34, 5  ;;  %2166 = vst.msk [vmem:[#allocation3 + $0x48] sm:$0xff] %vm2156_vm2, %v2127_v40  ;;  %v3740_v63 = vshll.u32 %v3431_v27, 16  ;;  %v3744_v5 = vshrl.u32 %v3431_v27, 16  ;;  %v2723_v61 = vsel %vm5847_vm12, %v2718_v42, %v2722_v55  ;;  %v3168_v4 = vpop.permute.xlu0 %3167 }
 0x170   : > { %v3975_v46 = vld [vmem:[#allocation2 + $0xa8] sm:$0xe]  ;;  %v2732_v21 = vrot.slane %v2730_v31, 5  ;;  %v3750_v38 = vshll.u32 %v3432_v8, 16  ;;  %v3976_v29 = vld [vmem:[#allocation2 + $0xac] sm:$0xf]  ;;  %v2304_v7 = vpop.permute.xlu1 %2303 }
 0x171   : > { %v3977_v32 = vld [vmem:[#allocation2 + $0xb0] sm:$0x1]  ;;  %v3733_v35 = vrot.slane %v3731_v44, 4  ;;  %v3736_v2 = vrot.slane %v3734_v13, 5  ;;  %v3742_v50 = vrot.slane %v3740_v63, 5  ;;  %v3088_v36 = vsel %vm5794_vm8, %v3086_v45, %v3087_v15  ;;  %v5685_v40 = vld [vmem:[#allocation2 + $0xa8] sm:$0xff]  }
 0x172   : > { %v1343_v26 = vld [vmem:[#allocation2 + $0xa8] sm:$0xf]  ;;  %v2733_v0 = vsel %vm5847_vm12, %v2728_v56, %v2732_v21  ;;  %v3746_v19 = vrot.slane %v3744_v5, 4  ;;  %v5278_v59 = vrot.slane %v3975_v46, 9  ;;  %v3752_v24 = vrot.slane %v3750_v38, 5 }
 0x173   : > { %v5199_v33 = vcombine.low %v2723_v61, %v2733_v0  ;;  %v3737_v51 = vor.u32 %v3736_v2, %v3733_v35  ;;  %v4121_v16 = vrot.slane %v3976_v29, 5  ;;  %vm7587_vm15 = vcmask 326912   ;;  %v3433_v25 = vld [vmem:[#allocation2 + $0xb4] sm:$0xf]  ;;  %v1344_v54 = vld [vmem:[#allocation2 + $0xac] sm:$0xf] }
 0x174   : > { %2887 = vst.msk [vmem:[#allocation3 + $0x40] sm:$0xff] %vm7587_vm15, %v2847_v14  ;;  %v3747_v6 = vor.u32 %v3746_v19, %v3742_v50  ;;  %v4124_v41 = vrot.slane %v3977_v32, 5  ;;  %v1689_v3 = vshrl.u32 %v1343_v26, 16  ;;  %v5231_v55 = vcombine.low %v3085_v17, %v3088_v36  ;;  %v3434_v57 = vld [vmem:[#allocation2 + $0xb8] sm:$0xf] }
 0x175   : > { %2856 = vrot.lane.b32.xlu1 %v5199_v33, %s5708_s21  ;;  %v3738_v30 = vrot.slane %v3737_v51, 4  ;;  %v7174_v47 = vsel %vm5794_vm8, %v5278_v59, %v4121_v16  ;;  %v1692_v58 = vshll.u32 %v1343_v26, 16  ;;  %v3435_v20 = vld [vmem:[#allocation2 + $0xbc] sm:$0x1]  ;;  %v3755_v52 = vshrl.u32 %v3433_v25, 16  ;;  %v5674_v37 = vld [vmem:[#allocation2 + $0xb4] sm:$0xff]  }
 0x176   : > { %v3748_v45 = vrot.slane %v3747_v6, 4  ;;  %v3758_v53 = vshll.u32 %v3433_v25, 16  ;;  %v3764_v60 = vshll.u32 %v3434_v57, 16  ;;  %v3768_v43 = vshrl.u32 %v3434_v57, 16  ;;  %v1345_v27 = vld [vmem:[#allocation2 + $0xb0] sm:$0x1]  ;;  %v3346_v19 = vpop.permute.xlu0 %3345 }
 0x177   : > { %v3743_v39 = vsel %vm5847_vm12, %v3738_v30, %v3742_v50  ;;  %v3774_v48 = vshll.u32 %v3435_v20, 16  ;;  %v4123_v49 = vrot.slane %v4121_v16, 4  ;;  %vm7588_vm4 = vcmask 392512   ;;  %v3978_v44 = vld [vmem:[#allocation2 + $0xb4] sm:$0xe] }
 0x178   : > { %3208 = vst.msk [vmem:[#allocation3 + $0x40] sm:$0xff] %vm7588_vm4, %v3168_v4  ;;  %v3753_v10 = vsel %vm5847_vm12, %v3748_v45, %v3752_v24  ;;  %v3757_v34 = vrot.slane %v3755_v52, 4  ;;  %v3760_v62 = vrot.slane %v3758_v53, 5  ;;  %v3766_v8 = vrot.slane %v3764_v60, 5  ;;  %v3979_v13 = vld [vmem:[#allocation2 + $0xb8] sm:$0xf] }
 0x179   : > { %3177 = vrot.lane.b32.xlu1 %v5231_v55, %s5706_s19  ;;  %v5262_v42 = vcombine.low %v3743_v39, %v3753_v10  ;;  %v3770_v56 = vrot.slane %v3768_v43, 4  ;;  %v3776_v31 = vrot.slane %v3774_v48, 5  ;;  %v4125_v15 = vsel %vm5794_vm8, %v4123_v49, %v4124_v41  ;;  %v3980_v17 = vld [vmem:[#allocation2 + $0xbc] sm:$0x1]  ;;  %v5686_v35 = vld [vmem:[#allocation2 + $0xb4] sm:$0xff]   ;;  %3386 = vst.msk [vmem:[#allocation3 + $0x40] sm:$0xff] %vm3377_vm9, %v3346_v19 }
 0x17a   : > { %vm7589_vm15 = vcmask 261312   ;;  %v3761_v63 = vor.u32 %v3760_v62, %v3757_v34  ;;  %v5294_v5 = vcombine.low %v7174_v47, %v4125_v15  ;;  %v1691_v46 = vrot.slane %v1689_v3, 4  ;;  %v1346_v36 = vld [vmem:[#allocation2 + $0xb4] sm:$0xf]  ;;  %v1347_v24 = vld [vmem:[#allocation2 + $0xb8] sm:$0xf] }
 0x17b   : > { %2343 = vst.msk [vmem:[#allocation3 + $0x48] sm:$0xff] %vm7589_vm15, %v2304_v7  ;;  %v1694_v61 = vrot.slane %v1692_v58, 5  ;;  %vm7590_vm4 = vcmask 64512   ;;  %3898 = vrot.lane.b32.xlu0 %v5262_v42, %s5709_s22  ;;  %v3771_v21 = vor.u32 %v3770_v56, %v3766_v8  ;;  %v1698_v38 = vshll.u32 %v1344_v54, 16  ;;  %v1891_v3 = vld [vmem:[#allocation2 + $0xa8] sm:$0xe] }
 0x17c   : > { %1299 = vst.msk [vmem:[#allocation3 + $0x70] sm:$0xff] %vm7590_vm4, %v5685_v40  ;;  %v1702_v29 = vshrl.u32 %v1344_v54, 16  ;;  %v1708_v32 = vshll.u32 %v1345_v27, 16  ;;  %v3762_v2 = vrot.slane %v3761_v63, 4  ;;  %v5279_v26 = vrot.slane %v3978_v44, 9  ;;  %vm7591_vm15 = vmmov %vm7590_vm4  ;;  %v4557_v27 = vld [vmem:[%s6604_s12 + $0xc0] sm:$0xff] }
 0x17d   : > { %v1695_v50 = vor.u32 %v1694_v61, %v1691_v46  ;;  %v4128_v0 = vrot.slane %v3979_v13, 5  ;;  %3355 = vrot.lane.b32.xlu1 %v5674_v37, %s5705_s18  ;;  %v3772_v59 = vrot.slane %v3771_v21, 4  ;;  %v1700_v14 = vrot.slane %v1698_v38, 5  ;;  %1300 = vst.msk [vmem:[#allocation3 + $0x78] sm:$0xff] %vm7591_vm15, %v5686_v35  ;;  %v1348_v47 = vld [vmem:[#allocation2 + $0xbc] sm:$0x1]  ;;  %5604 = vmatprep.mubr.msk.f32.mxu1 %vm4566_vm6, %v4557_v27 }
 0x17e   : > { %v1704_v33 = vrot.slane %v1702_v29, 4  ;;  %v1710_v51 = vrot.slane %v1708_v32, 5  ;;  %v3767_v16 = vsel %vm5847_vm12, %v3762_v2, %v3766_v8  ;;  %v4131_v57 = vrot.slane %v3980_v17, 5  ;;  %v1892_v60 = vld [vmem:[#allocation2 + $0xac] sm:$0xf] }
 0x17f   : > { %v1696_v6 = vrot.slane %v1695_v50, 4  ;;  %v4129_v25 = vsel %vm5794_vm8, %v5279_v26, %v4128_v0  ;;  %v4130_v41 = vrot.slane %v4128_v0, 4  ;;  %v3777_v55 = vsel %vm5847_vm12, %v3772_v59, %v3776_v31  ;;  %4219 = vrot.lane.b32.xlu0 %v5294_v5, %s5707_s20  ;;  %v1893_v54 = vld [vmem:[#allocation2 + $0xb0] sm:$0x1]  ;;  %v1894_v49 = vld [vmem:[#allocation2 + $0xb4] sm:$0xe] }
 0x180   : > { %v1705_v30 = vor.u32 %v1704_v33, %v1700_v14  ;;  %v1713_v58 = vshrl.u32 %v1346_v36, 16  ;;  %v5263_v45 = vcombine.low %v3767_v16, %v3777_v55  ;;  %v1716_v52 = vshll.u32 %v1346_v36, 16  ;;  %v1895_v8 = vld [vmem:[#allocation2 + $0xb8] sm:$0xf]  ;;  %v1896_v31 = vld [vmem:[#allocation2 + $0xbc] sm:$0x1] }
 0x181   : > { %v1701_v20 = vsel %vm5847_vm12, %v1696_v6, %v1700_v14  ;;  %v1722_v53 = vshll.u32 %v1347_v24, 16  ;;  %v4132_v39 = vsel %vm5794_vm8, %v4130_v41, %v4131_v57  ;;  %v1726_v48 = vshrl.u32 %v1347_v24, 16  ;;  %v4558_v44 = vld [vmem:[%s6604_s12 + $0xc8] sm:$0xff]  ;;  %v2392_v32 = vld [vmem:[#allocation2 + $0xb4] sm:$0xf] }
 0x182   : > { %v1706_v4 = vrot.slane %v1705_v30, 4  ;;  %v1715_v43 = vrot.slane %v1713_v58, 4  ;;  %3900 = vrot.lane.b32.xlu1 %v5263_v45, %s5709_s22  ;;  %v5295_v37 = vcombine.low %v4129_v25, %v4132_v39  ;;  %v1718_v10 = vrot.slane %v1716_v52, 5  ;;  %v2849_v15 = vpop.permute.xlu1 %2848  ;;  %5605 = vmatmul.mubr.msk.f32.gmra.mrb[24].mxu1 %vm4566_vm6, %v4558_v44  ;;  %v4559_v14 = vld [vmem:[%s6604_s12 + $0xd0] sm:$0xff]  ;;  %v1149_v6 = vld [vmem:[#allocation2 + $0xc0] sm:$0xf] }
 0x183   : > { %v1724_v34 = vrot.slane %v1722_v53, 5  ;;  %v1732_v62 = vshll.u32 %v1348_v47, 16  ;;  %v1728_v40 = vrot.slane %v1726_v48, 4  ;;  %v5152_v42 = vrot.slane %v1891_v3, 9  ;;  %5607 = vmatprep.mubr.msk.f32.mxu1 %vm4566_vm6, %v4559_v14  ;;  %v2393_v55 = vld [vmem:[#allocation2 + $0xb8] sm:$0xf] }
 0x184   : > { %v1711_v7 = vsel %vm5847_vm12, %v1706_v4, %v1710_v51  ;;  %v2048_v56 = vrot.slane %v1892_v60, 5  ;;  %4221 = vrot.lane.b32.xlu0 %v5295_v37, %s5707_s20  ;;  %v1719_v63 = vor.u32 %v1718_v10, %v1715_v43  ;;  %v2051_v46 = vrot.slane %v1893_v54, 5  ;;  %v5675_v47 = vld [vmem:[#allocation2 + $0xb4] sm:$0xff]   ;;  %v2394_v58 = vld [vmem:[#allocation2 + $0xbc] sm:$0x1] }
 0x185   : > { %v5136_v13 = vcombine.low %v1701_v20, %v1711_v7  ;;  %v1734_v5 = vrot.slane %v1732_v62, 5  ;;  %vm7592_vm4 = vcmask 326912   ;;  %v1729_v61 = vor.u32 %v1728_v40, %v1724_v34  ;;  %v4560_v52 = vld [vmem:[%s6604_s12 + $0xd8] sm:$0xff]  ;;  %v1153_v39 = vld [vmem:[#allocation2 + $0xc8] sm:$0x1] }
 0x186   : > { %2888 = vst.msk [vmem:[#allocation3 + $0x48] sm:$0xff] %vm7592_vm4, %v2849_v15  ;;  %v2049_v21 = vsel %vm5794_vm8, %v5152_v42, %v2048_v56  ;;  %v2050_v38 = vrot.slane %v2048_v56, 4  ;;  %v5153_v29 = vrot.slane %v1894_v49, 9  ;;  %v1720_v17 = vrot.slane %v1719_v63, 4  ;;  %v3170_v59 = vpop.permute.xlu1 %3169  ;;  %v2937_v43 = vld [vmem:[#allocation2 + $0xb4] sm:$0xe]  ;;  %5608 = vmatmul.mubr.msk.f32.gmra.mrb[26].mxu1 %vm4566_vm6, %v4560_v52 }
 0x187   : > { %1812 = vrot.lane.b32.xlu1 %v5136_v13, %s5703_s16  ;;  %v2055_v35 = vrot.slane %v1895_v8, 5  ;;  %v2058_v2 = vrot.slane %v1896_v31, 5  ;;  %v977_v50 = vshrl.u32 %v7157_v11, 16  ;;  %v1730_v26 = vrot.slane %v1729_v61, 4  ;;  %v564_v48 = vld [vmem:[#allocation2 + $0xcc] sm:$0x1] }
 0x188   : > { %v2052_v0 = vsel %vm5794_vm8, %v2050_v38, %v2051_v46  ;;  %v980_v36 = vshll.u32 %v7157_v11, 16  ;;  %v985_v19 = vshrl.u32 %v7169_v22, 16  ;;  %v1725_v33 = vsel %vm5847_vm12, %v1720_v17, %v1724_v34  ;;  %v2938_v34 = vld [vmem:[#allocation2 + $0xb8] sm:$0xf]  ;;  %v620_v56 = vld [vmem:[#allocation2 + $0xd4] sm:$0x1] }
 0x189   : > { %v5168_v51 = vcombine.low %v2049_v21, %v2052_v0  ;;  %v2056_v24 = vsel %vm5794_vm8, %v5153_v29, %v2055_v35  ;;  %v2057_v16 = vrot.slane %v2055_v35, 4  ;;  %vm7593_vm15 = vcmask 392512   ;;  %v3891_v62 = vpop.permute.xlu0 %3890  ;;  %v3440_v31 = vld [vmem:[#allocation2 + $0xd0] sm:$0xf]  ;;  %v2939_v13 = vld [vmem:[#allocation2 + $0xbc] sm:$0x1] }
 0x18a   : > { %3209 = vst.msk [vmem:[#allocation3 + $0x48] sm:$0xff] %vm7593_vm15, %v3170_v59  ;;  %v1735_v11 = vsel %vm5847_vm12, %v1730_v26, %v1734_v5  ;;  %v979_v25 = vrot.slane %v977_v50, 7  ;;  %v987_v41 = vrot.slane %v985_v19, 7  ;;  %v988_v3 = vshll.u32 %v7169_v22, 16  ;;  %v3348_v22 = vpop.permute.xlu1 %3347 }
 0x18b   : > { %v5137_v30 = vcombine.low %v1725_v33, %v1735_v11  ;;  %2136 = vrot.lane.b32.xlu0 %v5168_v51, %s5702_s15  ;;  %v2059_v57 = vsel %vm5794_vm8, %v2057_v16, %v2058_v2  ;;  %v2735_v45 = vshrl.u32 %v2392_v32, 16  ;;  %v2738_v20 = vshll.u32 %v2392_v32, 16  ;;  %3387 = vst.msk [vmem:[#allocation3 + $0x48] sm:$0xff] %vm3377_vm9, %v3348_v22  ;;  %v7261_v33 = vld [vmem:[#allocation2 + $0xd0] sm:$0xf] }
 0x18c   : > { %v5169_v53 = vcombine.low %v2056_v24, %v2059_v57  ;;  %v982_v60 = vor.u32 %v980_v36, %v979_v25  ;;  %v983_v54 = vrot.slane %v979_v25, 4  ;;  %v990_v4 = vor.u32 %v988_v3, %v987_v41  ;;  %3931 = vst.msk [vmem:[#allocation3 + $0x40] sm:$0xff] %vm3922_vm10, %v3891_v62 }
 0x18d   : > { %1814 = vrot.lane.b32.xlu1 %v5137_v30, %s5703_s16  ;;  %v992_v49 = vrot.slane %v987_v41, 4  ;;  %v2737_v27 = vrot.slane %v2735_v45, 4  ;;  %v2740_v37 = vrot.slane %v2738_v20, 5  ;;  %v2744_v10 = vshll.u32 %v2393_v55, 16  ;;  %v4212_v32 = vpop.permute.xlu0 %4211 }
 0x18e   : > { %v991_v8 = vsel %vm5863_vm14, %v983_v54, %v990_v4  ;;  %v1150_v7 = vsel %vm5854_vm13, %v982_v60, %v1149_v6  ;;  %v2748_v40 = vshrl.u32 %v2393_v55, 16  ;;  %v2754_v42 = vshll.u32 %v2394_v58, 16  ;;  %4252 = vst.msk [vmem:[#allocation3 + $0x40] sm:$0xff] %vm4243_vm11, %v4212_v32 }
 0x18f   : > { %2313 = vrot.lane.b32.xlu0 %v5675_v47, %s5704_s17  ;;  %1151 = vst [vmem:[#allocation2 + $0xc0] sm:$0xf] %v1150_v7  ;;  %1152 = vst.msk [vmem:[#allocation2 + $0xc4] sm:$0xf] %vm501_vm0, %v991_v8  ;;  %v2741_v15 = vor.u32 %v2740_v37, %v2737_v27  ;;  %v2746_v44 = vrot.slane %v2744_v10, 5  ;;  %v1154_v28 = vsel %vm5771_vm3, %v992_v49, %v1153_v39  ;;  %v5216_v5 = vrot.slane %v2937_v43, 9 }
 0x190   : > { %v2750_v63 = vrot.slane %v2748_v40, 4  ;;  %v2756_v23 = vrot.slane %v2754_v42, 5  ;;  %1155 = vst [vmem:[#allocation2 + $0xc8] sm:$0x1] %v1154_v28  ;;  %v3091_v46 = vrot.slane %v2938_v34, 5  ;;  %v565_v21 = vsel %vm5771_vm3, 0, %v564_v48  ;;  %vm7595_vm3 = vmmov %vm7592_vm4 }
 0x191   : > { %2138 = vrot.lane.b32.xlu1 %v5169_v53, %s5702_s15  ;;  %v2742_v61 = vrot.slane %v2741_v15, 4  ;;  %v621_v38 = vsel %vm5785_vm7, 0, %v620_v56  ;;  %v3812_v29 = vshll.u32 %v3440_v31, 16  ;;  %v3094_v2 = vrot.slane %v2939_v13, 5  ;;  %566 = vst [vmem:[#allocation2 + $0xcc] sm:$0x1] %v565_v21 }
 0x192   : > { %v2751_v17 = vor.u32 %v2750_v63, %v2746_v44  ;;  %v3093_v35 = vrot.slane %v3091_v46, 4  ;;  %622 = vst [vmem:[#allocation2 + $0xd4] sm:$0x1] %v621_v38  ;;  %v3816_v50 = vshrl.u32 %v3440_v31, 16  ;;  %v3092_v59 = vsel %vm5794_vm8, %v5216_v5, %v3091_v46  ;;  %v4214_v51 = vpop.permute.xlu0 %4213 }
 0x193   : > { %v7251_v26 = vrot.slane %v3812_v29, 5  ;;  %v2747_v0 = vsel %vm5847_vm12, %v2742_v61, %v2746_v44  ;;  %v3893_v41 = vpop.permute.xlu1 %3892  ;;  %v4142_v49 = vrot.slane %v7261_v33, 5  ;;  %vm7594_vm0 = vcmask 261312  }
 0x194   : > { %v2752_v1 = vrot.slane %v2751_v17, 4  ;;  %v3818_v36 = vrot.slane %v3816_v50, 4  ;;  %v3095_v14 = vsel %vm5794_vm8, %v3093_v35, %v3094_v2  ;;  %3932 = vst.msk [vmem:[#allocation3 + $0x48] sm:$0xff] %vm3922_vm10, %v3893_v41  ;;  %vm7596_vm7 = vmmov %vm7594_vm0 }
 0x195   : > { %v5232_v45 = vcombine.low %v3092_v59, %v3095_v14  ;;  %4253 = vst.msk [vmem:[#allocation3 + $0x48] sm:$0xff] %vm4243_vm11, %v4214_v51  ;;  %v4268_v32 = vld [vmem:[#allocation3 + $0x40] sm:$0xff]  ;;  %vm7600_vm14 = vmmov %vm7594_vm0 }
 0x196   : > { %v5676_v19 = vld [vmem:[#allocation2 + $0xc0] sm:$0xff]   ;;  %v2757_v9 = vsel %vm5847_vm12, %v2752_v1, %v2756_v23  ;;  %v3819_v25 = vor.u32 %v3818_v36, %v7251_v26  ;;  %5550 = vmatprep.mubr.msk.bf16.mxu0 %vm4319_vm5, %v4268_v32  ;;  %vm7602_vm4 = vmmov %vm7594_vm0 }
 0x197   : > { %v5200_v24 = vcombine.low %v2747_v0, %v2757_v9  ;;  %v2395_v16 = vld [vmem:[#allocation2 + $0xc0] sm:$0xf]  ;;  %v2396_v6 = vld [vmem:[#allocation2 + $0xc4] sm:$0xf]  ;;  %v2397_v11 = vld [vmem:[#allocation2 + $0xc8] sm:$0x1]  ;;  %2315 = vrot.lane.b32.xlu1 %v5676_v19, %s5704_s17  ;;  %v1805_v27 = vpop.permute.xlu1 %1804 }
 0x198   : > { %v2759_v3 = vshrl.u32 %v2395_v16, 16  ;;  %v2762_v55 = vshll.u32 %v2395_v16, 16  ;;  %v2768_v30 = vshll.u32 %v2396_v6, 16  ;;  %v2772_v57 = vshrl.u32 %v2396_v6, 16  ;;  %v2940_v47 = vld [vmem:[#allocation2 + $0xc0] sm:$0xe] }
 0x199   : > { %2858 = vrot.lane.b32.xlu0 %v5200_v24, %s5708_s21  ;;  %v2778_v58 = vshll.u32 %v2397_v11, 16  ;;  %v2941_v20 = vld [vmem:[#allocation2 + $0xc4] sm:$0xf]  ;;  %v2942_v52 = vld [vmem:[#allocation2 + $0xc8] sm:$0x1]  ;;  %v5217_v53 = vrot.slane %v2940_v47, 9  ;;  %v2129_v7 = vpop.permute.xlu0 %2128 }
 0x19a   : > { %v2761_v60 = vrot.slane %v2759_v3, 4  ;;  %v2764_v54 = vrot.slane %v2762_v55, 5  ;;  %v2770_v4 = vrot.slane %v2768_v30, 5  ;;  %v2774_v39 = vrot.slane %v2772_v57, 4  ;;  %v5679_v34 = vld [vmem:[#allocation2 + $0xc0] sm:$0xff]   ;;  %1843 = vst.msk [vmem:[#allocation3 + $0x50] sm:$0xff] %vm1832_vm1, %v1805_v27 }
 0x19b   : > { %v2780_v43 = vrot.slane %v2778_v58, 5  ;;  %v3098_v48 = vrot.slane %v2941_v20, 5  ;;  %v3101_v22 = vrot.slane %v2942_v52, 5  ;;  %v3436_v62 = vld [vmem:[#allocation2 + $0xc0] sm:$0xf]  ;;  %v7269_v8 = vrot.slane %v3819_v25, 4  ;;  %v1807_v29 = vpop.permute.xlu1 %1806 }
 0x19c   : > { %v2765_v37 = vor.u32 %v2764_v54, %v2761_v60  ;;  %v2775_v10 = vor.u32 %v2774_v39, %v2770_v4  ;;  %v3437_v56 = vld [vmem:[#allocation2 + $0xc4] sm:$0xf]  ;;  %v3438_v31 = vld [vmem:[#allocation2 + $0xc8] sm:$0x1]  ;;  %v3779_v15 = vshrl.u32 %v3436_v62, 16  ;;  %2167 = vst.msk [vmem:[#allocation3 + $0x50] sm:$0xff] %vm2156_vm2, %v2129_v7 }
 0x19d   : > { %3179 = vrot.lane.b32.xlu0 %v5232_v45, %s5706_s19  ;;  %v3099_v40 = vsel %vm5794_vm8, %v5217_v53, %v3098_v48  ;;  %v3100_v42 = vrot.slane %v3098_v48, 4  ;;  %v3782_v13 = vshll.u32 %v3436_v62, 16  ;;  %v3788_v63 = vshll.u32 %v3437_v56, 16  ;;  %v3439_v23 = vld [vmem:[#allocation2 + $0xcc] sm:$0xf]  ;;  %1844 = vst.msk [vmem:[#allocation3 + $0x58] sm:$0xff] %vm1832_vm1, %v1807_v29  ;;  %v2306_v36 = vpop.permute.xlu0 %2305 }
 0x19e   : > { %v2766_v44 = vrot.slane %v2765_v37, 4  ;;  %v2776_v28 = vrot.slane %v2775_v10, 4  ;;  %v3781_v46 = vrot.slane %v3779_v15, 4  ;;  %v3792_v61 = vshrl.u32 %v3437_v56, 16  ;;  %v3441_v38 = vld [vmem:[#allocation2 + $0xd4] sm:$0x1] }
 0x19f   : > { %v3102_v5 = vsel %vm5794_vm8, %v3100_v42, %v3101_v22  ;;  %v3798_v21 = vshll.u32 %v3438_v31, 16  ;;  %v3784_v50 = vrot.slane %v3782_v13, 5  ;;  %v3981_v0 = vld [vmem:[#allocation2 + $0xc0] sm:$0xe]  ;;  %v3982_v1 = vld [vmem:[#allocation2 + $0xc4] sm:$0xf]  ;;  %v2131_v47 = vpop.permute.xlu1 %2130 }
 0x1a0   : > { %v2771_v17 = vsel %vm5847_vm12, %v2766_v44, %v2770_v4  ;;  %v2781_v35 = vsel %vm5847_vm12, %v2776_v28, %v2780_v43  ;;  %v5233_v2 = vcombine.low %v3099_v40, %v3102_v5  ;;  %v4269_v19 = vld [vmem:[#allocation3 + $0x48] sm:$0xff]  ;;  %v3790_v59 = vrot.slane %v3788_v63, 5  ;;  %v3983_v24 = vld [vmem:[#allocation2 + $0xc8] sm:$0x1]  ;;  %2344 = vst.msk [vmem:[#allocation3 + $0x50] sm:$0xff] %vm7594_vm0, %v2306_v36  ;;  %v5680_v27 = vld [vmem:[#allocation2 + $0xcc] sm:$0xff]  }
 0x1a1   : > { %v5201_v9 = vcombine.low %v2771_v17, %v2781_v35  ;;  %3357 = vrot.lane.b32.xlu0 %v5679_v34, %s5705_s18  ;;  %v3794_v14 = vrot.slane %v3792_v61, 4  ;;  %v3800_v51 = vrot.slane %v3798_v21, 5  ;;  %5551 = vmatmul.mubr.msk.bf16.gmra.mrb[16].mxu0 %vm4319_vm5, %v4269_v19  ;;  %v3785_v16 = vor.u32 %v3784_v50, %v3781_v46  ;;  %v3984_v57 = vld [vmem:[#allocation2 + $0xcc] sm:$0xe]  ;;  %2168 = vst.msk [vmem:[#allocation3 + $0x58] sm:$0xff] %vm2156_vm2, %v2131_v47  ;;  %v4561_v48 = vld [vmem:[%s6604_s12 + $0xe0] sm:$0xff] }
 0x1a2   : > { %v3803_v6 = vshrl.u32 %v3439_v23, 16  ;;  %v3806_v11 = vshll.u32 %v3439_v23, 16  ;;  %v3822_v25 = vshll.u32 %v3441_v38, 16  ;;  %v5280_v3 = vrot.slane %v3981_v0, 9  ;;  %v3986_v54 = vld [vmem:[#allocation2 + $0xd4] sm:$0x1]  ;;  %5610 = vmatprep.mubr.msk.f32.mxu1 %vm4566_vm6, %v4561_v48 }
 0x1a3   : > { %2860 = vrot.lane.b32.xlu1 %v5201_v9, %s5708_s21  ;;  %v3795_v41 = vor.u32 %v3794_v14, %v3790_v59  ;;  %v4135_v55 = vrot.slane %v3982_v1, 5  ;;  %v4138_v30 = vrot.slane %v3983_v24, 5  ;;  %v3786_v58 = vrot.slane %v3785_v16, 4  ;;  %v4562_v22 = vld [vmem:[%s6604_s12 + $0xe8] sm:$0xff]  ;;  %v7349_v16 = vld [vmem:[%s7550_s4] ss:$0 sm:$0xff] }
 0x1a4   : > { %v3805_v45 = vrot.slane %v3803_v6, 4  ;;  %v3808_v20 = vrot.slane %v3806_v11, 5  ;;  %v3824_v52 = vrot.slane %v3822_v25, 5  ;;  %v5281_v43 = vrot.slane %v3984_v57, 9  ;;  %5611 = vmatmul.mubr.msk.f32.gmra.mrb[28].mxu1 %vm4566_vm6, %v4562_v22  ;;  %v7357_v57 = vld [vmem:[%s7553_s7] ss:$0 sm:$0xff] }
 0x1a5   : > { %v3796_v53 = vrot.slane %v3795_v41, 4  ;;  %v4137_v60 = vrot.slane %v4135_v55, 4  ;;  %v3791_v4 = vsel %vm5847_vm12, %v3786_v58, %v3790_v59  ;;  %v4136_v10 = vsel %vm5794_vm8, %v5280_v3, %v4135_v55  ;;  %5613 = vmatprep.mubr.msk.f32.mxu1 %vm4566_vm6, %v4563_v18 }
 0x1a6   : > { %v3809_v39 = vor.u32 %v3808_v20, %v3805_v45  ;;  %v4144_v62 = vrot.slane %v4142_v49, 4  ;;  %v3825_v42 = vsel %vm5847_vm12, %v7269_v8, %v3824_v52  ;;  %v4145_v56 = vrot.slane %v3986_v54, 5  ;;  %v2851_v31 = vpop.permute.xlu0 %2850 }
 0x1a7   : > { %3181 = vrot.lane.b32.xlu1 %v5233_v2, %s5706_s19  ;;  %v3801_v37 = vsel %vm5847_vm12, %v3796_v53, %v3800_v51  ;;  %v4139_v34 = vsel %vm5794_vm8, %v4137_v60, %v4138_v30  ;;  %2889 = vst.msk [vmem:[#allocation3 + $0x50] sm:$0xff] %vm7595_vm3, %v2851_v31  ;;  %v2308_v13 = vpop.permute.xlu1 %2307  ;;  %v4143_v8 = vsel %vm5794_vm8, %v5281_v43, %v4142_v49  ;;  %vm7604_vm0 = vcmask 64512  }
 0x1a8   : > { %v5264_v7 = vcombine.low %v3791_v4, %v3801_v37  ;;  %v3810_v40 = vrot.slane %v3809_v39, 4  ;;  %v5296_v44 = vcombine.low %v4136_v10, %v4139_v34  ;;  %v4146_v63 = vsel %vm5794_vm8, %v4144_v62, %v4145_v56  ;;  %2345 = vst.msk [vmem:[#allocation3 + $0x58] sm:$0xff] %vm7596_vm7, %v2308_v13  ;;  %vm7598_vm8 = vmmov %vm7595_vm3 }
 0x1a9   : > { %v5297_v33 = vcombine.low %v4143_v8, %v4146_v63  ;;  %vm7605_vm7 = vmmov %vm7604_vm0 }
 0x1aa   : > { %3902 = vrot.lane.b32.xlu0 %v5264_v7, %s5709_s22  ;;  %v3815_v15 = vsel %vm5847_vm12, %v3810_v40, %v7251_v26  ;;  %v3172_v23 = vpop.permute.xlu0 %3171  ;;  %vm7597_vm12 = vmmov %vm7593_vm15  ;;  %v4564_v26 = vld [vmem:[%s6604_s12 + $0xf8] sm:$0xff] }
 0x1ab   : > { %3359 = vrot.lane.b32.xlu1 %v5680_v27, %s5705_s18  ;;  %v5265_v28 = vcombine.low %v3815_v15, %v3825_v42  ;;  %3210 = vst.msk [vmem:[#allocation3 + $0x50] sm:$0xff] %vm7597_vm12, %v3172_v23  ;;  %5614 = vmatmul.mubr.msk.f32.gmra.mrb[30].mxu1 %vm4566_vm6, %v4564_v26  ;;  %vm7599_vm13 = vmmov %vm7597_vm12 }
 0x1ac   : > { %vm7601_vm6 = vmmov %vm7595_vm3 }
 0x1ad   : > { %vm7603_vm15 = vmmov %vm7597_vm12 }
 0x1ae   : > { %4223 = vrot.lane.b32.xlu0 %v5296_v44, %s5707_s20  ;;  %v3350_v49 = vpop.permute.xlu0 %3349  ;;  %vm7606_vm12 = vmmov %vm7604_vm0 }
 0x1af   : > { %3904 = vrot.lane.b32.xlu1 %v5265_v28, %s5709_s22  ;;  %3388 = vst.msk [vmem:[#allocation3 + $0x50] sm:$0xff] %vm3377_vm9, %v3350_v49 }
 0x1b3   : > { %4225 = vrot.lane.b32.xlu1 %v5297_v33, %s5707_s20  ;;  %v2853_v12 = vpop.permute.xlu1 %2852  ;;  %s7365_s20 = scalar_lea.vmem %s7554_s8, %s5357_s30 }
 0x1b4   : > { %2890 = vst.msk [vmem:[#allocation3 + $0x58] sm:$0xff] %vm7598_vm8, %v2853_v12  ;;  %vm7607_vm8 = vmmov %vm7604_vm0 }
 0x1b7   : > { %v3174_v5 = vpop.permute.xlu1 %3173 }
 0x1b8   : > { %3211 = vst.msk [vmem:[#allocation3 + $0x58] sm:$0xff] %vm7599_vm13, %v3174_v5 }
 0x1ba   : > { %v3895_v46 = vpop.permute.xlu0 %3894 }
 0x1bb   : > { %v3352_v61 = vpop.permute.xlu1 %3351  ;;  %3933 = vst.msk [vmem:[#allocation3 + $0x50] sm:$0xff] %vm3922_vm10, %v3895_v46 }
 0x1bc   : > { %3389 = vst.msk [vmem:[#allocation3 + $0x58] sm:$0xff] %vm3377_vm9, %v3352_v61 }
 0x1be   : > { %v4216_v21 = vpop.permute.xlu0 %4215 }
 0x1bf   : > { %4254 = vst.msk [vmem:[#allocation3 + $0x50] sm:$0xff] %vm4243_vm11, %v4216_v21 }
 0x1c4   : > { %v4218_v38 = vpop.permute.xlu0 %4217  ;;  %v3897_v29 = vpop.permute.xlu1 %3896 }
 0x1c5   : > { %3934 = vst.msk [vmem:[#allocation3 + $0x58] sm:$0xff] %vm3922_vm10, %v3897_v29 }
 0x1c6   : > { %4255 = vst.msk [vmem:[#allocation3 + $0x58] sm:$0xff] %vm4243_vm11, %v4218_v38  ;;  %v4270_v32 = vld [vmem:[#allocation3 + $0x50] sm:$0xff] }
 0x1c7   : > { %5554 = vmatprep.mubr.msk.bf16.mxu0 %vm4319_vm5, %v4270_v32 }
 0x1c8   : > { %v1809_v17 = vpop.permute.xlu1 %1808 }
 0x1c9   : > { %1845 = vst.msk [vmem:[#allocation3 + $0x60] sm:$0xff] %vm1832_vm1, %v1809_v17 }
 0x1cb   : > { %v2133_v35 = vpop.permute.xlu0 %2132 }
 0x1cc   : > { %2169 = vst.msk [vmem:[#allocation3 + $0x60] sm:$0xff] %vm2156_vm2, %v2133_v35  ;;  %v1811_v2 = vpop.permute.xlu1 %1810 }
 0x1cd   : > { %1846 = vst.msk [vmem:[#allocation3 + $0x68] sm:$0xff] %vm1832_vm1, %v1811_v2  ;;  %v4271_v50 = vld [vmem:[#allocation3 + $0x58] sm:$0xff] }
 0x1ce   : > { %5555 = vmatmul.mubr.msk.bf16.gmra.mrb[20].mxu0 %vm4319_vm5, %v4271_v50 }
 0x1cf   : > { %v2310_v0 = vpop.permute.xlu0 %2309  ;;  %v5570_v36 = vpop.f32.mrb[0].mxu1 }
 0x1d0   : > { %2346 = vst.msk [vmem:[#allocation3 + $0x60] sm:$0xff] %vm7600_vm14, %v2310_v0  ;;  %v2135_v1 = vpop.permute.xlu1 %2134  ;;  %v4732_v9 = vpop.f32.mrb[1].mxu1  ;;  %vm7608_vm14 = vmmov %vm7604_vm0 }
 0x1d1   : > { %2170 = vst.msk [vmem:[#allocation3 + $0x68] sm:$0xff] %vm2156_vm2, %v2135_v1 }
 0x1d3   : > { %v5573_v14 = vpop.f32.mrb[2].mxu1 }
 0x1d4   : > { %v4742_v24 = vpop.f32.mrb[3].mxu1 }
 0x1d7   : > { %v2855_v19 = vpop.permute.xlu0 %2854  ;;  %v5576_v6 = vpop.f32.mrb[4].mxu1 }
 0x1d8   : > { %2891 = vst.msk [vmem:[#allocation3 + $0x60] sm:$0xff] %vm7601_vm6, %v2855_v19  ;;  %v4752_v25 = vpop.f32.mrb[5].mxu1  ;;  %vm7609_vm6 = vmmov %vm7604_vm0 }
 0x1d9   : > { %v2312_v59 = vpop.permute.xlu1 %2311 }
 0x1da   : > { %2347 = vst.msk [vmem:[#allocation3 + $0x68] sm:$0xff] %vm7602_vm4, %v2312_v59  ;;  %vm7610_vm4 = vmmov %vm7604_vm0 }
 0x1db   : > { %v3176_v51 = vpop.permute.xlu0 %3175  ;;  %v5579_v58 = vpop.f32.mrb[6].mxu1 }
 0x1dc   : > { %3212 = vst.msk [vmem:[#allocation3 + $0x60] sm:$0xff] %vm7603_vm15, %v3176_v51  ;;  %v5536_v41 = vpop.f32.mrb[0].mxu0  ;;  %v4762_v53 = vpop.f32.mrb[7].mxu1  ;;  %vm7611_vm15 = vmmov %vm7604_vm0 }
 0x1dd   : > { %v4415_v3 = vadd.f32 %v5536_v41, %v7349_v16  ;;  %v4406_v55 = vpop.f32.mrb[1].mxu0 }
 0x1de   : > { %v4407_v30 = vadd.f32 %v7349_v16, %v4406_v55  ;;  %v5537_v47 = vpop.f32.mrb[2].mxu0 }
 0x1df   : > { %v3354_v11 = vpop.permute.xlu0 %3353  ;;  %v4418_v45 = vadd.f32 %v5537_v47, %v7349_v16  ;;  %v4893_v20 = vadd.f32 %v4742_v24, %v4415_v3  ;;  %v4409_v52 = vpop.f32.mrb[3].mxu0 }
 0x1e0   : > { %3390 = vst.msk [vmem:[#allocation3 + $0x60] sm:$0xff] %vm3377_vm9, %v3354_v11  ;;  %v4891_v60 = vadd.f32 %v4732_v9, %v4407_v30  ;;  %v4410_v54 = vadd.f32 %v7349_v16, %v4409_v52 }
 0x1e1   : > { %v4894_v4 = vadd.f32 %v5573_v14, %v4418_v45  ;;  %v4932_v39 = vadd.f32 %v7357_v57, %v4893_v20  ;;  %v7370_v22 = vpop.f32.mrb[8].mxu1 }
 0x1e2   : > { %v4930_v43 = vadd.f32 %v7357_v57, %v4891_v60  ;;  %v4892_v48 = vadd.f32 %v5570_v36, %v4410_v54  ;;  %v7375_v10 = vpop.f32.mrb[9].mxu1 }
 0x1e3   : > { %v4933_v37 = vadd.f32 %v7357_v57, %v4894_v4  ;;  %4964 = vst.msk [vmem:[%s7365_s20 + $0x10] sm:$0xff] %vm7604_vm0, %v4932_v39  ;;  %vm7612_vm0 = vcmask 261312  }
 0x1e4   : > { %4962 = vst.msk [vmem:[%s7365_s20] sm:$0xff] %vm7605_vm7, %v4930_v43  ;;  %v4931_v34 = vadd.f32 %v7357_v57, %v4892_v48  ;;  %v5540_v62 = vpop.f32.mrb[4].mxu0  ;;  %vm7615_vm7 = vmmov %vm7599_vm13 }
 0x1e5   : > { %4965 = vst.msk [vmem:[%s7365_s20 + $0x18] sm:$0xff] %vm7606_vm12, %v4933_v37  ;;  %v4431_v7 = vadd.f32 %v5540_v62, %v7349_v16  ;;  %v4422_v40 = vpop.f32.mrb[5].mxu0  ;;  %v7387_v31 = vpop.f32.mrb[10].mxu1 }
 0x1e6   : > { %4963 = vst.msk [vmem:[%s7365_s20 + $0x8] sm:$0xff] %vm7607_vm8, %v4931_v34  ;;  %v4423_v42 = vadd.f32 %v7349_v16, %v4422_v40  ;;  %v5541_v56 = vpop.f32.mrb[6].mxu0  ;;  %v4782_v23 = vpop.f32.mrb[11].mxu1 }
 0x1e7   : > { %v2857_v27 = vpop.permute.xlu1 %2856  ;;  %v4434_v44 = vadd.f32 %v5541_v56, %v7349_v16  ;;  %v4897_v28 = vadd.f32 %v4762_v53, %v4431_v7  ;;  %v4425_v13 = vpop.f32.mrb[7].mxu0 }
 0x1e8   : > { %2892 = vst.msk [vmem:[#allocation3 + $0x68] sm:$0xff] %vm7595_vm3, %v2857_v27  ;;  %v4895_v8 = vadd.f32 %v4752_v25, %v4423_v42  ;;  %v4426_v63 = vadd.f32 %v7349_v16, %v4425_v13  ;;  %vm7613_vm3 = vmmov %vm7612_vm0 }
 0x1e9   : > { %v4898_v26 = vadd.f32 %v5579_v58, %v4434_v44  ;;  %v4936_v33 = vadd.f32 %v7357_v57, %v4897_v28 }
 0x1ea   : > { %v4934_v49 = vadd.f32 %v7357_v57, %v4895_v8  ;;  %v4896_v12 = vadd.f32 %v5576_v6, %v4426_v63 }
 0x1eb   : > { %v3178_v15 = vpop.permute.xlu1 %3177  ;;  %v4937_v46 = vadd.f32 %v7357_v57, %v4898_v26  ;;  %4968 = vst.msk [vmem:[%s7365_s20 + $0x30] sm:$0xff] %vm7608_vm14, %v4936_v33 }
 0x1ec   : > { %3213 = vst.msk [vmem:[#allocation3 + $0x68] sm:$0xff] %vm7599_vm13, %v3178_v15  ;;  %v4935_v61 = vadd.f32 %v7357_v57, %v4896_v12 }
 0x1ed   : > { %v3899_v18 = vpop.permute.xlu0 %3898  ;;  %4966 = vst.msk [vmem:[%s7365_s20 + $0x20] sm:$0xff] %vm7609_vm6, %v4934_v49  ;;  %vm7621_vm6 = vmmov %vm7615_vm7 }
 0x1ee   : > { %3935 = vst.msk [vmem:[#allocation3 + $0x60] sm:$0xff] %vm3922_vm10, %v3899_v18 }
 0x1ef   : > { %v3356_v5 = vpop.permute.xlu1 %3355  ;;  %4969 = vst.msk [vmem:[%s7365_s20 + $0x38] sm:$0xff] %vm7610_vm4, %v4937_v46 }
 0x1f0   : > { %3391 = vst.msk [vmem:[#allocation3 + $0x68] sm:$0xff] %vm3377_vm9, %v3356_v5 }
 0x1f1   : > { %v4220_v21 = vpop.permute.xlu0 %4219  ;;  %4967 = vst.msk [vmem:[%s7365_s20 + $0x28] sm:$0xff] %vm7611_vm15, %v4935_v61 }
 0x1f2   : > { %4256 = vst.msk [vmem:[#allocation3 + $0x60] sm:$0xff] %vm4243_vm11, %v4220_v21 }
 0x1f4   : > { %v3901_v38 = vpop.permute.xlu1 %3900 }
 0x1f5   : > { %3936 = vst.msk [vmem:[#allocation3 + $0x68] sm:$0xff] %vm3922_vm10, %v3901_v38 }
 0x1f6   : > { %v4222_v29 = vpop.permute.xlu0 %4221 }
 0x1f7   : > { %4257 = vst.msk [vmem:[#allocation3 + $0x68] sm:$0xff] %vm4243_vm11, %v4222_v29 }
 0x1f9   : > { %v1813_v32 = vpop.permute.xlu1 %1812  ;;  %v4272_v17 = vld [vmem:[#allocation3 + $0x60] sm:$0xff]  ;;  %v7414_v0 = vpop.f32.mrb[12].mxu1 }
 0x1fa   : > { %1847 = vst.msk [vmem:[#allocation3 + $0x70] sm:$0xff] %vm1832_vm1, %v1813_v32  ;;  %5558 = vmatprep.mubr.msk.bf16.mxu0 %vm4319_vm5, %v4272_v17  ;;  %v7416_v36 = vpop.f32.mrb[13].mxu1 }
 0x1fd   : > { %v2137_v35 = vpop.permute.xlu0 %2136  ;;  %v7420_v9 = vpop.f32.mrb[14].mxu1 }
 0x1fe   : > { %2171 = vst.msk [vmem:[#allocation3 + $0x70] sm:$0xff] %vm2156_vm2, %v2137_v35  ;;  %v4273_v50 = vld [vmem:[#allocation3 + $0x68] sm:$0xff]  ;;  %v4802_v59 = vpop.f32.mrb[15].mxu1 }
 0x1ff   : > { %v1815_v2 = vpop.permute.xlu1 %1814  ;;  %5559 = vmatmul.mubr.msk.bf16.gmra.mrb[24].mxu0 %vm4319_vm5, %v4273_v50 }
 0x200   : > { %1848 = vst.msk [vmem:[#allocation3 + $0x78] sm:$0xff] %vm1832_vm1, %v1815_v2  ;;  %vm7614_vm1 = vcmask 326912  }
 0x201   : > { %v2314_v1 = vpop.permute.xlu0 %2313  ;;  %vm7617_vm12 = vmmov %vm7614_vm1 }
 0x202   : > { %2348 = vst.msk [vmem:[#allocation3 + $0x70] sm:$0xff] %vm7612_vm0, %v2314_v1 }
 0x203   : > { %v2139_v19 = vpop.permute.xlu1 %2138 }
 0x204   : > { %2172 = vst.msk [vmem:[#allocation3 + $0x78] sm:$0xff] %vm2156_vm2, %v2139_v19  ;;  %vm7616_vm2 = vmmov %vm7610_vm4 }
 0x205   : > { %vm7618_vm8 = vmmov %vm7616_vm2 }
 0x206   : > { %vm7619_vm13 = vmmov %vm7616_vm2 }
 0x207   : > { %vm7620_vm14 = vmmov %vm7616_vm2 }
 0x208   : > { %vm7626_vm4 = vmmov %vm7616_vm2 }
 0x209   : > { %v2316_v14 = vpop.permute.xlu1 %2315  ;;  %vm7627_vm15 = vmmov %vm7616_vm2 }
 0x20a   : > { %2349 = vst.msk [vmem:[#allocation3 + $0x78] sm:$0xff] %vm7613_vm3, %v2316_v14  ;;  %vm7628_vm0 = vmmov %vm7616_vm2 }
 0x20b   : > { %v2859_v51 = vpop.permute.xlu0 %2858  ;;  %v5544_v24 = vpop.f32.mrb[8].mxu0  ;;  %vm7629_vm3 = vmmov %vm7628_vm0 }
 0x20c   : > { %2893 = vst.msk [vmem:[#allocation3 + $0x70] sm:$0xff] %vm7614_vm1, %v2859_v51  ;;  %v4447_v11 = vadd.f32 %v5544_v24, %v7349_v16  ;;  %v4438_v25 = vpop.f32.mrb[9].mxu0  ;;  %vm7630_vm1 = vmmov %vm7628_vm0 }
 0x20d   : > { %v4439_v41 = vadd.f32 %v7349_v16, %v4438_v25  ;;  %v5545_v3 = vpop.f32.mrb[10].mxu0 }
 0x20e   : > { %v4450_v55 = vadd.f32 %v5545_v3, %v7349_v16  ;;  %v4901_v30 = vadd.f32 %v4782_v23, %v4447_v11  ;;  %v4441_v47 = vpop.f32.mrb[11].mxu0 }
 0x20f   : > { %v3180_v6 = vpop.permute.xlu0 %3179  ;;  %v4899_v58 = vadd.f32 %v7375_v10, %v4439_v41  ;;  %v4442_v45 = vadd.f32 %v7349_v16, %v4441_v47 }
 0x210   : > { %3214 = vst.msk [vmem:[#allocation3 + $0x70] sm:$0xff] %vm7615_vm7, %v3180_v6  ;;  %v4902_v52 = vadd.f32 %v7387_v31, %v4450_v55  ;;  %v4940_v53 = vadd.f32 %v7357_v57, %v4901_v30  ;;  %vm7631_vm7 = vmmov %vm7628_vm0 }
 0x211   : > { %v4938_v60 = vadd.f32 %v7357_v57, %v4899_v58  ;;  %v4900_v54 = vadd.f32 %v7370_v22, %v4442_v45  ;;  %v7438_v43 = vpop.f32.mrb[16].mxu1 }
 0x212   : > { %v4941_v39 = vadd.f32 %v7357_v57, %v4902_v52  ;;  %4972 = vst.msk [vmem:[%s7365_s20 + $0x50] sm:$0xff] %vm7616_vm2, %v4940_v53  ;;  %v4812_v27 = vpop.f32.mrb[17].mxu1 }
 0x213   : > { %v3358_v20 = vpop.permute.xlu0 %3357  ;;  %4970 = vst.msk [vmem:[%s7365_s20 + $0x40] sm:$0xff] %vm7618_vm8, %v4938_v60  ;;  %v4939_v48 = vadd.f32 %v7357_v57, %v4900_v54  ;;  %vm7634_vm8 = vmmov %vm7628_vm0 }
 0x214   : > { %3392 = vst.msk [vmem:[#allocation3 + $0x70] sm:$0xff] %vm3377_vm9, %v3358_v20 }
 0x215   : > { %v2861_v4 = vpop.permute.xlu1 %2860  ;;  %4973 = vst.msk [vmem:[%s7365_s20 + $0x58] sm:$0xff] %vm7619_vm13, %v4941_v39  ;;  %v5597_v22 = vpop.f32.mrb[18].mxu1  ;;  %vm7635_vm13 = vmmov %vm7628_vm0 }
 0x216   : > { %2894 = vst.msk [vmem:[#allocation3 + $0x78] sm:$0xff] %vm7617_vm12, %v2861_v4  ;;  %v4822_v10 = vpop.f32.mrb[19].mxu1  ;;  %vm7633_vm12 = vmmov %vm7628_vm0 }
 0x217   : > { %4971 = vst.msk [vmem:[%s7365_s20 + $0x48] sm:$0xff] %vm7620_vm14, %v4939_v48  ;;  %vm7636_vm14 = vmmov %vm7628_vm0 }
 0x219   : > { %v3182_v37 = vpop.permute.xlu1 %3181 }
 0x21a   : > { %3215 = vst.msk [vmem:[#allocation3 + $0x78] sm:$0xff] %vm7621_vm6, %v3182_v37  ;;  %vm7637_vm6 = vmmov %vm7628_vm0 }
 0x21c   : > { %v3903_v34 = vpop.permute.xlu0 %3902 }
 0x21d   : > { %v3360_v62 = vpop.permute.xlu1 %3359  ;;  %3937 = vst.msk [vmem:[#allocation3 + $0x70] sm:$0xff] %vm3922_vm10, %v3903_v34 }
 0x21e   : > { %3393 = vst.msk [vmem:[#allocation3 + $0x78] sm:$0xff] %vm3377_vm9, %v3360_v62  ;;  %vm7623_vm9 = vmmov %vm7616_vm2 }
 0x220   : > { %v4224_v7 = vpop.permute.xlu0 %4223 }
 0x221   : > { %v3905_v40 = vpop.permute.xlu1 %3904  ;;  %4258 = vst.msk [vmem:[#allocation3 + $0x70] sm:$0xff] %vm4243_vm11, %v4224_v7  ;;  %v7454_v56 = vpop.f32.mrb[20].mxu1 }
 0x222   : > { %3938 = vst.msk [vmem:[#allocation3 + $0x78] sm:$0xff] %vm3922_vm10, %v3905_v40  ;;  %v4832_v15 = vpop.f32.mrb[21].mxu1  ;;  %vm7624_vm10 = vmmov %vm7616_vm2 }
 0x225   : > { %v4226_v42 = vpop.permute.xlu1 %4225 }
 0x226   : > { %4259 = vst.msk [vmem:[#allocation3 + $0x78] sm:$0xff] %vm4243_vm11, %v4226_v42  ;;  %vm7625_vm11 = vmmov %vm7616_vm2 }
 0x228   : > { %v4274_v31 = vld [vmem:[#allocation3 + $0x70] sm:$0xff] }
 0x229   : > { %5562 = vmatprep.mubr.msk.bf16.mxu0 %vm4319_vm5, %v4274_v31 }
 0x22a   : > { %v5603_v28 = vpop.f32.mrb[22].mxu1 }
 0x22b   : > { %v4842_v13 = vpop.f32.mrb[23].mxu1 }
 0x22d   : > { %v4275_v44 = vld [vmem:[#allocation3 + $0x78] sm:$0xff] }
 0x22e   : > { %5563 = vmatmul.mubr.msk.bf16.gmra.mrb[28].mxu0 %vm4319_vm5, %v4275_v44  ;;  %vm7622_vm5 = vmmov %vm7616_vm2 }
 0x22f   : > { %vm7632_vm2 = vmmov %vm7628_vm0 }
 0x23d   : > { %v5548_v8 = vpop.f32.mrb[12].mxu0 }
 0x23e   : > { %v4463_v63 = vadd.f32 %v5548_v8, %v7349_v16  ;;  %v4454_v23 = vpop.f32.mrb[13].mxu0 }
 0x23f   : > { %v4455_v18 = vadd.f32 %v7349_v16, %v4454_v23  ;;  %v5549_v26 = vpop.f32.mrb[14].mxu0 }
 0x240   : > { %v4466_v33 = vadd.f32 %v5549_v26, %v7349_v16  ;;  %v4905_v49 = vadd.f32 %v4802_v59, %v4463_v63  ;;  %v4457_v12 = vpop.f32.mrb[15].mxu0 }
 0x241   : > { %v4903_v5 = vadd.f32 %v7416_v36, %v4455_v18  ;;  %v4458_v46 = vadd.f32 %v7349_v16, %v4457_v12 }
 0x242   : > { %v4906_v61 = vadd.f32 %v7420_v9, %v4466_v33  ;;  %v4944_v21 = vadd.f32 %v7357_v57, %v4905_v49 }
 0x243   : > { %v4942_v38 = vadd.f32 %v7357_v57, %v4903_v5  ;;  %v4904_v29 = vadd.f32 %v7414_v0, %v4458_v46 }
 0x244   : > { %v4945_v32 = vadd.f32 %v7357_v57, %v4906_v61  ;;  %4976 = vst.msk [vmem:[%s7365_s20 + $0x70] sm:$0xff] %vm7622_vm5, %v4944_v21  ;;  %vm7638_vm5 = vmmov %vm7628_vm0 }
 0x245   : > { %4974 = vst.msk [vmem:[%s7365_s20 + $0x60] sm:$0xff] %vm7623_vm9, %v4942_v38  ;;  %v4943_v17 = vadd.f32 %v7357_v57, %v4904_v29  ;;  %vm7639_vm9 = vmmov %vm7628_vm0 }
 0x246   : > { %4977 = vst.msk [vmem:[%s7365_s20 + $0x78] sm:$0xff] %vm7624_vm10, %v4945_v32  ;;  %vm7640_vm10 = vmmov %vm7628_vm0 }
 0x247   : > { %4975 = vst.msk [vmem:[%s7365_s20 + $0x68] sm:$0xff] %vm7625_vm11, %v4943_v17  ;;  %vm7641_vm11 = vmmov %vm7628_vm0 }
 0x255   : > { %v5606_v35 = vpop.f32.mrb[24].mxu1 }
 0x256   : > { %v4852_v2 = vpop.f32.mrb[25].mxu1 }
 0x259   : > { %v5609_v50 = vpop.f32.mrb[26].mxu1 }
 0x25a   : > { %v4862_v1 = vpop.f32.mrb[27].mxu1 }
 0x274   : > { %v5552_v36 = vpop.f32.mrb[16].mxu0 }
 0x275   : > { %v4479_v0 = vadd.f32 %v5552_v36, %v7349_v16  ;;  %v4470_v19 = vpop.f32.mrb[17].mxu0 }
 0x276   : > { %v4471_v9 = vadd.f32 %v7349_v16, %v4470_v19  ;;  %v5553_v59 = vpop.f32.mrb[18].mxu0 }
 0x277   : > { %v4482_v14 = vadd.f32 %v5553_v59, %v7349_v16  ;;  %v4909_v51 = vadd.f32 %v4822_v10, %v4479_v0  ;;  %v4473_v24 = vpop.f32.mrb[19].mxu0  ;;  %v5612_v47 = vpop.f32.mrb[28].mxu1 }
 0x278   : > { %v4907_v6 = vadd.f32 %v4812_v27, %v4471_v9  ;;  %v4474_v11 = vadd.f32 %v7349_v16, %v4473_v24  ;;  %v4872_v45 = vpop.f32.mrb[29].mxu1 }
 0x279   : > { %v4910_v25 = vadd.f32 %v5597_v22, %v4482_v14  ;;  %v4948_v41 = vadd.f32 %v7357_v57, %v4909_v51 }
 0x27a   : > { %v4946_v3 = vadd.f32 %v7357_v57, %v4907_v6  ;;  %v4908_v55 = vadd.f32 %v7438_v43, %v4474_v11 }
 0x27b   : > { %v4949_v30 = vadd.f32 %v7357_v57, %v4910_v25  ;;  %4980 = vst.msk [vmem:[%s7365_s20 + $0x90] sm:$0xff] %vm7626_vm4, %v4948_v41 }
 0x27c   : > { %4978 = vst.msk [vmem:[%s7365_s20 + $0x80] sm:$0xff] %vm7627_vm15, %v4946_v3  ;;  %v4947_v58 = vadd.f32 %v7357_v57, %v4908_v55 }
 0x27d   : > { %4981 = vst.msk [vmem:[%s7365_s20 + $0x98] sm:$0xff] %vm7628_vm0, %v4949_v30 }
 0x27e   : > { %4979 = vst.msk [vmem:[%s7365_s20 + $0x88] sm:$0xff] %vm7629_vm3, %v4947_v58  ;;  %v5615_v20 = vpop.f32.mrb[30].mxu1 }
 0x27f   : > { %v4882_v52 = vpop.f32.mrb[31].mxu1 }
 0x2a1   : > { %v5556_v53 = vpop.f32.mrb[20].mxu0 }
 0x2a2   : > { %v4495_v60 = vadd.f32 %v5556_v53, %v7349_v16  ;;  %v4486_v54 = vpop.f32.mrb[21].mxu0 }
 0x2a3   : > { %v4487_v4 = vadd.f32 %v7349_v16, %v4486_v54  ;;  %v5557_v39 = vpop.f32.mrb[22].mxu0 }
 0x2a4   : > { %v4498_v43 = vadd.f32 %v5557_v39, %v7349_v16  ;;  %v4913_v48 = vadd.f32 %v4842_v13, %v4495_v60  ;;  %v4489_v27 = vpop.f32.mrb[23].mxu0 }
 0x2a5   : > { %v4911_v37 = vadd.f32 %v4832_v15, %v4487_v4  ;;  %v4490_v22 = vadd.f32 %v7349_v16, %v4489_v27 }
 0x2a6   : > { %v4914_v10 = vadd.f32 %v5603_v28, %v4498_v43  ;;  %v4952_v34 = vadd.f32 %v7357_v57, %v4913_v48 }
 0x2a7   : > { %v4950_v62 = vadd.f32 %v7357_v57, %v4911_v37  ;;  %v4912_v7 = vadd.f32 %v7454_v56, %v4490_v22 }
 0x2a8   : > { %v4953_v40 = vadd.f32 %v7357_v57, %v4914_v10  ;;  %4984 = vst.msk [vmem:[%s7365_s20 + $0xb0] sm:$0xff] %vm7630_vm1, %v4952_v34 }
 0x2a9   : > { %4982 = vst.msk [vmem:[%s7365_s20 + $0xa0] sm:$0xff] %vm7631_vm7, %v4950_v62  ;;  %v4951_v42 = vadd.f32 %v7357_v57, %v4912_v7 }
 0x2aa   : > { %4985 = vst.msk [vmem:[%s7365_s20 + $0xb8] sm:$0xff] %vm7632_vm2, %v4953_v40 }
 0x2ab   : > { %4983 = vst.msk [vmem:[%s7365_s20 + $0xa8] sm:$0xff] %vm7633_vm12, %v4951_v42 }
 0x2d2   : > { %v5560_v31 = vpop.f32.mrb[24].mxu0 }
 0x2d3   : > { %v4511_v15 = vadd.f32 %v5560_v31, %v7349_v16  ;;  %v4502_v44 = vpop.f32.mrb[25].mxu0 }
 0x2d4   : > { %v4503_v56 = vadd.f32 %v7349_v16, %v4502_v44  ;;  %v5561_v28 = vpop.f32.mrb[26].mxu0 }
 0x2d5   : > { %v4514_v13 = vadd.f32 %v5561_v28, %v7349_v16  ;;  %v4917_v8 = vadd.f32 %v4862_v1, %v4511_v15  ;;  %v4505_v63 = vpop.f32.mrb[27].mxu0 }
 0x2d6   : > { %v4915_v23 = vadd.f32 %v4852_v2, %v4503_v56  ;;  %v4506_v18 = vadd.f32 %v7349_v16, %v4505_v63 }
 0x2d7   : > { %v4918_v26 = vadd.f32 %v5609_v50, %v4514_v13  ;;  %v4956_v33 = vadd.f32 %v7357_v57, %v4917_v8 }
 0x2d8   : > { %v4954_v49 = vadd.f32 %v7357_v57, %v4915_v23  ;;  %v4916_v12 = vadd.f32 %v5606_v35, %v4506_v18 }
 0x2d9   : > { %v4957_v5 = vadd.f32 %v7357_v57, %v4918_v26  ;;  %4988 = vst.msk [vmem:[%s7365_s20 + $0xd0] sm:$0xff] %vm7634_vm8, %v4956_v33 }
 0x2da   : > { %4986 = vst.msk [vmem:[%s7365_s20 + $0xc0] sm:$0xff] %vm7635_vm13, %v4954_v49  ;;  %v4955_v46 = vadd.f32 %v7357_v57, %v4916_v12 }
 0x2db   : > { %4989 = vst.msk [vmem:[%s7365_s20 + $0xd8] sm:$0xff] %vm7636_vm14, %v4957_v5 }
 0x2dc   : > { %4987 = vst.msk [vmem:[%s7365_s20 + $0xc8] sm:$0xff] %vm7637_vm6, %v4955_v46 }
 0x301   : > { %v5564_v61 = vpop.f32.mrb[28].mxu0 }
 0x302   : > { %v4527_v21 = vadd.f32 %v5564_v61, %v7349_v16  ;;  %v4518_v38 = vpop.f32.mrb[29].mxu0 }
 0x303   : > { %v4519_v29 = vadd.f32 %v7349_v16, %v4518_v38  ;;  %v5565_v32 = vpop.f32.mrb[30].mxu0 }
 0x304   : > { %v4530_v17 = vadd.f32 %v5565_v32, %v7349_v16  ;;  %v4921_v35 = vadd.f32 %v4882_v52, %v4527_v21  ;;  %v4521_v2 = vpop.f32.mrb[31].mxu0 }
 0x305   : > { %v4919_v50 = vadd.f32 %v4872_v45, %v4519_v29  ;;  %v4522_v1 = vadd.f32 %v7349_v16, %v4521_v2 }
 0x306   : > { %v4922_v36 = vadd.f32 %v5615_v20, %v4530_v17  ;;  %v4960_v0 = vadd.f32 %v7357_v57, %v4921_v35 }
 0x307   : > { %v4958_v19 = vadd.f32 %v7357_v57, %v4919_v50  ;;  %v4920_v9 = vadd.f32 %v5612_v47, %v4522_v1 }
 0x308   : > { %v4961_v59 = vadd.f32 %v7357_v57, %v4922_v36  ;;  %4992 = vst.msk [vmem:[%s7365_s20 + $0xf0] sm:$0xff] %vm7638_vm5, %v4960_v0 }
 0x309   : > { %4990 = vst.msk [vmem:[%s7365_s20 + $0xe0] sm:$0xff] %vm7639_vm9, %v4958_v19  ;;  %v4959_v14 = vadd.f32 %v7357_v57, %v4920_v9 }
 0x30a   : > { %4993 = vst.msk [vmem:[%s7365_s20 + $0xf8] sm:$0xff] %vm7640_vm10, %v4961_v59 }
 0x30b   : > { %4991 = vst.msk [vmem:[%s7365_s20 + $0xe8] sm:$0xff] %vm7641_vm11, %v4959_v14 }
 0x30c PF: > { %s18_s27 = sadd.s32 1, %s5699_s27  }
 0x30d   : > { %p15_p4 = scmp.ge.s32.totalorder %s18_s27, 4  }
 0x30f   :  { %17 = sbr.rel (!%p15_p4) target bundleno = 1 (0x1), region = 88 }

</bundles_post_ra>
